<compile_context>
chip_gen: v7x
topology: tpu7x:2x2x1
jax: 0.10.0
libtpu: 0.0.40
codegen_flags: <defaults>
</compile_context>

<pallas_src>
import numpy as np

import jax
import jax.numpy as jnp
from jax.experimental import pallas as pl
from jax.experimental.pallas import tpu as pltpu


_H = 16                                   # input spatial size of this synthetic run
_HP16, _HP8, _HP4 = _H + 2, _H // 2 + 2, _H // 4 + 2   # padded heights: 18, 10, 6
_LANES = 128


# ---------------------------------------------------------------------------
# Pallas kernel: full UNet forward for one batch element (matmuls only)
# ---------------------------------------------------------------------------
def _unet_kernel(x_ref, sh_ref, rescol_ref,
                 wl_in_ref, b_in_ref,
                 wl_d0_ref, b_d0_ref,
                 wl_d1_ref, b_d1_ref,
                 wl_u0_ref, b_u0_ref,
                 wl_u1_ref, b_u1_ref,
                 wl_out_ref, b_out_ref,
                 dr0_ref, dr1_ref, ur0_ref, ur1a_ref, ur1b_ref,
                 o_ref):
    f32 = jnp.float32
    bf16 = jnp.bfloat16

    sh_m1 = sh_ref[0]            # (128,128): selects column x-1 (dx = -1 tap)
    sh_p1 = sh_ref[1]            # (128,128): selects column x+1 (dx = +1 tap)

    def mm(a, b):                # bf16 x bf16 -> f32 accumulate on the MXU
        return jnp.dot(a, b, preferred_element_type=f32)

    def conv(a, wl_ref, b_ref, relu):
        # a: (Cin*Hp, 128) activation slab; wl_ref: (3, Cout*Hp, Cin*Hp); b_ref: (Cout*Hp, 1)
        a = a.astype(bf16)
        a_m1 = mm(a, sh_m1).astype(bf16)        # A[:, x-1]  (exact 0/1 selection)
        a_p1 = mm(a, sh_p1).astype(bf16)        # A[:, x+1]
        acc = mm(wl_ref[1], a) + mm(wl_ref[0], a_m1) + mm(wl_ref[2], a_p1)
        acc = acc + b_ref[...]                  # f32 bias epilogue
        if relu:
            acc = jnp.maximum(acc, 0.0)
        return acc                               # (Cout*Hp, 128) f32

    def resample(a, rrow_ref, rcol_idx):
        a = a.astype(bf16)
        t = mm(rrow_ref[...], a).astype(bf16)    # row (height/channel) selection
        return mm(t, rescol_ref[rcol_idx])       # column (width) selection, f32

    x0 = x_ref[0]                                          # (4*18, 128) bf16, clean ring

    # input_block: conv 4 -> 8 @ 16x16, ReLU
    z = conv(x0, wl_in_ref, b_in_ref, relu=True)           # (8*18, 128)

    # down block 0: nearest x0.5 (16->8), conv 8 -> 16, ReLU      [skip tensor]
    zd = resample(z, dr0_ref, 0)                           # (8*10, 128)
    d0 = conv(zd, wl_d0_ref, b_d0_ref, relu=True)          # (16*10, 128)

    # down block 1: nearest x0.5 (8->4), conv 16 -> 32, ReLU
    zd = resample(d0, dr1_ref, 1)                          # (16*6, 128)
    d1 = conv(zd, wl_d1_ref, b_d1_ref, relu=True)          # (32*6, 128)

    # TODO(synk): optional z_inject bottleneck concat is not wired into the fused kernel.

    # up block 0: nearest x2 (4->8), conv 32 -> 16, ReLU
    zu = resample(d1, ur0_ref, 2)                          # (32*10, 128)
    u0 = conv(zu, wl_u0_ref, b_u0_ref, relu=True)          # (16*10, 128)

    # up block 1: concat(u0, d0) on channels (folded into the split row matmul),
    #             nearest x2 (8->16), conv 32 -> 8, ReLU
    t = (mm(ur1a_ref[...], u0.astype(bf16)) +
         mm(ur1b_ref[...], d0.astype(bf16))).astype(bf16)  # (32*18, 128)
    zu = mm(t, rescol_ref[3])                              # (32*18, 128) f32
    u1 = conv(zu, wl_u1_ref, b_u1_ref, relu=True)          # (8*18, 128)

    # output block: conv 8 -> 3 @ 16x16, no activation.  The packed WL / SH
    # matrices have zero rows/cols for the padding ring, so u1's ring garbage
    # never reaches the interior of the output.
    y = conv(u1, wl_out_ref, b_out_ref, relu=False)        # (3*18, 128)

    o_ref[0] = y.astype(o_ref.dtype)


# ---------------------------------------------------------------------------
# Host-side packing of weights into the matmul-sandwich operands
# ---------------------------------------------------------------------------
def _band(hp, dy):
    # (hp, hp) with ones on the dy-diagonal; ring-row columns zeroed so a
    # garbage padding ring in the input behaves exactly like zero padding.
    m = np.eye(hp, k=dy, dtype=np.float32)
    m[:, 0] = 0.0
    m[:, hp - 1] = 0.0
    return m


def _pack_conv(w, b, hp):
    # w: (Cout, Cin, 3, 3) OIHW (PyTorch), b: (Cout,)
    cout, cin = int(w.shape[0]), int(w.shape[1])
    wls = []
    for dx in (-1, 0, 1):
        m = jnp.zeros((cout * hp, cin * hp), jnp.float32)
        for dy in (-1, 0, 1):
            m = m + jnp.kron(w[:, :, dy + 1, dx + 1], jnp.asarray(_band(hp, dy)))
        wls.append(m)
    wl = jnp.stack(wls, axis=0).astype(jnp.bfloat16)                 # (3, Cout*hp, Cin*hp)
    brow = jnp.kron(b, jnp.ones((hp,), jnp.float32)).reshape(cout * hp, 1)
    return wl, brow


def _shift_mats(w_max):
    # SH_dx[x_src, x_dst] = 1  iff  x_src = x_dst + dx and x_src is a real image column.
    sh = np.zeros((2, _LANES, _LANES), np.float32)
    for i, dx in enumerate((-1, 1)):
        for xx in range(_LANES):
            xs = xx + dx
            if 1 <= xs <= w_max:
                sh[i, xs, xx] = 1.0
    return jnp.asarray(sh, jnp.bfloat16)


def _resample_rows(c, h_in, h_out, up):
    hpi, hpo = h_in + 2, h_out + 2
    rm = np.zeros((hpo, hpi), np.float32)
    for yo in range(h_out):
        yi = yo // 2 if up else 2 * yo            # F.interpolate(mode='nearest')
        rm[yo + 1, yi + 1] = 1.0
    return np.kron(np.eye(c, dtype=np.float32), rm)


def _resample_cols(w_out, up):
    cm = np.zeros((_LANES, _LANES), np.float32)
    for xo in range(w_out):
        xi = xo // 2 if up else 2 * xo
        cm[xi + 1, xo + 1] = 1.0
    return cm


def pack_params(params):
    p = {}
    p["sh"] = _shift_mats(_H)
    p["rescol"] = jnp.asarray(
        np.stack([_resample_cols(8, False),      # down 16 -> 8
                  _resample_cols(4, False),      # down  8 -> 4
                  _resample_cols(8, True),       # up    4 -> 8
                  _resample_cols(16, True)]),    # up    8 -> 16
        jnp.bfloat16)
    p["wl_in"], p["b_in"] = _pack_conv(*params["in"], _HP16)
    p["wl_d0"], p["b_d0"] = _pack_conv(*params["down"][0], _HP8)
    p["wl_d1"], p["b_d1"] = _pack_conv(*params["down"][1], _HP4)
    p["wl_u0"], p["b_u0"] = _pack_conv(*params["up"][0], _HP8)
    p["wl_u1"], p["b_u1"] = _pack_conv(*params["up"][1], _HP16)
    p["wl_out"], p["b_out"] = _pack_conv(*params["out"], _HP16)
    p["dr0"] = jnp.asarray(_resample_rows(8, 16, 8, False), jnp.bfloat16)    # (80, 144)
    p["dr1"] = jnp.asarray(_resample_rows(16, 8, 4, False), jnp.bfloat16)    # (96, 160)
    p["ur0"] = jnp.asarray(_resample_rows(32, 4, 8, True), jnp.bfloat16)     # (320, 192)
    ur1 = _resample_rows(32, 8, 16, True)                                    # (576, 320)
    p["ur1a"] = jnp.asarray(ur1[:, : 16 * _HP8], jnp.bfloat16)   # skip-concat part 1 (u0)
    p["ur1b"] = jnp.asarray(ur1[:, 16 * _HP8:], jnp.bfloat16)    # skip-concat part 2 (d0)
    return p


# ---------------------------------------------------------------------------
# Deterministic parameter init (shapes follow the chosen block_config)
# ---------------------------------------------------------------------------
def _conv_params(key, cin, cout):
    kw, kb = jax.random.split(key)
    w = 0.1 * jax.random.normal(kw, (cout, cin, 3, 3), jnp.float32)   # OIHW (PyTorch)
    b = 0.05 * jax.random.normal(kb, (cout,), jnp.float32)
    return w, b


def init_params(key):
    ks = jax.random.split(key, 6)
    return {
        "in": _conv_params(ks[0], 4, 8),         # InputBlock: 4 -> 8
        "down": [
            _conv_params(ks[1], 8, 16),          # down block 0: 8 -> 16 (@ /2)
            _conv_params(ks[2], 16, 32),         # down block 1: 16 -> 32 (@ /4)
        ],
        "up": [
            _conv_params(ks[3], 32, 16),         # up block 0: 32 -> 16 (@ x2)
            _conv_params(ks[4], 32, 8),          # up block 1: concat skip -> 32 -> 8 (@ x4)
        ],
        "out": _conv_params(ks[5], 8, 3),        # OutputBlock: 8 -> 3
    }


# ---------------------------------------------------------------------------
# BaseUNet.forward (fully fused)
# ---------------------------------------------------------------------------
_ARG_ORDER = ("sh", "rescol",
              "wl_in", "b_in", "wl_d0", "b_d0", "wl_d1", "b_d1",
              "wl_u0", "b_u0", "wl_u1", "b_u1", "wl_out", "b_out",
              "dr0", "dr1", "ur0", "ur1a", "ur1b")


def base_unet_forward(packed, z_nchw, z_inject=None, return_intermediate=False):
    # TODO(synk): z_inject / return_intermediate are not wired through the fused kernel.
    assert z_inject is None
    assert not return_intermediate

    B, C, H, W = z_nchw.shape
    assert (C, H, W) == (4, _H, _H)

    # NCHW -> channel-stacked zero-padded-row slab (B, C*Hp, 128), clean ring.
    xp = jnp.pad(z_nchw, ((0, 0), (0, 0), (1, 1), (1, _LANES - W - 1)))
    x_slab = xp.reshape(B, C * _HP16, _LANES).astype(jnp.bfloat16)

    consts = [packed[k] for k in _ARG_ORDER]

    def _const_spec(a):
        zeros = (0,) * a.ndim
        return pl.BlockSpec(a.shape, lambda b, _z=zeros: _z)

    out_rows = 3 * _HP16
    out_slab = pl.pallas_call(
        _unet_kernel,
        out_shape=jax.ShapeDtypeStruct((B, out_rows, _LANES), jnp.float32),
        grid=(B,),
        in_specs=[pl.BlockSpec((1, C * _HP16, _LANES), lambda b: (b, 0, 0))]
                 + [_const_spec(a) for a in consts],
        out_specs=pl.BlockSpec((1, out_rows, _LANES), lambda b: (b, 0, 0)),
        compiler_params=pltpu.CompilerParams(dimension_semantics=("parallel",)),
    )(x_slab, *consts)

    # (B, 3*Hp, 128) -> (B, 3, 16, 16): drop the padding ring / unused lanes.
    out = out_slab.reshape(B, 3, _HP16, _LANES)[:, :, 1:H + 1, 1:W + 1]
    return out


if __name__ == "__main__":
    key = jax.random.PRNGKey(0)
    k_params, k_data = jax.random.split(key)

    params = init_params(k_params)
    packed = pack_params(params)
    z = jax.random.normal(k_data, (2, 4, 16, 16), jnp.float32)   # NCHW, like PyTorch

    fwd = jax.jit(base_unet_forward)
    out = fwd(packed, z)
    out = jax.block_until_ready(out)

    assert out.shape == (2, 3, 16, 16), out.shape
    assert out.dtype == jnp.float32
    assert bool(jnp.all(jnp.isfinite(out)))
    print("KERNEL_OK")
</pallas_src>

<mosaic_0001>
module attributes {stable_mosaic.version = 11 : i64} {
  func.func @_unet_kernel(%arg0: i32, %arg1: memref<1x72x128xbf16, #tpu.memory_space<vmem>>, %arg2: memref<2x128x128xbf16, #tpu.memory_space<vmem>>, %arg3: memref<4x128x128xbf16, #tpu.memory_space<vmem>>, %arg4: memref<3x144x72xbf16, #tpu.memory_space<vmem>>, %arg5: memref<144x1xf32, #tpu.memory_space<vmem>>, %arg6: memref<3x160x80xbf16, #tpu.memory_space<vmem>>, %arg7: memref<160x1xf32, #tpu.memory_space<vmem>>, %arg8: memref<3x192x96xbf16, #tpu.memory_space<vmem>>, %arg9: memref<192x1xf32, #tpu.memory_space<vmem>>, %arg10: memref<3x160x320xbf16, #tpu.memory_space<vmem>>, %arg11: memref<160x1xf32, #tpu.memory_space<vmem>>, %arg12: memref<3x144x576xbf16, #tpu.memory_space<vmem>>, %arg13: memref<144x1xf32, #tpu.memory_space<vmem>>, %arg14: memref<3x54x144xbf16, #tpu.memory_space<vmem>>, %arg15: memref<54x1xf32, #tpu.memory_space<vmem>>, %arg16: memref<80x144xbf16, #tpu.memory_space<vmem>>, %arg17: memref<96x160xbf16, #tpu.memory_space<vmem>>, %arg18: memref<320x192xbf16, #tpu.memory_space<vmem>>, %arg19: memref<576x160xbf16, #tpu.memory_space<vmem>>, %arg20: memref<576x160xbf16, #tpu.memory_space<vmem>>, %arg21: memref<1x54x128xf32, #tpu.memory_space<vmem>>) attributes {dimension_semantics = [#tpu.dimension_semantics<parallel>], iteration_bounds = array<i64: 2>, scalar_prefetch = 0 : i64, scratch_operands = 0 : i64, tpu.core_type = #tpu.core_type<tc>, window_params = [{transform_indices = @transform_0, window_bounds = array<i64: 1, 72, 128>}, {pipeline_mode = #tpu.pipeline_mode<synchronous>, transform_indices = @transform_1, window_bounds = array<i64: 2, 128, 128>}, {pipeline_mode = #tpu.pipeline_mode<synchronous>, transform_indices = @transform_2, window_bounds = array<i64: 4, 128, 128>}, {pipeline_mode = #tpu.pipeline_mode<synchronous>, transform_indices = @transform_3, window_bounds = array<i64: 3, 144, 72>}, {pipeline_mode = #tpu.pipeline_mode<synchronous>, transform_indices = @transform_4, window_bounds = array<i64: 144, 1>}, {pipeline_mode = #tpu.pipeline_mode<synchronous>, transform_indices = @transform_5, window_bounds = array<i64: 3, 160, 80>}, {pipeline_mode = #tpu.pipeline_mode<synchronous>, transform_indices = @transform_6, window_bounds = array<i64: 160, 1>}, {pipeline_mode = #tpu.pipeline_mode<synchronous>, transform_indices = @transform_7, window_bounds = array<i64: 3, 192, 96>}, {pipeline_mode = #tpu.pipeline_mode<synchronous>, transform_indices = @transform_8, window_bounds = array<i64: 192, 1>}, {pipeline_mode = #tpu.pipeline_mode<synchronous>, transform_indices = @transform_9, window_bounds = array<i64: 3, 160, 320>}, {pipeline_mode = #tpu.pipeline_mode<synchronous>, transform_indices = @transform_10, window_bounds = array<i64: 160, 1>}, {pipeline_mode = #tpu.pipeline_mode<synchronous>, transform_indices = @transform_11, window_bounds = array<i64: 3, 144, 576>}, {pipeline_mode = #tpu.pipeline_mode<synchronous>, transform_indices = @transform_12, window_bounds = array<i64: 144, 1>}, {pipeline_mode = #tpu.pipeline_mode<synchronous>, transform_indices = @transform_13, window_bounds = array<i64: 3, 54, 144>}, {pipeline_mode = #tpu.pipeline_mode<synchronous>, transform_indices = @transform_14, window_bounds = array<i64: 54, 1>}, {pipeline_mode = #tpu.pipeline_mode<synchronous>, transform_indices = @transform_15, window_bounds = array<i64: 80, 144>}, {pipeline_mode = #tpu.pipeline_mode<synchronous>, transform_indices = @transform_16, window_bounds = array<i64: 96, 160>}, {pipeline_mode = #tpu.pipeline_mode<synchronous>, transform_indices = @transform_17, window_bounds = array<i64: 320, 192>}, {pipeline_mode = #tpu.pipeline_mode<synchronous>, transform_indices = @transform_18, window_bounds = array<i64: 576, 160>}, {pipeline_mode = #tpu.pipeline_mode<synchronous>, transform_indices = @transform_19, window_bounds = array<i64: 576, 160>}, {transform_indices = @transform_20, window_bounds = array<i64: 1, 54, 128>}]} {
    %c0 = arith.constant 0 : index
    %c0_0 = arith.constant 0 : index
    %c0_1 = arith.constant 0 : index
    %0 = vector.load %arg2[%c0, %c0_0, %c0_1] : memref<2x128x128xbf16, #tpu.memory_space<vmem>>, vector<1x128x128xbf16>
    %1 = vector.shape_cast %0 : vector<1x128x128xbf16> to vector<128x128xbf16>
    %c1 = arith.constant 1 : index
    %c0_2 = arith.constant 0 : index
    %c0_3 = arith.constant 0 : index
    %2 = vector.load %arg2[%c1, %c0_2, %c0_3] : memref<2x128x128xbf16, #tpu.memory_space<vmem>>, vector<1x128x128xbf16>
    %3 = vector.shape_cast %2 : vector<1x128x128xbf16> to vector<128x128xbf16>
    %c0_4 = arith.constant 0 : index
    %c0_5 = arith.constant 0 : index
    %c0_6 = arith.constant 0 : index
    %4 = vector.load %arg1[%c0_4, %c0_5, %c0_6] : memref<1x72x128xbf16, #tpu.memory_space<vmem>>, vector<1x72x128xbf16>
    %5 = vector.shape_cast %4 : vector<1x72x128xbf16> to vector<72x128xbf16>
    %cst = arith.constant dense<0.000000e+00> : vector<72x128xf32>
    %6 = tpu.matmul %5, %1, %cst {dimension_numbers = #tpu.dot_dimension_numbers<[1], [0], [0], [1], [0, 0, 1, 1], [], []>} : vector<72x128xbf16>, vector<128x128xbf16>, vector<72x128xf32> -> vector<72x128xf32>
    %7 = arith.truncf %6 : vector<72x128xf32> to vector<72x128xbf16>
    %cst_7 = arith.constant dense<0.000000e+00> : vector<72x128xf32>
    %8 = tpu.matmul %5, %3, %cst_7 {dimension_numbers = #tpu.dot_dimension_numbers<[1], [0], [0], [1], [0, 0, 1, 1], [], []>} : vector<72x128xbf16>, vector<128x128xbf16>, vector<72x128xf32> -> vector<72x128xf32>
    %9 = arith.truncf %8 : vector<72x128xf32> to vector<72x128xbf16>
    %c1_8 = arith.constant 1 : index
    %c0_9 = arith.constant 0 : index
    %c0_10 = arith.constant 0 : index
    %10 = vector.load %arg4[%c1_8, %c0_9, %c0_10] : memref<3x144x72xbf16, #tpu.memory_space<vmem>>, vector<1x144x72xbf16>
    %11 = vector.shape_cast %10 : vector<1x144x72xbf16> to vector<144x72xbf16>
    %cst_11 = arith.constant dense<0.000000e+00> : vector<144x128xf32>
    %12 = tpu.matmul %11, %5, %cst_11 {dimension_numbers = #tpu.dot_dimension_numbers<[1], [0], [0], [1], [0, 0, 1, 1], [], []>} : vector<144x72xbf16>, vector<72x128xbf16>, vector<144x128xf32> -> vector<144x128xf32>
    %c0_12 = arith.constant 0 : index
    %c0_13 = arith.constant 0 : index
    %c0_14 = arith.constant 0 : index
    %13 = vector.load %arg4[%c0_12, %c0_13, %c0_14] : memref<3x144x72xbf16, #tpu.memory_space<vmem>>, vector<1x144x72xbf16>
    %14 = vector.shape_cast %13 : vector<1x144x72xbf16> to vector<144x72xbf16>
    %cst_15 = arith.constant dense<0.000000e+00> : vector<144x128xf32>
    %15 = tpu.matmul %14, %7, %cst_15 {dimension_numbers = #tpu.dot_dimension_numbers<[1], [0], [0], [1], [0, 0, 1, 1], [], []>} : vector<144x72xbf16>, vector<72x128xbf16>, vector<144x128xf32> -> vector<144x128xf32>
    %16 = arith.addf %12, %15 : vector<144x128xf32>
    %c2 = arith.constant 2 : index
    %c0_16 = arith.constant 0 : index
    %c0_17 = arith.constant 0 : index
    %17 = vector.load %arg4[%c2, %c0_16, %c0_17] : memref<3x144x72xbf16, #tpu.memory_space<vmem>>, vector<1x144x72xbf16>
    %18 = vector.shape_cast %17 : vector<1x144x72xbf16> to vector<144x72xbf16>
    %cst_18 = arith.constant dense<0.000000e+00> : vector<144x128xf32>
    %19 = tpu.matmul %18, %9, %cst_18 {dimension_numbers = #tpu.dot_dimension_numbers<[1], [0], [0], [1], [0, 0, 1, 1], [], []>} : vector<144x72xbf16>, vector<72x128xbf16>, vector<144x128xf32> -> vector<144x128xf32>
    %20 = arith.addf %16, %19 : vector<144x128xf32>
    %c0_19 = arith.constant 0 : index
    %c0_20 = arith.constant 0 : index
    %21 = vector.load %arg5[%c0_19, %c0_20] : memref<144x1xf32, #tpu.memory_space<vmem>>, vector<144x1xf32>
    %22 = vector.broadcast %21 : vector<144x1xf32> to vector<144x128xf32>
    %23 = arith.addf %20, %22 : vector<144x128xf32>
    %cst_21 = arith.constant 0.000000e+00 : f32
    %24 = vector.broadcast %cst_21 : f32 to vector<144x128xf32>
    %25 = arith.maximumf %23, %24 : vector<144x128xf32>
    %26 = arith.truncf %25 : vector<144x128xf32> to vector<144x128xbf16>
    %c0_22 = arith.constant 0 : index
    %c0_23 = arith.constant 0 : index
    %27 = vector.load %arg16[%c0_22, %c0_23] : memref<80x144xbf16, #tpu.memory_space<vmem>>, vector<80x144xbf16>
    %cst_24 = arith.constant dense<0.000000e+00> : vector<80x128xf32>
    %28 = tpu.matmul %27, %26, %cst_24 {dimension_numbers = #tpu.dot_dimension_numbers<[1], [0], [0], [1], [0, 0, 1, 1], [], []>} : vector<80x144xbf16>, vector<144x128xbf16>, vector<80x128xf32> -> vector<80x128xf32>
    %29 = arith.truncf %28 : vector<80x128xf32> to vector<80x128xbf16>
    %c0_25 = arith.constant 0 : index
    %c0_26 = arith.constant 0 : index
    %c0_27 = arith.constant 0 : index
    %30 = vector.load %arg3[%c0_25, %c0_26, %c0_27] : memref<4x128x128xbf16, #tpu.memory_space<vmem>>, vector<1x128x128xbf16>
    %31 = vector.shape_cast %30 : vector<1x128x128xbf16> to vector<128x128xbf16>
    %cst_28 = arith.constant dense<0.000000e+00> : vector<80x128xf32>
    %32 = tpu.matmul %29, %31, %cst_28 {dimension_numbers = #tpu.dot_dimension_numbers<[1], [0], [0], [1], [0, 0, 1, 1], [], []>} : vector<80x128xbf16>, vector<128x128xbf16>, vector<80x128xf32> -> vector<80x128xf32>
    %33 = arith.truncf %32 : vector<80x128xf32> to vector<80x128xbf16>
    %cst_29 = arith.constant dense<0.000000e+00> : vector<80x128xf32>
    %34 = tpu.matmul %33, %1, %cst_29 {dimension_numbers = #tpu.dot_dimension_numbers<[1], [0], [0], [1], [0, 0, 1, 1], [], []>} : vector<80x128xbf16>, vector<128x128xbf16>, vector<80x128xf32> -> vector<80x128xf32>
    %35 = arith.truncf %34 : vector<80x128xf32> to vector<80x128xbf16>
    %cst_30 = arith.constant dense<0.000000e+00> : vector<80x128xf32>
    %36 = tpu.matmul %33, %3, %cst_30 {dimension_numbers = #tpu.dot_dimension_numbers<[1], [0], [0], [1], [0, 0, 1, 1], [], []>} : vector<80x128xbf16>, vector<128x128xbf16>, vector<80x128xf32> -> vector<80x128xf32>
    %37 = arith.truncf %36 : vector<80x128xf32> to vector<80x128xbf16>
    %c1_31 = arith.constant 1 : index
    %c0_32 = arith.constant 0 : index
    %c0_33 = arith.constant 0 : index
    %38 = vector.load %arg6[%c1_31, %c0_32, %c0_33] : memref<3x160x80xbf16, #tpu.memory_space<vmem>>, vector<1x160x80xbf16>
    %39 = vector.shape_cast %38 : vector<1x160x80xbf16> to vector<160x80xbf16>
    %cst_34 = arith.constant dense<0.000000e+00> : vector<160x128xf32>
    %40 = tpu.matmul %39, %33, %cst_34 {dimension_numbers = #tpu.dot_dimension_numbers<[1], [0], [0], [1], [0, 0, 1, 1], [], []>} : vector<160x80xbf16>, vector<80x128xbf16>, vector<160x128xf32> -> vector<160x128xf32>
    %c0_35 = arith.constant 0 : index
    %c0_36 = arith.constant 0 : index
    %c0_37 = arith.constant 0 : index
    %41 = vector.load %arg6[%c0_35, %c0_36, %c0_37] : memref<3x160x80xbf16, #tpu.memory_space<vmem>>, vector<1x160x80xbf16>
    %42 = vector.shape_cast %41 : vector<1x160x80xbf16> to vector<160x80xbf16>
    %cst_38 = arith.constant dense<0.000000e+00> : vector<160x128xf32>
    %43 = tpu.matmul %42, %35, %cst_38 {dimension_numbers = #tpu.dot_dimension_numbers<[1], [0], [0], [1], [0, 0, 1, 1], [], []>} : vector<160x80xbf16>, vector<80x128xbf16>, vector<160x128xf32> -> vector<160x128xf32>
    %44 = arith.addf %40, %43 : vector<160x128xf32>
    %c2_39 = arith.constant 2 : index
    %c0_40 = arith.constant 0 : index
    %c0_41 = arith.constant 0 : index
    %45 = vector.load %arg6[%c2_39, %c0_40, %c0_41] : memref<3x160x80xbf16, #tpu.memory_space<vmem>>, vector<1x160x80xbf16>
    %46 = vector.shape_cast %45 : vector<1x160x80xbf16> to vector<160x80xbf16>
    %cst_42 = arith.constant dense<0.000000e+00> : vector<160x128xf32>
    %47 = tpu.matmul %46, %37, %cst_42 {dimension_numbers = #tpu.dot_dimension_numbers<[1], [0], [0], [1], [0, 0, 1, 1], [], []>} : vector<160x80xbf16>, vector<80x128xbf16>, vector<160x128xf32> -> vector<160x128xf32>
    %48 = arith.addf %44, %47 : vector<160x128xf32>
    %c0_43 = arith.constant 0 : index
    %c0_44 = arith.constant 0 : index
    %49 = vector.load %arg7[%c0_43, %c0_44] : memref<160x1xf32, #tpu.memory_space<vmem>>, vector<160x1xf32>
    %50 = vector.broadcast %49 : vector<160x1xf32> to vector<160x128xf32>
    %51 = arith.addf %48, %50 : vector<160x128xf32>
    %cst_45 = arith.constant 0.000000e+00 : f32
    %52 = vector.broadcast %cst_45 : f32 to vector<160x128xf32>
    %53 = arith.maximumf %51, %52 : vector<160x128xf32>
    %54 = arith.truncf %53 : vector<160x128xf32> to vector<160x128xbf16>
    %c0_46 = arith.constant 0 : index
    %c0_47 = arith.constant 0 : index
    %55 = vector.load %arg17[%c0_46, %c0_47] : memref<96x160xbf16, #tpu.memory_space<vmem>>, vector<96x160xbf16>
    %cst_48 = arith.constant dense<0.000000e+00> : vector<96x128xf32>
    %56 = tpu.matmul %55, %54, %cst_48 {dimension_numbers = #tpu.dot_dimension_numbers<[1], [0], [0], [1], [0, 0, 1, 1], [], []>} : vector<96x160xbf16>, vector<160x128xbf16>, vector<96x128xf32> -> vector<96x128xf32>
    %57 = arith.truncf %56 : vector<96x128xf32> to vector<96x128xbf16>
    %c1_49 = arith.constant 1 : index
    %c0_50 = arith.constant 0 : index
    %c0_51 = arith.constant 0 : index
    %58 = vector.load %arg3[%c1_49, %c0_50, %c0_51] : memref<4x128x128xbf16, #tpu.memory_space<vmem>>, vector<1x128x128xbf16>
    %59 = vector.shape_cast %58 : vector<1x128x128xbf16> to vector<128x128xbf16>
    %cst_52 = arith.constant dense<0.000000e+00> : vector<96x128xf32>
    %60 = tpu.matmul %57, %59, %cst_52 {dimension_numbers = #tpu.dot_dimension_numbers<[1], [0], [0], [1], [0, 0, 1, 1], [], []>} : vector<96x128xbf16>, vector<128x128xbf16>, vector<96x128xf32> -> vector<96x128xf32>
    %61 = arith.truncf %60 : vector<96x128xf32> to vector<96x128xbf16>
    %cst_53 = arith.constant dense<0.000000e+00> : vector<96x128xf32>
    %62 = tpu.matmul %61, %1, %cst_53 {dimension_numbers = #tpu.dot_dimension_numbers<[1], [0], [0], [1], [0, 0, 1, 1], [], []>} : vector<96x128xbf16>, vector<128x128xbf16>, vector<96x128xf32> -> vector<96x128xf32>
    %63 = arith.truncf %62 : vector<96x128xf32> to vector<96x128xbf16>
    %cst_54 = arith.constant dense<0.000000e+00> : vector<96x128xf32>
    %64 = tpu.matmul %61, %3, %cst_54 {dimension_numbers = #tpu.dot_dimension_numbers<[1], [0], [0], [1], [0, 0, 1, 1], [], []>} : vector<96x128xbf16>, vector<128x128xbf16>, vector<96x128xf32> -> vector<96x128xf32>
    %65 = arith.truncf %64 : vector<96x128xf32> to vector<96x128xbf16>
    %c1_55 = arith.constant 1 : index
    %c0_56 = arith.constant 0 : index
    %c0_57 = arith.constant 0 : index
    %66 = vector.load %arg8[%c1_55, %c0_56, %c0_57] : memref<3x192x96xbf16, #tpu.memory_space<vmem>>, vector<1x192x96xbf16>
    %67 = vector.shape_cast %66 : vector<1x192x96xbf16> to vector<192x96xbf16>
    %cst_58 = arith.constant dense<0.000000e+00> : vector<192x128xf32>
    %68 = tpu.matmul %67, %61, %cst_58 {dimension_numbers = #tpu.dot_dimension_numbers<[1], [0], [0], [1], [0, 0, 1, 1], [], []>} : vector<192x96xbf16>, vector<96x128xbf16>, vector<192x128xf32> -> vector<192x128xf32>
    %c0_59 = arith.constant 0 : index
    %c0_60 = arith.constant 0 : index
    %c0_61 = arith.constant 0 : index
    %69 = vector.load %arg8[%c0_59, %c0_60, %c0_61] : memref<3x192x96xbf16, #tpu.memory_space<vmem>>, vector<1x192x96xbf16>
    %70 = vector.shape_cast %69 : vector<1x192x96xbf16> to vector<192x96xbf16>
    %cst_62 = arith.constant dense<0.000000e+00> : vector<192x128xf32>
    %71 = tpu.matmul %70, %63, %cst_62 {dimension_numbers = #tpu.dot_dimension_numbers<[1], [0], [0], [1], [0, 0, 1, 1], [], []>} : vector<192x96xbf16>, vector<96x128xbf16>, vector<192x128xf32> -> vector<192x128xf32>
    %72 = arith.addf %68, %71 : vector<192x128xf32>
    %c2_63 = arith.constant 2 : index
    %c0_64 = arith.constant 0 : index
    %c0_65 = arith.constant 0 : index
    %73 = vector.load %arg8[%c2_63, %c0_64, %c0_65] : memref<3x192x96xbf16, #tpu.memory_space<vmem>>, vector<1x192x96xbf16>
    %74 = vector.shape_cast %73 : vector<1x192x96xbf16> to vector<192x96xbf16>
    %cst_66 = arith.constant dense<0.000000e+00> : vector<192x128xf32>
    %75 = tpu.matmul %74, %65, %cst_66 {dimension_numbers = #tpu.dot_dimension_numbers<[1], [0], [0], [1], [0, 0, 1, 1], [], []>} : vector<192x96xbf16>, vector<96x128xbf16>, vector<192x128xf32> -> vector<192x128xf32>
    %76 = arith.addf %72, %75 : vector<192x128xf32>
    %c0_67 = arith.constant 0 : index
    %c0_68 = arith.constant 0 : index
    %77 = vector.load %arg9[%c0_67, %c0_68] : memref<192x1xf32, #tpu.memory_space<vmem>>, vector<192x1xf32>
    %78 = vector.broadcast %77 : vector<192x1xf32> to vector<192x128xf32>
    %79 = arith.addf %76, %78 : vector<192x128xf32>
    %cst_69 = arith.constant 0.000000e+00 : f32
    %80 = vector.broadcast %cst_69 : f32 to vector<192x128xf32>
    %81 = arith.maximumf %79, %80 : vector<192x128xf32>
    %82 = arith.truncf %81 : vector<192x128xf32> to vector<192x128xbf16>
    %c0_70 = arith.constant 0 : index
    %c0_71 = arith.constant 0 : index
    %83 = vector.load %arg18[%c0_70, %c0_71] : memref<320x192xbf16, #tpu.memory_space<vmem>>, vector<320x192xbf16>
    %cst_72 = arith.constant dense<0.000000e+00> : vector<320x128xf32>
    %84 = tpu.matmul %83, %82, %cst_72 {dimension_numbers = #tpu.dot_dimension_numbers<[1], [0], [0], [1], [0, 0, 1, 1], [], []>} : vector<320x192xbf16>, vector<192x128xbf16>, vector<320x128xf32> -> vector<320x128xf32>
    %85 = arith.truncf %84 : vector<320x128xf32> to vector<320x128xbf16>
    %c2_73 = arith.constant 2 : index
    %c0_74 = arith.constant 0 : index
    %c0_75 = arith.constant 0 : index
    %86 = vector.load %arg3[%c2_73, %c0_74, %c0_75] : memref<4x128x128xbf16, #tpu.memory_space<vmem>>, vector<1x128x128xbf16>
    %87 = vector.shape_cast %86 : vector<1x128x128xbf16> to vector<128x128xbf16>
    %cst_76 = arith.constant dense<0.000000e+00> : vector<320x128xf32>
    %88 = tpu.matmul %85, %87, %cst_76 {dimension_numbers = #tpu.dot_dimension_numbers<[1], [0], [0], [1], [0, 0, 1, 1], [], []>} : vector<320x128xbf16>, vector<128x128xbf16>, vector<320x128xf32> -> vector<320x128xf32>
    %89 = arith.truncf %88 : vector<320x128xf32> to vector<320x128xbf16>
    %cst_77 = arith.constant dense<0.000000e+00> : vector<320x128xf32>
    %90 = tpu.matmul %89, %1, %cst_77 {dimension_numbers = #tpu.dot_dimension_numbers<[1], [0], [0], [1], [0, 0, 1, 1], [], []>} : vector<320x128xbf16>, vector<128x128xbf16>, vector<320x128xf32> -> vector<320x128xf32>
    %91 = arith.truncf %90 : vector<320x128xf32> to vector<320x128xbf16>
    %cst_78 = arith.constant dense<0.000000e+00> : vector<320x128xf32>
    %92 = tpu.matmul %89, %3, %cst_78 {dimension_numbers = #tpu.dot_dimension_numbers<[1], [0], [0], [1], [0, 0, 1, 1], [], []>} : vector<320x128xbf16>, vector<128x128xbf16>, vector<320x128xf32> -> vector<320x128xf32>
    %93 = arith.truncf %92 : vector<320x128xf32> to vector<320x128xbf16>
    %c1_79 = arith.constant 1 : index
    %c0_80 = arith.constant 0 : index
    %c0_81 = arith.constant 0 : index
    %94 = vector.load %arg10[%c1_79, %c0_80, %c0_81] : memref<3x160x320xbf16, #tpu.memory_space<vmem>>, vector<1x160x320xbf16>
    %95 = vector.shape_cast %94 : vector<1x160x320xbf16> to vector<160x320xbf16>
    %cst_82 = arith.constant dense<0.000000e+00> : vector<160x128xf32>
    %96 = tpu.matmul %95, %89, %cst_82 {dimension_numbers = #tpu.dot_dimension_numbers<[1], [0], [0], [1], [0, 0, 1, 1], [], []>} : vector<160x320xbf16>, vector<320x128xbf16>, vector<160x128xf32> -> vector<160x128xf32>
    %c0_83 = arith.constant 0 : index
    %c0_84 = arith.constant 0 : index
    %c0_85 = arith.constant 0 : index
    %97 = vector.load %arg10[%c0_83, %c0_84, %c0_85] : memref<3x160x320xbf16, #tpu.memory_space<vmem>>, vector<1x160x320xbf16>
    %98 = vector.shape_cast %97 : vector<1x160x320xbf16> to vector<160x320xbf16>
    %cst_86 = arith.constant dense<0.000000e+00> : vector<160x128xf32>
    %99 = tpu.matmul %98, %91, %cst_86 {dimension_numbers = #tpu.dot_dimension_numbers<[1], [0], [0], [1], [0, 0, 1, 1], [], []>} : vector<160x320xbf16>, vector<320x128xbf16>, vector<160x128xf32> -> vector<160x128xf32>
    %100 = arith.addf %96, %99 : vector<160x128xf32>
    %c2_87 = arith.constant 2 : index
    %c0_88 = arith.constant 0 : index
    %c0_89 = arith.constant 0 : index
    %101 = vector.load %arg10[%c2_87, %c0_88, %c0_89] : memref<3x160x320xbf16, #tpu.memory_space<vmem>>, vector<1x160x320xbf16>
    %102 = vector.shape_cast %101 : vector<1x160x320xbf16> to vector<160x320xbf16>
    %cst_90 = arith.constant dense<0.000000e+00> : vector<160x128xf32>
    %103 = tpu.matmul %102, %93, %cst_90 {dimension_numbers = #tpu.dot_dimension_numbers<[1], [0], [0], [1], [0, 0, 1, 1], [], []>} : vector<160x320xbf16>, vector<320x128xbf16>, vector<160x128xf32> -> vector<160x128xf32>
    %104 = arith.addf %100, %103 : vector<160x128xf32>
    %c0_91 = arith.constant 0 : index
    %c0_92 = arith.constant 0 : index
    %105 = vector.load %arg11[%c0_91, %c0_92] : memref<160x1xf32, #tpu.memory_space<vmem>>, vector<160x1xf32>
    %106 = vector.broadcast %105 : vector<160x1xf32> to vector<160x128xf32>
    %107 = arith.addf %104, %106 : vector<160x128xf32>
    %cst_93 = arith.constant 0.000000e+00 : f32
    %108 = vector.broadcast %cst_93 : f32 to vector<160x128xf32>
    %109 = arith.maximumf %107, %108 : vector<160x128xf32>
    %c0_94 = arith.constant 0 : index
    %c0_95 = arith.constant 0 : index
    %110 = vector.load %arg19[%c0_94, %c0_95] : memref<576x160xbf16, #tpu.memory_space<vmem>>, vector<576x160xbf16>
    %111 = arith.truncf %109 : vector<160x128xf32> to vector<160x128xbf16>
    %cst_96 = arith.constant dense<0.000000e+00> : vector<576x128xf32>
    %112 = tpu.matmul %110, %111, %cst_96 {dimension_numbers = #tpu.dot_dimension_numbers<[1], [0], [0], [1], [0, 0, 1, 1], [], []>} : vector<576x160xbf16>, vector<160x128xbf16>, vector<576x128xf32> -> vector<576x128xf32>
    %c0_97 = arith.constant 0 : index
    %c0_98 = arith.constant 0 : index
    %113 = vector.load %arg20[%c0_97, %c0_98] : memref<576x160xbf16, #tpu.memory_space<vmem>>, vector<576x160xbf16>
    %114 = arith.truncf %53 : vector<160x128xf32> to vector<160x128xbf16>
    %cst_99 = arith.constant dense<0.000000e+00> : vector<576x128xf32>
    %115 = tpu.matmul %113, %114, %cst_99 {dimension_numbers = #tpu.dot_dimension_numbers<[1], [0], [0], [1], [0, 0, 1, 1], [], []>} : vector<576x160xbf16>, vector<160x128xbf16>, vector<576x128xf32> -> vector<576x128xf32>
    %116 = arith.addf %112, %115 : vector<576x128xf32>
    %117 = arith.truncf %116 : vector<576x128xf32> to vector<576x128xbf16>
    %c3 = arith.constant 3 : index
    %c0_100 = arith.constant 0 : index
    %c0_101 = arith.constant 0 : index
    %118 = vector.load %arg3[%c3, %c0_100, %c0_101] : memref<4x128x128xbf16, #tpu.memory_space<vmem>>, vector<1x128x128xbf16>
    %119 = vector.shape_cast %118 : vector<1x128x128xbf16> to vector<128x128xbf16>
    %cst_102 = arith.constant dense<0.000000e+00> : vector<576x128xf32>
    %120 = tpu.matmul %117, %119, %cst_102 {dimension_numbers = #tpu.dot_dimension_numbers<[1], [0], [0], [1], [0, 0, 1, 1], [], []>} : vector<576x128xbf16>, vector<128x128xbf16>, vector<576x128xf32> -> vector<576x128xf32>
    %121 = arith.truncf %120 : vector<576x128xf32> to vector<576x128xbf16>
    %cst_103 = arith.constant dense<0.000000e+00> : vector<576x128xf32>
    %122 = tpu.matmul %121, %1, %cst_103 {dimension_numbers = #tpu.dot_dimension_numbers<[1], [0], [0], [1], [0, 0, 1, 1], [], []>} : vector<576x128xbf16>, vector<128x128xbf16>, vector<576x128xf32> -> vector<576x128xf32>
    %123 = arith.truncf %122 : vector<576x128xf32> to vector<576x128xbf16>
    %cst_104 = arith.constant dense<0.000000e+00> : vector<576x128xf32>
    %124 = tpu.matmul %121, %3, %cst_104 {dimension_numbers = #tpu.dot_dimension_numbers<[1], [0], [0], [1], [0, 0, 1, 1], [], []>} : vector<576x128xbf16>, vector<128x128xbf16>, vector<576x128xf32> -> vector<576x128xf32>
    %125 = arith.truncf %124 : vector<576x128xf32> to vector<576x128xbf16>
    %c1_105 = arith.constant 1 : index
    %c0_106 = arith.constant 0 : index
    %c0_107 = arith.constant 0 : index
    %126 = vector.load %arg12[%c1_105, %c0_106, %c0_107] : memref<3x144x576xbf16, #tpu.memory_space<vmem>>, vector<1x144x576xbf16>
    %127 = vector.shape_cast %126 : vector<1x144x576xbf16> to vector<144x576xbf16>
    %cst_108 = arith.constant dense<0.000000e+00> : vector<144x128xf32>
    %128 = tpu.matmul %127, %121, %cst_108 {dimension_numbers = #tpu.dot_dimension_numbers<[1], [0], [0], [1], [0, 0, 1, 1], [], []>} : vector<144x576xbf16>, vector<576x128xbf16>, vector<144x128xf32> -> vector<144x128xf32>
    %c0_109 = arith.constant 0 : index
    %c0_110 = arith.constant 0 : index
    %c0_111 = arith.constant 0 : index
    %129 = vector.load %arg12[%c0_109, %c0_110, %c0_111] : memref<3x144x576xbf16, #tpu.memory_space<vmem>>, vector<1x144x576xbf16>
    %130 = vector.shape_cast %129 : vector<1x144x576xbf16> to vector<144x576xbf16>
    %cst_112 = arith.constant dense<0.000000e+00> : vector<144x128xf32>
    %131 = tpu.matmul %130, %123, %cst_112 {dimension_numbers = #tpu.dot_dimension_numbers<[1], [0], [0], [1], [0, 0, 1, 1], [], []>} : vector<144x576xbf16>, vector<576x128xbf16>, vector<144x128xf32> -> vector<144x128xf32>
    %132 = arith.addf %128, %131 : vector<144x128xf32>
    %c2_113 = arith.constant 2 : index
    %c0_114 = arith.constant 0 : index
    %c0_115 = arith.constant 0 : index
    %133 = vector.load %arg12[%c2_113, %c0_114, %c0_115] : memref<3x144x576xbf16, #tpu.memory_space<vmem>>, vector<1x144x576xbf16>
    %134 = vector.shape_cast %133 : vector<1x144x576xbf16> to vector<144x576xbf16>
    %cst_116 = arith.constant dense<0.000000e+00> : vector<144x128xf32>
    %135 = tpu.matmul %134, %125, %cst_116 {dimension_numbers = #tpu.dot_dimension_numbers<[1], [0], [0], [1], [0, 0, 1, 1], [], []>} : vector<144x576xbf16>, vector<576x128xbf16>, vector<144x128xf32> -> vector<144x128xf32>
    %136 = arith.addf %132, %135 : vector<144x128xf32>
    %c0_117 = arith.constant 0 : index
    %c0_118 = arith.constant 0 : index
    %137 = vector.load %arg13[%c0_117, %c0_118] : memref<144x1xf32, #tpu.memory_space<vmem>>, vector<144x1xf32>
    %138 = vector.broadcast %137 : vector<144x1xf32> to vector<144x128xf32>
    %139 = arith.addf %136, %138 : vector<144x128xf32>
    %cst_119 = arith.constant 0.000000e+00 : f32
    %140 = vector.broadcast %cst_119 : f32 to vector<144x128xf32>
    %141 = arith.maximumf %139, %140 : vector<144x128xf32>
    %142 = arith.truncf %141 : vector<144x128xf32> to vector<144x128xbf16>
    %cst_120 = arith.constant dense<0.000000e+00> : vector<144x128xf32>
    %143 = tpu.matmul %142, %1, %cst_120 {dimension_numbers = #tpu.dot_dimension_numbers<[1], [0], [0], [1], [0, 0, 1, 1], [], []>} : vector<144x128xbf16>, vector<128x128xbf16>, vector<144x128xf32> -> vector<144x128xf32>
    %144 = arith.truncf %143 : vector<144x128xf32> to vector<144x128xbf16>
    %cst_121 = arith.constant dense<0.000000e+00> : vector<144x128xf32>
    %145 = tpu.matmul %142, %3, %cst_121 {dimension_numbers = #tpu.dot_dimension_numbers<[1], [0], [0], [1], [0, 0, 1, 1], [], []>} : vector<144x128xbf16>, vector<128x128xbf16>, vector<144x128xf32> -> vector<144x128xf32>
    %146 = arith.truncf %145 : vector<144x128xf32> to vector<144x128xbf16>
    %c1_122 = arith.constant 1 : index
    %c0_123 = arith.constant 0 : index
    %c0_124 = arith.constant 0 : index
    %147 = vector.load %arg14[%c1_122, %c0_123, %c0_124] : memref<3x54x144xbf16, #tpu.memory_space<vmem>>, vector<1x54x144xbf16>
    %148 = vector.shape_cast %147 : vector<1x54x144xbf16> to vector<54x144xbf16>
    %cst_125 = arith.constant dense<0.000000e+00> : vector<54x128xf32>
    %149 = tpu.matmul %148, %142, %cst_125 {dimension_numbers = #tpu.dot_dimension_numbers<[1], [0], [0], [1], [0, 0, 1, 1], [], []>} : vector<54x144xbf16>, vector<144x128xbf16>, vector<54x128xf32> -> vector<54x128xf32>
    %c0_126 = arith.constant 0 : index
    %c0_127 = arith.constant 0 : index
    %c0_128 = arith.constant 0 : index
    %150 = vector.load %arg14[%c0_126, %c0_127, %c0_128] : memref<3x54x144xbf16, #tpu.memory_space<vmem>>, vector<1x54x144xbf16>
    %151 = vector.shape_cast %150 : vector<1x54x144xbf16> to vector<54x144xbf16>
    %cst_129 = arith.constant dense<0.000000e+00> : vector<54x128xf32>
    %152 = tpu.matmul %151, %144, %cst_129 {dimension_numbers = #tpu.dot_dimension_numbers<[1], [0], [0], [1], [0, 0, 1, 1], [], []>} : vector<54x144xbf16>, vector<144x128xbf16>, vector<54x128xf32> -> vector<54x128xf32>
    %153 = arith.addf %149, %152 : vector<54x128xf32>
    %c2_130 = arith.constant 2 : index
    %c0_131 = arith.constant 0 : index
    %c0_132 = arith.constant 0 : index
    %154 = vector.load %arg14[%c2_130, %c0_131, %c0_132] : memref<3x54x144xbf16, #tpu.memory_space<vmem>>, vector<1x54x144xbf16>
    %155 = vector.shape_cast %154 : vector<1x54x144xbf16> to vector<54x144xbf16>
    %cst_133 = arith.constant dense<0.000000e+00> : vector<54x128xf32>
    %156 = tpu.matmul %155, %146, %cst_133 {dimension_numbers = #tpu.dot_dimension_numbers<[1], [0], [0], [1], [0, 0, 1, 1], [], []>} : vector<54x144xbf16>, vector<144x128xbf16>, vector<54x128xf32> -> vector<54x128xf32>
    %157 = arith.addf %153, %156 : vector<54x128xf32>
    %c0_134 = arith.constant 0 : index
    %c0_135 = arith.constant 0 : index
    %158 = vector.load %arg15[%c0_134, %c0_135] : memref<54x1xf32, #tpu.memory_space<vmem>>, vector<54x1xf32>
    %159 = vector.broadcast %158 : vector<54x1xf32> to vector<54x128xf32>
    %160 = arith.addf %157, %159 : vector<54x128xf32>
    %c0_136 = arith.constant 0 : index
    %c0_137 = arith.constant 0 : index
    %c0_138 = arith.constant 0 : index
    %161 = vector.load %arg21[%c0_136, %c0_137, %c0_138] : memref<1x54x128xf32, #tpu.memory_space<vmem>>, vector<1x54x128xf32>
    %162 = vector.shape_cast %161 : vector<1x54x128xf32> to vector<54x128xf32>
    %163 = vector.shape_cast %160 : vector<54x128xf32> to vector<1x54x128xf32>
    tpu.vector_store %arg21[%c0_136, %c0_137, %c0_138], %163 {strides = array<i32>} : memref<1x54x128xf32, #tpu.memory_space<vmem>>, vector<1x54x128xf32>,
    return
  }
  func.func @transform_0(%arg0: i32) -> (i32, i32, i32) {
    %c0_i32 = arith.constant 0 : i32
    %c0_i32_0 = arith.constant 0 : i32
    %c0_i32_1 = arith.constant 0 : i32
    return %arg0, %c0_i32, %c0_i32_0 : i32, i32, i32
  }
  func.func @transform_1(%arg0: i32) -> (i32, i32, i32) {
    %c0_i32 = arith.constant 0 : i32
    %c0_i32_0 = arith.constant 0 : i32
    %c0_i32_1 = arith.constant 0 : i32
    %c0_i32_2 = arith.constant 0 : i32
    return %c0_i32, %c0_i32_0, %c0_i32_1 : i32, i32, i32
  }
  func.func @transform_2(%arg0: i32) -> (i32, i32, i32) {
    %c0_i32 = arith.constant 0 : i32
    %c0_i32_0 = arith.constant 0 : i32
    %c0_i32_1 = arith.constant 0 : i32
    %c0_i32_2 = arith.constant 0 : i32
    return %c0_i32, %c0_i32_0, %c0_i32_1 : i32, i32, i32
  }
  func.func @transform_3(%arg0: i32) -> (i32, i32, i32) {
    %c0_i32 = arith.constant 0 : i32
    %c0_i32_0 = arith.constant 0 : i32
    %c0_i32_1 = arith.constant 0 : i32
    %c0_i32_2 = arith.constant 0 : i32
    return %c0_i32, %c0_i32_0, %c0_i32_1 : i32, i32, i32
  }
  func.func @transform_4(%arg0: i32) -> (i32, i32) {
    %c0_i32 = arith.constant 0 : i32
    %c0_i32_0 = arith.constant 0 : i32
    %c0_i32_1 = arith.constant 0 : i32
    return %c0_i32, %c0_i32_0 : i32, i32
  }
  func.func @transform_5(%arg0: i32) -> (i32, i32, i32) {
    %c0_i32 = arith.constant 0 : i32
    %c0_i32_0 = arith.constant 0 : i32
    %c0_i32_1 = arith.constant 0 : i32
    %c0_i32_2 = arith.constant 0 : i32
    return %c0_i32, %c0_i32_0, %c0_i32_1 : i32, i32, i32
  }
  func.func @transform_6(%arg0: i32) -> (i32, i32) {
    %c0_i32 = arith.constant 0 : i32
    %c0_i32_0 = arith.constant 0 : i32
    %c0_i32_1 = arith.constant 0 : i32
    return %c0_i32, %c0_i32_0 : i32, i32
  }
  func.func @transform_7(%arg0: i32) -> (i32, i32, i32) {
    %c0_i32 = arith.constant 0 : i32
    %c0_i32_0 = arith.constant 0 : i32
    %c0_i32_1 = arith.constant 0 : i32
    %c0_i32_2 = arith.constant 0 : i32
    return %c0_i32, %c0_i32_0, %c0_i32_1 : i32, i32, i32
  }
  func.func @transform_8(%arg0: i32) -> (i32, i32) {
    %c0_i32 = arith.constant 0 : i32
    %c0_i32_0 = arith.constant 0 : i32
    %c0_i32_1 = arith.constant 0 : i32
    return %c0_i32, %c0_i32_0 : i32, i32
  }
  func.func @transform_9(%arg0: i32) -> (i32, i32, i32) {
    %c0_i32 = arith.constant 0 : i32
    %c0_i32_0 = arith.constant 0 : i32
    %c0_i32_1 = arith.constant 0 : i32
    %c0_i32_2 = arith.constant 0 : i32
    return %c0_i32, %c0_i32_0, %c0_i32_1 : i32, i32, i32
  }
  func.func @transform_10(%arg0: i32) -> (i32, i32) {
    %c0_i32 = arith.constant 0 : i32
    %c0_i32_0 = arith.constant 0 : i32
    %c0_i32_1 = arith.constant 0 : i32
    return %c0_i32, %c0_i32_0 : i32, i32
  }
  func.func @transform_11(%arg0: i32) -> (i32, i32, i32) {
    %c0_i32 = arith.constant 0 : i32
    %c0_i32_0 = arith.constant 0 : i32
    %c0_i32_1 = arith.constant 0 : i32
    %c0_i32_2 = arith.constant 0 : i32
    return %c0_i32, %c0_i32_0, %c0_i32_1 : i32, i32, i32
  }
  func.func @transform_12(%arg0: i32) -> (i32, i32) {
    %c0_i32 = arith.constant 0 : i32
    %c0_i32_0 = arith.constant 0 : i32
    %c0_i32_1 = arith.constant 0 : i32
    return %c0_i32, %c0_i32_0 : i32, i32
  }
  func.func @transform_13(%arg0: i32) -> (i32, i32, i32) {
    %c0_i32 = arith.constant 0 : i32
    %c0_i32_0 = arith.constant 0 : i32
    %c0_i32_1 = arith.constant 0 : i32
    %c0_i32_2 = arith.constant 0 : i32
    return %c0_i32, %c0_i32_0, %c0_i32_1 : i32, i32, i32
  }
  func.func @transform_14(%arg0: i32) -> (i32, i32) {
    %c0_i32 = arith.constant 0 : i32
    %c0_i32_0 = arith.constant 0 : i32
    %c0_i32_1 = arith.constant 0 : i32
    return %c0_i32, %c0_i32_0 : i32, i32
  }
  func.func @transform_15(%arg0: i32) -> (i32, i32) {
    %c0_i32 = arith.constant 0 : i32
    %c0_i32_0 = arith.constant 0 : i32
    %c0_i32_1 = arith.constant 0 : i32
    return %c0_i32, %c0_i32_0 : i32, i32
  }
  func.func @transform_16(%arg0: i32) -> (i32, i32) {
    %c0_i32 = arith.constant 0 : i32
    %c0_i32_0 = arith.constant 0 : i32
    %c0_i32_1 = arith.constant 0 : i32
    return %c0_i32, %c0_i32_0 : i32, i32
  }
  func.func @transform_17(%arg0: i32) -> (i32, i32) {
    %c0_i32 = arith.constant 0 : i32
    %c0_i32_0 = arith.constant 0 : i32
    %c0_i32_1 = arith.constant 0 : i32
    return %c0_i32, %c0_i32_0 : i32, i32
  }
  func.func @transform_18(%arg0: i32) -> (i32, i32) {
    %c0_i32 = arith.constant 0 : i32
    %c0_i32_0 = arith.constant 0 : i32
    %c0_i32_1 = arith.constant 0 : i32
    return %c0_i32, %c0_i32_0 : i32, i32
  }
  func.func @transform_19(%arg0: i32) -> (i32, i32) {
    %c0_i32 = arith.constant 0 : i32
    %c0_i32_0 = arith.constant 0 : i32
    %c0_i32_1 = arith.constant 0 : i32
    return %c0_i32, %c0_i32_0 : i32, i32
  }
  func.func @transform_20(%arg0: i32) -> (i32, i32, i32) {
    %c0_i32 = arith.constant 0 : i32
    %c0_i32_0 = arith.constant 0 : i32
    %c0_i32_1 = arith.constant 0 : i32
    return %arg0, %c0_i32, %c0_i32_0 : i32, i32, i32
  }
}

</mosaic_0001>

<bundles_post_ra>
// kernel: base_unet_forward.1
= control target key start
LH: loop header
LB: loop body
LE: loop exit
PB: predicated region body
PF: predicated region fallthrough
CT: control target
= control target key end

     0   :  { %s22428_s0 = inlined_call_operand.vmem [shape: bf16[2,72,128], index: 0, kind: input, shape index: {}]   ;;  %s22429_s1 = inlined_call_operand.vmem [shape: bf16[2,128,128], index: 1, kind: input, shape index: {}]   ;;  %s22430_s2 = inlined_call_operand.vmem [shape: bf16[4,128,128], index: 2, kind: input, shape index: {}]   ;;  %s22431_s3 = inlined_call_operand.vmem [shape: bf16[3,144,72], index: 3, kind: input, shape index: {}]   ;;  %s22432_s4 = inlined_call_operand.vmem [shape: f32[144,1], index: 4, kind: input, shape index: {}]   ;;  %s22433_s5 = inlined_call_operand.vmem [shape: bf16[3,160,80], index: 5, kind: input, shape index: {}]   ;;  %s22434_s6 = inlined_call_operand.vmem [shape: f32[160,1], index: 6, kind: input, shape index: {}]   ;;  %s22435_s7 = inlined_call_operand.vmem [shape: bf16[3,192,96], index: 7, kind: input, shape index: {}]   ;;  %s22436_s8 = inlined_call_operand.vmem [shape: f32[192,1], index: 8, kind: input, shape index: {}]   ;;  %s22437_s9 = inlined_call_operand.vmem [shape: bf16[3,160,320], index: 9, kind: input, shape index: {}]   ;;  %s22438_s10 = inlined_call_operand.vmem [shape: f32[160,1], index: 10, kind: input, shape index: {}]   ;;  %s22439_s11 = inlined_call_operand.vmem [shape: bf16[3,144,576], index: 11, kind: input, shape index: {}]   ;;  %s22440_s12 = inlined_call_operand.vmem [shape: f32[144,1], index: 12, kind: input, shape index: {}]   ;;  %s22441_s13 = inlined_call_operand.vmem [shape: bf16[3,54,144], index: 13, kind: input, shape index: {}]   ;;  %s22442_s14 = inlined_call_operand.vmem [shape: f32[54,1], index: 14, kind: input, shape index: {}]   ;;  %s22443_s15 = inlined_call_operand.vmem [shape: bf16[80,144], index: 15, kind: input, shape index: {}]   ;;  %s22444_s16 = inlined_call_operand.vmem [shape: bf16[96,160], index: 16, kind: input, shape index: {}]   ;;  %s22445_s17 = inlined_call_operand.vmem [shape: bf16[320,192], index: 17, kind: input, shape index: {}]   ;;  %s22446_s18 = inlined_call_operand.vmem [shape: bf16[576,160], index: 18, kind: input, shape index: {}]   ;;  %s22447_s19 = inlined_call_operand.vmem [shape: bf16[576,160], index: 19, kind: input, shape index: {}]   ;;  %s22448_s20 = inlined_call_operand.vmem [shape: f32[2,54,128], index: 20, kind: output, shape index: {}]  }
   0x1   :  { %22470 = sst [smem:[#allocation13_spill]] %s22428_s0 }
   0x2   :  { %22471 = sst [smem:[#allocation14_spill]] %s22429_s1  ;;  %s17925_s1 = smov 0  }
   0x3   :  { %22472 = sst [smem:[#allocation15_spill]] %s22430_s2 }
   0x4   :  { %22473 = sst [smem:[#allocation16_spill]] %s22431_s3 }
   0x5   :  { %22474 = sst [smem:[#allocation17_spill]] %s22432_s4 }
   0x6 LB: > { %s12757_s22 = sadd.s32 4294967295, %s17815_s1   ;;  %p12761_p0 = scmp.ge.s32.totalorder %s17815_s1, 1  ;;  %s17815_s1 = sphi %s17925_s1, %s30_s1  }
   0x7   : > { %p562_p1 = scmp.lt.s32.totalorder %s17815_s1, 3 }
   0x9   : > { %p563_p2 = pnand %p12761_p0, %p562_p1 }
   0xb   : > { %566 = sbr.rel (%p563_p2) target bundleno = 5930 (0x172a), region = 100 }
  0x12   : > { %s22475_s2 = sld [smem:[#allocation14_spill]]  ;;  %v22454_v1 = vmov 0.0   ;;  %vm17818_vm0 = vmmov 0   ;;  %p620_p3 = scmp.lt.s32.totalorder %s12757_s22, 1  ;;  %v22456_v23 = vmov 0   ;;  %vm1061_vm1 = vcmask 1043456  }
  0x13   : > { %15249 = vmatprep.subr.bf16.mxu0 %v22454_v1  ;;  %15285 = vmatprep.subr.bf16.mxu1 %v22454_v1  ;;  %s22476_s30 = sld [smem:[#allocation13_spill]]  ;;  %s22477_s27 = sld [smem:[#allocation17_spill]]  ;;  %vm1033_vm2 = vcmask 588800   ;;  %v2829_v43 = vld [vmem:[%s22434_s6] sm:$0xff]  ;;  %v2831_v45 = vld [vmem:[%s22434_s6 + $0x10] sm:$0xff]  ;;  %v2830_v47 = vld [vmem:[%s22434_s6 + $0x8] sm:$0xff] }
  0x14   : > { %15265 = vmatprep.mubr.msk.bf16.mxu0 %vm17818_vm0, %v22454_v1  ;;  %15301 = vmatprep.mubr.msk.bf16.mxu1 %vm17818_vm0, %v22454_v1  ;;  %s22523_s22 = smov (!%p620_p3, %s12757_s22), 1  ;;  %s22478_s4 = sld [smem:[#allocation16_spill]]  ;;  %v2833_v48 = vld [vmem:[%s22434_s6 + $0x20] sm:$0xff]  ;;  %v2832_v49 = vld [vmem:[%s22434_s6 + $0x18] sm:$0xff]  ;;  %v2835_v50 = vld [vmem:[%s22434_s6 + $0x30] sm:$0xff]  ;;  %vm1775_vm3 = vcmask 130048  }
  0x15   : > { %s16933_s28 = smul.u32 36, %s22523_s22  ;;  %16946 = vset.pattern.permute.xlu0 %v22456_v23  ;;  %16947 = vset.pattern.permute.xlu1 %v22456_v23  ;;  %v2834_v52 = vld [vmem:[%s22434_s6 + $0x28] sm:$0xff]  ;;  %v2837_v53 = vld [vmem:[%s22434_s6 + $0x40] sm:$0xff]  ;;  %v2836_v54 = vld [vmem:[%s22434_s6 + $0x38] sm:$0xff]  ;;  %s22479_s3 = sld [smem:[#allocation15_spill]]  ;;  %vm2258_vm4 = vcmask 654336  }
  0x16   : > { %v2839_v55 = vld [vmem:[%s22434_s6 + $0x50] sm:$0xff]  ;;  %v2838_v57 = vld [vmem:[%s22434_s6 + $0x48] sm:$0xff]  ;;  %v2841_v58 = vld [vmem:[%s22434_s6 + $0x60] sm:$0xff]  ;;  %vm3065_vm5 = vcmask 261120   ;;  %vm3606_vm6 = vcmask 785408   ;;  %vm4695_vm7 = vcmask 523264  }
  0x17   : > { %v2840_v59 = vld [vmem:[%s22434_s6 + $0x58] sm:$0xff]  ;;  %v2843_v60 = vld [vmem:[%s22434_s6 + $0x70] sm:$0xff]  ;;  %v2842_v62 = vld [vmem:[%s22434_s6 + $0x68] sm:$0xff]  ;;  %s16934_s21 = smul.u32 56, %s22523_s22 }
  0x18   : > { %v16948_v0 = vld [vmem:[%s22475_s2] sm:$0xff]   ;;  %v16949_v2 = vld [vmem:[%s22475_s2 + $0x8] sm:$0xff]   ;;  %v16950_v3 = vld [vmem:[%s22475_s2 + $0x10] sm:$0xff]  }
  0x19   : > { %15250 = vmatpush3.bf16.msra.mxu0 %v16948_v0  ;;  %s17956_s0 = scalar_lea.vmem %s22476_s30, %s16933_s28  ;;  %v16961_v4 = vld [vmem:[%s22475_s2 + $0x40] sm:$0xff]   ;;  %v16951_v5 = vld [vmem:[%s22475_s2 + $0x18] sm:$0xff]   ;;  %v16962_v7 = vld [vmem:[%s22475_s2 + $0x48] sm:$0xff]   ;;  %s22416_s25 = scalar_lea.vmem %s22448_s20, %s16934_s21 }
  0x1a   : > { %15251 = vmatprep.subr.bf16.mxu0 %v22454_v1  ;;  %15286 = vmatpush3.bf16.msra.mxu1 %v16961_v4  ;;  %v16952_v6 = vld [vmem:[%s22475_s2 + $0x20] sm:$0xff]   ;;  %v16963_v8 = vld [vmem:[%s22475_s2 + $0x50] sm:$0xff]   ;;  %v16953_v9 = vld [vmem:[%s22475_s2 + $0x28] sm:$0xff]  }
  0x1b   : > { %15287 = vmatprep.subr.bf16.mxu1 %v22454_v1  ;;  %v16954_v10 = vld [vmem:[%s22475_s2 + $0x30] sm:$0xff]   ;;  %v16964_v11 = vld [vmem:[%s22475_s2 + $0x58] sm:$0xff]   ;;  %v16965_v12 = vld [vmem:[%s22475_s2 + $0x60] sm:$0xff]  }
  0x1c   : > { %v16955_v13 = vld [vmem:[%s22475_s2 + $0x38] sm:$0xff]   ;;  %v16966_v14 = vld [vmem:[%s22475_s2 + $0x68] sm:$0xff]   ;;  %v16956_v15 = vld [vmem:[%s17956_s0] sm:$0xff]  }
  0x1d   : > { %15252 = vmatpush3.bf16.msra.mxu0 %v16949_v2  ;;  %v16967_v16 = vld [vmem:[%s22475_s2 + $0x70] sm:$0xff]   ;;  %v16968_v17 = vld [vmem:[%s22475_s2 + $0x78] sm:$0xff]   ;;  %v16957_v18 = vld [vmem:[%s17956_s0 + $0x8] sm:$0xff]  }
  0x1e   : > { %15253 = vmatprep.subr.bf16.mxu0 %v22454_v1  ;;  %15288 = vmatpush3.bf16.msra.mxu1 %v16962_v7  ;;  %v16958_v19 = vld [vmem:[%s17956_s0 + $0x10] sm:$0xff]   ;;  %v16959_v20 = vld [vmem:[%s17956_s0 + $0x18] sm:$0xff]   ;;  %v16960_v21 = vld [vmem:[%s17956_s0 + $0x20] ss:$0 sps:$4 sm:$0xff]  }
  0x1f   : > { %15289 = vmatprep.subr.bf16.mxu1 %v22454_v1  ;;  %v1567_v22 = vld [vmem:[%s22477_s27] sm:$0xff]  ;;  %v1568_v24 = vld [vmem:[%s22477_s27 + $0x8] sm:$0xff]  ;;  %v1569_v25 = vld [vmem:[%s22477_s27 + $0x10] sm:$0xff]  ;;  %v1243_v33 = vsel %vm1061_vm1, %v16960_v21, 0 }
  0x20   : > { %1587 = vperm.xlu0 %16946, %v1567_v22   ;;  %v1571_v26 = vld [vmem:[%s22477_s27 + $0x20] sm:$0xff]  ;;  %1597 = vperm.xlu1 %16947, %v1569_v25   ;;  %v1570_v27 = vld [vmem:[%s22477_s27 + $0x18] sm:$0xff]  ;;  %v1573_v28 = vld [vmem:[%s22477_s27 + $0x30] sm:$0xff] }
  0x21   : > { %15254 = vmatpush3.bf16.msra.mxu0 %v16950_v3  ;;  %v1572_v29 = vld [vmem:[%s22477_s27 + $0x28] sm:$0xff]  ;;  %v1575_v30 = vld [vmem:[%s22477_s27 + $0x40] sm:$0xff]  ;;  %v1574_v31 = vld [vmem:[%s22477_s27 + $0x38] sm:$0xff] }
  0x22   : > { %15255 = vmatprep.subr.bf16.mxu0 %v22454_v1  ;;  %15290 = vmatpush3.bf16.msra.mxu1 %v16963_v8  ;;  %v1577_v32 = vld [vmem:[%s22477_s27 + $0x50] sm:$0xff]  ;;  %v1576_v34 = vld [vmem:[%s22477_s27 + $0x48] sm:$0xff]  ;;  %v1579_v35 = vld [vmem:[%s22477_s27 + $0x60] sm:$0xff] }
  0x23   : > { %15291 = vmatprep.subr.bf16.mxu1 %v22454_v1  ;;  %v16970_v36 = vld [vmem:[%s22478_s4 + $0x48] sm:$0xff]   ;;  %v1578_v37 = vld [vmem:[%s22477_s27 + $0x58] sm:$0xff]  ;;  %v1581_v38 = vld [vmem:[%s22477_s27 + $0x70] sm:$0xff] }
  0x24   : > { %1592 = vperm.xlu0 %16946, %v1568_v24   ;;  %1602 = vperm.xlu1 %16947, %v1570_v27   ;;  %v1580_v39 = vld [vmem:[%s22477_s27 + $0x68] sm:$0xff]  ;;  %v1583_v40 = vld [vmem:[%s22477_s27 + $0x80] sm:$0xff]  ;;  %v16972_v41 = vld [vmem:[%s22478_s4 + $0x50] sm:$0xff]  }
  0x25   : > { %15256 = vmatpush3.bf16.msra.mxu0 %v16951_v5  ;;  %v1582_v42 = vld [vmem:[%s22477_s27 + $0x78] sm:$0xff]  ;;  %v1584_v44 = vld [vmem:[%s22477_s27 + $0x88] sm:$0xff]  ;;  %v16976_v51 = vld [vmem:[%s22478_s4 + $0x60] sm:$0xff]  }
  0x26   : > { %15257 = vmatprep.subr.bf16.mxu0 %v22454_v1  ;;  %15292 = vmatpush3.bf16.msra.mxu1 %v16964_v11  ;;  %v16974_v46 = vld [vmem:[%s22478_s4 + $0x58] sm:$0xff]   ;;  %v16978_v56 = vld [vmem:[%s22478_s4 + $0x68] sm:$0xff]   ;;  %v16980_v61 = vld [vmem:[%s22478_s4 + $0x70] sm:$0xff]  }
  0x27   : > { %15293 = vmatprep.subr.bf16.mxu1 %v22454_v1  ;;  %v2845_v63 = vld [vmem:[%s22434_s6 + $0x80] sm:$0xff]  ;;  %v2844_v0 = vld [vmem:[%s22434_s6 + $0x78] sm:$0xff]  ;;  %v2847_v2 = vld [vmem:[%s22434_s6 + $0x90] sm:$0xff] }
  0x28   : > { %1607 = vperm.xlu0 %16946, %v1571_v26   ;;  %1612 = vperm.xlu1 %16947, %v1572_v29   ;;  %v16982_v3 = vld [vmem:[%s22478_s4 + $0x78] sm:$0xff]   ;;  %v2846_v4 = vld [vmem:[%s22434_s6 + $0x88] sm:$0xff]  ;;  %v4271_v5 = vld [vmem:[%s22436_s8] sm:$0xff] }
  0x29   : > { %15258 = vmatpush3.bf16.msra.mxu0 %v16952_v6  ;;  %v2848_v6 = vld [vmem:[%s22434_s6 + $0x98] sm:$0xff]  ;;  %v4273_v7 = vld [vmem:[%s22436_s8 + $0x10] sm:$0xff]  ;;  %v16984_v8 = vld [vmem:[%s22478_s4 + $0x80] sm:$0xff]  }
  0x2a   : > { %15259 = vmatprep.subr.bf16.mxu0 %v22454_v1  ;;  %15294 = vmatpush3.bf16.msra.mxu1 %v16965_v12  ;;  %v4274_v11 = vld [vmem:[%s22436_s8 + $0x18] sm:$0xff]  ;;  %v4277_v12 = vld [vmem:[%s22436_s8 + $0x30] sm:$0xff]  ;;  %v4284_v22 = vld [vmem:[%s22436_s8 + $0x68] sm:$0xff] }
  0x2b   : > { %15295 = vmatprep.subr.bf16.mxu1 %v22454_v1  ;;  %v4287_v24 = vld [vmem:[%s22436_s8 + $0x80] sm:$0xff]  ;;  %v4286_v25 = vld [vmem:[%s22436_s8 + $0x78] sm:$0xff]  ;;  %v4289_v26 = vld [vmem:[%s22436_s8 + $0x90] sm:$0xff] }
  0x2c   : > { %1617 = vperm.xlu0 %16946, %v1573_v28   ;;  %1622 = vperm.xlu1 %16947, %v1574_v31   ;;  %v4288_v28 = vld [vmem:[%s22436_s8 + $0x88] sm:$0xff]  ;;  %v4291_v29 = vld [vmem:[%s22436_s8 + $0xa0] sm:$0xff] }
  0x2d   : > { %15260 = vmatpush3.bf16.msra.mxu0 %v16953_v9  ;;  %v4272_v9 = vld [vmem:[%s22436_s8 + $0x8] sm:$0xff] }
  0x2e   : > { %15261 = vmatprep.subr.bf16.mxu0 %v22454_v1  ;;  %15296 = vmatpush3.bf16.msra.mxu1 %v16966_v14  ;;  %v4276_v14 = vld [vmem:[%s22436_s8 + $0x28] sm:$0xff] }
  0x2f   : > { %15297 = vmatprep.subr.bf16.mxu1 %v22454_v1 }
  0x30   : > { %1627 = vperm.xlu0 %16946, %v1575_v30   ;;  %1632 = vperm.xlu1 %16947, %v1576_v34  }
  0x31   : > { %15262 = vmatpush3.bf16.msra.mxu0 %v16954_v10  ;;  %v4275_v10 = vld [vmem:[%s22436_s8 + $0x20] sm:$0xff] }
  0x32   : > { %15263 = vmatprep.subr.bf16.mxu0 %v22454_v1  ;;  %15298 = vmatpush3.bf16.msra.mxu1 %v16967_v16  ;;  %v4278_v16 = vld [vmem:[%s22436_s8 + $0x38] sm:$0xff] }
  0x33   : > { %15299 = vmatprep.subr.bf16.mxu1 %v22454_v1 }
  0x34   : > { %1637 = vperm.xlu0 %16946, %v1577_v32   ;;  %1642 = vperm.xlu1 %16947, %v1578_v37   ;;  %v4290_v32 = vld [vmem:[%s22436_s8 + $0x98] sm:$0xff]  ;;  %v4292_v37 = vld [vmem:[%s22436_s8 + $0xa8] sm:$0xff] }
  0x35   : > { %15264 = vmatpush3.bf16.msra.mxu0 %v16955_v13  ;;  %v16986_v13 = vld [vmem:[%s22478_s4 + $0x88] sm:$0xff]  }
  0x36   : > { %15321 = vmatprep.subr.bf16.mxu0 %v22454_v1  ;;  %15300 = vmatpush3.bf16.msra.mxu1 %v16968_v17  ;;  %v4281_v17 = vld [vmem:[%s22436_s8 + $0x50] sm:$0xff] }
  0x37   : > { %15367 = vmatprep.subr.bf16.mxu1 %v22454_v1 }
  0x38   : > { %15266 = vmatmul.mubr.bf16.vlgmr.msra.gmra.mrb[0].mxu0 %v16956_v15  ;;  %1647 = vperm.xlu0 %16946, %v1579_v35  }
  0x39   : > { %15269 = vmatprep.mubr.msk.bf16.mxu0 %vm17818_vm0, %v22454_v1  ;;  %15302 = vmatmul.mubr.bf16.vlgmr.msra.gmra.mrb[0].mxu1 %v16956_v15 }
  0x3a   : > { %15305 = vmatprep.mubr.msk.bf16.mxu1 %vm17818_vm0, %v22454_v1  ;;  %15368 = vmatpush3.bf16.msra.mxu1 %v16956_v15  ;;  %v4279_v15 = vld [vmem:[%s22436_s8 + $0x40] sm:$0xff] }
  0x3b   : > { %15369 = vmatprep.subr.bf16.mxu1 %v22454_v1  ;;  %1652 = vperm.xlu1 %16947, %v1580_v39  }
  0x3c   : > { %1657 = vperm.xlu0 %16946, %v1581_v38   ;;  %v7033_v38 = vld [vmem:[%s22438_s10] sm:$0xff] }
  0x3e   : > { %15370 = vmatpush3.bf16.msra.mxu1 %v16957_v18 }
  0x3f   : > { %15371 = vmatprep.subr.bf16.mxu1 %v22454_v1  ;;  %1662 = vperm.xlu1 %16947, %v1582_v42   ;;  %v4294_v42 = vld [vmem:[%s22436_s8 + $0xb8] sm:$0xff] }
  0x40   : > { %15270 = vmatmul.mubr.bf16.gmra.mrb[4].mxu0 %v16957_v18  ;;  %1667 = vperm.xlu0 %16946, %v1583_v40  }
  0x41   : > { %15273 = vmatprep.mubr.msk.bf16.mxu0 %vm17818_vm0, %v22454_v1  ;;  %15306 = vmatmul.mubr.bf16.gmra.mrb[4].mxu1 %v16957_v18  ;;  %v4280_v18 = vld [vmem:[%s22436_s8 + $0x48] sm:$0xff] }
  0x42   : > { %15309 = vmatprep.mubr.msk.bf16.mxu1 %vm17818_vm0, %v22454_v1  ;;  %15372 = vmatpush3.bf16.msra.mxu1 %v16958_v19 }
  0x43   : > { %15373 = vmatprep.subr.bf16.mxu1 %v22454_v1  ;;  %1672 = vperm.xlu1 %16947, %v1584_v44  }
  0x44   : > { %2851 = vperm.xlu0 %16946, %v2829_v43   ;;  %v7035_v43 = vld [vmem:[%s22438_s10 + $0x10] sm:$0xff] }
  0x46   : > { %15374 = vmatpush3.bf16.msra.mxu1 %v16959_v20 }
  0x47   : > { %15375 = vmatprep.subr.bf16.mxu1 %v22454_v1  ;;  %2856 = vperm.xlu1 %16947, %v2830_v47  }
  0x48   : > { %15274 = vmatmul.mubr.bf16.gmra.mrb[8].mxu0 %v16958_v19  ;;  %2861 = vperm.xlu0 %16946, %v2831_v45  }
  0x49   : > { %15277 = vmatprep.mubr.msk.bf16.mxu0 %vm17818_vm0, %v22454_v1  ;;  %15310 = vmatmul.mubr.bf16.gmra.mrb[8].mxu1 %v16958_v19  ;;  %v4283_v19 = vld [vmem:[%s22436_s8 + $0x60] sm:$0xff] }
  0x4a   : > { %15313 = vmatprep.mubr.msk.bf16.mxu1 %vm17818_vm0, %v22454_v1  ;;  %15376 = vmatpush3.bf16.msra.mxu1 %v1243_v33  ;;  %v4293_v33 = vld [vmem:[%s22436_s8 + $0xb0] sm:$0xff] }
  0x4b   : > { %1791 = vmatprep.subr.bf16.mxu1 %v22456_v23  ;;  %2866 = vperm.xlu1 %16947, %v2832_v49  }
  0x4c   : > { %2871 = vperm.xlu0 %16946, %v2833_v48  }
  0x4f   : > { %2876 = vperm.xlu1 %16947, %v2834_v52   ;;  %v7037_v52 = vld [vmem:[%s22438_s10 + $0x20] sm:$0xff] }
  0x50   : > { %15278 = vmatmul.mubr.bf16.gmra.mrb[12].mxu0 %v16959_v20  ;;  %2881 = vperm.xlu0 %16946, %v2835_v50  }
  0x51   : > { %15281 = vmatprep.mubr.msk.bf16.mxu0 %vm17818_vm0, %v22454_v1  ;;  %15314 = vmatmul.mubr.bf16.gmra.mrb[12].mxu1 %v16959_v20  ;;  %v4282_v20 = vld [vmem:[%s22436_s8 + $0x58] sm:$0xff] }
  0x52   : > { %15317 = vmatprep.mubr.msk.bf16.mxu1 %vm17818_vm0, %v22454_v1 }
  0x53   : > { %2886 = vperm.xlu1 %16947, %v2836_v54  }
  0x54   : > { %2891 = vperm.xlu0 %16946, %v2837_v53  }
  0x57   : > { %2896 = vperm.xlu1 %16947, %v2838_v57   ;;  %v7039_v57 = vld [vmem:[%s22438_s10 + $0x30] sm:$0xff] }
  0x58   : > { %15282 = vmatmul.mubr.bf16.gmra.mrb[16].mxu0 %v16960_v21  ;;  %2901 = vperm.xlu0 %16946, %v2839_v55  }
  0x59   : > { %15331 = vmatprep.mubr.msk.bf16.mxu0 %vm17818_vm0, %v22454_v1  ;;  %15318 = vmatmul.mubr.bf16.gmra.mrb[16].mxu1 %v16960_v21  ;;  %v4285_v21 = vld [vmem:[%s22436_s8 + $0x70] sm:$0xff] }
  0x5a   : > { %15377 = vmatprep.mubr.msk.bf16.mxu1 %vm17818_vm0, %v22454_v1 }
  0x5b   : > { %2906 = vperm.xlu1 %16947, %v2840_v59  }
  0x5c   : > { %2911 = vperm.xlu0 %16946, %v2841_v58  }
  0x5f   : > { %2916 = vperm.xlu1 %16947, %v2842_v62  }
  0x60   : > { %2921 = vperm.xlu0 %16946, %v2843_v60  }
  0x61   : > { %15378 = vmatmul.mubr.msk.bf16.vlgmr.msra.gmra.mrb[20].mxu1 %vm1033_vm2, %v16970_v36 }
  0x62   : > { %15381 = vmatprep.mubr.msk.bf16.mxu1 %vm17818_vm0, %v22454_v1 }
  0x63   : > { %2926 = vperm.xlu1 %16947, %v2844_v0  }
  0x64   : > { %2931 = vperm.xlu0 %16946, %v2845_v63  }
  0x67   : > { %2936 = vperm.xlu1 %16947, %v2846_v4  }
  0x68   : > { %2941 = vperm.xlu0 %16946, %v2847_v2   ;;  %v7038_v2 = vld [vmem:[%s22438_s10 + $0x28] sm:$0xff] }
  0x69   : > { %15382 = vmatmul.mubr.msk.bf16.gmra.mrb[24].mxu1 %vm1033_vm2, %v16972_v41 }
  0x6a   : > { %15385 = vmatprep.mubr.msk.bf16.mxu1 %vm17818_vm0, %v22454_v1 }
  0x6b   : > { %2946 = vperm.xlu1 %16947, %v2848_v6  }
  0x6c   : > { %4297 = vperm.xlu0 %16946, %v4271_v5  }
  0x6f   : > { %4302 = vperm.xlu1 %16947, %v4272_v9  }
  0x70   : > { %4307 = vperm.xlu0 %16946, %v4273_v7   ;;  %v7040_v7 = vld [vmem:[%s22438_s10 + $0x38] sm:$0xff] }
  0x71   : > { %15386 = vmatmul.mubr.msk.bf16.gmra.mrb[28].mxu1 %vm1033_vm2, %v16974_v46 }
  0x72   : > { %15389 = vmatprep.mubr.msk.bf16.mxu1 %vm17818_vm0, %v22454_v1 }
  0x73   : > { %4312 = vperm.xlu1 %16947, %v4274_v11  }
  0x74   : > { %4317 = vperm.xlu0 %16946, %v4275_v10  }
  0x77   : > { %4322 = vperm.xlu1 %16947, %v4276_v14  }
  0x78   : > { %4327 = vperm.xlu0 %16946, %v4277_v12  }
  0x79   : > { %15390 = vmatmul.mubr.msk.bf16.gmra.mrb[32].mxu1 %vm1033_vm2, %v16976_v51  ;;  %v7034_v51 = vld [vmem:[%s22438_s10 + $0x8] sm:$0xff] }
  0x7a   : > { %15393 = vmatprep.mubr.msk.bf16.mxu1 %vm17818_vm0, %v22454_v1 }
  0x7b   : > { %4332 = vperm.xlu1 %16947, %v4278_v16   ;;  %v7042_v16 = vld [vmem:[%s22438_s10 + $0x48] sm:$0xff] }
  0x7c   : > { %4337 = vperm.xlu0 %16946, %v4279_v15  }
  0x7f   : > { %4342 = vperm.xlu1 %16947, %v4280_v18  }
  0x80   : > { %4347 = vperm.xlu0 %16946, %v4281_v17   ;;  %v7045_v17 = vld [vmem:[%s22438_s10 + $0x60] sm:$0xff] }
  0x81   : > { %15394 = vmatmul.mubr.msk.bf16.gmra.mrb[36].mxu1 %vm1033_vm2, %v16978_v56  ;;  %v7036_v56 = vld [vmem:[%s22438_s10 + $0x18] sm:$0xff] }
  0x82   : > { %15397 = vmatprep.mubr.msk.bf16.mxu1 %vm17818_vm0, %v22454_v1 }
  0x83   : > { %4352 = vperm.xlu1 %16947, %v4282_v20   ;;  %v16969_v20 = vld [vmem:[%s22478_s4] sm:$0xff]  }
  0x84   : > { %4357 = vperm.xlu0 %16946, %v4283_v19  }
  0x87   : > { %4362 = vperm.xlu1 %16947, %v4284_v22  }
  0x88   : > { %4367 = vperm.xlu0 %16946, %v4285_v21  }
  0x89   : > { %15398 = vmatmul.mubr.msk.bf16.gmra.mrb[40].mxu1 %vm1033_vm2, %v16980_v61 }
  0x8a   : > { %15401 = vmatprep.mubr.msk.bf16.mxu1 %vm17818_vm0, %v22454_v1 }
  0x8b   : > { %4372 = vperm.xlu1 %16947, %v4286_v25  }
  0x8c   : > { %4377 = vperm.xlu0 %16946, %v4287_v24   ;;  %v7044_v24 = vld [vmem:[%s22438_s10 + $0x58] sm:$0xff] }
  0x8f   : > { %4382 = vperm.xlu1 %16947, %v4288_v28  }
  0x90   : > { %4387 = vperm.xlu0 %16946, %v4289_v26  }
  0x91   : > { %15402 = vmatmul.mubr.msk.bf16.gmra.mrb[44].mxu1 %vm1033_vm2, %v16982_v3  ;;  %v7041_v3 = vld [vmem:[%s22438_s10 + $0x40] sm:$0xff] }
  0x92   : > { %15405 = vmatprep.mubr.msk.bf16.mxu1 %vm17818_vm0, %v22454_v1 }
  0x93   : > { %4392 = vperm.xlu1 %16947, %v4290_v32   ;;  %v7046_v32 = vld [vmem:[%s22438_s10 + $0x68] sm:$0xff] }
  0x94   : > { %4397 = vperm.xlu0 %16946, %v4291_v29   ;;  %v7047_v29 = vld [vmem:[%s22438_s10 + $0x70] sm:$0xff] }
  0x97   : > { %4402 = vperm.xlu1 %16947, %v4292_v37  }
  0x98   : > { %4407 = vperm.xlu0 %16946, %v4293_v33   ;;  %v7049_v33 = vld [vmem:[%s22438_s10 + $0x80] sm:$0xff] }
  0x99   : > { %15406 = vmatmul.mubr.msk.bf16.gmra.mrb[48].mxu1 %vm1033_vm2, %v16984_v8  ;;  %v7043_v8 = vld [vmem:[%s22438_s10 + $0x50] sm:$0xff] }
  0x9a   : > { %15409 = vmatprep.mubr.msk.bf16.mxu1 %vm17818_vm0, %v22454_v1 }
  0x9b   : > { %4412 = vperm.xlu1 %16947, %v4294_v42  }
  0x9c   : > { %7055 = vperm.xlu0 %16946, %v7033_v38  }
  0x9f   : > { %7060 = vperm.xlu1 %16947, %v7034_v51   ;;  %v11911_v51 = vld [vmem:[%s22440_s12 + $0x18] sm:$0xff] }
  0xa0   : > { %7065 = vperm.xlu0 %16946, %v7035_v43   ;;  %v11908_v43 = vld [vmem:[%s22440_s12] sm:$0xff] }
  0xa1   : > { %15410 = vmatmul.mubr.msk.bf16.gmra.mrb[52].mxu1 %vm1033_vm2, %v16986_v13 }
  0xa3   : > { %7070 = vperm.xlu1 %16947, %v7036_v56   ;;  %v11915_v56 = vld [vmem:[%s22440_s12 + $0x38] sm:$0xff] }
  0xa4   : > { %7075 = vperm.xlu0 %16946, %v7037_v52   ;;  %v11914_v52 = vld [vmem:[%s22440_s12 + $0x30] sm:$0xff] }
  0xa7   : > { %7080 = vperm.xlu1 %16947, %v7038_v2   ;;  %v11924_v2 = vld [vmem:[%s22440_s12 + $0x80] sm:$0xff] }
  0xa8   : > { %7085 = vperm.xlu0 %16946, %v7039_v57   ;;  %v11918_v57 = vld [vmem:[%s22440_s12 + $0x50] sm:$0xff] }
  0xab   : > { %7090 = vperm.xlu1 %16947, %v7040_v7   ;;  %v12646_v7 = vld [vmem:[%s22442_s14] sm:$0xff] }
  0xac   : > { %7095 = vperm.xlu0 %16946, %v7041_v3   ;;  %v16981_v3 = vld [vmem:[%s22478_s4 + $0x30] sm:$0xff]  }
  0xaf   : > { %7100 = vperm.xlu1 %16947, %v7042_v16   ;;  %v12649_v16 = vld [vmem:[%s22442_s14 + $0x18] sm:$0xff] }
  0xb0   : > { %7105 = vperm.xlu0 %16946, %v7043_v8   ;;  %v11925_v8 = vld [vmem:[%s22440_s12 + $0x88] sm:$0xff] }
  0xb3   : > { %7110 = vperm.xlu1 %16947, %v7044_v24   ;;  %v16987_v24 = vld [vmem:[%s22478_s4 + $0x90] sm:$0xff]  }
  0xb4   : > { %7115 = vperm.xlu0 %16946, %v7045_v17  }
  0xb7   : > { %7120 = vperm.xlu1 %16947, %v7046_v32   ;;  %v17748_v32 = vld [vmem:[%s22475_s2 + $0x18] sm:$0xff]  }
  0xb8   : > { %7125 = vperm.xlu0 %16946, %v7047_v29   ;;  %v16989_v29 = vld [vmem:[%s22478_s4 + $0xa0] sm:$0xff]  }
  0xbc   : > { %7135 = vperm.xlu0 %16946, %v7049_v33  }
 0x10b   : > { %v783_v27 = vpop.f32.mrb[0].mxu0 }
 0x10c   : > { %v15267_v30 = vpop.f32.mrb[1].mxu0  ;;  %v18283_v41 = vpop.f32.mrb[0].mxu1 }
 0x10d   : > { %v786_v31 = vpop.f32.mrb[2].mxu0  ;;  %v15303_v46 = vpop.f32.mrb[1].mxu1 }
 0x10e   : > { %v821_v34 = vpack.c.bf16 %v786_v31, %v783_v27  ;;  %v15268_v35 = vpop.f32.mrb[3].mxu0  ;;  %v18291_v47 = vpop.f32.mrb[2].mxu1 }
 0x10f   : > { %v946_v48 = vpack.c.bf16 %v18291_v47, %v18283_v41  ;;  %v15304_v49 = vpop.f32.mrb[3].mxu1  ;;  %v7050_v41 = vld [vmem:[%s22438_s10 + $0x88] sm:$0xff]  ;;  %v11910_v47 = vld [vmem:[%s22440_s12 + $0x10] sm:$0xff] }
 0x110   : > { %15322 = vmatpush3.bf16.msra.mxu0 %v821_v34  ;;  %v16971_v34 = vld [vmem:[%s22478_s4 + $0x8] sm:$0xff]   ;;  %v11912_v49 = vld [vmem:[%s22440_s12 + $0x20] sm:$0xff] }
 0x111   : > { %15323 = vmatprep.subr.bf16.mxu0 %v22454_v1 }
 0x113   : > { %v791_v36 = vpop.f32.mrb[4].mxu0 }
 0x114   : > { %v15271_v39 = vpop.f32.mrb[5].mxu0  ;;  %v18302_v55 = vpop.f32.mrb[4].mxu1 }
 0x115   : > { %v794_v40 = vpop.f32.mrb[6].mxu0  ;;  %v15307_v60 = vpop.f32.mrb[5].mxu1  ;;  %v7051_v39 = vld [vmem:[%s22438_s10 + $0x90] sm:$0xff] }
 0x116   : > { %v822_v44 = vpack.c.bf16 %v794_v40, %v791_v36  ;;  %v15272_v45 = vpop.f32.mrb[7].mxu0  ;;  %v919_v61 = vpop.f32.mrb[6].mxu1  ;;  %v7048_v36 = vld [vmem:[%s22438_s10 + $0x78] sm:$0xff]  ;;  %7145 = vperm.xlu0 %16946, %v7051_v39   ;;  %v16979_v60 = vld [vmem:[%s22478_s4 + $0x28] sm:$0xff]  }
 0x117   : > { %v947_v62 = vpack.c.bf16 %v919_v61, %v18302_v55  ;;  %v15308_v63 = vpop.f32.mrb[7].mxu1  ;;  %7130 = vperm.xlu1 %16947, %v7048_v36   ;;  %v7052_v45 = vld [vmem:[%s22438_s10 + $0x98] sm:$0xff]  ;;  %v16977_v55 = vld [vmem:[%s22478_s4 + $0x20] sm:$0xff]   ;;  %v16990_v36 = vld [vmem:[%s22478_s4 + $0xa8] sm:$0xff]  }
 0x118   : > { %15324 = vmatpush3.bf16.msra.mxu0 %v822_v44  ;;  %v16973_v44 = vld [vmem:[%s22478_s4 + $0x10] sm:$0xff]   ;;  %v11919_v61 = vld [vmem:[%s22440_s12 + $0x58] sm:$0xff]  ;;  %v17750_v39 = vld [vmem:[%s22475_s2 + $0x28] sm:$0xff]  }
 0x119   : > { %15325 = vmatprep.subr.bf16.mxu0 %v22454_v1  ;;  %v11922_v63 = vld [vmem:[%s22440_s12 + $0x70] sm:$0xff] }
 0x11a   : > { %11928 = vperm.xlu0 %16946, %v11908_v43   ;;  %v16991_v43 = vld [vmem:[%s22478_s4 + $0xb0] sm:$0xff]  }
 0x11b   : > { %v799_v50 = vpop.f32.mrb[8].mxu0  ;;  %7140 = vperm.xlu1 %16947, %v7050_v41  }
 0x11c   : > { %v15275_v53 = vpop.f32.mrb[9].mxu0  ;;  %v924_v6 = vpop.f32.mrb[8].mxu1 }
 0x11d   : > { %v802_v54 = vpop.f32.mrb[10].mxu0  ;;  %v15311_v11 = vpop.f32.mrb[9].mxu1  ;;  %v11913_v53 = vld [vmem:[%s22440_s12 + $0x28] sm:$0xff] }
 0x11e   : > { %v823_v58 = vpack.c.bf16 %v802_v54, %v799_v50  ;;  %v15276_v59 = vpop.f32.mrb[11].mxu0  ;;  %v927_v12 = vpop.f32.mrb[10].mxu1  ;;  %v16975_v50 = vld [vmem:[%s22478_s4 + $0x18] sm:$0xff]   ;;  %11938 = vperm.xlu0 %16946, %v11910_v47   ;;  %v11916_v54 = vld [vmem:[%s22440_s12 + $0x40] sm:$0xff] }
 0x11f   : > { %v948_v13 = vpack.c.bf16 %v927_v12, %v924_v6  ;;  %v15312_v14 = vpop.f32.mrb[11].mxu1  ;;  %7150 = vperm.xlu1 %16947, %v7052_v45   ;;  %v11920_v59 = vld [vmem:[%s22440_s12 + $0x60] sm:$0xff]  ;;  %v18460_v6 = vpop.permute.xlu1 %1597  ;;  %v16983_v11 = vld [vmem:[%s22478_s4 + $0x38] sm:$0xff]  }
 0x120   : > { %15326 = vmatpush3.bf16.msra.mxu0 %v823_v58  ;;  %v11917_v58 = vld [vmem:[%s22440_s12 + $0x48] sm:$0xff]  ;;  %v12650_v14 = vld [vmem:[%s22442_s14 + $0x20] sm:$0xff] }
 0x121   : > { %15327 = vmatprep.subr.bf16.mxu0 %v22454_v1 }
 0x122   : > { %11948 = vperm.xlu0 %16946, %v11912_v49   ;;  %v16992_v49 = vld [vmem:[%s22478_s4 + $0xb8] sm:$0xff]  }
 0x123   : > { %v807_v0 = vpop.f32.mrb[12].mxu0  ;;  %v18479_v12 = vpop.permute.xlu1 %1602 }
 0x124   : > { %v15279_v4 = vpop.f32.mrb[13].mxu0  ;;  %v932_v22 = vpop.f32.mrb[12].mxu1 }
 0x125   : > { %v810_v5 = vpop.f32.mrb[14].mxu0  ;;  %v15315_v27 = vpop.f32.mrb[13].mxu1 }
 0x126   : > { %v824_v9 = vpack.c.bf16 %v810_v5, %v807_v0  ;;  %v15280_v10 = vpop.f32.mrb[15].mxu0  ;;  %v935_v28 = vpop.f32.mrb[14].mxu1  ;;  %11958 = vperm.xlu0 %16946, %v11914_v52   ;;  %v11921_v0 = vld [vmem:[%s22440_s12 + $0x68] sm:$0xff]  ;;  %v11923_v5 = vld [vmem:[%s22440_s12 + $0x78] sm:$0xff] }
 0x127   : > { %v15316_v30 = vpop.f32.mrb[15].mxu1  ;;  %v949_v31 = vpack.c.bf16 %v935_v28, %v932_v22  ;;  %v12648_v10 = vld [vmem:[%s22442_s14 + $0x10] sm:$0xff]  ;;  %v18495_v17 = vpop.permute.xlu1 %1612  ;;  %v17746_v27 = vld [vmem:[%s22475_s2 + $0x8] sm:$0xff]  }
 0x128   : > { %15328 = vmatpush3.bf16.msra.mxu0 %v824_v9  ;;  %v17747_v28 = vld [vmem:[%s22475_s2 + $0x10] sm:$0xff]  }
 0x129   : > { %15329 = vmatprep.subr.bf16.mxu0 %v22454_v1 }
 0x12a   : > { %11968 = vperm.xlu0 %16946, %v11916_v54   ;;  %v16993_v54 = vld [vmem:[%s22478_s4 + $0xc0] sm:$0xff]  }
 0x12b   : > { %v815_v15 = vpop.f32.mrb[16].mxu0  ;;  %v18509_v22 = vpop.permute.xlu1 %1622 }
 0x12c   : > { %v825_v18 = vpack.c.bf16 %v815_v15, %v815_v15  ;;  %v15283_v19 = vpop.f32.mrb[17].mxu0  ;;  %v940_v35 = vpop.f32.mrb[16].mxu1 }
 0x12d   : > { %v818_v21 = vpop.f32.mrb[18].mxu0  ;;  %v15319_v37 = vpop.f32.mrb[17].mxu1  ;;  %v950_v42 = vpack.c.bf16 %v940_v35, %v940_v35  ;;  %v16985_v19 = vld [vmem:[%s22478_s4 + $0x40] sm:$0xff]  }
 0x12e   : > { %v15284_v25 = vpop.f32.mrb[19].mxu0  ;;  %v1063_v26 = vsel %vm1061_vm1, %v825_v18, 0  ;;  %v943_v38 = vpop.f32.mrb[18].mxu1  ;;  %11978 = vperm.xlu0 %16946, %v11918_v57   ;;  %v12652_v18 = vld [vmem:[%s22442_s14 + $0x30] sm:$0x3f]  ;;  %v17749_v35 = vld [vmem:[%s22475_s2 + $0x20] sm:$0xff]  }
 0x12f   : > { %15330 = vmatpush3.bf16.msra.mxu0 %v1063_v26  ;;  %v15320_v40 = vpop.f32.mrb[19].mxu1  ;;  %v1442_v46 = vsel %vm1061_vm1, %v950_v42, 0  ;;  %v17745_v25 = vld [vmem:[%s22475_s2] sm:$0xff]   ;;  %v16988_v26 = vld [vmem:[%s22478_s4 + $0x98] sm:$0xff]   ;;  %v17751_v42 = vld [vmem:[%s22475_s2 + $0x30] sm:$0xff]  }
 0x130   : > { %15413 = vmatprep.subr.bf16.mxu0 %v22454_v1 }
 0x132   : > { %15332 = vmatmul.mubr.msk.bf16.vlgmr.msra.gmra.mrb[20].mxu0 %vm1033_vm2, %v16969_v20  ;;  %11988 = vperm.xlu0 %16946, %v11920_v59   ;;  %v12651_v20 = vld [vmem:[%s22442_s14 + $0x28] sm:$0xff] }
 0x133   : > { %15335 = vmatprep.mubr.msk.bf16.mxu0 %vm17818_vm0, %v22454_v1  ;;  %15414 = vmatpush3.bf16.msra.mxu0 %v946_v48  ;;  %v11909_v48 = vld [vmem:[%s22440_s12 + $0x8] sm:$0xff] }
 0x134   : > { %15415 = vmatprep.subr.bf16.mxu0 %v22454_v1  ;;  %11933 = vperm.xlu1 %16947, %v11909_v48   ;;  %v18540_v30 = vpop.f32.mrb[20].mxu1  ;;  %v16994_v59 = vld [vmem:[%s22478_s4 + $0xc8] sm:$0xff]  }
 0x136   : > { %11998 = vperm.xlu0 %16946, %v11922_v63  }
 0x137   : > { %15416 = vmatpush3.bf16.msra.mxu0 %v947_v62  ;;  %v18438_v62 = vpop.permute.xlu0 %1587 }
 0x138   : > { %15417 = vmatprep.subr.bf16.mxu0 %v22454_v1  ;;  %11943 = vperm.xlu1 %16947, %v11911_v51  }
 0x13a   : > { %15336 = vmatmul.mubr.msk.bf16.gmra.mrb[24].mxu0 %vm1033_vm2, %v16971_v34  ;;  %12008 = vperm.xlu0 %16946, %v11924_v2   ;;  %v16995_v2 = vld [vmem:[%s22478_s4 + $0xd0] sm:$0xff]  }
 0x13b   : > { %15339 = vmatprep.mubr.msk.bf16.mxu0 %vm17818_vm0, %v22454_v1  ;;  %15418 = vmatpush3.bf16.msra.mxu0 %v948_v13  ;;  %v18455_v4 = vpop.permute.xlu0 %1592  ;;  %v12647_v13 = vld [vmem:[%s22442_s14 + $0x8] sm:$0xff] }
 0x13c   : > { %15419 = vmatprep.subr.bf16.mxu0 %v22454_v1  ;;  %11953 = vperm.xlu1 %16947, %v11913_v53  }
 0x13e   : > { %12655 = vperm.xlu0 %16946, %v12646_v7  }
 0x13f   : > { %15420 = vmatpush3.bf16.msra.mxu0 %v949_v31  ;;  %v18471_v9 = vpop.permute.xlu0 %1607  ;;  %v15379_v31 = vpop.f32.mrb[21].mxu1 }
 0x140   : > { %15421 = vmatprep.subr.bf16.mxu0 %v22454_v1  ;;  %11963 = vperm.xlu1 %16947, %v11915_v56   ;;  %v18545_v33 = vpop.f32.mrb[22].mxu1 }
 0x141   : > { %v15380_v34 = vpop.f32.mrb[23].mxu1 }
 0x142   : > { %15340 = vmatmul.mubr.msk.bf16.gmra.mrb[28].mxu0 %vm1033_vm2, %v16973_v44  ;;  %12665 = vperm.xlu0 %16946, %v12648_v10   ;;  %v18558_v37 = vpop.f32.mrb[24].mxu1 }
 0x143   : > { %15343 = vmatprep.mubr.msk.bf16.mxu0 %vm17818_vm0, %v22454_v1  ;;  %15422 = vmatpush3.bf16.msra.mxu0 %v1442_v46  ;;  %v18488_v15 = vpop.permute.xlu0 %1617  ;;  %v15383_v38 = vpop.f32.mrb[25].mxu1  ;;  %v17752_v46 = vld [vmem:[%s22475_s2 + $0x38] sm:$0xff]  }
 0x144   : > { %15495 = vmatprep.subr.bf16.mxu0 %v22454_v1  ;;  %11973 = vperm.xlu1 %16947, %v11917_v58   ;;  %v18563_v40 = vpop.f32.mrb[26].mxu1 }
 0x145   : > { %v15384_v41 = vpop.f32.mrb[27].mxu1 }
 0x146   : > { %12675 = vperm.xlu0 %16946, %v12650_v14   ;;  %v1295_v44 = vpop.f32.mrb[28].mxu1 }
 0x147   : > { %v18506_v21 = vpop.permute.xlu0 %1627  ;;  %v15387_v45 = vpop.f32.mrb[29].mxu1 }
 0x148   : > { %11983 = vperm.xlu1 %16947, %v11919_v61   ;;  %v1298_v47 = vpop.f32.mrb[30].mxu1 }
 0x149   : > { %v15388_v48 = vpop.f32.mrb[31].mxu1 }
 0x14a   : > { %15344 = vmatmul.mubr.msk.bf16.gmra.mrb[32].mxu0 %vm1033_vm2, %v16975_v50  ;;  %12685 = vperm.xlu0 %16946, %v12652_v18  }
 0x14b   : > { %15347 = vmatprep.mubr.msk.bf16.mxu0 %vm17818_vm0, %v22454_v1 }
 0x14c   : > { %11993 = vperm.xlu1 %16947, %v11921_v0   ;;  %v1303_v50 = vpop.f32.mrb[32].mxu1 }
 0x14d   : > { %v15391_v51 = vpop.f32.mrb[33].mxu1 }
 0x14e   : > { %v1306_v52 = vpop.f32.mrb[34].mxu1 }
 0x14f   : > { %v15392_v53 = vpop.f32.mrb[35].mxu1 }
 0x150   : > { %12003 = vperm.xlu1 %16947, %v11923_v5  }
 0x152   : > { %15348 = vmatmul.mubr.msk.bf16.gmra.mrb[36].mxu0 %vm1033_vm2, %v16977_v55 }
 0x153   : > { %15351 = vmatprep.mubr.msk.bf16.mxu0 %vm17818_vm0, %v22454_v1 }
 0x154   : > { %12013 = vperm.xlu1 %16947, %v11925_v8   ;;  %v1311_v55 = vpop.f32.mrb[36].mxu1 }
 0x155   : > { %v15395_v56 = vpop.f32.mrb[37].mxu1 }
 0x156   : > { %v1314_v57 = vpop.f32.mrb[38].mxu1 }
 0x157   : > { %v15396_v58 = vpop.f32.mrb[39].mxu1 }
 0x158   : > { %12660 = vperm.xlu1 %16947, %v12647_v13  }
 0x15a   : > { %15352 = vmatmul.mubr.msk.bf16.gmra.mrb[40].mxu0 %vm1033_vm2, %v16979_v60 }
 0x15b   : > { %15355 = vmatprep.mubr.msk.bf16.mxu0 %vm17818_vm0, %v22454_v1 }
 0x15c   : > { %12670 = vperm.xlu1 %16947, %v12649_v16   ;;  %v1319_v60 = vpop.f32.mrb[40].mxu1 }
 0x15d   : > { %v15399_v61 = vpop.f32.mrb[41].mxu1 }
 0x15e   : > { %v1322_v63 = vpop.f32.mrb[42].mxu1 }
 0x15f   : > { %v15400_v0 = vpop.f32.mrb[43].mxu1 }
 0x160   : > { %12680 = vperm.xlu1 %16947, %v12651_v20  }
 0x162   : > { %15356 = vmatmul.mubr.msk.bf16.gmra.mrb[44].mxu0 %vm1033_vm2, %v16981_v3 }
 0x163   : > { %15359 = vmatprep.mubr.msk.bf16.mxu0 %vm17818_vm0, %v22454_v1 }
 0x164   : > { %v1327_v3 = vpop.f32.mrb[44].mxu1 }
 0x165   : > { %v15403_v5 = vpop.f32.mrb[45].mxu1 }
 0x166   : > { %v1330_v7 = vpop.f32.mrb[46].mxu1 }
 0x167   : > { %v15404_v8 = vpop.f32.mrb[47].mxu1 }
 0x16a   : > { %15360 = vmatmul.mubr.msk.bf16.gmra.mrb[48].mxu0 %vm1033_vm2, %v16983_v11 }
 0x16b   : > { %15363 = vmatprep.mubr.msk.bf16.mxu0 %vm17818_vm0, %v22454_v1 }
 0x16c   : > { %v1335_v10 = vpop.f32.mrb[48].mxu1 }
 0x16d   : > { %v15407_v11 = vpop.f32.mrb[49].mxu1 }
 0x16e   : > { %v1338_v13 = vpop.f32.mrb[50].mxu1 }
 0x16f   : > { %v15408_v14 = vpop.f32.mrb[51].mxu1 }
 0x172   : > { %15364 = vmatmul.mubr.msk.bf16.gmra.mrb[52].mxu0 %vm1033_vm2, %v16985_v19 }
 0x173   : > { %15423 = vmatprep.mubr.msk.bf16.mxu0 %vm17818_vm0, %v22454_v1 }
 0x174   : > { %v1343_v16 = vpop.f32.mrb[52].mxu1 }
 0x175   : > { %v15411_v18 = vpop.f32.mrb[53].mxu1 }
 0x176   : > { %v1346_v19 = vpop.f32.mrb[54].mxu1 }
 0x177   : > { %v15412_v20 = vpop.f32.mrb[55].mxu1 }
 0x17a   : > { %15424 = vmatmul.mubr.msk.bf16.vlgmr.msra.gmra.mrb[56].mxu0 %vm1033_vm2, %v16987_v24 }
 0x17b   : > { %15427 = vmatprep.mubr.msk.bf16.mxu0 %vm17818_vm0, %v22454_v1  ;;  %15496 = vmatpush3.bf16.msra.mxu0 %v17745_v25 }
 0x17c   : > { %15497 = vmatprep.subr.bf16.mxu0 %v22454_v1 }
 0x17f   : > { %15498 = vmatpush3.bf16.msra.mxu0 %v17746_v27 }
 0x180   : > { %15499 = vmatprep.subr.bf16.mxu0 %v22454_v1 }
 0x182   : > { %15428 = vmatmul.mubr.msk.bf16.gmra.mrb[60].mxu0 %vm1033_vm2, %v16988_v26 }
 0x183   : > { %15431 = vmatprep.mubr.msk.bf16.mxu0 %vm17818_vm0, %v22454_v1  ;;  %15500 = vmatpush3.bf16.msra.mxu0 %v17747_v28 }
 0x184   : > { %15501 = vmatprep.subr.bf16.mxu0 %v22454_v1 }
 0x187   : > { %15502 = vmatpush3.bf16.msra.mxu0 %v17748_v32 }
 0x188   : > { %15503 = vmatprep.subr.bf16.mxu0 %v22454_v1 }
 0x18a   : > { %15432 = vmatmul.mubr.msk.bf16.gmra.mrb[64].mxu0 %vm1033_vm2, %v16989_v29 }
 0x18b   : > { %15435 = vmatprep.mubr.msk.bf16.mxu0 %vm17818_vm0, %v22454_v1  ;;  %15504 = vmatpush3.bf16.msra.mxu0 %v17749_v35 }
 0x18c   : > { %15505 = vmatprep.subr.bf16.mxu0 %v22454_v1 }
 0x18f   : > { %15506 = vmatpush3.bf16.msra.mxu0 %v17750_v39 }
 0x190   : > { %15507 = vmatprep.subr.bf16.mxu0 %v22454_v1 }
 0x192   : > { %15436 = vmatmul.mubr.msk.bf16.gmra.mrb[68].mxu0 %vm1033_vm2, %v16990_v36 }
 0x193   : > { %15439 = vmatprep.mubr.msk.bf16.mxu0 %vm17818_vm0, %v22454_v1  ;;  %15508 = vmatpush3.bf16.msra.mxu0 %v17751_v42 }
 0x194   : > { %15509 = vmatprep.subr.bf16.mxu0 %v22454_v1 }
 0x197   : > { %15510 = vmatpush3.bf16.msra.mxu0 %v17752_v46 }
 0x19a   : > { %15440 = vmatmul.mubr.msk.bf16.gmra.mrb[72].mxu0 %vm1033_vm2, %v16991_v43 }
 0x19b   : > { %15443 = vmatprep.mubr.msk.bf16.mxu0 %vm17818_vm0, %v22454_v1 }
 0x1a2   : > { %15444 = vmatmul.mubr.msk.bf16.gmra.mrb[76].mxu0 %vm1033_vm2, %v16992_v49 }
 0x1a3   : > { %15447 = vmatprep.mubr.msk.bf16.mxu0 %vm17818_vm0, %v22454_v1 }
 0x1aa   : > { %15448 = vmatmul.mubr.msk.bf16.gmra.mrb[80].mxu0 %vm1033_vm2, %v16993_v54 }
 0x1ab   : > { %15451 = vmatprep.mubr.msk.bf16.mxu0 %vm17818_vm0, %v22454_v1 }
 0x1b2   : > { %15452 = vmatmul.mubr.msk.bf16.gmra.mrb[84].mxu0 %vm1033_vm2, %v16994_v59 }
 0x1b3   : > { %15455 = vmatprep.mubr.msk.bf16.mxu0 %vm17818_vm0, %v22454_v1 }
 0x1ba   : > { %15456 = vmatmul.mubr.msk.bf16.gmra.mrb[88].mxu0 %vm1033_vm2, %v16995_v2 }
 0x1bb   : > { %15511 = vmatprep.mubr.msk.bf16.mxu0 %vm17818_vm0, %v22454_v1 }
 0x205   : > { %v1099_v24 = vpop.f32.mrb[20].mxu0 }
 0x206   : > { %v15333_v25 = vpop.f32.mrb[21].mxu0  ;;  %v1280_v26 = vadd.f32 %v18540_v30, %v1099_v24  ;;  %v16998_v30 = vld [vmem:[%s22443_s15 + $0x4] ss:$8 sps:$4 sm:$0xff]  }
 0x207   : > { %v1102_v27 = vpop.f32.mrb[22].mxu0  ;;  %12901 = vmatprep.mubr.msk.bf16.mxu1 %vm1775_vm3, %v16998_v30 }
 0x208   : > { %v15334_v28 = vpop.f32.mrb[23].mxu0  ;;  %v1283_v29 = vadd.f32 %v18545_v33, %v1102_v27 }
 0x20d   : > { %v1107_v31 = vpop.f32.mrb[24].mxu0 }
 0x20e   : > { %v15337_v32 = vpop.f32.mrb[25].mxu0  ;;  %v1288_v34 = vadd.f32 %v18558_v37, %v1107_v31 }
 0x20f   : > { %v1110_v35 = vpop.f32.mrb[26].mxu0 }
 0x210   : > { %v15338_v36 = vpop.f32.mrb[27].mxu0  ;;  %v1291_v38 = vadd.f32 %v18563_v40, %v1110_v35 }
 0x215   : > { %v1115_v39 = vpop.f32.mrb[28].mxu0 }
 0x216   : > { %v15341_v41 = vpop.f32.mrb[29].mxu0  ;;  %v18610_v42 = vadd.f32 %v1295_v44, %v1115_v39 }
 0x217   : > { %v1118_v43 = vpop.f32.mrb[30].mxu0 }
 0x218   : > { %v15342_v45 = vpop.f32.mrb[31].mxu0  ;;  %v18612_v46 = vadd.f32 %v1298_v47, %v1118_v43 }
 0x21d   : > { %v1123_v33 = vpop.f32.mrb[32].mxu0 }
 0x21e   : > { %v18618_v37 = vadd.f32 %v1303_v50, %v1123_v33  ;;  %v15345_v48 = vpop.f32.mrb[33].mxu0 }
 0x21f   : > { %v1126_v40 = vpop.f32.mrb[34].mxu0 }
 0x220   : > { %v18620_v49 = vadd.f32 %v1306_v52, %v1126_v40  ;;  %v15346_v44 = vpop.f32.mrb[35].mxu0 }
 0x225   : > { %v1131_v51 = vpop.f32.mrb[36].mxu0 }
 0x226   : > { %v18622_v53 = vadd.f32 %v1311_v55, %v1131_v51  ;;  %v15349_v47 = vpop.f32.mrb[37].mxu0 }
 0x227   : > { %v1134_v54 = vpop.f32.mrb[38].mxu0 }
 0x228   : > { %v18624_v56 = vadd.f32 %v1314_v57, %v1134_v54  ;;  %v15350_v58 = vpop.f32.mrb[39].mxu0 }
 0x22d   : > { %v1139_v59 = vpop.f32.mrb[40].mxu0 }
 0x22e   : > { %v18626_v61 = vadd.f32 %v1319_v60, %v1139_v59  ;;  %v15353_v0 = vpop.f32.mrb[41].mxu0 }
 0x22f   : > { %v1142_v2 = vpop.f32.mrb[42].mxu0 }
 0x230   : > { %v18628_v50 = vadd.f32 %v1322_v63, %v1142_v2  ;;  %v15354_v5 = vpop.f32.mrb[43].mxu0 }
 0x235   : > { %v1147_v8 = vpop.f32.mrb[44].mxu0 }
 0x236   : > { %v18630_v52 = vadd.f32 %v1327_v3, %v1147_v8  ;;  %v15357_v11 = vpop.f32.mrb[45].mxu0 }
 0x237   : > { %v1150_v14 = vpop.f32.mrb[46].mxu0 }
 0x238   : > { %v18632_v55 = vadd.f32 %v1330_v7, %v1150_v14  ;;  %v15358_v18 = vpop.f32.mrb[47].mxu0 }
 0x23d   : > { %v1155_v20 = vpop.f32.mrb[48].mxu0 }
 0x23e   : > { %v18634_v57 = vadd.f32 %v1335_v10, %v1155_v20  ;;  %v15361_v24 = vpop.f32.mrb[49].mxu0 }
 0x23f   : > { %v1158_v25 = vpop.f32.mrb[50].mxu0 }
 0x240   : > { %v18636_v60 = vadd.f32 %v1338_v13, %v1158_v25  ;;  %v15362_v27 = vpop.f32.mrb[51].mxu0 }
 0x245   : > { %v1163_v28 = vpop.f32.mrb[52].mxu0 }
 0x246   : > { %v18638_v63 = vadd.f32 %v1343_v16, %v1163_v28  ;;  %v15365_v31 = vpop.f32.mrb[53].mxu0 }
 0x247   : > { %v1166_v32 = vpop.f32.mrb[54].mxu0 }
 0x248   : > { %v18640_v3 = vadd.f32 %v1346_v19, %v1166_v32  ;;  %v15366_v35 = vpop.f32.mrb[55].mxu0 }
 0x24d   : > { %v1478_v36 = vpop.f32.mrb[56].mxu0 }
 0x24e   : > { %v1549_v7 = vadd.f32 %v1478_v36, %v1280_v26  ;;  %v15425_v39 = vpop.f32.mrb[57].mxu0 }
 0x24f   : > { %v1481_v41 = vpop.f32.mrb[58].mxu0 }
 0x250   : > { %v1675_v10 = vadd.f32 %v18438_v62, %v1549_v7  ;;  %v1550_v43 = vadd.f32 %v1481_v41, %v1283_v29  ;;  %v15426_v45 = vpop.f32.mrb[59].mxu0 }
 0x252   : > { %v1676_v13 = vadd.f32 %v18455_v4, %v1550_v43  ;;  %v1693_v30 = vmax.f32 %v1675_v10, 0.0 }
 0x254   : > { %v1694_v33 = vmax.f32 %v1676_v13, 0.0  ;;  %v1638_v13 = vpop.permute.xlu0 %1637 }
 0x255   : > { %v1486_v48 = vpop.f32.mrb[60].mxu0 }
 0x256   : > { %v1551_v16 = vadd.f32 %v1486_v48, %v1288_v34  ;;  %v15429_v40 = vpop.f32.mrb[61].mxu0  ;;  %v1711_v44 = vpack.c.bf16 %v1694_v33, %v1693_v30 }
 0x257   : > { %v1489_v51 = vpop.f32.mrb[62].mxu0 }
 0x258   : > { %v1677_v19 = vadd.f32 %v18460_v6, %v1551_v16  ;;  %v1552_v47 = vadd.f32 %v1489_v51, %v1291_v38  ;;  %v15430_v54 = vpop.f32.mrb[63].mxu0  ;;  %1792 = vmatpush1.bf16.msra.mxu1 %v1711_v44 }
 0x259   : > { %1793 = vmatprep.subr.bf16.mxu1 %v22456_v23  ;;  %v1648_v54 = vpop.permute.xlu0 %1647 }
 0x25a   : > { %v1678_v62 = vadd.f32 %v18479_v12, %v1552_v47  ;;  %v1695_v26 = vmax.f32 %v1677_v19, 0.0 }
 0x25c   : > { %v1696_v29 = vmax.f32 %v1678_v62, 0.0 }
 0x25d   : > { %v1494_v58 = vpop.f32.mrb[64].mxu0 }
 0x25e   : > { %v1553_v4 = vadd.f32 %v1494_v58, %v18610_v42  ;;  %v15433_v59 = vpop.f32.mrb[65].mxu0  ;;  %v1712_v0 = vpack.c.bf16 %v1696_v29, %v1695_v26 }
 0x25f   : > { %v1497_v34 = vpop.f32.mrb[66].mxu0 }
 0x260   : > { %v1679_v2 = vadd.f32 %v18471_v9, %v1553_v4  ;;  %v1554_v5 = vadd.f32 %v1497_v34, %v18612_v46  ;;  %v15434_v6 = vpop.f32.mrb[67].mxu0  ;;  %1794 = vmatpush1.bf16.msra.mxu1 %v1712_v0 }
 0x261   : > { %1795 = vmatprep.subr.bf16.mxu1 %v22456_v23  ;;  %v1658_v6 = vpop.permute.xlu0 %1657 }
 0x262   : > { %v1680_v38 = vadd.f32 %v18495_v17, %v1554_v5  ;;  %v1697_v8 = vmax.f32 %v1679_v2, 0.0 }
 0x264   : > { %v1698_v12 = vmax.f32 %v1680_v38, 0.0 }
 0x265   : > { %v1502_v11 = vpop.f32.mrb[68].mxu0 }
 0x266   : > { %v1555_v14 = vadd.f32 %v1502_v11, %v18618_v37  ;;  %v15437_v18 = vpop.f32.mrb[69].mxu0  ;;  %v1713_v42 = vpack.c.bf16 %v1698_v12, %v1697_v8 }
 0x267   : > { %v1505_v20 = vpop.f32.mrb[70].mxu0 }
 0x268   : > { %v1681_v24 = vadd.f32 %v18488_v15, %v1555_v14  ;;  %v1556_v9 = vadd.f32 %v1505_v20, %v18620_v49  ;;  %v15438_v25 = vpop.f32.mrb[71].mxu0  ;;  %1796 = vmatpush1.bf16.msra.mxu1 %v1713_v42  ;;  %v1633_v49 = vpop.permute.xlu1 %1632 }
 0x269   : > { %1797 = vmatprep.subr.bf16.mxu1 %v22456_v23  ;;  %v1668_v25 = vpop.permute.xlu0 %1667 }
 0x26a   : > { %v1682_v46 = vadd.f32 %v18509_v22, %v1556_v9  ;;  %v1699_v27 = vmax.f32 %v1681_v24, 0.0 }
 0x26c   : > { %v1700_v17 = vmax.f32 %v1682_v46, 0.0 }
 0x26d   : > { %v1510_v28 = vpop.f32.mrb[72].mxu0 }
 0x26e   : > { %v1557_v31 = vadd.f32 %v1510_v28, %v18622_v53  ;;  %v15441_v32 = vpop.f32.mrb[73].mxu0  ;;  %v1714_v37 = vpack.c.bf16 %v1700_v17, %v1699_v27 }
 0x26f   : > { %v1513_v35 = vpop.f32.mrb[74].mxu0 }
 0x270   : > { %v1683_v36 = vadd.f32 %v18506_v21, %v1557_v31  ;;  %v1558_v15 = vadd.f32 %v1513_v35, %v18624_v56  ;;  %v15442_v7 = vpop.f32.mrb[75].mxu0  ;;  %1798 = vmatpush1.bf16.msra.mxu1 %v1714_v37  ;;  %v1643_v56 = vpop.permute.xlu1 %1642 }
 0x271   : > { %1799 = vmatprep.subr.bf16.mxu1 %v22456_v23  ;;  %v17001_v7 = vld [vmem:[%s22443_s15 + $0x10] ss:$8 sps:$4 sm:$0xff]  }
 0x272   : > { %v1684_v39 = vadd.f32 %v1633_v49, %v1558_v15  ;;  %v1701_v41 = vmax.f32 %v1683_v36, 0.0  ;;  %v16999_v36 = vld [vmem:[%s22443_s15 + $0x14] ss:$8 sps:$4 sm:$0xff]   ;;  %v17012_v15 = vld [vmem:[%s22479_s3 + $0x8] sm:$0xff]  }
 0x273   : > { %v17002_v49 = vld [vmem:[%s22443_s15 + $0x24] ss:$8 sps:$4 sm:$0xff]  }
 0x274   : > { %v1702_v22 = vmax.f32 %v1684_v39, 0.0  ;;  %v17013_v39 = vld [vmem:[%s22479_s3 + $0x10] sm:$0xff]  }
 0x275   : > { %v1518_v10 = vpop.f32.mrb[76].mxu0 }
 0x276   : > { %v1559_v43 = vadd.f32 %v1518_v10, %v18626_v61  ;;  %v15445_v45 = vpop.f32.mrb[77].mxu0  ;;  %v1715_v53 = vpack.c.bf16 %v1702_v22, %v1701_v41  ;;  %v17014_v41 = vld [vmem:[%s22479_s3 + $0x18] sm:$0xff]   ;;  %v17004_v22 = vld [vmem:[%s22443_s15 + $0x20] ss:$8 sps:$4 sm:$0xff]  }
 0x277   : > { %v1521_v30 = vpop.f32.mrb[78].mxu0  ;;  %v17005_v10 = vld [vmem:[%s22443_s15 + $0x34] ss:$8 sps:$4 sm:$0xff]   ;;  %v17016_v45 = vld [vmem:[%s22479_s3 + $0x28] sm:$0xff]  }
 0x278   : > { %v1685_v33 = vadd.f32 %v1638_v13, %v1559_v43  ;;  %v1560_v21 = vadd.f32 %v1521_v30, %v18628_v50  ;;  %v15446_v48 = vpop.f32.mrb[79].mxu0  ;;  %1800 = vmatpush1.bf16.msra.mxu1 %v1715_v53  ;;  %v1653_v50 = vpop.permute.xlu1 %1652  ;;  %v17015_v43 = vld [vmem:[%s22479_s3 + $0x20] sm:$0xff]   ;;  %v17007_v53 = vld [vmem:[%s22443_s15 + $0x30] ss:$8 sps:$4 sm:$0xff]  }
 0x279   : > { %1801 = vmatprep.subr.bf16.mxu1 %v22456_v23  ;;  %v17008_v13 = vld [vmem:[%s22443_s15 + $0x44] ss:$8 sps:$4 sm:$0xff]   ;;  %v17017_v30 = vld [vmem:[%s22479_s3 + $0x30] sm:$0xff]  }
 0x27a   : > { %v1686_v16 = vadd.f32 %v1643_v56, %v1560_v21  ;;  %v1703_v40 = vmax.f32 %v1685_v33, 0.0  ;;  %v17010_v33 = vld [vmem:[%s22443_s15 + $0x40] ss:$8 sps:$4 sm:$0xff]   ;;  %v17018_v21 = vld [vmem:[%s22479_s3 + $0x38] sm:$0xff]  }
 0x27c   : > { %v1704_v44 = vmax.f32 %v1686_v16, 0.0 }
 0x27d   : > { %v1526_v51 = vpop.f32.mrb[80].mxu0 }
 0x27e   : > { %v1561_v19 = vadd.f32 %v1526_v51, %v18630_v52  ;;  %v15449_v47 = vpop.f32.mrb[81].mxu0  ;;  %v1716_v61 = vpack.c.bf16 %v1704_v44, %v1703_v40  ;;  %v18744_v51 = vld [vmem:[%s22475_s2 + $0x40] sm:$0xff]  }
 0x27f   : > { %v1529_v62 = vpop.f32.mrb[82].mxu0 }
 0x280   : > { %v1687_v26 = vadd.f32 %v1648_v54, %v1561_v19  ;;  %v1562_v29 = vadd.f32 %v1529_v62, %v18632_v55  ;;  %v15450_v58 = vpop.f32.mrb[83].mxu0  ;;  %1802 = vmatpush1.bf16.msra.mxu1 %v1716_v61  ;;  %v1663_v55 = vpop.permute.xlu1 %1662  ;;  %v18751_v54 = vld [vmem:[%s22475_s2 + $0x48] sm:$0xff]  }
 0x281   : > { %1803 = vmatprep.subr.bf16.mxu1 %v22456_v23 }
 0x282   : > { %v1688_v4 = vadd.f32 %v1653_v50, %v1562_v29  ;;  %v1705_v59 = vmax.f32 %v1687_v26, 0.0  ;;  %v18760_v29 = vld [vmem:[%s22475_s2 + $0x50] sm:$0xff]  }
 0x284   : > { %v1706_v0 = vmax.f32 %v1688_v4, 0.0 }
 0x285   : > { %v1534_v34 = vpop.f32.mrb[84].mxu0 }
 0x286   : > { %v1563_v2 = vadd.f32 %v1534_v34, %v18634_v57  ;;  %v15453_v5 = vpop.f32.mrb[85].mxu0  ;;  %v1717_v52 = vpack.c.bf16 %v1706_v0, %v1705_v59  ;;  %v18767_v59 = vld [vmem:[%s22475_s2 + $0x58] sm:$0xff]  }
 0x287   : > { %v1537_v38 = vpop.f32.mrb[86].mxu0 }
 0x288   : > { %v1689_v8 = vadd.f32 %v1658_v6, %v1563_v2  ;;  %v1564_v12 = vadd.f32 %v1537_v38, %v18636_v60  ;;  %v15454_v11 = vpop.f32.mrb[87].mxu0  ;;  %1804 = vmatpush1.bf16.msra.mxu1 %v1717_v52  ;;  %v1673_v60 = vpop.permute.xlu1 %1672  ;;  %v18776_v2 = vld [vmem:[%s22475_s2 + $0x60] sm:$0xff]   ;;  %v18783_v38 = vld [vmem:[%s22475_s2 + $0x68] sm:$0xff]  }
 0x289   : > { %1805 = vmatprep.subr.bf16.mxu1 %v22456_v23  ;;  %v18792_v11 = vld [vmem:[%s22475_s2 + $0x70] sm:$0xff]  }
 0x28a   : > { %v1690_v14 = vadd.f32 %v1663_v55, %v1564_v12  ;;  %v1707_v18 = vmax.f32 %v1689_v8, 0.0 }
 0x28c   : > { %v1708_v42 = vmax.f32 %v1690_v14, 0.0 }
 0x28d   : > { %v1542_v20 = vpop.f32.mrb[88].mxu0 }
 0x28e   : > { %v1565_v24 = vadd.f32 %v1542_v20, %v18638_v63  ;;  %v15457_v9 = vpop.f32.mrb[89].mxu0  ;;  %v1718_v57 = vpack.c.bf16 %v1708_v42, %v1707_v18  ;;  %v16996_v63 = vld [vmem:[%s22443_s15] ss:$8 sps:$4 sm:$0xff]   ;;  %v18799_v42 = vld [vmem:[%s22475_s2 + $0x78] sm:$0xff]  }
 0x28f   : > { %v1545_v46 = vpop.f32.mrb[90].mxu0 }
 0x290   : > { %v1691_v27 = vadd.f32 %v1668_v25, %v1565_v24  ;;  %v1566_v17 = vadd.f32 %v1545_v46, %v18640_v3  ;;  %v15458_v28 = vpop.f32.mrb[91].mxu0  ;;  %1806 = vmatpush1.bf16.msra.mxu1 %v1718_v57  ;;  %v17011_v3 = vld [vmem:[%s22479_s3] sm:$0xff]  }
 0x291   : > { %1807 = vmatprep.subr.bf16.mxu1 %v22456_v23 }
 0x292   : > { %v1692_v31 = vadd.f32 %v1673_v60, %v1566_v17  ;;  %v1709_v32 = vmax.f32 %v1691_v27, 0.0 }
 0x294   : > { %v1710_v37 = vmax.f32 %v1692_v31, 0.0 }
 0x296   : > { %v1719_v35 = vpack.c.bf16 %v1710_v37, %v1709_v32 }
 0x298   : > { %1808 = vmatpush1.bf16.msra.mxu1 %v1719_v35 }
 0x299   : > { %15459 = vmatprep.subr.bf16.mxu1 %v22454_v1 }
 0x29b   : > { %1824 = vmatmul.mubr.bf16.vlgmr.msra.gmra.mrb[56].mxu1 %v16996_v63 }
 0x29c   : > { %12902 = vmatprep.mubr.msk.bf16.mxu1 %vm1775_vm3, %v16999_v36  ;;  %15460 = vmatpush3.bf16.msra.mxu1 %v17011_v3 }
 0x29d   : > { %15461 = vmatprep.subr.bf16.mxu1 %v22454_v1 }
 0x2a0   : > { %15462 = vmatpush3.bf16.msra.mxu1 %v17012_v15 }
 0x2a1   : > { %15463 = vmatprep.subr.bf16.mxu1 %v22454_v1 }
 0x2a3   : > { %1832 = vmatmul.mubr.bf16.gmra.mrb[60].mxu1 %v17001_v7 }
 0x2a4   : > { %12903 = vmatprep.mubr.msk.bf16.mxu1 %vm1775_vm3, %v17002_v49  ;;  %15464 = vmatpush3.bf16.msra.mxu1 %v17013_v39 }
 0x2a5   : > { %15465 = vmatprep.subr.bf16.mxu1 %v22454_v1 }
 0x2a8   : > { %15466 = vmatpush3.bf16.msra.mxu1 %v17014_v41 }
 0x2a9   : > { %15467 = vmatprep.subr.bf16.mxu1 %v22454_v1 }
 0x2ab   : > { %1840 = vmatmul.mubr.bf16.gmra.mrb[64].mxu1 %v17004_v22 }
 0x2ac   : > { %12904 = vmatprep.mubr.msk.bf16.mxu1 %vm1775_vm3, %v17005_v10  ;;  %15468 = vmatpush3.bf16.msra.mxu1 %v17015_v43 }
 0x2ad   : > { %15469 = vmatprep.subr.bf16.mxu1 %v22454_v1 }
 0x2b0   : > { %15470 = vmatpush3.bf16.msra.mxu1 %v17016_v45 }
 0x2b1   : > { %15471 = vmatprep.subr.bf16.mxu1 %v22454_v1 }
 0x2b3   : > { %1848 = vmatmul.mubr.bf16.gmra.mrb[68].mxu1 %v17007_v53 }
 0x2b4   : > { %12905 = vmatprep.mubr.msk.bf16.mxu1 %vm1775_vm3, %v17008_v13  ;;  %15472 = vmatpush3.bf16.msra.mxu1 %v17017_v30  ;;  %v17019_v13 = vld [vmem:[%s22433_s5] sm:$0xff]  }
 0x2b5   : > { %15473 = vmatprep.subr.bf16.mxu1 %v22454_v1 }
 0x2b8   : > { %15474 = vmatpush3.bf16.msra.mxu1 %v17018_v21 }
 0x2b9   : > { %15531 = vmatprep.subr.bf16.mxu1 %v22454_v1 }
 0x2bb   : > { %1856 = vmatmul.mubr.bf16.gmra.mrb[72].mxu1 %v17010_v33 }
 0x2bc   : > { %15475 = vmatprep.mubr.msk.bf16.mxu1 %vm17818_vm0, %v22454_v1 }
 0x36e   : > { %v1825_v48 = vpop.f32.mrb[56].mxu1 }
 0x36f   : > { %v1827_v56 = vpop.f32.mrb[57].mxu1 }
 0x370   : > { %v1828_v16 = vpop.f32.mrb[58].mxu1 }
 0x371   : > { %v1864_v40 = vpack.c.bf16 %v1828_v16, %v1825_v48  ;;  %v1830_v44 = vpop.f32.mrb[59].mxu1 }
 0x373   : > { %15476 = vmatmul.mubr.bf16.vlgmr.msra.gmra.mrb[76].mxu1 %v1864_v40 }
 0x374   : > { %15479 = vmatprep.mubr.msk.bf16.mxu1 %vm17818_vm0, %v22454_v1  ;;  %15532 = vmatpush3.bf16.msra.mxu1 %v18744_v51 }
 0x375   : > { %15533 = vmatprep.subr.bf16.mxu1 %v22454_v1 }
 0x376   : > { %v1833_v19 = vpop.f32.mrb[60].mxu1 }
 0x377   : > { %v1835_v47 = vpop.f32.mrb[61].mxu1 }
 0x378   : > { %v1836_v61 = vpop.f32.mrb[62].mxu1  ;;  %15534 = vmatpush3.bf16.msra.mxu1 %v18751_v54 }
 0x379   : > { %v1865_v62 = vpack.c.bf16 %v1836_v61, %v1833_v19  ;;  %v1838_v26 = vpop.f32.mrb[63].mxu1  ;;  %15535 = vmatprep.subr.bf16.mxu1 %v22454_v1 }
 0x37b   : > { %15480 = vmatmul.mubr.bf16.gmra.mrb[80].mxu1 %v1865_v62 }
 0x37c   : > { %15483 = vmatprep.mubr.msk.bf16.mxu1 %vm17818_vm0, %v22454_v1  ;;  %15536 = vmatpush3.bf16.msra.mxu1 %v18760_v29 }
 0x37d   : > { %15537 = vmatprep.subr.bf16.mxu1 %v22454_v1 }
 0x37e   : > { %v1841_v58 = vpop.f32.mrb[64].mxu1 }
 0x37f   : > { %v1843_v50 = vpop.f32.mrb[65].mxu1 }
 0x380   : > { %v1844_v4 = vpop.f32.mrb[66].mxu1  ;;  %15538 = vmatpush3.bf16.msra.mxu1 %v18767_v59 }
 0x381   : > { %v1866_v0 = vpack.c.bf16 %v1844_v4, %v1841_v58  ;;  %v1846_v34 = vpop.f32.mrb[67].mxu1  ;;  %15539 = vmatprep.subr.bf16.mxu1 %v22454_v1 }
 0x383   : > { %15484 = vmatmul.mubr.bf16.gmra.mrb[84].mxu1 %v1866_v0 }
 0x384   : > { %15487 = vmatprep.mubr.msk.bf16.mxu1 %vm17818_vm0, %v22454_v1  ;;  %15540 = vmatpush3.bf16.msra.mxu1 %v18776_v2 }
 0x385   : > { %15541 = vmatprep.subr.bf16.mxu1 %v22454_v1 }
 0x386   : > { %v1849_v5 = vpop.f32.mrb[68].mxu1 }
 0x387   : > { %v1851_v52 = vpop.f32.mrb[69].mxu1 }
 0x388   : > { %v1852_v6 = vpop.f32.mrb[70].mxu1  ;;  %15542 = vmatpush3.bf16.msra.mxu1 %v18783_v38 }
 0x389   : > { %v1867_v8 = vpack.c.bf16 %v1852_v6, %v1849_v5  ;;  %v1854_v12 = vpop.f32.mrb[71].mxu1  ;;  %15543 = vmatprep.subr.bf16.mxu1 %v22454_v1 }
 0x38b   : > { %15488 = vmatmul.mubr.bf16.gmra.mrb[88].mxu1 %v1867_v8 }
 0x38c   : > { %15491 = vmatprep.mubr.msk.bf16.mxu1 %vm17818_vm0, %v22454_v1  ;;  %15544 = vmatpush3.bf16.msra.mxu1 %v18792_v11 }
 0x38d   : > { %15545 = vmatprep.subr.bf16.mxu1 %v22454_v1 }
 0x38e   : > { %v1857_v55 = vpop.f32.mrb[72].mxu1 }
 0x38f   : > { %v1859_v14 = vpop.f32.mrb[73].mxu1 }
 0x390   : > { %v1860_v18 = vpop.f32.mrb[74].mxu1  ;;  %15546 = vmatpush3.bf16.msra.mxu1 %v18799_v42 }
 0x391   : > { %v1868_v20 = vpack.c.bf16 %v1860_v18, %v1857_v55  ;;  %v1862_v24 = vpop.f32.mrb[75].mxu1  ;;  %3084 = vmatprep.subr.bf16.mxu1 %v22456_v23 }
 0x393   : > { %15492 = vmatmul.mubr.bf16.gmra.mrb[92].mxu1 %v1868_v20 }
 0x394   : > { %15547 = vmatprep.mubr.msk.bf16.mxu1 %vm17818_vm0, %v22454_v1 }
 0x446   : > { %v1967_v9 = vpop.f32.mrb[76].mxu1 }
 0x447   : > { %v15477_v57 = vpop.f32.mrb[77].mxu1 }
 0x448   : > { %v1970_v25 = vpop.f32.mrb[78].mxu1 }
 0x449   : > { %v18805_v46 = vpack.c.bf16 %v1970_v25, %v1967_v9  ;;  %v15478_v27 = vpop.f32.mrb[79].mxu1 }
 0x44b   : > { %15512 = vmatmul.mubr.bf16.vlgmr.msra.gmra.mrb[92].mxu0 %v18805_v46  ;;  %15548 = vmatmul.mubr.bf16.vlgmr.msra.gmra.mrb[96].mxu1 %v18805_v46 }
 0x44c   : > { %15515 = vmatprep.mubr.msk.bf16.mxu0 %vm17818_vm0, %v22454_v1  ;;  %15551 = vmatprep.mubr.msk.bf16.mxu1 %vm17818_vm0, %v22454_v1 }
 0x44e   : > { %v1975_v17 = vpop.f32.mrb[80].mxu1 }
 0x44f   : > { %v15481_v28 = vpop.f32.mrb[81].mxu1 }
 0x450   : > { %v1978_v60 = vpop.f32.mrb[82].mxu1 }
 0x451   : > { %v18813_v31 = vpack.c.bf16 %v1978_v60, %v1975_v17  ;;  %v15482_v32 = vpop.f32.mrb[83].mxu1 }
 0x453   : > { %15516 = vmatmul.mubr.bf16.gmra.mrb[96].mxu0 %v18813_v31  ;;  %15552 = vmatmul.mubr.bf16.gmra.mrb[100].mxu1 %v18813_v31 }
 0x454   : > { %15519 = vmatprep.mubr.msk.bf16.mxu0 %vm17818_vm0, %v22454_v1  ;;  %15555 = vmatprep.mubr.msk.bf16.mxu1 %vm17818_vm0, %v22454_v1 }
 0x456   : > { %v1983_v37 = vpop.f32.mrb[84].mxu1 }
 0x457   : > { %v15485_v35 = vpop.f32.mrb[85].mxu1 }
 0x458   : > { %v1986_v63 = vpop.f32.mrb[86].mxu1 }
 0x459   : > { %v18821_v36 = vpack.c.bf16 %v1986_v63, %v1983_v37  ;;  %v15486_v3 = vpop.f32.mrb[87].mxu1 }
 0x45b   : > { %15520 = vmatmul.mubr.bf16.gmra.mrb[100].mxu0 %v18821_v36  ;;  %15556 = vmatmul.mubr.bf16.gmra.mrb[104].mxu1 %v18821_v36 }
 0x45c   : > { %15523 = vmatprep.mubr.msk.bf16.mxu0 %vm17818_vm0, %v22454_v1  ;;  %15559 = vmatprep.mubr.msk.bf16.mxu1 %vm17818_vm0, %v22454_v1 }
 0x45e   : > { %v1991_v15 = vpop.f32.mrb[88].mxu1 }
 0x45f   : > { %v15489_v7 = vpop.f32.mrb[89].mxu1 }
 0x460   : > { %v1994_v49 = vpop.f32.mrb[90].mxu1 }
 0x461   : > { %v18829_v39 = vpack.c.bf16 %v1994_v49, %v1991_v15  ;;  %v15490_v41 = vpop.f32.mrb[91].mxu1 }
 0x463   : > { %15524 = vmatmul.mubr.bf16.gmra.mrb[104].mxu0 %v18829_v39  ;;  %15560 = vmatmul.mubr.bf16.gmra.mrb[108].mxu1 %v18829_v39 }
 0x464   : > { %15527 = vmatprep.mubr.msk.bf16.mxu0 %vm17818_vm0, %v22454_v1  ;;  %15563 = vmatprep.mubr.msk.bf16.mxu1 %vm17818_vm0, %v22454_v1 }
 0x466   : > { %v1999_v22 = vpop.f32.mrb[92].mxu1 }
 0x467   : > { %v15493_v10 = vpop.f32.mrb[93].mxu1 }
 0x468   : > { %v2002_v43 = vpop.f32.mrb[94].mxu1 }
 0x469   : > { %v18837_v45 = vpack.c.bf16 %v2002_v43, %v1999_v22  ;;  %v15494_v53 = vpop.f32.mrb[95].mxu1 }
 0x46b   : > { %15528 = vmatmul.mubr.bf16.gmra.mrb[108].mxu0 %v18837_v45  ;;  %15564 = vmatmul.mubr.bf16.gmra.mrb[112].mxu1 %v18837_v45 }
 0x46c   : > { %15577 = vmatprep.mubr.msk.bf16.mxu0 %vm2258_vm4, %v17019_v13 }
 0x51e   : > { %v2045_v30 = vpop.f32.mrb[92].mxu0  ;;  %v2123_v33 = vpop.f32.mrb[96].mxu1 }
 0x51f   : > { %v15513_v21 = vpop.f32.mrb[93].mxu0  ;;  %v15549_v48 = vpop.f32.mrb[97].mxu1 }
 0x520   : > { %v2048_v56 = vpop.f32.mrb[94].mxu0  ;;  %v2126_v16 = vpop.f32.mrb[98].mxu1  ;;  %v17021_v21 = vld [vmem:[%s22433_s5 + $0x10] sm:$0xff]   ;;  %v17022_v48 = vld [vmem:[%s22433_s5 + $0x18] sm:$0xff]  }
 0x521   : > { %v18845_v40 = vpack.c.bf16 %v2126_v16, %v2123_v33  ;;  %v15514_v44 = vpop.f32.mrb[95].mxu0  ;;  %v15550_v19 = vpop.f32.mrb[99].mxu1  ;;  %v2084_v47 = vpack.c.bf16 %v2048_v56, %v2045_v30  ;;  %v17020_v33 = vld [vmem:[%s22433_s5 + $0x8] sm:$0xff]   ;;  %v17023_v56 = vld [vmem:[%s22433_s5 + $0x20] sm:$0xff]   ;;  %v17029_v16 = vld [vmem:[%s22433_s5 + $0x50] sm:$0xff]  }
 0x522   : > { %v17030_v44 = vld [vmem:[%s22433_s5 + $0x58] sm:$0xff]   ;;  %v17031_v19 = vld [vmem:[%s22433_s5 + $0x60] sm:$0xff]  }
 0x523   : > { %15567 = vmatprep.subr.bf16.mxu0 %v2084_v47 }
 0x524   : > { %15568 = vmatpush3.bf16.msra.mxu0 %v2084_v47  ;;  %v17032_v47 = vld [vmem:[%s22433_s5 + $0x68] sm:$0xff]  }
 0x526   : > { %v2053_v61 = vpop.f32.mrb[96].mxu0  ;;  %v2131_v62 = vpop.f32.mrb[100].mxu1 }
 0x527   : > { %v15517_v26 = vpop.f32.mrb[97].mxu0  ;;  %v15553_v58 = vpop.f32.mrb[101].mxu1 }
 0x528   : > { %v2056_v50 = vpop.f32.mrb[98].mxu0  ;;  %v2134_v4 = vpop.f32.mrb[102].mxu1  ;;  %v17036_v26 = vld [vmem:[%s22433_s5 + $0x88] sm:$0xff]   ;;  %v17037_v58 = vld [vmem:[%s22433_s5 + $0x90] sm:$0xff]  }
 0x529   : > { %v18847_v0 = vpack.c.bf16 %v2134_v4, %v2131_v62  ;;  %v15518_v34 = vpop.f32.mrb[99].mxu0  ;;  %v15554_v5 = vpop.f32.mrb[103].mxu1  ;;  %v2085_v52 = vpack.c.bf16 %v2056_v50, %v2053_v61  ;;  %v17033_v61 = vld [vmem:[%s22433_s5 + $0x70] sm:$0xff]   ;;  %v17035_v62 = vld [vmem:[%s22433_s5 + $0x80] sm:$0xff]   ;;  %v17038_v50 = vld [vmem:[%s22433_s5 + $0x98] sm:$0xff]  }
 0x52a   : > { %v17039_v4 = vld [vmem:[%s22433_s5 + $0xa0] sm:$0xff]   ;;  %v17041_v34 = vld [vmem:[%s22433_s5 + $0xb0] sm:$0xff]   ;;  %v17042_v5 = vld [vmem:[%s22433_s5 + $0xb8] sm:$0xff]  }
 0x52b   : > { %15569 = vmatprep.subr.bf16.mxu0 %v2085_v52 }
 0x52c   : > { %15570 = vmatpush3.bf16.msra.mxu0 %v2085_v52  ;;  %v17043_v52 = vld [vmem:[%s22433_s5 + $0xc0] sm:$0xff]  }
 0x52e   : > { %v2061_v6 = vpop.f32.mrb[100].mxu0  ;;  %v2139_v8 = vpop.f32.mrb[104].mxu1 }
 0x52f   : > { %v15521_v12 = vpop.f32.mrb[101].mxu0  ;;  %v15557_v55 = vpop.f32.mrb[105].mxu1 }
 0x530   : > { %v2064_v14 = vpop.f32.mrb[102].mxu0  ;;  %v2142_v18 = vpop.f32.mrb[106].mxu1 }
 0x531   : > { %v18849_v20 = vpack.c.bf16 %v2142_v18, %v2139_v8  ;;  %v15522_v24 = vpop.f32.mrb[103].mxu0  ;;  %v15558_v9 = vpop.f32.mrb[107].mxu1  ;;  %v2086_v57 = vpack.c.bf16 %v2064_v14, %v2061_v6  ;;  %v17045_v6 = vld [vmem:[%s22433_s5 + $0xd0] sm:$0xff]  }
 0x533   : > { %15571 = vmatprep.subr.bf16.mxu0 %v2086_v57 }
 0x534   : > { %15572 = vmatpush3.bf16.msra.mxu0 %v2086_v57 }
 0x536   : > { %v2069_v25 = vpop.f32.mrb[104].mxu0  ;;  %v2147_v27 = vpop.f32.mrb[108].mxu1 }
 0x537   : > { %v15525_v17 = vpop.f32.mrb[105].mxu0  ;;  %v15561_v28 = vpop.f32.mrb[109].mxu1 }
 0x538   : > { %v2072_v60 = vpop.f32.mrb[106].mxu0  ;;  %v2150_v32 = vpop.f32.mrb[110].mxu1 }
 0x539   : > { %v18851_v37 = vpack.c.bf16 %v2150_v32, %v2147_v27  ;;  %v15526_v35 = vpop.f32.mrb[107].mxu0  ;;  %v15562_v63 = vpop.f32.mrb[111].mxu1  ;;  %v2087_v3 = vpack.c.bf16 %v2072_v60, %v2069_v25 }
 0x53b   : > { %15573 = vmatprep.subr.bf16.mxu0 %v2087_v3 }
 0x53c   : > { %15574 = vmatpush3.bf16.msra.mxu0 %v2087_v3 }
 0x53e   : > { %v2077_v15 = vpop.f32.mrb[108].mxu0  ;;  %v2155_v7 = vpop.f32.mrb[112].mxu1 }
 0x53f   : > { %v15529_v49 = vpop.f32.mrb[109].mxu0  ;;  %v15565_v41 = vpop.f32.mrb[113].mxu1 }
 0x540   : > { %v2080_v22 = vpop.f32.mrb[110].mxu0  ;;  %v2158_v10 = vpop.f32.mrb[114].mxu1 }
 0x541   : > { %v2166_v43 = vpack.c.bf16 %v2158_v10, %v2155_v7  ;;  %v15530_v53 = vpop.f32.mrb[111].mxu0  ;;  %v15566_v13 = vpop.f32.mrb[115].mxu1  ;;  %v2088_v30 = vpack.c.bf16 %v2080_v22, %v2077_v15 }
 0x543   : > { %15575 = vmatprep.subr.bf16.mxu0 %v2088_v30 }
 0x544   : > { %15576 = vmatpush3.bf16.msra.mxu0 %v2088_v30 }
 0x545   : > { %15597 = vmatprep.subr.bf16.mxu0 %v18805_v46 }
 0x547   : > { %15578 = vmatmul.mubr.msk.bf16.vlgmr.msra.gmra.mrb[112].mxu0 %vm2258_vm4, %v17020_v33 }
 0x548   : > { %15598 = vmatpush3.bf16.msra.mxu0 %v18805_v46  ;;  %15581 = vmatprep.mubr.msk.bf16.mxu0 %vm2258_vm4, %v17021_v21  ;;  %v17024_v46 = vld [vmem:[%s22433_s5 + $0x28] sm:$0xff]  }
 0x549   : > { %15599 = vmatprep.subr.bf16.mxu0 %v18813_v31 }
 0x54c   : > { %15600 = vmatpush3.bf16.msra.mxu0 %v18813_v31  ;;  %v17025_v31 = vld [vmem:[%s22433_s5 + $0x30] sm:$0xff]  }
 0x54d   : > { %15601 = vmatprep.subr.bf16.mxu0 %v18821_v36 }
 0x54f   : > { %15582 = vmatmul.mubr.msk.bf16.gmra.mrb[116].mxu0 %vm2258_vm4, %v17022_v48 }
 0x550   : > { %15602 = vmatpush3.bf16.msra.mxu0 %v18821_v36  ;;  %15585 = vmatprep.mubr.msk.bf16.mxu0 %vm2258_vm4, %v17023_v56  ;;  %v17026_v36 = vld [vmem:[%s22433_s5 + $0x38] sm:$0xff]  }
 0x551   : > { %15603 = vmatprep.subr.bf16.mxu0 %v18829_v39 }
 0x554   : > { %15604 = vmatpush3.bf16.msra.mxu0 %v18829_v39  ;;  %v17027_v39 = vld [vmem:[%s22433_s5 + $0x40] sm:$0xff]  }
 0x555   : > { %15605 = vmatprep.subr.bf16.mxu0 %v18837_v45 }
 0x557   : > { %15586 = vmatmul.mubr.msk.bf16.gmra.mrb[120].mxu0 %vm2258_vm4, %v17024_v46 }
 0x558   : > { %15606 = vmatpush3.bf16.msra.mxu0 %v18837_v45  ;;  %15589 = vmatprep.mubr.msk.bf16.mxu0 %vm2258_vm4, %v17025_v31  ;;  %v17028_v45 = vld [vmem:[%s22433_s5 + $0x48] sm:$0xff]  }
 0x559   : > { %15627 = vmatprep.subr.bf16.mxu0 %v18845_v40 }
 0x55f   : > { %15590 = vmatmul.mubr.msk.bf16.gmra.mrb[124].mxu0 %vm2258_vm4, %v17026_v36 }
 0x560   : > { %15593 = vmatprep.mubr.msk.bf16.mxu0 %vm2258_vm4, %v17027_v39 }
 0x567   : > { %15594 = vmatmul.mubr.msk.bf16.gmra.mrb[128].mxu0 %vm2258_vm4, %v17028_v45 }
 0x568   : > { %15607 = vmatprep.mubr.msk.bf16.mxu0 %vm2258_vm4, %v17029_v16 }
 0x56f   : > { %15608 = vmatmul.mubr.msk.bf16.vlgmr.msra.gmra.mrb[112].mxu0 %vm2258_vm4, %v17030_v44 }
 0x570   : > { %15628 = vmatpush3.bf16.msra.mxu0 %v18845_v40  ;;  %15611 = vmatprep.mubr.msk.bf16.mxu0 %vm2258_vm4, %v17031_v19  ;;  %v17034_v40 = vld [vmem:[%s22433_s5 + $0x78] sm:$0xff]  }
 0x571   : > { %15629 = vmatprep.subr.bf16.mxu0 %v18847_v0 }
 0x574   : > { %15630 = vmatpush3.bf16.msra.mxu0 %v18847_v0  ;;  %v17040_v0 = vld [vmem:[%s22433_s5 + $0xa8] sm:$0xff]  }
 0x575   : > { %15631 = vmatprep.subr.bf16.mxu0 %v18849_v20 }
 0x577   : > { %15612 = vmatmul.mubr.msk.bf16.gmra.mrb[116].mxu0 %vm2258_vm4, %v17032_v47 }
 0x578   : > { %15632 = vmatpush3.bf16.msra.mxu0 %v18849_v20  ;;  %15615 = vmatprep.mubr.msk.bf16.mxu0 %vm2258_vm4, %v17033_v61 }
 0x579   : > { %15633 = vmatprep.subr.bf16.mxu0 %v18851_v37 }
 0x57c   : > { %15634 = vmatpush3.bf16.msra.mxu0 %v18851_v37 }
 0x57d   : > { %15635 = vmatprep.subr.bf16.mxu0 %v2166_v43 }
 0x57f   : > { %15616 = vmatmul.mubr.msk.bf16.gmra.mrb[120].mxu0 %vm2258_vm4, %v17034_v40 }
 0x580   : > { %15636 = vmatpush3.bf16.msra.mxu0 %v2166_v43  ;;  %15619 = vmatprep.mubr.msk.bf16.mxu0 %vm2258_vm4, %v17035_v62 }
 0x581   : > { %15713 = vmatprep.subr.bf16.mxu0 %v18744_v51 }
 0x587   : > { %15620 = vmatmul.mubr.msk.bf16.gmra.mrb[124].mxu0 %vm2258_vm4, %v17036_v26 }
 0x588   : > { %15623 = vmatprep.mubr.msk.bf16.mxu0 %vm2258_vm4, %v17037_v58 }
 0x58f   : > { %15624 = vmatmul.mubr.msk.bf16.gmra.mrb[128].mxu0 %vm2258_vm4, %v17038_v50 }
 0x590   : > { %15637 = vmatprep.mubr.msk.bf16.mxu0 %vm2258_vm4, %v17039_v4 }
 0x597   : > { %15638 = vmatmul.mubr.msk.bf16.vlgmr.msra.gmra.mrb[112].mxu0 %vm2258_vm4, %v17040_v0 }
 0x598   : > { %15641 = vmatprep.mubr.msk.bf16.mxu0 %vm2258_vm4, %v17041_v34  ;;  %15714 = vmatpush3.bf16.msra.mxu0 %v18744_v51  ;;  %v17044_v51 = vld [vmem:[%s22433_s5 + $0xc8] sm:$0xff]  }
 0x599   : > { %15715 = vmatprep.subr.bf16.mxu0 %v18751_v54 }
 0x59c   : > { %15716 = vmatpush3.bf16.msra.mxu0 %v18751_v54  ;;  %v17046_v54 = vld [vmem:[%s22433_s5 + $0xd8] sm:$0xff]  }
 0x59d   : > { %15717 = vmatprep.subr.bf16.mxu0 %v18760_v29 }
 0x59f   : > { %15642 = vmatmul.mubr.msk.bf16.gmra.mrb[116].mxu0 %vm2258_vm4, %v17042_v5 }
 0x5a0   : > { %15645 = vmatprep.mubr.msk.bf16.mxu0 %vm2258_vm4, %v17043_v52  ;;  %15718 = vmatpush3.bf16.msra.mxu0 %v18760_v29  ;;  %v17047_v29 = vld [vmem:[%s22433_s5 + $0xe0] sm:$0xff]  }
 0x5a1   : > { %15719 = vmatprep.subr.bf16.mxu0 %v18767_v59 }
 0x5a4   : > { %15720 = vmatpush3.bf16.msra.mxu0 %v18767_v59  ;;  %v17048_v59 = vld [vmem:[%s22433_s5 + $0xe8] sm:$0xff]  }
 0x5a5   : > { %15721 = vmatprep.subr.bf16.mxu0 %v18776_v2 }
 0x5a7   : > { %15646 = vmatmul.mubr.msk.bf16.gmra.mrb[120].mxu0 %vm2258_vm4, %v17044_v51 }
 0x5a8   : > { %15649 = vmatprep.mubr.msk.bf16.mxu0 %vm2258_vm4, %v17045_v6  ;;  %15722 = vmatpush3.bf16.msra.mxu0 %v18776_v2  ;;  %v17051_v2 = vld [vmem:[%s22444_s16 + $0x4] ss:$8 sps:$4 sm:$0xff]  }
 0x5a9   : > { %15723 = vmatprep.subr.bf16.mxu0 %v18783_v38  ;;  %13026 = vmatprep.mubr.msk.bf16.mxu1 %vm3065_vm5, %v17051_v2 }
 0x5ac   : > { %15724 = vmatpush3.bf16.msra.mxu0 %v18783_v38  ;;  %v2852_v38 = vpop.permute.xlu0 %2851 }
 0x5ad   : > { %15725 = vmatprep.subr.bf16.mxu0 %v18792_v11 }
 0x5af   : > { %15650 = vmatmul.mubr.msk.bf16.gmra.mrb[124].mxu0 %vm2258_vm4, %v17046_v54 }
 0x5b0   : > { %15653 = vmatprep.mubr.msk.bf16.mxu0 %vm2258_vm4, %v17047_v29  ;;  %15726 = vmatpush3.bf16.msra.mxu0 %v18792_v11  ;;  %v2857_v11 = vpop.permute.xlu1 %2856  ;;  %v2862_v8 = vpop.permute.xlu0 %2861 }
 0x5b1   : > { %15727 = vmatprep.subr.bf16.mxu0 %v18799_v42 }
 0x5b4   : > { %15728 = vmatpush3.bf16.msra.mxu0 %v18799_v42  ;;  %v2867_v12 = vpop.permute.xlu1 %2866  ;;  %v2872_v55 = vpop.permute.xlu0 %2871 }
 0x5b5   : > { %4756 = vmatprep.subr.bf16.mxu0 %v22456_v23 }
 0x5b7   : > { %15654 = vmatmul.mubr.msk.bf16.gmra.mrb[128].mxu0 %vm2258_vm4, %v17048_v59 }
 0x5b8   : > { %v2877_v14 = vpop.permute.xlu1 %2876  ;;  %v2882_v18 = vpop.permute.xlu0 %2881 }
 0x5bc   : > { %v2887_v20 = vpop.permute.xlu1 %2886  ;;  %v2892_v57 = vpop.permute.xlu0 %2891 }
 0x5c0   : > { %v2897_v60 = vpop.permute.xlu1 %2896  ;;  %v2902_v7 = vpop.permute.xlu0 %2901 }
 0x5c4   : > { %v2907_v43 = vpop.permute.xlu1 %2906  ;;  %v2912_v46 = vpop.permute.xlu0 %2911 }
 0x5c8   : > { %v2917_v45 = vpop.permute.xlu1 %2916  ;;  %v2922_v58 = vpop.permute.xlu0 %2921 }
 0x5cc   : > { %v2927_v34 = vpop.permute.xlu1 %2926  ;;  %v2932_v2 = vpop.permute.xlu0 %2931 }
 0x66a   : > { %v15639_v42 = vpop.f32.mrb[112].mxu0 }
 0x66b   : > { %v2951_v24 = vadd.f32 %v15639_v42, %v2862_v8  ;;  %v2730_v9 = vpop.f32.mrb[113].mxu0 }
 0x66c   : > { %v2949_v25 = vadd.f32 %v2852_v38, %v2730_v9  ;;  %v15640_v27 = vpop.f32.mrb[114].mxu0 }
 0x66d   : > { %v2952_v17 = vadd.f32 %v15640_v27, %v2867_v12  ;;  %v2733_v28 = vpop.f32.mrb[115].mxu0  ;;  %v2971_v37 = vmax.f32 %v2951_v24, 0.0 }
 0x66e   : > { %v2950_v32 = vadd.f32 %v2857_v11, %v2733_v28  ;;  %v2969_v63 = vmax.f32 %v2949_v25, 0.0 }
 0x66f   : > { %v2972_v35 = vmax.f32 %v2952_v17, 0.0 }
 0x670   : > { %v2970_v3 = vmax.f32 %v2950_v32, 0.0 }
 0x671   : > { %v19008_v15 = vpack.c.bf16 %v2972_v35, %v2971_v37 }
 0x672   : > { %v15643_v49 = vpop.f32.mrb[116].mxu0  ;;  %v19010_v41 = vpack.c.bf16 %v2970_v3, %v2969_v63 }
 0x673   : > { %22480 = vst [vmem:[#allocation2_spill] sm:$0xff] %v19008_v15  ;;  %v2955_v22 = vadd.f32 %v15643_v49, %v2882_v18  ;;  %v2746_v10 = vpop.f32.mrb[117].mxu0 }
 0x674   : > { %22481 = vst [vmem:[#allocation3_spill] sm:$0xff] %v19010_v41  ;;  %v2953_v53 = vadd.f32 %v2872_v55, %v2746_v10  ;;  %v15644_v13 = vpop.f32.mrb[118].mxu0  ;;  %3085 = vmatpush1.bf16.msra.mxu1 %v19010_v41  ;;  %v2937_v55 = vpop.permute.xlu1 %2936 }
 0x675   : > { %v2956_v30 = vadd.f32 %v15644_v13, %v2887_v20  ;;  %v2749_v33 = vpop.f32.mrb[119].mxu0  ;;  %3086 = vmatprep.subr.bf16.mxu1 %v22456_v23  ;;  %v2975_v48 = vmax.f32 %v2955_v22, 0.0  ;;  %v17067_v13 = vld [vmem:[%s22479_s3 + $0x40] sm:$0xff]  }
 0x676   : > { %v2954_v21 = vadd.f32 %v2877_v14, %v2749_v33  ;;  %v2973_v31 = vmax.f32 %v2953_v53, 0.0  ;;  %v17052_v33 = vld [vmem:[%s22444_s16 + $0x14] ss:$8 sps:$4 sm:$0xff]  }
 0x677   : > { %v2976_v56 = vmax.f32 %v2956_v30, 0.0  ;;  %v17049_v30 = vld [vmem:[%s22444_s16] ss:$8 sps:$4 sm:$0xff]  }
 0x678   : > { %v2974_v36 = vmax.f32 %v2954_v21, 0.0  ;;  %3087 = vmatpush1.bf16.msra.mxu1 %v19008_v15  ;;  %v17068_v21 = vld [vmem:[%s22479_s3 + $0x48] sm:$0xff]  }
 0x679   : > { %3088 = vmatprep.subr.bf16.mxu1 %v22456_v23  ;;  %v19016_v39 = vpack.c.bf16 %v2976_v56, %v2975_v48  ;;  %v17069_v48 = vld [vmem:[%s22479_s3 + $0x50] sm:$0xff]  }
 0x67a   : > { %v15647_v16 = vpop.f32.mrb[120].mxu0  ;;  %v19018_v44 = vpack.c.bf16 %v2974_v36, %v2973_v31  ;;  %v17054_v56 = vld [vmem:[%s22444_s16 + $0x10] ss:$8 sps:$4 sm:$0xff]   ;;  %v17071_v36 = vld [vmem:[%s22479_s3 + $0x60] sm:$0xff]  }
 0x67b   : > { %22482 = vst [vmem:[#allocation4_spill] sm:$0xff] %v19016_v39  ;;  %v2959_v19 = vadd.f32 %v15647_v16, %v2902_v7  ;;  %v2762_v47 = vpop.f32.mrb[121].mxu0  ;;  %v17070_v31 = vld [vmem:[%s22479_s3 + $0x58] sm:$0xff]  }
 0x67c   : > { %22483 = vst [vmem:[#allocation5_spill] sm:$0xff] %v19018_v44  ;;  %v2957_v61 = vadd.f32 %v2892_v57, %v2762_v47  ;;  %v15648_v40 = vpop.f32.mrb[122].mxu0  ;;  %3089 = vmatpush1.bf16.msra.mxu1 %v19018_v44  ;;  %v2942_v57 = vpop.permute.xlu0 %2941  ;;  %v17058_v16 = vld [vmem:[%s22444_s16 + $0x34] ss:$8 sps:$4 sm:$0xff]   ;;  %v17061_v47 = vld [vmem:[%s22444_s16 + $0x44] ss:$8 sps:$4 sm:$0xff]  }
 0x67d   : > { %v2960_v62 = vadd.f32 %v15648_v40, %v2907_v43  ;;  %v2765_v26 = vpop.f32.mrb[123].mxu0  ;;  %3090 = vmatprep.subr.bf16.mxu1 %v22456_v23  ;;  %v2979_v4 = vmax.f32 %v2959_v19, 0.0  ;;  %v17060_v19 = vld [vmem:[%s22444_s16 + $0x30] ss:$8 sps:$4 sm:$0xff]   ;;  %v17064_v40 = vld [vmem:[%s22444_s16 + $0x54] ss:$8 sps:$4 sm:$0xff]  }
 0x67e   : > { %v2958_v50 = vadd.f32 %v2897_v60, %v2765_v26  ;;  %v2977_v5 = vmax.f32 %v2957_v61, 0.0  ;;  %v2947_v60 = vpop.permute.xlu1 %2946  ;;  %v17063_v61 = vld [vmem:[%s22444_s16 + $0x40] ss:$8 sps:$4 sm:$0xff]  }
 0x67f   : > { %v2980_v0 = vmax.f32 %v2960_v62, 0.0  ;;  %v17066_v62 = vld [vmem:[%s22444_s16 + $0x50] ss:$8 sps:$4 sm:$0xff]   ;;  %v17072_v26 = vld [vmem:[%s22479_s3 + $0x68] sm:$0xff]  }
 0x680   : > { %v2978_v52 = vmax.f32 %v2958_v50, 0.0  ;;  %3091 = vmatpush1.bf16.msra.mxu1 %v19016_v39  ;;  %v17074_v50 = vld [vmem:[%s22479_s3 + $0x78] sm:$0xff]  }
 0x681   : > { %3092 = vmatprep.subr.bf16.mxu1 %v22456_v23  ;;  %v19024_v51 = vpack.c.bf16 %v2980_v0, %v2979_v4  ;;  %v19112_v4 = vld [vmem:[%s22475_s2] sm:$0xff]  }
 0x682   : > { %v15651_v6 = vpop.f32.mrb[124].mxu0  ;;  %v19026_v54 = vpack.c.bf16 %v2978_v52, %v2977_v5 }
 0x683   : > { %22484 = vst [vmem:[#allocation6_spill] sm:$0xff] %v19024_v51  ;;  %v2963_v29 = vadd.f32 %v15651_v6, %v2922_v58  ;;  %v2778_v59 = vpop.f32.mrb[125].mxu0  ;;  %v17073_v58 = vld [vmem:[%s22479_s3 + $0x70] sm:$0xff]  }
 0x684   : > { %22485 = vst [vmem:[#allocation7_spill] sm:$0xff] %v19026_v54  ;;  %v2961_v38 = vadd.f32 %v2912_v46, %v2778_v59  ;;  %v15652_v11 = vpop.f32.mrb[126].mxu0  ;;  %3093 = vmatpush1.bf16.msra.mxu1 %v19026_v54  ;;  %v17055_v46 = vld [vmem:[%s22444_s16 + $0x24] ss:$8 sps:$4 sm:$0xff]  }
 0x685   : > { %v2964_v8 = vadd.f32 %v15652_v11, %v2927_v34  ;;  %v2781_v12 = vpop.f32.mrb[127].mxu0  ;;  %3094 = vmatprep.subr.bf16.mxu1 %v22456_v23  ;;  %v2983_v18 = vmax.f32 %v2963_v29, 0.0 }
 0x686   : > { %v2962_v14 = vadd.f32 %v2917_v45, %v2781_v12  ;;  %v2981_v42 = vmax.f32 %v2961_v38, 0.0  ;;  %v17057_v45 = vld [vmem:[%s22444_s16 + $0x20] ss:$8 sps:$4 sm:$0xff]  }
 0x687   : > { %v2984_v20 = vmax.f32 %v2964_v8, 0.0  ;;  %v19119_v8 = vld [vmem:[%s22475_s2 + $0x8] sm:$0xff]  }
 0x688   : > { %v2982_v24 = vmax.f32 %v2962_v14, 0.0  ;;  %3095 = vmatpush1.bf16.msra.mxu1 %v19024_v51 }
 0x689   : > { %3096 = vmatprep.subr.bf16.mxu1 %v22456_v23  ;;  %v19032_v9 = vpack.c.bf16 %v2984_v20, %v2983_v18 }
 0x68a   : > { %v15655_v25 = vpop.f32.mrb[128].mxu0  ;;  %v19034_v27 = vpack.c.bf16 %v2982_v24, %v2981_v42  ;;  %v19126_v42 = vld [vmem:[%s22475_s2 + $0x10] sm:$0xff]   ;;  %v19133_v24 = vld [vmem:[%s22475_s2 + $0x18] sm:$0xff]  }
 0x68b   : > { %22486 = vst [vmem:[#allocation8_spill] sm:$0xff] %v19032_v9  ;;  %v2967_v17 = vadd.f32 %v15655_v25, %v2942_v57  ;;  %v2794_v28 = vpop.f32.mrb[129].mxu0 }
 0x68c   : > { %22487 = vst [vmem:[#allocation9_spill] sm:$0xff] %v19034_v27  ;;  %v2965_v32 = vadd.f32 %v2932_v2, %v2794_v28  ;;  %v15656_v37 = vpop.f32.mrb[130].mxu0  ;;  %3097 = vmatpush1.bf16.msra.mxu1 %v19034_v27 }
 0x68d   : > { %v2968_v35 = vadd.f32 %v15656_v37, %v2947_v60  ;;  %v2797_v63 = vpop.f32.mrb[131].mxu0  ;;  %3098 = vmatprep.subr.bf16.mxu1 %v22456_v23  ;;  %v2987_v7 = vmax.f32 %v2967_v17, 0.0  ;;  %v19147_v37 = vld [vmem:[%s22475_s2 + $0x28] sm:$0xff]  }
 0x68e   : > { %v2966_v3 = vadd.f32 %v2937_v55, %v2797_v63  ;;  %v2985_v22 = vmax.f32 %v2965_v32, 0.0  ;;  %v19140_v32 = vld [vmem:[%s22475_s2 + $0x20] sm:$0xff]  }
 0x68f   : > { %v2988_v49 = vmax.f32 %v2968_v35, 0.0 }
 0x690   : > { %v2986_v10 = vmax.f32 %v2966_v3, 0.0  ;;  %3099 = vmatpush1.bf16.msra.mxu1 %v19032_v9 }
 0x691   : > { %3100 = vmatprep.subr.bf16.mxu1 %v22456_v23  ;;  %v19040_v43 = vpack.c.bf16 %v2988_v49, %v2987_v7 }
 0x692   : > { %v19042_v53 = vpack.c.bf16 %v2986_v10, %v2985_v22  ;;  %v19154_v22 = vld [vmem:[%s22475_s2 + $0x30] sm:$0xff]   ;;  %v19161_v10 = vld [vmem:[%s22475_s2 + $0x38] sm:$0xff]  }
 0x693   : > { %22488 = vst [vmem:[#allocation10_spill] sm:$0xff] %v19040_v43 }
 0x694   : > { %22489 = vst [vmem:[#allocation11_spill] sm:$0xff] %v19042_v53  ;;  %3101 = vmatpush1.bf16.msra.mxu1 %v19042_v53 }
 0x695   : > { %3102 = vmatprep.subr.bf16.mxu1 %v22456_v23 }
 0x698   : > { %3103 = vmatpush1.bf16.msra.mxu1 %v19040_v43 }
 0x699   : > { %15657 = vmatprep.subr.bf16.mxu1 %v17067_v13 }
 0x69b   : > { %3117 = vmatmul.mubr.bf16.vlgmr.msra.gmra.mrb[116].mxu1 %v17049_v30 }
 0x69c   : > { %13027 = vmatprep.mubr.msk.bf16.mxu1 %vm3065_vm5, %v17052_v33  ;;  %15658 = vmatpush3.bf16.msra.mxu1 %v17067_v13 }
 0x69d   : > { %15659 = vmatprep.subr.bf16.mxu1 %v17068_v21 }
 0x6a0   : > { %15660 = vmatpush3.bf16.msra.mxu1 %v17068_v21 }
 0x6a1   : > { %15661 = vmatprep.subr.bf16.mxu1 %v17069_v48 }
 0x6a3   : > { %3125 = vmatmul.mubr.bf16.gmra.mrb[120].mxu1 %v17054_v56 }
 0x6a4   : > { %13028 = vmatprep.mubr.msk.bf16.mxu1 %vm3065_vm5, %v17055_v46  ;;  %15662 = vmatpush3.bf16.msra.mxu1 %v17069_v48 }
 0x6a5   : > { %15663 = vmatprep.subr.bf16.mxu1 %v17070_v31 }
 0x6a8   : > { %15664 = vmatpush3.bf16.msra.mxu1 %v17070_v31 }
 0x6a9   : > { %15665 = vmatprep.subr.bf16.mxu1 %v17071_v36 }
 0x6ab   : > { %3133 = vmatmul.mubr.bf16.gmra.mrb[124].mxu1 %v17057_v45 }
 0x6ac   : > { %13029 = vmatprep.mubr.msk.bf16.mxu1 %vm3065_vm5, %v17058_v16  ;;  %15666 = vmatpush3.bf16.msra.mxu1 %v17071_v36 }
 0x6ad   : > { %15667 = vmatprep.subr.bf16.mxu1 %v17072_v26 }
 0x6b0   : > { %15668 = vmatpush3.bf16.msra.mxu1 %v17072_v26 }
 0x6b1   : > { %15669 = vmatprep.subr.bf16.mxu1 %v17073_v58 }
 0x6b3   : > { %3141 = vmatmul.mubr.bf16.gmra.mrb[128].mxu1 %v17060_v19 }
 0x6b4   : > { %13030 = vmatprep.mubr.msk.bf16.mxu1 %vm3065_vm5, %v17061_v47  ;;  %15670 = vmatpush3.bf16.msra.mxu1 %v17073_v58 }
 0x6b5   : > { %15671 = vmatprep.subr.bf16.mxu1 %v17074_v50 }
 0x6b8   : > { %15672 = vmatpush3.bf16.msra.mxu1 %v17074_v50 }
 0x6b9   : > { %15685 = vmatprep.subr.bf16.mxu1 %v19112_v4 }
 0x6bb   : > { %3149 = vmatmul.mubr.bf16.gmra.mrb[132].mxu1 %v17063_v61 }
 0x6bc   : > { %13031 = vmatprep.mubr.msk.bf16.mxu1 %vm3065_vm5, %v17064_v40 }
 0x6c3   : > { %3157 = vmatmul.mubr.bf16.gmra.mrb[136].mxu1 %v17066_v62 }
 0x76e   : > { %v3118_v0 = vpop.f32.mrb[116].mxu1 }
 0x76f   : > { %v3120_v34 = vpop.f32.mrb[117].mxu1 }
 0x770   : > { %v3121_v5 = vpop.f32.mrb[118].mxu1 }
 0x771   : > { %v3165_v52 = vpack.c.bf16 %v3121_v5, %v3118_v0  ;;  %v3123_v6 = vpop.f32.mrb[119].mxu1 }
 0x772   : > { %v17075_v6 = vld [vmem:[%s22435_s7] sm:$0xff]  }
 0x773   : > { %15673 = vmatprep.mubr.bf16.mxu1 %v3165_v52 }
 0x776   : > { %v3126_v29 = vpop.f32.mrb[120].mxu1 }
 0x777   : > { %v3128_v59 = vpop.f32.mrb[121].mxu1 }
 0x778   : > { %v3129_v2 = vpop.f32.mrb[122].mxu1 }
 0x779   : > { %v3166_v38 = vpack.c.bf16 %v3129_v2, %v3126_v29  ;;  %v3131_v11 = vpop.f32.mrb[123].mxu1 }
 0x77b   : > { %15674 = vmatmul.mubr.bf16.vlgmr.msra.gmra.mrb[140].mxu1 %v3166_v38 }
 0x77c   : > { %15686 = vmatpush3.bf16.msra.mxu1 %v19112_v4 }
 0x77d   : > { %15687 = vmatprep.subr.bf16.mxu1 %v19119_v8 }
 0x77e   : > { %v3134_v12 = vpop.f32.mrb[124].mxu1 }
 0x77f   : > { %v3136_v55 = vpop.f32.mrb[125].mxu1 }
 0x780   : > { %v3137_v14 = vpop.f32.mrb[126].mxu1  ;;  %15688 = vmatpush3.bf16.msra.mxu1 %v19119_v8 }
 0x781   : > { %v3167_v18 = vpack.c.bf16 %v3137_v14, %v3134_v12  ;;  %v3139_v20 = vpop.f32.mrb[127].mxu1  ;;  %15689 = vmatprep.subr.bf16.mxu1 %v19126_v42 }
 0x783   : > { %15677 = vmatprep.mubr.bf16.mxu1 %v3167_v18 }
 0x784   : > { %15690 = vmatpush3.bf16.msra.mxu1 %v19126_v42 }
 0x785   : > { %15691 = vmatprep.subr.bf16.mxu1 %v19133_v24 }
 0x786   : > { %v3142_v57 = vpop.f32.mrb[128].mxu1 }
 0x787   : > { %v3144_v25 = vpop.f32.mrb[129].mxu1 }
 0x788   : > { %v3145_v17 = vpop.f32.mrb[130].mxu1  ;;  %15692 = vmatpush3.bf16.msra.mxu1 %v19133_v24 }
 0x789   : > { %v3168_v28 = vpack.c.bf16 %v3145_v17, %v3142_v57  ;;  %v3147_v60 = vpop.f32.mrb[131].mxu1  ;;  %15693 = vmatprep.subr.bf16.mxu1 %v19140_v32 }
 0x78b   : > { %15678 = vmatmul.mubr.bf16.gmra.mrb[144].mxu1 %v3168_v28 }
 0x78c   : > { %15694 = vmatpush3.bf16.msra.mxu1 %v19140_v32 }
 0x78d   : > { %15695 = vmatprep.subr.bf16.mxu1 %v19147_v37 }
 0x78e   : > { %v3150_v35 = vpop.f32.mrb[132].mxu1 }
 0x78f   : > { %v3152_v63 = vpop.f32.mrb[133].mxu1 }
 0x790   : > { %v3153_v3 = vpop.f32.mrb[134].mxu1  ;;  %15696 = vmatpush3.bf16.msra.mxu1 %v19147_v37 }
 0x791   : > { %v3169_v7 = vpack.c.bf16 %v3153_v3, %v3150_v35  ;;  %v3155_v49 = vpop.f32.mrb[135].mxu1  ;;  %15697 = vmatprep.subr.bf16.mxu1 %v19154_v22 }
 0x793   : > { %15681 = vmatprep.mubr.bf16.mxu1 %v3169_v7 }
 0x794   : > { %15698 = vmatpush3.bf16.msra.mxu1 %v19154_v22 }
 0x795   : > { %15699 = vmatprep.subr.bf16.mxu1 %v19161_v10 }
 0x796   : > { %v3158_v13 = vpop.f32.mrb[136].mxu1 }
 0x797   : > { %v3160_v30 = vpop.f32.mrb[137].mxu1 }
 0x798   : > { %v3161_v33 = vpop.f32.mrb[138].mxu1  ;;  %15700 = vmatpush3.bf16.msra.mxu1 %v19161_v10 }
 0x799   : > { %v3170_v21 = vpack.c.bf16 %v3161_v33, %v3158_v13  ;;  %v3163_v48 = vpop.f32.mrb[139].mxu1 }
 0x79b   : > { %15682 = vmatmul.mubr.bf16.gmra.mrb[148].mxu1 %v3170_v21 }
 0x84e   : > { %v15675_v56 = vpop.f32.mrb[140].mxu1 }
 0x84f   : > { %v3270_v46 = vpop.f32.mrb[141].mxu1 }
 0x850   : > { %v15676_v31 = vpop.f32.mrb[142].mxu1 }
 0x851   : > { %v19165_v36 = vpack.c.bf16 %v15676_v31, %v15675_v56  ;;  %v3273_v45 = vpop.f32.mrb[143].mxu1 }
 0x852   : > { %v19167_v16 = vpack.c.bf16 %v3273_v45, %v3270_v46 }
 0x854   : > { %15701 = vmatprep.mubr.bf16.mxu1 %v19167_v16  ;;  %15729 = vmatprep.mubr.bf16.mxu0 %v19167_v16 }
 0x855   : > { %15702 = vmatmul.mubr.bf16.vlgmr.msra.gmra.mrb[152].mxu1 %v19165_v36  ;;  %15730 = vmatmul.mubr.bf16.vlgmr.msra.gmra.mrb[132].mxu0 %v19165_v36 }
 0x85e   : > { %v15679_v19 = vpop.f32.mrb[144].mxu1 }
 0x85f   : > { %v3286_v47 = vpop.f32.mrb[145].mxu1 }
 0x860   : > { %v15680_v61 = vpop.f32.mrb[146].mxu1 }
 0x861   : > { %v19173_v40 = vpack.c.bf16 %v15680_v61, %v15679_v19  ;;  %v3289_v62 = vpop.f32.mrb[147].mxu1 }
 0x862   : > { %v19175_v26 = vpack.c.bf16 %v3289_v62, %v3286_v47 }
 0x864   : > { %15705 = vmatprep.mubr.bf16.mxu1 %v19175_v26  ;;  %15733 = vmatprep.mubr.bf16.mxu0 %v19175_v26 }
 0x865   : > { %15706 = vmatmul.mubr.bf16.gmra.mrb[156].mxu1 %v19173_v40  ;;  %15734 = vmatmul.mubr.bf16.gmra.mrb[136].mxu0 %v19173_v40 }
 0x86e   : > { %v15683_v58 = vpop.f32.mrb[148].mxu1 }
 0x86f   : > { %v3302_v50 = vpop.f32.mrb[149].mxu1 }
 0x870   : > { %v15684_v0 = vpop.f32.mrb[150].mxu1 }
 0x871   : > { %v19181_v34 = vpack.c.bf16 %v15684_v0, %v15683_v58  ;;  %v3305_v5 = vpop.f32.mrb[151].mxu1 }
 0x872   : > { %v19183_v52 = vpack.c.bf16 %v3305_v5, %v3302_v50  ;;  %v17076_v5 = vld [vmem:[%s22435_s7 + $0x8] sm:$0xff]  }
 0x874   : > { %15709 = vmatprep.mubr.bf16.mxu1 %v19183_v52  ;;  %15737 = vmatprep.mubr.bf16.mxu0 %v19183_v52 }
 0x875   : > { %15710 = vmatmul.mubr.bf16.gmra.mrb[160].mxu1 %v19181_v34  ;;  %15738 = vmatmul.mubr.bf16.gmra.mrb[140].mxu0 %v19181_v34 }
 0x876   : > { %15753 = vmatprep.mubr.msk.bf16.mxu1 %vm3606_vm6, %v17075_v6  ;;  %v17077_v6 = vld [vmem:[%s22435_s7 + $0x10] sm:$0xff]  }
 0x928   : > { %v15703_v29 = vpop.f32.mrb[152].mxu1  ;;  %v15731_v59 = vpop.f32.mrb[132].mxu0 }
 0x929   : > { %v3357_v2 = vpop.f32.mrb[153].mxu1  ;;  %v3444_v38 = vpop.f32.mrb[133].mxu0 }
 0x92a   : > { %v15704_v11 = vpop.f32.mrb[154].mxu1  ;;  %v15732_v12 = vpop.f32.mrb[134].mxu0 }
 0x92b   : > { %v3405_v55 = vpack.c.bf16 %v15704_v11, %v15703_v29  ;;  %v3360_v14 = vpop.f32.mrb[155].mxu1  ;;  %v3447_v18 = vpop.f32.mrb[135].mxu0  ;;  %v19193_v20 = vpack.c.bf16 %v15732_v12, %v15731_v59  ;;  %v17078_v29 = vld [vmem:[%s22435_s7 + $0x18] sm:$0xff]   ;;  %v17079_v59 = vld [vmem:[%s22435_s7 + $0x20] sm:$0xff]   ;;  %v17088_v11 = vld [vmem:[%s22435_s7 + $0x68] sm:$0xff]  }
 0x92c   : > { %v3404_v57 = vpack.c.bf16 %v3360_v14, %v3357_v2  ;;  %v19195_v25 = vpack.c.bf16 %v3447_v18, %v3444_v38  ;;  %v17085_v2 = vld [vmem:[%s22435_s7 + $0x50] sm:$0xff]   ;;  %v17087_v38 = vld [vmem:[%s22435_s7 + $0x60] sm:$0xff]   ;;  %v17092_v18 = vld [vmem:[%s22435_s7 + $0x88] sm:$0xff]  }
 0x92d   : > { %v17089_v12 = vld [vmem:[%s22435_s7 + $0x70] sm:$0xff]   ;;  %v17091_v14 = vld [vmem:[%s22435_s7 + $0x80] sm:$0xff]  }
 0x92e   : > { %15741 = vmatprep.subr.bf16.mxu1 %v3404_v57 }
 0x92f   : > { %15742 = vmatpush3.bf16.msra.mxu1 %v3404_v57  ;;  %v17094_v57 = vld [vmem:[%s22435_s7 + $0x98] sm:$0xff]  }
 0x930   : > { %15743 = vmatprep.subr.bf16.mxu1 %v3405_v55 }
 0x933   : > { %15744 = vmatpush3.bf16.msra.mxu1 %v3405_v55  ;;  %v17090_v55 = vld [vmem:[%s22435_s7 + $0x78] sm:$0xff]  }
 0x938   : > { %v15707_v17 = vpop.f32.mrb[156].mxu1  ;;  %v15735_v28 = vpop.f32.mrb[136].mxu0 }
 0x939   : > { %v3373_v60 = vpop.f32.mrb[157].mxu1  ;;  %v3460_v35 = vpop.f32.mrb[137].mxu0 }
 0x93a   : > { %v15708_v63 = vpop.f32.mrb[158].mxu1  ;;  %v15736_v3 = vpop.f32.mrb[138].mxu0 }
 0x93b   : > { %v3407_v7 = vpack.c.bf16 %v15708_v63, %v15707_v17  ;;  %v3376_v49 = vpop.f32.mrb[159].mxu1  ;;  %v3463_v13 = vpop.f32.mrb[139].mxu0  ;;  %v19197_v30 = vpack.c.bf16 %v15736_v3, %v15735_v28  ;;  %v17096_v17 = vld [vmem:[%s22435_s7 + $0xa8] sm:$0xff]   ;;  %v17097_v28 = vld [vmem:[%s22435_s7 + $0xb0] sm:$0xff]  }
 0x93c   : > { %v3406_v33 = vpack.c.bf16 %v3376_v49, %v3373_v60  ;;  %v19199_v21 = vpack.c.bf16 %v3463_v13, %v3460_v35  ;;  %v17098_v60 = vld [vmem:[%s22435_s7 + $0xb8] sm:$0xff]   ;;  %v17099_v35 = vld [vmem:[%s22435_s7 + $0xc0] sm:$0xff]   ;;  %v17100_v63 = vld [vmem:[%s22435_s7 + $0xc8] sm:$0xff]  }
 0x93d   : > { %v17101_v3 = vld [vmem:[%s22435_s7 + $0xd0] sm:$0xff]   ;;  %v17103_v49 = vld [vmem:[%s22435_s7 + $0xe0] sm:$0xff]   ;;  %v17104_v13 = vld [vmem:[%s22435_s7 + $0xe8] sm:$0xff]  }
 0x93e   : > { %15745 = vmatprep.subr.bf16.mxu1 %v3406_v33 }
 0x93f   : > { %15746 = vmatpush3.bf16.msra.mxu1 %v3406_v33  ;;  %v17106_v33 = vld [vmem:[%s22435_s7 + $0xf8] sm:$0xff]  }
 0x940   : > { %15747 = vmatprep.subr.bf16.mxu1 %v3407_v7 }
 0x943   : > { %15748 = vmatpush3.bf16.msra.mxu1 %v3407_v7  ;;  %v17102_v7 = vld [vmem:[%s22435_s7 + $0xd8] sm:$0xff]  }
 0x948   : > { %v15711_v48 = vpop.f32.mrb[160].mxu1  ;;  %v15739_v56 = vpop.f32.mrb[140].mxu0 }
 0x949   : > { %v3389_v46 = vpop.f32.mrb[161].mxu1  ;;  %v3476_v31 = vpop.f32.mrb[141].mxu0 }
 0x94a   : > { %v15712_v45 = vpop.f32.mrb[162].mxu1  ;;  %v15740_v19 = vpop.f32.mrb[142].mxu0 }
 0x94b   : > { %v3409_v47 = vpack.c.bf16 %v15712_v45, %v15711_v48  ;;  %v3392_v61 = vpop.f32.mrb[163].mxu1  ;;  %v3479_v62 = vpop.f32.mrb[143].mxu0  ;;  %v19201_v58 = vpack.c.bf16 %v15740_v19, %v15739_v56  ;;  %v17108_v48 = vld [vmem:[%s22435_s7 + $0x108] sm:$0xff]   ;;  %v17109_v56 = vld [vmem:[%s22435_s7 + $0x110] sm:$0xff]  }
 0x94c   : > { %v3408_v50 = vpack.c.bf16 %v3392_v61, %v3389_v46  ;;  %v3495_v0 = vpack.c.bf16 %v3479_v62, %v3476_v31  ;;  %v17110_v46 = vld [vmem:[%s22435_s7 + $0x118] sm:$0xff]   ;;  %v17113_v31 = vld [vmem:[%s22445_s17 + $0x4] ss:$8 sps:$4 sm:$0xff]   ;;  %v4298_v45 = vpop.permute.xlu0 %4297  ;;  %v4303_v19 = vpop.permute.xlu1 %4302 }
 0x94d   : > { %13216 = vmatprep.mubr.msk.bf16.mxu0 %vm4695_vm7, %v17113_v31 }
 0x94e   : > { %15749 = vmatprep.subr.bf16.mxu1 %v3408_v50 }
 0x94f   : > { %15750 = vmatpush3.bf16.msra.mxu1 %v3408_v50 }
 0x950   : > { %15751 = vmatprep.subr.bf16.mxu1 %v3409_v47  ;;  %v4313_v61 = vpop.permute.xlu1 %4312 }
 0x953   : > { %15752 = vmatpush3.bf16.msra.mxu1 %v3409_v47  ;;  %v4308_v47 = vpop.permute.xlu0 %4307 }
 0x954   : > { %15777 = vmatprep.subr.bf16.mxu1 %v19167_v16 }
 0x956   : > { %15754 = vmatmul.mubr.msk.bf16.vlgmr.msra.gmra.mrb[164].mxu1 %vm3606_vm6, %v17076_v5 }
 0x957   : > { %15778 = vmatpush3.bf16.msra.mxu1 %v19167_v16  ;;  %15757 = vmatprep.mubr.msk.bf16.mxu1 %vm3606_vm6, %v17077_v6  ;;  %v17080_v16 = vld [vmem:[%s22435_s7 + $0x28] sm:$0xff]   ;;  %v4318_v62 = vpop.permute.xlu0 %4317 }
 0x958   : > { %15779 = vmatprep.subr.bf16.mxu1 %v19165_v36 }
 0x95b   : > { %15780 = vmatpush3.bf16.msra.mxu1 %v19165_v36  ;;  %v17081_v36 = vld [vmem:[%s22435_s7 + $0x30] sm:$0xff]   ;;  %v4328_v50 = vpop.permute.xlu0 %4327 }
 0x95c   : > { %15781 = vmatprep.subr.bf16.mxu1 %v19175_v26 }
 0x95e   : > { %15758 = vmatmul.mubr.msk.bf16.gmra.mrb[168].mxu1 %vm3606_vm6, %v17078_v29 }
 0x95f   : > { %15782 = vmatpush3.bf16.msra.mxu1 %v19175_v26  ;;  %15761 = vmatprep.mubr.msk.bf16.mxu1 %vm3606_vm6, %v17079_v59  ;;  %v17082_v26 = vld [vmem:[%s22435_s7 + $0x38] sm:$0xff]   ;;  %v4338_v5 = vpop.permute.xlu0 %4337 }
 0x960   : > { %15783 = vmatprep.subr.bf16.mxu1 %v19173_v40 }
 0x963   : > { %15784 = vmatpush3.bf16.msra.mxu1 %v19173_v40  ;;  %v17083_v40 = vld [vmem:[%s22435_s7 + $0x40] sm:$0xff]  }
 0x964   : > { %15785 = vmatprep.subr.bf16.mxu1 %v19183_v52 }
 0x966   : > { %15762 = vmatmul.mubr.msk.bf16.gmra.mrb[172].mxu1 %vm3606_vm6, %v17080_v16 }
 0x967   : > { %15786 = vmatpush3.bf16.msra.mxu1 %v19183_v52  ;;  %15765 = vmatprep.mubr.msk.bf16.mxu1 %vm3606_vm6, %v17081_v36  ;;  %v17084_v52 = vld [vmem:[%s22435_s7 + $0x48] sm:$0xff]  }
 0x968   : > { %15787 = vmatprep.subr.bf16.mxu1 %v19181_v34 }
 0x96b   : > { %15788 = vmatpush3.bf16.msra.mxu1 %v19181_v34  ;;  %v17086_v34 = vld [vmem:[%s22435_s7 + $0x58] sm:$0xff]  }
 0x96c   : > { %15813 = vmatprep.subr.bf16.mxu1 %v19195_v25 }
 0x96e   : > { %15766 = vmatmul.mubr.msk.bf16.gmra.mrb[176].mxu1 %vm3606_vm6, %v17082_v26 }
 0x96f   : > { %15769 = vmatprep.mubr.msk.bf16.mxu1 %vm3606_vm6, %v17083_v40 }
 0x976   : > { %15770 = vmatmul.mubr.msk.bf16.gmra.mrb[180].mxu1 %vm3606_vm6, %v17084_v52 }
 0x977   : > { %15773 = vmatprep.mubr.msk.bf16.mxu1 %vm3606_vm6, %v17085_v2  ;;  %v4348_v2 = vpop.permute.xlu0 %4347 }
 0x97e   : > { %15774 = vmatmul.mubr.msk.bf16.gmra.mrb[184].mxu1 %vm3606_vm6, %v17086_v34 }
 0x97f   : > { %15789 = vmatprep.mubr.msk.bf16.mxu1 %vm3606_vm6, %v17087_v38 }
 0x986   : > { %15790 = vmatmul.mubr.msk.bf16.vlgmr.msra.gmra.mrb[164].mxu1 %vm3606_vm6, %v17088_v11 }
 0x987   : > { %15814 = vmatpush3.bf16.msra.mxu1 %v19195_v25  ;;  %15793 = vmatprep.mubr.msk.bf16.mxu1 %vm3606_vm6, %v17089_v12  ;;  %v17095_v25 = vld [vmem:[%s22435_s7 + $0xa0] sm:$0xff]  }
 0x988   : > { %15815 = vmatprep.subr.bf16.mxu1 %v19193_v20 }
 0x98b   : > { %15816 = vmatpush3.bf16.msra.mxu1 %v19193_v20  ;;  %v17093_v20 = vld [vmem:[%s22435_s7 + $0x90] sm:$0xff]  }
 0x98c   : > { %15817 = vmatprep.subr.bf16.mxu1 %v19199_v21 }
 0x98e   : > { %15794 = vmatmul.mubr.msk.bf16.gmra.mrb[168].mxu1 %vm3606_vm6, %v17090_v55 }
 0x98f   : > { %15818 = vmatpush3.bf16.msra.mxu1 %v19199_v21  ;;  %15797 = vmatprep.mubr.msk.bf16.mxu1 %vm3606_vm6, %v17091_v14  ;;  %v17107_v21 = vld [vmem:[%s22435_s7 + $0x100] sm:$0xff]  }
 0x990   : > { %15819 = vmatprep.subr.bf16.mxu1 %v19197_v30 }
 0x993   : > { %15820 = vmatpush3.bf16.msra.mxu1 %v19197_v30  ;;  %v17105_v30 = vld [vmem:[%s22435_s7 + $0xf0] sm:$0xff]  }
 0x994   : > { %15821 = vmatprep.subr.bf16.mxu1 %v3495_v0 }
 0x996   : > { %15798 = vmatmul.mubr.msk.bf16.gmra.mrb[172].mxu1 %vm3606_vm6, %v17092_v18 }
 0x997   : > { %15822 = vmatpush3.bf16.msra.mxu1 %v3495_v0  ;;  %15801 = vmatprep.mubr.msk.bf16.mxu1 %vm3606_vm6, %v17093_v20 }
 0x998   : > { %15823 = vmatprep.subr.bf16.mxu1 %v19201_v58 }
 0x99b   : > { %15824 = vmatpush3.bf16.msra.mxu1 %v19201_v58  ;;  %v4323_v58 = vpop.permute.xlu1 %4322 }
 0x99e   : > { %15802 = vmatmul.mubr.msk.bf16.gmra.mrb[176].mxu1 %vm3606_vm6, %v17094_v57 }
 0x99f   : > { %15805 = vmatprep.mubr.msk.bf16.mxu1 %vm3606_vm6, %v17095_v25  ;;  %v4333_v0 = vpop.permute.xlu1 %4332 }
 0x9a3   : > { %v4343_v6 = vpop.permute.xlu1 %4342 }
 0x9a6   : > { %15806 = vmatmul.mubr.msk.bf16.gmra.mrb[180].mxu1 %vm3606_vm6, %v17096_v17 }
 0x9a7   : > { %15809 = vmatprep.mubr.msk.bf16.mxu1 %vm3606_vm6, %v17097_v28  ;;  %v4353_v12 = vpop.permute.xlu1 %4352  ;;  %v4358_v28 = vpop.permute.xlu0 %4357 }
 0x9ae   : > { %15810 = vmatmul.mubr.msk.bf16.gmra.mrb[184].mxu1 %vm3606_vm6, %v17098_v60 }
 0x9af   : > { %15825 = vmatprep.mubr.msk.bf16.mxu1 %vm3606_vm6, %v17099_v35 }
 0x9b6   : > { %15826 = vmatmul.mubr.msk.bf16.vlgmr.msra.gmra.mrb[164].mxu1 %vm3606_vm6, %v17100_v63 }
 0x9b7   : > { %15829 = vmatprep.mubr.msk.bf16.mxu1 %vm3606_vm6, %v17101_v3 }
 0x9be   : > { %15830 = vmatmul.mubr.msk.bf16.gmra.mrb[168].mxu1 %vm3606_vm6, %v17102_v7  ;;  %v4363_v7 = vpop.permute.xlu1 %4362 }
 0x9bf   : > { %15833 = vmatprep.mubr.msk.bf16.mxu1 %vm3606_vm6, %v17103_v49 }
 0x9c6   : > { %15834 = vmatmul.mubr.msk.bf16.gmra.mrb[172].mxu1 %vm3606_vm6, %v17104_v13 }
 0x9c7   : > { %15837 = vmatprep.mubr.msk.bf16.mxu1 %vm3606_vm6, %v17105_v30 }
 0x9ce   : > { %15838 = vmatmul.mubr.msk.bf16.gmra.mrb[176].mxu1 %vm3606_vm6, %v17106_v33 }
 0x9cf   : > { %15841 = vmatprep.mubr.msk.bf16.mxu1 %vm3606_vm6, %v17107_v21 }
 0x9d6   : > { %15842 = vmatmul.mubr.msk.bf16.gmra.mrb[180].mxu1 %vm3606_vm6, %v17108_v48 }
 0x9d7   : > { %15845 = vmatprep.mubr.msk.bf16.mxu1 %vm3606_vm6, %v17109_v56  ;;  %v4368_v56 = vpop.permute.xlu0 %4367 }
 0x9de   : > { %15846 = vmatmul.mubr.msk.bf16.gmra.mrb[184].mxu1 %vm3606_vm6, %v17110_v46 }
 0xa89   : > { %v15827_v29 = vpop.f32.mrb[164].mxu1 }
 0xa8a   : > { %v4417_v59 = vadd.f32 %v15827_v29, %v4308_v47  ;;  %v4152_v16 = vpop.f32.mrb[165].mxu1  ;;  %v4373_v47 = vpop.permute.xlu1 %4372 }
 0xa8b   : > { %v4415_v36 = vadd.f32 %v4298_v45, %v4152_v16  ;;  %v15828_v26 = vpop.f32.mrb[166].mxu1  ;;  %v4378_v16 = vpop.permute.xlu0 %4377 }
 0xa8c   : > { %v4418_v40 = vadd.f32 %v15828_v26, %v4313_v61  ;;  %v4155_v52 = vpop.f32.mrb[167].mxu1  ;;  %v4441_v38 = vmax.f32 %v4417_v59, 0.0 }
 0xa8d   : > { %v4416_v34 = vadd.f32 %v4303_v19, %v4155_v52  ;;  %v4439_v55 = vmax.f32 %v4415_v36, 0.0 }
 0xa8e   : > { %v4442_v11 = vmax.f32 %v4418_v40, 0.0  ;;  %v4383_v52 = vpop.permute.xlu1 %4382 }
 0xa8f   : > { %v4440_v14 = vmax.f32 %v4416_v34, 0.0 }
 0xa90   : > { %v4464_v18 = vpack.c.bf16 %v4442_v11, %v4441_v38 }
 0xa91   : > { %v4463_v20 = vpack.c.bf16 %v4440_v14, %v4439_v55  ;;  %v15831_v57 = vpop.f32.mrb[168].mxu1 }
 0xa92   : > { %v4421_v25 = vadd.f32 %v15831_v57, %v4328_v50  ;;  %v4168_v17 = vpop.f32.mrb[169].mxu1 }
 0xa93   : > { %v4419_v60 = vadd.f32 %v4318_v62, %v4168_v17  ;;  %v15832_v35 = vpop.f32.mrb[170].mxu1  ;;  %4757 = vmatpush1.bf16.msra.mxu0 %v4463_v20 }
 0xa94   : > { %v4422_v63 = vadd.f32 %v15832_v35, %v4333_v0  ;;  %v4171_v3 = vpop.f32.mrb[171].mxu1  ;;  %4758 = vmatprep.subr.bf16.mxu0 %v22456_v23  ;;  %v4445_v13 = vmax.f32 %v4421_v25, 0.0  ;;  %v4393_v25 = vpop.permute.xlu1 %4392 }
 0xa95   : > { %v4420_v49 = vadd.f32 %v4323_v58, %v4171_v3  ;;  %v4443_v33 = vmax.f32 %v4419_v60, 0.0 }
 0xa96   : > { %v4446_v30 = vmax.f32 %v4422_v63, 0.0 }
 0xa97   : > { %v4444_v21 = vmax.f32 %v4420_v49, 0.0  ;;  %4759 = vmatpush1.bf16.msra.mxu0 %v4464_v18 }
 0xa98   : > { %v4466_v48 = vpack.c.bf16 %v4446_v30, %v4445_v13  ;;  %4760 = vmatprep.subr.bf16.mxu0 %v22456_v23 }
 0xa99   : > { %v4465_v46 = vpack.c.bf16 %v4444_v21, %v4443_v33  ;;  %v15835_v31 = vpop.f32.mrb[172].mxu1 }
 0xa9a   : > { %v4425_v45 = vadd.f32 %v15835_v31, %v4348_v2  ;;  %v4184_v19 = vpop.f32.mrb[173].mxu1 }
 0xa9b   : > { %v4423_v61 = vadd.f32 %v4338_v5, %v4184_v19  ;;  %v15836_v62 = vpop.f32.mrb[174].mxu1  ;;  %4761 = vmatpush1.bf16.msra.mxu0 %v4465_v46 }
 0xa9c   : > { %v4426_v50 = vadd.f32 %v15836_v62, %v4353_v12  ;;  %v4187_v0 = vpop.f32.mrb[175].mxu1  ;;  %4762 = vmatprep.subr.bf16.mxu0 %v22456_v23  ;;  %v4449_v29 = vmax.f32 %v4425_v45, 0.0 }
 0xa9d   : > { %v4424_v58 = vadd.f32 %v4343_v6, %v4187_v0  ;;  %v4447_v36 = vmax.f32 %v4423_v61, 0.0  ;;  %v4388_v6 = vpop.permute.xlu0 %4387 }
 0xa9e   : > { %v4450_v59 = vmax.f32 %v4426_v50, 0.0 }
 0xa9f   : > { %v4448_v26 = vmax.f32 %v4424_v58, 0.0  ;;  %4763 = vmatpush1.bf16.msra.mxu0 %v4466_v48 }
 0xaa0   : > { %v4468_v40 = vpack.c.bf16 %v4450_v59, %v4449_v29  ;;  %4764 = vmatprep.subr.bf16.mxu0 %v22456_v23 }
 0xaa1   : > { %v4467_v2 = vpack.c.bf16 %v4448_v26, %v4447_v36  ;;  %v15839_v34 = vpop.f32.mrb[176].mxu1  ;;  %v4398_v13 = vpop.permute.xlu0 %4397 }
 0xaa2   : > { %v4429_v5 = vadd.f32 %v15839_v34, %v4368_v56  ;;  %v4200_v38 = vpop.f32.mrb[177].mxu1 }
 0xaa3   : > { %v4427_v11 = vadd.f32 %v4358_v28, %v4200_v38  ;;  %v15840_v12 = vpop.f32.mrb[178].mxu1  ;;  %4765 = vmatpush1.bf16.msra.mxu0 %v4467_v2 }
 0xaa4   : > { %v4430_v55 = vadd.f32 %v15840_v12, %v4373_v47  ;;  %v4203_v14 = vpop.f32.mrb[179].mxu1  ;;  %4766 = vmatprep.subr.bf16.mxu0 %v22456_v23  ;;  %v4453_v20 = vmax.f32 %v4429_v5, 0.0  ;;  %v17111_v12 = vld [vmem:[%s22445_s17] ss:$8 sps:$4 sm:$0xff]  }
 0xaa5   : > { %v4428_v18 = vadd.f32 %v4363_v7, %v4203_v14  ;;  %v4451_v17 = vmax.f32 %v4427_v11, 0.0  ;;  %v4403_v7 = vpop.permute.xlu1 %4402  ;;  %v4408_v61 = vpop.permute.xlu0 %4407  ;;  %v17116_v14 = vld [vmem:[%s22445_s17 + $0x10] ss:$8 sps:$4 sm:$0xff]  }
 0xaa6   : > { %v4454_v57 = vmax.f32 %v4430_v55, 0.0  ;;  %v17114_v55 = vld [vmem:[%s22445_s17 + $0x14] ss:$8 sps:$4 sm:$0xff]  }
 0xaa7   : > { %v4452_v60 = vmax.f32 %v4428_v18, 0.0  ;;  %4767 = vmatpush1.bf16.msra.mxu0 %v4468_v40  ;;  %v17120_v18 = vld [vmem:[%s22445_s17 + $0x34] ss:$8 sps:$4 sm:$0xff]  }
 0xaa8   : > { %v4470_v35 = vpack.c.bf16 %v4454_v57, %v4453_v20  ;;  %4768 = vmatprep.subr.bf16.mxu0 %v22456_v23  ;;  %v17173_v20 = vld [vmem:[%s22479_s3 + $0x90] sm:$0xff]  }
 0xaa9   : > { %v4469_v63 = vpack.c.bf16 %v4452_v60, %v4451_v17  ;;  %v15843_v3 = vpop.f32.mrb[180].mxu1  ;;  %v4413_v29 = vpop.permute.xlu1 %4412  ;;  %v17126_v57 = vld [vmem:[%s22445_s17 + $0x54] ss:$8 sps:$4 sm:$0xff]   ;;  %v17175_v17 = vld [vmem:[%s22479_s3 + $0xa0] sm:$0xff]  }
 0xaaa   : > { %v4433_v28 = vadd.f32 %v15843_v3, %v4388_v6  ;;  %v4216_v49 = vpop.f32.mrb[181].mxu1  ;;  %v17117_v6 = vld [vmem:[%s22445_s17 + $0x24] ss:$8 sps:$4 sm:$0xff]   ;;  %v17131_v60 = vld [vmem:[%s22445_s17 + $0x60] ss:$8 sps:$4 sm:$0xff]  }
 0xaab   : > { %v4431_v30 = vadd.f32 %v4378_v16, %v4216_v49  ;;  %v15844_v33 = vpop.f32.mrb[182].mxu1  ;;  %4769 = vmatpush1.bf16.msra.mxu0 %v4469_v63  ;;  %v17134_v63 = vld [vmem:[%s22445_s17 + $0x70] ss:$8 sps:$4 sm:$0xff]   ;;  %v17135_v3 = vld [vmem:[%s22445_s17 + $0x84] ss:$8 sps:$4 sm:$0xff]  }
 0xaac   : > { %v4434_v21 = vadd.f32 %v15844_v33, %v4393_v25  ;;  %v4219_v48 = vpop.f32.mrb[183].mxu1  ;;  %4770 = vmatprep.subr.bf16.mxu0 %v22456_v23  ;;  %v4457_v46 = vmax.f32 %v4433_v28, 0.0  ;;  %v17128_v25 = vld [vmem:[%s22445_s17 + $0x50] ss:$8 sps:$4 sm:$0xff]   ;;  %v17137_v28 = vld [vmem:[%s22445_s17 + $0x80] ss:$8 sps:$4 sm:$0xff]  }
 0xaad   : > { %v4432_v56 = vadd.f32 %v4383_v52, %v4219_v48  ;;  %v4455_v45 = vmax.f32 %v4431_v30, 0.0  ;;  %v17138_v49 = vld [vmem:[%s22445_s17 + $0x94] ss:$8 sps:$4 sm:$0xff]   ;;  %v17141_v30 = vld [vmem:[%s22445_s17 + $0xa4] ss:$8 sps:$4 sm:$0xff]  }
 0xaae   : > { %v4458_v31 = vmax.f32 %v4434_v21, 0.0  ;;  %v17143_v33 = vld [vmem:[%s22445_s17 + $0xa0] ss:$8 sps:$4 sm:$0xff]   ;;  %v17144_v21 = vld [vmem:[%s22445_s17 + $0xb4] ss:$8 sps:$4 sm:$0xff]  }
 0xaaf   : > { %v4456_v19 = vmax.f32 %v4432_v56, 0.0  ;;  %4771 = vmatpush1.bf16.msra.mxu0 %v4470_v35  ;;  %v17132_v35 = vld [vmem:[%s22445_s17 + $0x74] ss:$8 sps:$4 sm:$0xff]   ;;  %v17176_v48 = vld [vmem:[%s22479_s3 + $0xa8] sm:$0xff]  }
 0xab0   : > { %v4472_v47 = vpack.c.bf16 %v4458_v31, %v4457_v46  ;;  %4772 = vmatprep.subr.bf16.mxu0 %v22456_v23  ;;  %v17147_v56 = vld [vmem:[%s22445_s17 + $0xc4] ss:$8 sps:$4 sm:$0xff]   ;;  %v17177_v46 = vld [vmem:[%s22479_s3 + $0xb0] sm:$0xff]   ;;  %v17178_v31 = vld [vmem:[%s22479_s3 + $0xb8] sm:$0xff]  }
 0xab1   : > { %v4471_v62 = vpack.c.bf16 %v4456_v19, %v4455_v45  ;;  %v15847_v50 = vpop.f32.mrb[184].mxu1  ;;  %v17149_v45 = vld [vmem:[%s22445_s17 + $0xc0] ss:$8 sps:$4 sm:$0xff]   ;;  %v17150_v19 = vld [vmem:[%s22445_s17 + $0xd4] ss:$8 sps:$4 sm:$0xff]  }
 0xab2   : > { %v4437_v0 = vadd.f32 %v15847_v50, %v4408_v61  ;;  %v4232_v58 = vpop.f32.mrb[185].mxu1  ;;  %v17152_v61 = vld [vmem:[%s22445_s17 + $0xd0] ss:$8 sps:$4 sm:$0xff]   ;;  %v17155_v50 = vld [vmem:[%s22445_s17 + $0xe0] ss:$8 sps:$4 sm:$0xff]  }
 0xab3   : > { %v4435_v59 = vadd.f32 %v4398_v13, %v4232_v58  ;;  %v15848_v16 = vpop.f32.mrb[186].mxu1  ;;  %4773 = vmatpush1.bf16.msra.mxu0 %v4471_v62  ;;  %v17140_v13 = vld [vmem:[%s22445_s17 + $0x90] ss:$8 sps:$4 sm:$0xff]   ;;  %v17153_v62 = vld [vmem:[%s22445_s17 + $0xe4] ss:$8 sps:$4 sm:$0xff]  }
 0xab4   : > { %v4438_v36 = vadd.f32 %v15848_v16, %v4413_v29  ;;  %v4235_v26 = vpop.f32.mrb[187].mxu1  ;;  %4774 = vmatprep.subr.bf16.mxu0 %v22456_v23  ;;  %v4461_v52 = vmax.f32 %v4437_v0, 0.0  ;;  %v17156_v0 = vld [vmem:[%s22445_s17 + $0xf4] ss:$8 sps:$4 sm:$0xff]   ;;  %v17158_v58 = vld [vmem:[%s22445_s17 + $0xf0] ss:$8 sps:$4 sm:$0xff]  }
 0xab5   : > { %v4436_v40 = vadd.f32 %v4403_v7, %v4235_v26  ;;  %v4459_v34 = vmax.f32 %v4435_v59, 0.0  ;;  %v17146_v7 = vld [vmem:[%s22445_s17 + $0xb0] ss:$8 sps:$4 sm:$0xff]   ;;  %v17159_v29 = vld [vmem:[%s22445_s17 + $0x104] ss:$8 sps:$4 sm:$0xff]  }
 0xab6   : > { %v4462_v2 = vmax.f32 %v4438_v36, 0.0  ;;  %v17161_v59 = vld [vmem:[%s22445_s17 + $0x100] ss:$8 sps:$4 sm:$0xff]   ;;  %v17162_v16 = vld [vmem:[%s22445_s17 + $0x114] ss:$8 sps:$4 sm:$0xff]  }
 0xab7   : > { %v4460_v5 = vmax.f32 %v4436_v40, 0.0  ;;  %4775 = vmatpush1.bf16.msra.mxu0 %v4472_v47  ;;  %v17769_v47 = vld [vmem:[%s22475_s2 + $0x40] sm:$0xff]   ;;  %v17164_v36 = vld [vmem:[%s22445_s17 + $0x110] ss:$8 sps:$4 sm:$0xff]  }
 0xab8   : > { %v4474_v38 = vpack.c.bf16 %v4462_v2, %v4461_v52  ;;  %4776 = vmatprep.subr.bf16.mxu0 %v22456_v23  ;;  %v17165_v26 = vld [vmem:[%s22445_s17 + $0x124] ss:$8 sps:$4 sm:$0xff]   ;;  %v17167_v40 = vld [vmem:[%s22445_s17 + $0x120] ss:$8 sps:$4 sm:$0xff]   ;;  %v17168_v52 = vld [vmem:[%s22445_s17 + $0x134] ss:$8 sps:$4 sm:$0xff]  }
 0xab9   : > { %v4473_v11 = vpack.c.bf16 %v4460_v5, %v4459_v34  ;;  %v17170_v2 = vld [vmem:[%s22445_s17 + $0x130] ss:$8 sps:$4 sm:$0xff]  }
 0xabb   : > { %4777 = vmatpush1.bf16.msra.mxu0 %v4473_v11 }
 0xabc   : > { %4778 = vmatprep.subr.bf16.mxu0 %v22456_v23 }
 0xabf   : > { %4779 = vmatpush1.bf16.msra.mxu0 %v4474_v38 }
 0xac0   : > { %15905 = vmatprep.subr.bf16.mxu0 %v19112_v4 }
 0xac2   : > { %4789 = vmatmul.mubr.bf16.vlgmr.msra.gmra.mrb[144].mxu0 %v17111_v12 }
 0xac3   : > { %13217 = vmatprep.mubr.msk.bf16.mxu0 %vm4695_vm7, %v17114_v55  ;;  %15906 = vmatpush3.bf16.msra.mxu0 %v19112_v4  ;;  %v17119_v4 = vld [vmem:[%s22445_s17 + $0x20] ss:$8 sps:$4 sm:$0xff]  }
 0xac4   : > { %15907 = vmatprep.subr.bf16.mxu0 %v19119_v8 }
 0xac7   : > { %15908 = vmatpush3.bf16.msra.mxu0 %v19119_v8  ;;  %v17122_v8 = vld [vmem:[%s22445_s17 + $0x30] ss:$8 sps:$4 sm:$0xff]  }
 0xac8   : > { %15909 = vmatprep.subr.bf16.mxu0 %v19126_v42 }
 0xaca   : > { %4797 = vmatmul.mubr.bf16.gmra.mrb[148].mxu0 %v17116_v14 }
 0xacb   : > { %13218 = vmatprep.mubr.msk.bf16.mxu0 %vm4695_vm7, %v17117_v6  ;;  %15910 = vmatpush3.bf16.msra.mxu0 %v19126_v42  ;;  %v17123_v42 = vld [vmem:[%s22445_s17 + $0x44] ss:$8 sps:$4 sm:$0xff]  }
 0xacc   : > { %15911 = vmatprep.subr.bf16.mxu0 %v19133_v24 }
 0xacf   : > { %15912 = vmatpush3.bf16.msra.mxu0 %v19133_v24  ;;  %v17171_v24 = vld [vmem:[%s22479_s3 + $0x80] sm:$0xff]  }
 0xad0   : > { %15913 = vmatprep.subr.bf16.mxu0 %v19140_v32  ;;  %15849 = vmatprep.subr.bf16.mxu1 %v17171_v24 }
 0xad1   : > { %15850 = vmatpush3.bf16.msra.mxu1 %v17171_v24 }
 0xad2   : > { %4805 = vmatmul.mubr.bf16.gmra.mrb[152].mxu0 %v17119_v4 }
 0xad3   : > { %13219 = vmatprep.mubr.msk.bf16.mxu0 %vm4695_vm7, %v17120_v18  ;;  %15914 = vmatpush3.bf16.msra.mxu0 %v19140_v32  ;;  %v17172_v32 = vld [vmem:[%s22479_s3 + $0x88] sm:$0xff]  }
 0xad4   : > { %15915 = vmatprep.subr.bf16.mxu0 %v19147_v37  ;;  %15851 = vmatprep.subr.bf16.mxu1 %v17172_v32 }
 0xad5   : > { %15852 = vmatpush3.bf16.msra.mxu1 %v17172_v32 }
 0xad6   : > { %15853 = vmatprep.subr.bf16.mxu1 %v17173_v20 }
 0xad7   : > { %15916 = vmatpush3.bf16.msra.mxu0 %v19147_v37  ;;  %v17125_v37 = vld [vmem:[%s22445_s17 + $0x40] ss:$8 sps:$4 sm:$0xff]  }
 0xad8   : > { %15917 = vmatprep.subr.bf16.mxu0 %v19154_v22 }
 0xad9   : > { %15854 = vmatpush3.bf16.msra.mxu1 %v17173_v20 }
 0xada   : > { %4813 = vmatmul.mubr.bf16.gmra.mrb[156].mxu0 %v17122_v8  ;;  %v17770_v8 = vld [vmem:[%s22475_s2 + $0x48] sm:$0xff]  }
 0xadb   : > { %13220 = vmatprep.mubr.msk.bf16.mxu0 %vm4695_vm7, %v17123_v42  ;;  %15918 = vmatpush3.bf16.msra.mxu0 %v19154_v22  ;;  %v17174_v22 = vld [vmem:[%s22479_s3 + $0x98] sm:$0xff]  }
 0xadc   : > { %15919 = vmatprep.subr.bf16.mxu0 %v19161_v10  ;;  %15855 = vmatprep.subr.bf16.mxu1 %v17174_v22 }
 0xadd   : > { %15856 = vmatpush3.bf16.msra.mxu1 %v17174_v22  ;;  %v17772_v22 = vld [vmem:[%s22475_s2 + $0x58] sm:$0xff]  }
 0xade   : > { %15857 = vmatprep.subr.bf16.mxu1 %v17175_v17 }
 0xadf   : > { %15920 = vmatpush3.bf16.msra.mxu0 %v19161_v10  ;;  %v17129_v10 = vld [vmem:[%s22445_s17 + $0x64] ss:$8 sps:$4 sm:$0xff]  }
 0xae1   : > { %15858 = vmatpush3.bf16.msra.mxu1 %v17175_v17 }
 0xae2   : > { %4821 = vmatmul.mubr.bf16.gmra.mrb[160].mxu0 %v17125_v37  ;;  %15859 = vmatprep.subr.bf16.mxu1 %v17176_v48 }
 0xae3   : > { %13221 = vmatprep.mubr.msk.bf16.mxu0 %vm4695_vm7, %v17126_v57  ;;  %v17771_v57 = vld [vmem:[%s22475_s2 + $0x50] sm:$0xff]  }
 0xae5   : > { %15860 = vmatpush3.bf16.msra.mxu1 %v17176_v48  ;;  %v17776_v48 = vld [vmem:[%s22475_s2 + $0x78] sm:$0xff]  }
 0xae6   : > { %15861 = vmatprep.subr.bf16.mxu1 %v17177_v46 }
 0xae9   : > { %15862 = vmatpush3.bf16.msra.mxu1 %v17177_v46 }
 0xaea   : > { %4829 = vmatmul.mubr.bf16.gmra.mrb[164].mxu0 %v17128_v25  ;;  %15863 = vmatprep.subr.bf16.mxu1 %v17178_v31 }
 0xaeb   : > { %13222 = vmatprep.mubr.msk.bf16.mxu0 %vm4695_vm7, %v17129_v10 }
 0xaed   : > { %15864 = vmatpush3.bf16.msra.mxu1 %v17178_v31 }
 0xaee   : > { %15961 = vmatprep.subr.bf16.mxu1 %v17769_v47 }
 0xaf2   : > { %4837 = vmatmul.mubr.bf16.gmra.mrb[168].mxu0 %v17131_v60 }
 0xaf3   : > { %13223 = vmatprep.mubr.msk.bf16.mxu0 %vm4695_vm7, %v17132_v35 }
 0xafa   : > { %4845 = vmatmul.mubr.bf16.gmra.mrb[172].mxu0 %v17134_v63  ;;  %v17773_v63 = vld [vmem:[%s22475_s2 + $0x60] sm:$0xff]  }
 0xafb   : > { %13224 = vmatprep.mubr.msk.bf16.mxu0 %vm4695_vm7, %v17135_v3  ;;  %v17774_v3 = vld [vmem:[%s22475_s2 + $0x68] sm:$0xff]  }
 0xb02   : > { %4853 = vmatmul.mubr.bf16.gmra.mrb[176].mxu0 %v17137_v28 }
 0xb03   : > { %13225 = vmatprep.mubr.msk.bf16.mxu0 %vm4695_vm7, %v17138_v49 }
 0xb0a   : > { %4861 = vmatmul.mubr.bf16.gmra.mrb[180].mxu0 %v17140_v13 }
 0xb0b   : > { %13226 = vmatprep.mubr.msk.bf16.mxu0 %vm4695_vm7, %v17141_v30 }
 0xb12   : > { %4869 = vmatmul.mubr.bf16.gmra.mrb[184].mxu0 %v17143_v33 }
 0xb13   : > { %13227 = vmatprep.mubr.msk.bf16.mxu0 %vm4695_vm7, %v17144_v21  ;;  %v17775_v21 = vld [vmem:[%s22475_s2 + $0x70] sm:$0xff]  }
 0xb1a   : > { %4877 = vmatmul.mubr.bf16.gmra.mrb[188].mxu0 %v17146_v7 }
 0xb1b   : > { %13228 = vmatprep.mubr.msk.bf16.mxu0 %vm4695_vm7, %v17147_v56 }
 0xb22   : > { %4885 = vmatmul.mubr.bf16.gmra.mrb[192].mxu0 %v17149_v45 }
 0xb23   : > { %13229 = vmatprep.mubr.msk.bf16.mxu0 %vm4695_vm7, %v17150_v19 }
 0xb2a   : > { %4893 = vmatmul.mubr.bf16.gmra.mrb[196].mxu0 %v17152_v61 }
 0xb2b   : > { %13230 = vmatprep.mubr.msk.bf16.mxu0 %vm4695_vm7, %v17153_v62 }
 0xb32   : > { %4901 = vmatmul.mubr.bf16.gmra.mrb[200].mxu0 %v17155_v50 }
 0xb33   : > { %13231 = vmatprep.mubr.msk.bf16.mxu0 %vm4695_vm7, %v17156_v0 }
 0xb3a   : > { %4909 = vmatmul.mubr.bf16.gmra.mrb[204].mxu0 %v17158_v58 }
 0xb3b   : > { %13232 = vmatprep.mubr.msk.bf16.mxu0 %vm4695_vm7, %v17159_v29 }
 0xb42   : > { %4917 = vmatmul.mubr.bf16.gmra.mrb[208].mxu0 %v17161_v59 }
 0xb43   : > { %13233 = vmatprep.mubr.msk.bf16.mxu0 %vm4695_vm7, %v17162_v16 }
 0xb4a   : > { %4925 = vmatmul.mubr.bf16.gmra.mrb[212].mxu0 %v17164_v36 }
 0xb4b   : > { %13234 = vmatprep.mubr.msk.bf16.mxu0 %vm4695_vm7, %v17165_v26 }
 0xb52   : > { %4933 = vmatmul.mubr.bf16.gmra.mrb[216].mxu0 %v17167_v40 }
 0xb53   : > { %13235 = vmatprep.mubr.msk.bf16.mxu0 %vm4695_vm7, %v17168_v52 }
 0xb5a   : > { %4941 = vmatmul.mubr.bf16.gmra.mrb[220].mxu0 %v17170_v2 }
 0xb95   : > { %v4790_v34 = vpop.f32.mrb[144].mxu0 }
 0xb96   : > { %v4792_v5 = vpop.f32.mrb[145].mxu0 }
 0xb97   : > { %v4793_v38 = vpop.f32.mrb[146].mxu0 }
 0xb98   : > { %v4795_v11 = vpop.f32.mrb[147].mxu0  ;;  %v4949_v12 = vpack.c.bf16 %v4793_v38, %v4790_v34 }
 0xb9a   : > { %15865 = vmatprep.mubr.bf16.mxu1 %v4949_v12 }
 0xb9d   : > { %v4798_v55 = vpop.f32.mrb[148].mxu0 }
 0xb9e   : > { %v4800_v14 = vpop.f32.mrb[149].mxu0 }
 0xb9f   : > { %v4801_v6 = vpop.f32.mrb[150].mxu0 }
 0xba0   : > { %v4950_v4 = vpack.c.bf16 %v4801_v6, %v4798_v55  ;;  %v4803_v18 = vpop.f32.mrb[151].mxu0 }
 0xba2   : > { %15866 = vmatmul.mubr.bf16.vlgmr.msra.gmra.mrb[188].mxu1 %v4950_v4 }
 0xba3   : > { %15962 = vmatpush3.bf16.msra.mxu1 %v17769_v47 }
 0xba4   : > { %15963 = vmatprep.subr.bf16.mxu1 %v17770_v8 }
 0xba5   : > { %v4806_v42 = vpop.f32.mrb[152].mxu0 }
 0xba6   : > { %v4808_v24 = vpop.f32.mrb[153].mxu0 }
 0xba7   : > { %v4809_v32 = vpop.f32.mrb[154].mxu0  ;;  %15964 = vmatpush3.bf16.msra.mxu1 %v17770_v8 }
 0xba8   : > { %v4811_v37 = vpop.f32.mrb[155].mxu0  ;;  %v4951_v20 = vpack.c.bf16 %v4809_v32, %v4806_v42  ;;  %15965 = vmatprep.subr.bf16.mxu1 %v17771_v57 }
 0xbaa   : > { %15869 = vmatprep.mubr.bf16.mxu1 %v4951_v20 }
 0xbab   : > { %15966 = vmatpush3.bf16.msra.mxu1 %v17771_v57 }
 0xbac   : > { %15967 = vmatprep.subr.bf16.mxu1 %v17772_v22 }
 0xbad   : > { %v4814_v25 = vpop.f32.mrb[156].mxu0 }
 0xbae   : > { %v4816_v17 = vpop.f32.mrb[157].mxu0 }
 0xbaf   : > { %v4817_v10 = vpop.f32.mrb[158].mxu0  ;;  %15968 = vmatpush3.bf16.msra.mxu1 %v17772_v22 }
 0xbb0   : > { %v4819_v60 = vpop.f32.mrb[159].mxu0  ;;  %v4952_v35 = vpack.c.bf16 %v4817_v10, %v4814_v25  ;;  %15969 = vmatprep.subr.bf16.mxu1 %v17773_v63 }
 0xbb2   : > { %15870 = vmatmul.mubr.bf16.gmra.mrb[192].mxu1 %v4952_v35 }
 0xbb3   : > { %15970 = vmatpush3.bf16.msra.mxu1 %v17773_v63 }
 0xbb4   : > { %15971 = vmatprep.subr.bf16.mxu1 %v17774_v3 }
 0xbb5   : > { %v4822_v28 = vpop.f32.mrb[160].mxu0 }
 0xbb6   : > { %v4824_v49 = vpop.f32.mrb[161].mxu0 }
 0xbb7   : > { %v4825_v13 = vpop.f32.mrb[162].mxu0  ;;  %15972 = vmatpush3.bf16.msra.mxu1 %v17774_v3 }
 0xbb8   : > { %v4827_v30 = vpop.f32.mrb[163].mxu0  ;;  %v4953_v33 = vpack.c.bf16 %v4825_v13, %v4822_v28  ;;  %15973 = vmatprep.subr.bf16.mxu1 %v17775_v21 }
 0xbba   : > { %15873 = vmatprep.mubr.bf16.mxu1 %v4953_v33 }
 0xbbb   : > { %15974 = vmatpush3.bf16.msra.mxu1 %v17775_v21 }
 0xbbc   : > { %15975 = vmatprep.subr.bf16.mxu1 %v17776_v48 }
 0xbbd   : > { %v4830_v7 = vpop.f32.mrb[164].mxu0 }
 0xbbe   : > { %v4832_v56 = vpop.f32.mrb[165].mxu0 }
 0xbbf   : > { %v4833_v46 = vpop.f32.mrb[166].mxu0  ;;  %15976 = vmatpush3.bf16.msra.mxu1 %v17776_v48 }
 0xbc0   : > { %v4835_v31 = vpop.f32.mrb[167].mxu0  ;;  %v4954_v45 = vpack.c.bf16 %v4833_v46, %v4830_v7 }
 0xbc2   : > { %15874 = vmatmul.mubr.bf16.gmra.mrb[196].mxu1 %v4954_v45 }
 0xbc5   : > { %v4838_v19 = vpop.f32.mrb[168].mxu0 }
 0xbc6   : > { %v4840_v47 = vpop.f32.mrb[169].mxu0 }
 0xbc7   : > { %v4841_v61 = vpop.f32.mrb[170].mxu0 }
 0xbc8   : > { %v4843_v62 = vpop.f32.mrb[171].mxu0  ;;  %v4955_v50 = vpack.c.bf16 %v4841_v61, %v4838_v19 }
 0xbca   : > { %15877 = vmatprep.mubr.bf16.mxu1 %v4955_v50 }
 0xbcd   : > { %v4846_v0 = vpop.f32.mrb[172].mxu0 }
 0xbce   : > { %v4848_v58 = vpop.f32.mrb[173].mxu0 }
 0xbcf   : > { %v4849_v29 = vpop.f32.mrb[174].mxu0 }
 0xbd0   : > { %v4851_v59 = vpop.f32.mrb[175].mxu0  ;;  %v4956_v16 = vpack.c.bf16 %v4849_v29, %v4846_v0 }
 0xbd2   : > { %15878 = vmatmul.mubr.bf16.gmra.mrb[200].mxu1 %v4956_v16 }
 0xbd5   : > { %v4854_v36 = vpop.f32.mrb[176].mxu0 }
 0xbd6   : > { %v4856_v26 = vpop.f32.mrb[177].mxu0 }
 0xbd7   : > { %v4857_v40 = vpop.f32.mrb[178].mxu0 }
 0xbd8   : > { %v4859_v52 = vpop.f32.mrb[179].mxu0  ;;  %v4957_v2 = vpack.c.bf16 %v4857_v40, %v4854_v36 }
 0xbda   : > { %15881 = vmatprep.mubr.bf16.mxu1 %v4957_v2 }
 0xbdd   : > { %v4862_v34 = vpop.f32.mrb[180].mxu0 }
 0xbde   : > { %v4864_v5 = vpop.f32.mrb[181].mxu0 }
 0xbdf   : > { %v4865_v38 = vpop.f32.mrb[182].mxu0 }
 0xbe0   : > { %v4867_v11 = vpop.f32.mrb[183].mxu0  ;;  %v4958_v12 = vpack.c.bf16 %v4865_v38, %v4862_v34 }
 0xbe2   : > { %15882 = vmatmul.mubr.bf16.gmra.mrb[204].mxu1 %v4958_v12 }
 0xbe5   : > { %v4870_v55 = vpop.f32.mrb[184].mxu0 }
 0xbe6   : > { %v4872_v14 = vpop.f32.mrb[185].mxu0 }
 0xbe7   : > { %v4873_v6 = vpop.f32.mrb[186].mxu0 }
 0xbe8   : > { %v4875_v4 = vpop.f32.mrb[187].mxu0  ;;  %v4959_v18 = vpack.c.bf16 %v4873_v6, %v4870_v55 }
 0xbea   : > { %15885 = vmatprep.mubr.bf16.mxu1 %v4959_v18 }
 0xbed   : > { %v4878_v8 = vpop.f32.mrb[188].mxu0 }
 0xbee   : > { %v4880_v42 = vpop.f32.mrb[189].mxu0 }
 0xbef   : > { %v4881_v24 = vpop.f32.mrb[190].mxu0 }
 0xbf0   : > { %v4883_v32 = vpop.f32.mrb[191].mxu0  ;;  %v4960_v37 = vpack.c.bf16 %v4881_v24, %v4878_v8 }
 0xbf2   : > { %15886 = vmatmul.mubr.bf16.gmra.mrb[208].mxu1 %v4960_v37 }
 0xbf5   : > { %v4886_v20 = vpop.f32.mrb[192].mxu0 }
 0xbf6   : > { %v4888_v57 = vpop.f32.mrb[193].mxu0 }
 0xbf7   : > { %v4889_v22 = vpop.f32.mrb[194].mxu0 }
 0xbf8   : > { %v4891_v25 = vpop.f32.mrb[195].mxu0  ;;  %v4961_v17 = vpack.c.bf16 %v4889_v22, %v4886_v20 }
 0xbfa   : > { %15889 = vmatprep.mubr.bf16.mxu1 %v4961_v17 }
 0xbfd   : > { %v4894_v10 = vpop.f32.mrb[196].mxu0 }
 0xbfe   : > { %v4896_v60 = vpop.f32.mrb[197].mxu0 }
 0xbff   : > { %v4897_v35 = vpop.f32.mrb[198].mxu0 }
 0xc00   : > { %v4899_v63 = vpop.f32.mrb[199].mxu0  ;;  %v4962_v3 = vpack.c.bf16 %v4897_v35, %v4894_v10 }
 0xc02   : > { %15890 = vmatmul.mubr.bf16.gmra.mrb[212].mxu1 %v4962_v3 }
 0xc05   : > { %v4902_v28 = vpop.f32.mrb[200].mxu0 }
 0xc06   : > { %v4904_v49 = vpop.f32.mrb[201].mxu0 }
 0xc07   : > { %v4905_v13 = vpop.f32.mrb[202].mxu0 }
 0xc08   : > { %v4907_v30 = vpop.f32.mrb[203].mxu0  ;;  %v4963_v33 = vpack.c.bf16 %v4905_v13, %v4902_v28 }
 0xc0a   : > { %15893 = vmatprep.mubr.bf16.mxu1 %v4963_v33 }
 0xc0d   : > { %v4910_v21 = vpop.f32.mrb[204].mxu0 }
 0xc0e   : > { %v4912_v48 = vpop.f32.mrb[205].mxu0 }
 0xc0f   : > { %v4913_v7 = vpop.f32.mrb[206].mxu0 }
 0xc10   : > { %v4915_v56 = vpop.f32.mrb[207].mxu0  ;;  %v4964_v46 = vpack.c.bf16 %v4913_v7, %v4910_v21 }
 0xc12   : > { %15894 = vmatmul.mubr.bf16.gmra.mrb[216].mxu1 %v4964_v46 }
 0xc15   : > { %v4918_v31 = vpop.f32.mrb[208].mxu0 }
 0xc16   : > { %v4920_v45 = vpop.f32.mrb[209].mxu0 }
 0xc17   : > { %v4921_v19 = vpop.f32.mrb[210].mxu0 }
 0xc18   : > { %v4923_v47 = vpop.f32.mrb[211].mxu0  ;;  %v4965_v61 = vpack.c.bf16 %v4921_v19, %v4918_v31 }
 0xc1a   : > { %15897 = vmatprep.mubr.bf16.mxu1 %v4965_v61 }
 0xc1d   : > { %v4926_v62 = vpop.f32.mrb[212].mxu0 }
 0xc1e   : > { %v4928_v50 = vpop.f32.mrb[213].mxu0 }
 0xc1f   : > { %v4929_v0 = vpop.f32.mrb[214].mxu0 }
 0xc20   : > { %v4931_v58 = vpop.f32.mrb[215].mxu0  ;;  %v4966_v29 = vpack.c.bf16 %v4929_v0, %v4926_v62 }
 0xc22   : > { %15898 = vmatmul.mubr.bf16.gmra.mrb[220].mxu1 %v4966_v29 }
 0xc25   : > { %v4934_v59 = vpop.f32.mrb[216].mxu0 }
 0xc26   : > { %v4936_v16 = vpop.f32.mrb[217].mxu0 }
 0xc27   : > { %v4937_v36 = vpop.f32.mrb[218].mxu0 }
 0xc28   : > { %v4939_v26 = vpop.f32.mrb[219].mxu0  ;;  %v4967_v40 = vpack.c.bf16 %v4937_v36, %v4934_v59 }
 0xc2a   : > { %15901 = vmatprep.mubr.bf16.mxu1 %v4967_v40 }
 0xc2d   : > { %v4942_v52 = vpop.f32.mrb[220].mxu0 }
 0xc2e   : > { %v4944_v2 = vpop.f32.mrb[221].mxu0 }
 0xc2f   : > { %v4945_v34 = vpop.f32.mrb[222].mxu0 }
 0xc30   : > { %v4947_v5 = vpop.f32.mrb[223].mxu0  ;;  %v4968_v38 = vpack.c.bf16 %v4945_v34, %v4942_v52 }
 0xc32   : > { %15902 = vmatmul.mubr.bf16.gmra.mrb[224].mxu1 %v4968_v38 }
 0xc75   : > { %v15867_v11 = vpop.f32.mrb[188].mxu1 }
 0xc76   : > { %v5068_v12 = vpop.f32.mrb[189].mxu1 }
 0xc77   : > { %v15868_v55 = vpop.f32.mrb[190].mxu1 }
 0xc78   : > { %v19580_v14 = vpack.c.bf16 %v15868_v55, %v15867_v11  ;;  %v5071_v6 = vpop.f32.mrb[191].mxu1 }
 0xc79   : > { %v19582_v4 = vpack.c.bf16 %v5071_v6, %v5068_v12 }
 0xc7b   : > { %15921 = vmatprep.mubr.bf16.mxu0 %v19582_v4  ;;  %15977 = vmatprep.mubr.bf16.mxu1 %v19582_v4 }
 0xc7c   : > { %15922 = vmatmul.mubr.bf16.vlgmr.msra.gmra.mrb[224].mxu0 %v19580_v14  ;;  %15978 = vmatmul.mubr.bf16.vlgmr.msra.gmra.mrb[228].mxu1 %v19580_v14 }
 0xc85   : > { %v15871_v18 = vpop.f32.mrb[192].mxu1 }
 0xc86   : > { %v5084_v8 = vpop.f32.mrb[193].mxu1 }
 0xc87   : > { %v15872_v42 = vpop.f32.mrb[194].mxu1 }
 0xc88   : > { %v19588_v24 = vpack.c.bf16 %v15872_v42, %v15871_v18  ;;  %v5087_v32 = vpop.f32.mrb[195].mxu1 }
 0xc89   : > { %v19590_v37 = vpack.c.bf16 %v5087_v32, %v5084_v8 }
 0xc8b   : > { %15925 = vmatprep.mubr.bf16.mxu0 %v19590_v37  ;;  %15981 = vmatprep.mubr.bf16.mxu1 %v19590_v37 }
 0xc8c   : > { %15926 = vmatmul.mubr.bf16.gmra.mrb[228].mxu0 %v19588_v24  ;;  %15982 = vmatmul.mubr.bf16.gmra.mrb[232].mxu1 %v19588_v24 }
 0xc95   : > { %v15875_v20 = vpop.f32.mrb[196].mxu1 }
 0xc96   : > { %v5100_v57 = vpop.f32.mrb[197].mxu1 }
 0xc97   : > { %v15876_v22 = vpop.f32.mrb[198].mxu1 }
 0xc98   : > { %v19596_v25 = vpack.c.bf16 %v15876_v22, %v15875_v20  ;;  %v5103_v17 = vpop.f32.mrb[199].mxu1  ;;  %v17181_v20 = vld [vmem:[%s22437_s9 + $0x4] ss:$12 sps:$4 sm:$0xff]  }
 0xc99   : > { %v19598_v10 = vpack.c.bf16 %v5103_v17, %v5100_v57 }
 0xc9b   : > { %15929 = vmatprep.mubr.bf16.mxu0 %v19598_v10  ;;  %15985 = vmatprep.mubr.bf16.mxu1 %v19598_v10 }
 0xc9c   : > { %15930 = vmatmul.mubr.bf16.gmra.mrb[232].mxu0 %v19596_v25  ;;  %15986 = vmatmul.mubr.bf16.gmra.mrb[236].mxu1 %v19596_v25 }
 0xca5   : > { %v15879_v60 = vpop.f32.mrb[200].mxu1 }
 0xca6   : > { %v5116_v35 = vpop.f32.mrb[201].mxu1 }
 0xca7   : > { %v15880_v63 = vpop.f32.mrb[202].mxu1 }
 0xca8   : > { %v19604_v3 = vpack.c.bf16 %v15880_v63, %v15879_v60  ;;  %v5119_v28 = vpop.f32.mrb[203].mxu1 }
 0xca9   : > { %v19606_v49 = vpack.c.bf16 %v5119_v28, %v5116_v35 }
 0xcab   : > { %15933 = vmatprep.mubr.bf16.mxu0 %v19606_v49  ;;  %15989 = vmatprep.mubr.bf16.mxu1 %v19606_v49 }
 0xcac   : > { %15934 = vmatmul.mubr.bf16.gmra.mrb[236].mxu0 %v19604_v3  ;;  %15990 = vmatmul.mubr.bf16.gmra.mrb[240].mxu1 %v19604_v3 }
 0xcb5   : > { %v15883_v13 = vpop.f32.mrb[204].mxu1 }
 0xcb6   : > { %v5132_v30 = vpop.f32.mrb[205].mxu1 }
 0xcb7   : > { %v15884_v33 = vpop.f32.mrb[206].mxu1 }
 0xcb8   : > { %v19612_v21 = vpack.c.bf16 %v15884_v33, %v15883_v13  ;;  %v5135_v48 = vpop.f32.mrb[207].mxu1 }
 0xcb9   : > { %v19614_v7 = vpack.c.bf16 %v5135_v48, %v5132_v30 }
 0xcbb   : > { %15937 = vmatprep.mubr.bf16.mxu0 %v19614_v7  ;;  %15993 = vmatprep.mubr.bf16.mxu1 %v19614_v7 }
 0xcbc   : > { %15938 = vmatmul.mubr.bf16.gmra.mrb[240].mxu0 %v19612_v21  ;;  %15994 = vmatmul.mubr.bf16.gmra.mrb[244].mxu1 %v19612_v21 }
 0xcc5   : > { %v15887_v56 = vpop.f32.mrb[208].mxu1 }
 0xcc6   : > { %v5148_v46 = vpop.f32.mrb[209].mxu1 }
 0xcc7   : > { %v15888_v31 = vpop.f32.mrb[210].mxu1 }
 0xcc8   : > { %v19620_v45 = vpack.c.bf16 %v15888_v31, %v15887_v56  ;;  %v5151_v19 = vpop.f32.mrb[211].mxu1 }
 0xcc9   : > { %v19622_v47 = vpack.c.bf16 %v5151_v19, %v5148_v46 }
 0xccb   : > { %15941 = vmatprep.mubr.bf16.mxu0 %v19622_v47  ;;  %15997 = vmatprep.mubr.bf16.mxu1 %v19622_v47 }
 0xccc   : > { %15942 = vmatmul.mubr.bf16.gmra.mrb[244].mxu0 %v19620_v45  ;;  %15998 = vmatmul.mubr.bf16.gmra.mrb[248].mxu1 %v19620_v45 }
 0xcd5   : > { %v15891_v61 = vpop.f32.mrb[212].mxu1 }
 0xcd6   : > { %v5164_v62 = vpop.f32.mrb[213].mxu1 }
 0xcd7   : > { %v15892_v50 = vpop.f32.mrb[214].mxu1 }
 0xcd8   : > { %v19628_v0 = vpack.c.bf16 %v15892_v50, %v15891_v61  ;;  %v5167_v58 = vpop.f32.mrb[215].mxu1 }
 0xcd9   : > { %v19630_v29 = vpack.c.bf16 %v5167_v58, %v5164_v62 }
 0xcdb   : > { %15945 = vmatprep.mubr.bf16.mxu0 %v19630_v29  ;;  %16001 = vmatprep.mubr.bf16.mxu1 %v19630_v29 }
 0xcdc   : > { %15946 = vmatmul.mubr.bf16.gmra.mrb[248].mxu0 %v19628_v0  ;;  %16002 = vmatmul.mubr.bf16.gmra.mrb[252].mxu1 %v19628_v0 }
 0xce5   : > { %v15895_v59 = vpop.f32.mrb[216].mxu1 }
 0xce6   : > { %v5180_v16 = vpop.f32.mrb[217].mxu1 }
 0xce7   : > { %v15896_v36 = vpop.f32.mrb[218].mxu1 }
 0xce8   : > { %v19636_v26 = vpack.c.bf16 %v15896_v36, %v15895_v59  ;;  %v5183_v40 = vpop.f32.mrb[219].mxu1 }
 0xce9   : > { %v19638_v52 = vpack.c.bf16 %v5183_v40, %v5180_v16 }
 0xceb   : > { %15949 = vmatprep.mubr.bf16.mxu0 %v19638_v52  ;;  %16005 = vmatprep.mubr.bf16.mxu1 %v19638_v52 }
 0xcec   : > { %15950 = vmatmul.mubr.bf16.gmra.mrb[252].mxu0 %v19636_v26  ;;  %16006 = vmatmul.mubr.bf16.gmra.mrb[0].mxu1 %v19636_v26 }
 0xcf5   : > { %v15899_v2 = vpop.f32.mrb[220].mxu1 }
 0xcf6   : > { %v5196_v34 = vpop.f32.mrb[221].mxu1 }
 0xcf7   : > { %v15900_v5 = vpop.f32.mrb[222].mxu1 }
 0xcf8   : > { %v19644_v38 = vpack.c.bf16 %v15900_v5, %v15899_v2  ;;  %v5199_v11 = vpop.f32.mrb[223].mxu1 }
 0xcf9   : > { %v19646_v12 = vpack.c.bf16 %v5199_v11, %v5196_v34  ;;  %v17194_v34 = vld [vmem:[%s22437_s9 + $0x8] ss:$12 sps:$4 sm:$0xff]  }
 0xcfb   : > { %15953 = vmatprep.mubr.bf16.mxu0 %v19646_v12  ;;  %16009 = vmatprep.mubr.bf16.mxu1 %v19646_v12 }
 0xcfc   : > { %15954 = vmatmul.mubr.bf16.gmra.mrb[0].mxu0 %v19644_v38  ;;  %16010 = vmatmul.mubr.bf16.gmra.mrb[4].mxu1 %v19644_v38 }
 0xd05   : > { %v15903_v55 = vpop.f32.mrb[224].mxu1 }
 0xd06   : > { %v5212_v6 = vpop.f32.mrb[225].mxu1 }
 0xd07   : > { %v15904_v18 = vpop.f32.mrb[226].mxu1 }
 0xd08   : > { %v19652_v8 = vpack.c.bf16 %v15904_v18, %v15903_v55  ;;  %v5215_v42 = vpop.f32.mrb[227].mxu1 }
 0xd09   : > { %v19654_v32 = vpack.c.bf16 %v5215_v42, %v5212_v6 }
 0xd0a   : > { %22490 = vst [vmem:[#allocation12_spill] sm:$0xff] %v19652_v8 }
 0xd0b   : > { %15957 = vmatprep.mubr.bf16.mxu0 %v19654_v32  ;;  %16013 = vmatprep.mubr.bf16.mxu1 %v19654_v32 }
 0xd0c   : > { %15958 = vmatmul.mubr.bf16.gmra.mrb[4].mxu0 %v19652_v8  ;;  %16014 = vmatmul.mubr.bf16.gmra.mrb[8].mxu1 %v19652_v8 }
 0xd0d   : > { %5966 = vmatprep.mubr.bf16.mxu0 %v17181_v20  ;;  %16025 = vmatprep.mubr.msk.bf16.mxu1 %vm4695_vm7, %v17194_v34 }
 0xd4f   : > { %v19663_v57 = vpop.f32.mrb[224].mxu0  ;;  %v19665_v22 = vpop.f32.mrb[228].mxu1 }
 0xd50   : > { %v5281_v17 = vpop.f32.mrb[225].mxu0  ;;  %v19667_v60 = vpop.f32.mrb[229].mxu1 }
 0xd51   : > { %v15924_v35 = vpop.f32.mrb[226].mxu0  ;;  %v19669_v63 = vpop.f32.mrb[230].mxu1 }
 0xd52   : > { %v5441_v28 = vpack.c.bf16 %v15924_v35, %v19663_v57  ;;  %v5284_v30 = vpop.f32.mrb[227].mxu0  ;;  %v19674_v33 = vpop.f32.mrb[231].mxu1 }
 0xd53   : > { %v5440_v48 = vpack.c.bf16 %v5284_v30, %v5281_v17 }
 0xd5f   : > { %v19678_v46 = vpop.f32.mrb[228].mxu0  ;;  %v19680_v31 = vpop.f32.mrb[232].mxu1 }
 0xd60   : > { %v19682_v19 = vpop.f32.mrb[229].mxu0  ;;  %v19684_v61 = vpop.f32.mrb[233].mxu1 }
 0xd61   : > { %v19686_v62 = vpop.f32.mrb[230].mxu0  ;;  %v19688_v50 = vpop.f32.mrb[234].mxu1 }
 0xd62   : > { %v5443_v58 = vpack.c.bf16 %v19686_v62, %v19678_v46  ;;  %v5300_v16 = vpop.f32.mrb[231].mxu0  ;;  %v19694_v36 = vpop.f32.mrb[235].mxu1 }
 0xd63   : > { %v5442_v40 = vpack.c.bf16 %v5300_v16, %v19682_v19 }
 0xd6f   : > { %v19703_v5 = vpop.f32.mrb[232].mxu0  ;;  %v19705_v11 = vpop.f32.mrb[236].mxu1 }
 0xd70   : > { %v19707_v55 = vpop.f32.mrb[233].mxu0  ;;  %v19709_v6 = vpop.f32.mrb[237].mxu1 }
 0xd71   : > { %v19711_v18 = vpop.f32.mrb[234].mxu0  ;;  %v19713_v42 = vpop.f32.mrb[238].mxu1 }
 0xd72   : > { %v5316_v17 = vpop.f32.mrb[235].mxu0  ;;  %v19719_v35 = vpop.f32.mrb[239].mxu1 }
 0xd73   : > { %v5444_v30 = vpack.c.bf16 %v5316_v17, %v19707_v55 }
 0xd7f   : > { %v19724_v19 = vpop.f32.mrb[236].mxu0  ;;  %v19726_v62 = vpop.f32.mrb[240].mxu1 }
 0xd80   : > { %v19728_v16 = vpop.f32.mrb[237].mxu0  ;;  %v19730_v34 = vpop.f32.mrb[241].mxu1 }
 0xd81   : > { %v19732_v1 = vpop.f32.mrb[238].mxu0  ;;  %v19734_v23 = vpop.f32.mrb[242].mxu1 }
 0xd82   : > { %v19740_v17 = vpop.f32.mrb[239].mxu0  ;;  %v19742_v46 = vpop.f32.mrb[243].mxu1 }
 0xd83   : > { %v5446_v59 = vpack.c.bf16 %v19740_v17, %v19728_v16 }
 0xd8f   : > { %v15939_v13 = vpop.f32.mrb[240].mxu0  ;;  %v19748_v56 = vpop.f32.mrb[244].mxu1 }
 0xd90   : > { %v5345_v20 = vpop.f32.mrb[241].mxu0  ;;  %v19750_v43 = vpop.f32.mrb[245].mxu1 }
 0xd91   : > { %v15940_v57 = vpop.f32.mrb[242].mxu0  ;;  %v19752_v53 = vpop.f32.mrb[246].mxu1 }
 0xd92   : > { %v5449_v55 = vpack.c.bf16 %v15940_v57, %v15939_v13  ;;  %v5348_v27 = vpop.f32.mrb[243].mxu0  ;;  %v5561_v51 = vpop.f32.mrb[247].mxu1 }
 0xd93   : > { %v5448_v54 = vpack.c.bf16 %v5348_v27, %v5345_v20  ;;  %v5661_v16 = vpack.c.bf16 %v5561_v51, %v19750_v43 }
 0xd95   : > { %14354 = vmatprep.subr.bf16.mxu0 %v5448_v54 }
 0xd96   : > { %14355 = vmatpush3.bf16.msra.mxu0 %v5440_v48 }
 0xd97   : > { %14356 = vmatprep.subr.bf16.mxu0 %v5449_v55 }
 0xd9a   : > { %14357 = vmatpush3.bf16.msra.mxu0 %v5441_v28 }
 0xd9f   : > { %v15943_v17 = vpop.f32.mrb[244].mxu0  ;;  %v19757_v2 = vpop.f32.mrb[248].mxu1 }
 0xda0   : > { %v5361_v39 = vpop.f32.mrb[245].mxu0  ;;  %v19759_v44 = vpop.f32.mrb[249].mxu1 }
 0xda1   : > { %v15944_v15 = vpop.f32.mrb[246].mxu0  ;;  %v19761_v13 = vpop.f32.mrb[250].mxu1 }
 0xda2   : > { %v5451_v57 = vpack.c.bf16 %v15944_v15, %v15943_v17  ;;  %v5364_v27 = vpop.f32.mrb[247].mxu0  ;;  %v5577_v20 = vpop.f32.mrb[251].mxu1 }
 0xda3   : > { %v5450_v51 = vpack.c.bf16 %v5364_v27, %v5361_v39  ;;  %v5663_v54 = vpack.c.bf16 %v5577_v20, %v19759_v44 }
 0xda5   : > { %14358 = vmatprep.subr.bf16.mxu0 %v5450_v51 }
 0xda6   : > { %14359 = vmatpush3.bf16.msra.mxu0 %v5442_v40 }
 0xda7   : > { %14360 = vmatprep.subr.bf16.mxu0 %v5451_v57 }
 0xdaa   : > { %14361 = vmatpush3.bf16.msra.mxu0 %v5443_v58  ;;  %v22491_v58 = vpack.c.bf16 %v19711_v18, %v19703_v5  ;;  %v17179_v5 = vld [vmem:[%s22437_s9] ss:$12 sps:$4 sm:$0xff]   ;;  %v22492_v18 = vpack.c.bf16 %v19732_v1, %v19724_v19 }
 0xdaf   : > { %v15947_v43 = vpop.f32.mrb[248].mxu0  ;;  %v19766_v28 = vpop.f32.mrb[252].mxu1 }
 0xdb0   : > { %v5377_v48 = vpop.f32.mrb[249].mxu0  ;;  %v19768_v55 = vpop.f32.mrb[253].mxu1 }
 0xdb1   : > { %v15948_v8 = vpop.f32.mrb[250].mxu0  ;;  %v19770_v15 = vpop.f32.mrb[254].mxu1 }
 0xdb2   : > { %v5453_v17 = vpack.c.bf16 %v15948_v8, %v15947_v43  ;;  %v5380_v39 = vpop.f32.mrb[251].mxu0  ;;  %v5593_v27 = vpop.f32.mrb[255].mxu1 }
 0xdb3   : > { %v5452_v44 = vpack.c.bf16 %v5380_v39, %v5377_v48  ;;  %v5665_v40 = vpack.c.bf16 %v5593_v27, %v19768_v55  ;;  %v17184_v27 = vld [vmem:[%s22437_s9 + $0x1c] ss:$12 sps:$4 sm:$0xff]  }
 0xdb5   : > { %14362 = vmatprep.subr.bf16.mxu0 %v5452_v44  ;;  %v22493_v44 = vpack.c.bf16 %v19674_v33, %v19667_v60 }
 0xdb6   : > { %14363 = vmatpush3.bf16.msra.mxu0 %v5444_v30 }
 0xdb7   : > { %14364 = vmatprep.subr.bf16.mxu0 %v5453_v17 }
 0xdba   : > { %14365 = vmatpush3.bf16.msra.mxu0 %v22491_v58  ;;  %v22494_v58 = vpack.c.bf16 %v19752_v53, %v19748_v56  ;;  %v17187_v56 = vld [vmem:[%s22437_s9 + $0x34] ss:$12 sps:$4 sm:$0xff]  }
 0xdbf   : > { %v15951_v57 = vpop.f32.mrb[252].mxu0  ;;  %v19778_v20 = vpop.f32.mrb[0].mxu1 }
 0xdc0   : > { %v5393_v51 = vpop.f32.mrb[253].mxu0  ;;  %v19780_v8 = vpop.f32.mrb[1].mxu1 }
 0xdc1   : > { %v15952_v43 = vpop.f32.mrb[254].mxu0  ;;  %v19782_v9 = vpop.f32.mrb[2].mxu1 }
 0xdc2   : > { %v5455_v41 = vpack.c.bf16 %v15952_v43, %v15951_v57  ;;  %v5668_v48 = vpack.c.bf16 %v19782_v9, %v19778_v20  ;;  %v5396_v55 = vpop.f32.mrb[255].mxu0  ;;  %v5609_v30 = vpop.f32.mrb[3].mxu1  ;;  %v17199_v9 = vld [vmem:[%s22437_s9 + $0x38] ss:$12 sps:$4 sm:$0xff]  }
 0xdc3   : > { %v5454_v17 = vpack.c.bf16 %v5396_v55, %v5393_v51  ;;  %v5667_v39 = vpack.c.bf16 %v5609_v30, %v19780_v8  ;;  %v22495_v55 = vpack.c.bf16 %v19669_v63, %v19665_v22  ;;  %v22497_v22 = vpack.c.bf16 %v19761_v13, %v19757_v2  ;;  %v17185_v63 = vld [vmem:[%s22437_s9 + $0x30] ss:$12 sps:$4 sm:$0xff]   ;;  %v17224_v20 = vld [vmem:[%s22437_s9 + $0x10c] ss:$12 sps:$4 sm:$0xff]  }
 0xdc5   : > { %14366 = vmatprep.subr.bf16.mxu0 %v5454_v17  ;;  %v22496_v17 = vpack.c.bf16 %v19694_v36, %v19684_v61  ;;  %v17190_v61 = vld [vmem:[%s22437_s9 + $0x4c] ss:$12 sps:$4 sm:$0xff]   ;;  %v22499_v36 = vpack.c.bf16 %v19719_v35, %v19709_v6 }
 0xdc6   : > { %14367 = vmatpush3.bf16.msra.mxu0 %v5446_v59 }
 0xdc7   : > { %14368 = vmatprep.subr.bf16.mxu0 %v5455_v41 }
 0xdca   : > { %14369 = vmatpush3.bf16.msra.mxu0 %v22492_v18 }
 0xdcb   : > { %14534 = vmatprep.subr.bf16.mxu0 %v5661_v16  ;;  %v17182_v16 = vld [vmem:[%s22437_s9 + $0x18] ss:$12 sps:$4 sm:$0xff]  }
 0xdcd   : > { %5967 = vmatmul.mubr.bf16.vlgmr.msra.gmra.mrb[8].mxu0 %v17179_v5  ;;  %v22500_v5 = vpack.c.bf16 %v19770_v15, %v19766_v28  ;;  %v17193_v15 = vld [vmem:[%s22437_s9 + $0x64] ss:$12 sps:$4 sm:$0xff]  }
 0xdce   : > { %14535 = vmatpush3.bf16.msra.mxu0 %v22493_v44  ;;  %5974 = vmatprep.mubr.bf16.mxu0 %v17184_v27 }
 0xdcf   : > { %v15955_v41 = vpop.f32.mrb[0].mxu0  ;;  %v16011_v59 = vpop.f32.mrb[4].mxu1  ;;  %14536 = vmatprep.subr.bf16.mxu0 %v22494_v58 }
 0xdd0   : > { %v5409_v57 = vpop.f32.mrb[1].mxu0  ;;  %v5622_v1 = vpop.f32.mrb[5].mxu1 }
 0xdd1   : > { %v15956_v19 = vpop.f32.mrb[2].mxu0  ;;  %v16012_v51 = vpop.f32.mrb[6].mxu1 }
 0xdd2   : > { %v5457_v8 = vpack.c.bf16 %v15956_v19, %v15955_v41  ;;  %v19805_v43 = vpack.c.bf16 %v16012_v51, %v16011_v59  ;;  %v5412_v60 = vpop.f32.mrb[3].mxu0  ;;  %v5625_v33 = vpop.f32.mrb[7].mxu1  ;;  %14537 = vmatpush3.bf16.msra.mxu0 %v22495_v55  ;;  %v22501_v59 = vpack.c.bf16 %v19713_v42, %v19705_v11  ;;  %v17191_v11 = vld [vmem:[%s22437_s9 + $0x60] ss:$12 sps:$4 sm:$0xff]   ;;  %v17233_v51 = vld [vmem:[%s22437_s9 + $0x1fc] ss:$12 sps:$4 sm:$0xff]  }
 0xdd3   : > { %v5456_v30 = vpack.c.bf16 %v5412_v60, %v5409_v57  ;;  %v19810_v53 = vpack.c.bf16 %v5625_v33, %v5622_v1  ;;  %14538 = vmatprep.subr.bf16.mxu0 %v5663_v54  ;;  %v22498_v54 = vpack.c.bf16 %v19688_v50, %v19680_v31  ;;  %v22502_v57 = vpack.c.bf16 %v19742_v46, %v19730_v34  ;;  %v17195_v42 = vld [vmem:[%s22437_s9 + $0x20] ss:$12 sps:$4 sm:$0xff]   ;;  %v17198_v46 = vld [vmem:[%s22437_s9 + $0x7c] ss:$12 sps:$4 sm:$0xff]   ;;  %v17231_v60 = vld [vmem:[%s22437_s9 + $0x1f8] ss:$12 sps:$4 sm:$0xff]  }
 0xdd4   : > { %v22504_v34 = vmov 0   ;;  %v17222_v1 = vld [vmem:[%s22437_s9 + $0x108] ss:$12 sps:$4 sm:$0xff]   ;;  %v17225_v19 = vld [vmem:[%s22437_s9 + $0x1e0] ss:$12 sps:$4 sm:$0xff]  }
 0xdd5   : > { %5975 = vmatmul.mubr.bf16.gmra.mrb[12].mxu0 %v17182_v16  ;;  %16017 = vmatprep.subr.bf16.mxu1 %v5456_v30  ;;  %v22505_v16 = vld [vmem:[#allocation3_spill] sm:$0xff]  ;;  %v22507_v33 = vld [vmem:[#allocation2_spill] sm:$0xff] }
 0xdd6   : > { %16018 = vmatpush3.bf16.msra.mxu1 %v5456_v30  ;;  %14539 = vmatpush3.bf16.msra.mxu0 %v22496_v17  ;;  %v17239_v55 = vld [vmem:[%s22437_s9 + $0x214] ss:$12 sps:$4 sm:$0xff]   ;;  %v22508_v30 = vld [vmem:[#allocation5_spill] sm:$0xff] }
 0xdd7   : > { %16019 = vmatprep.subr.bf16.mxu1 %v5457_v8  ;;  %14540 = vmatprep.subr.bf16.mxu0 %v22497_v22  ;;  %v17237_v17 = vld [vmem:[%s22437_s9 + $0x210] ss:$12 sps:$4 sm:$0xff]  }
 0xdd8   : > { %5982 = vmatprep.mubr.bf16.mxu0 %v17187_v56  ;;  %v17234_v56 = vld [vmem:[%s22437_s9 + $0x138] ss:$12 sps:$4 sm:$0xff]   ;;  %v22509_v22 = vld [vmem:[#allocation4_spill] sm:$0xff] }
 0xdda   : > { %16020 = vmatpush3.bf16.msra.mxu1 %v5457_v8  ;;  %14541 = vmatpush3.bf16.msra.mxu0 %v22498_v54  ;;  %v22506_v8 = vld [vmem:[#allocation12_spill] sm:$0xff]  ;;  %v17245_v54 = vld [vmem:[%s22437_s9 + $0x22c] ss:$12 sps:$4 sm:$0xff]  }
 0xddb   : > { %14542 = vmatprep.subr.bf16.mxu0 %v5665_v40  ;;  %v17188_v40 = vld [vmem:[%s22437_s9 + $0x48] ss:$12 sps:$4 sm:$0xff]  }
 0xddd   : > { %5983 = vmatmul.mubr.bf16.gmra.mrb[16].mxu0 %v17185_v63  ;;  %v17242_v63 = vld [vmem:[%s22437_s9 + $0x154] ss:$12 sps:$4 sm:$0xff]  }
 0xdde   : > { %14543 = vmatpush3.bf16.msra.mxu0 %v22499_v36  ;;  %5990 = vmatprep.mubr.bf16.mxu0 %v17190_v61  ;;  %v22510_v61 = vld [vmem:[#allocation7_spill] sm:$0xff]  ;;  %v17240_v36 = vld [vmem:[%s22437_s9 + $0x150] ss:$12 sps:$4 sm:$0xff]  }
 0xddf   : > { %v15959_v2 = vpop.f32.mrb[4].mxu0  ;;  %v16015_v13 = vpop.f32.mrb[8].mxu1  ;;  %14544 = vmatprep.subr.bf16.mxu0 %v22500_v5  ;;  %v17248_v5 = vld [vmem:[%s22437_s9 + $0x16c] ss:$12 sps:$4 sm:$0xff]  }
 0xde0   : > { %v5425_v18 = vpop.f32.mrb[5].mxu0  ;;  %v5638_v31 = vpop.f32.mrb[9].mxu1 }
 0xde1   : > { %v15960_v50 = vpop.f32.mrb[6].mxu0  ;;  %v16016_v27 = vpop.f32.mrb[10].mxu1 }
 0xde2   : > { %v5459_v44 = vpack.c.bf16 %v15960_v50, %v15959_v2  ;;  %v19839_v41 = vpack.c.bf16 %v16016_v27, %v16015_v13  ;;  %v5428_v6 = vpop.f32.mrb[7].mxu0  ;;  %v5641_v35 = vpop.f32.mrb[11].mxu1  ;;  %14545 = vmatpush3.bf16.msra.mxu0 %v22501_v59  ;;  %v17243_v2 = vld [vmem:[%s22437_s9 + $0x228] ss:$12 sps:$4 sm:$0xff]   ;;  %v22511_v13 = vld [vmem:[#allocation6_spill] sm:$0xff] }
 0xde3   : > { %v5458_v58 = vpack.c.bf16 %v5428_v6, %v5425_v18  ;;  %v19844_v28 = vpack.c.bf16 %v5641_v35, %v5638_v31  ;;  %14546 = vmatprep.subr.bf16.mxu0 %v5667_v39  ;;  %v22503_v39 = vpack.c.bf16 %v19734_v23, %v19726_v62  ;;  %v17196_v23 = vld [vmem:[%s22437_s9 + $0x78] ss:$12 sps:$4 sm:$0xff]   ;;  %v17203_v62 = vld [vmem:[%s22437_s9 + $0x94] ss:$12 sps:$4 sm:$0xff]   ;;  %v17257_v6 = vld [vmem:[%s22437_s9 + $0x25c] ss:$12 sps:$4 sm:$0xff]  }
 0xde4   : > { %v17251_v18 = vld [vmem:[%s22437_s9 + $0x244] ss:$12 sps:$4 sm:$0xff]   ;;  %v22512_v31 = vld [vmem:[#allocation9_spill] sm:$0xff]  ;;  %v17246_v50 = vld [vmem:[%s22437_s9 + $0x168] ss:$12 sps:$4 sm:$0xff]  }
 0xde5   : > { %5991 = vmatmul.mubr.bf16.gmra.mrb[20].mxu0 %v17188_v40  ;;  %16021 = vmatprep.subr.bf16.mxu1 %v5458_v58  ;;  %v17249_v27 = vld [vmem:[%s22437_s9 + $0x240] ss:$12 sps:$4 sm:$0xff]   ;;  %v22513_v40 = vld [vmem:[#allocation8_spill] sm:$0xff] }
 0xde6   : > { %16022 = vmatpush3.bf16.msra.mxu1 %v5458_v58  ;;  %14547 = vmatpush3.bf16.msra.mxu0 %v22502_v57  ;;  %v22514_v35 = vld [vmem:[#allocation11_spill] sm:$0xff]  ;;  %v17255_v58 = vld [vmem:[%s22437_s9 + $0x258] ss:$12 sps:$4 sm:$0xff]  }
 0xde7   : > { %16023 = vmatprep.subr.bf16.mxu1 %v5459_v44  ;;  %14548 = vmatprep.subr.bf16.mxu0 %v5668_v48  ;;  %v17227_v48 = vld [vmem:[%s22437_s9 + $0x1e4] ss:$12 sps:$4 sm:$0xff]   ;;  %v17252_v59 = vld [vmem:[%s22437_s9 + $0x180] ss:$12 sps:$4 sm:$0xff]   ;;  %v17260_v57 = vld [vmem:[%s22437_s9 + $0x19c] ss:$12 sps:$4 sm:$0xff]  }
 0xde8   : > { %5998 = vmatprep.mubr.bf16.mxu0 %v17193_v15  ;;  %v22515_v15 = vld [vmem:[#allocation10_spill] sm:$0xff] }
 0xdea   : > { %16024 = vmatpush3.bf16.msra.mxu1 %v5459_v44  ;;  %14549 = vmatpush3.bf16.msra.mxu0 %v22503_v39  ;;  %v17254_v44 = vld [vmem:[%s22437_s9 + $0x184] ss:$12 sps:$4 sm:$0xff]  }
 0xdeb   : > { %14444 = vmatprep.subr.bf16.mxu1 %v19614_v7  ;;  %7779 = vmatprep.subr.bf16.mxu0 %v22504_v34  ;;  %v17200_v7 = vld [vmem:[%s22437_s9 + $0x50] ss:$12 sps:$4 sm:$0xff]  }
 0xdec   : > { %v17261_v39 = vld [vmem:[%s22437_s9 + $0x270] ss:$12 sps:$4 sm:$0xff]  }
 0xded   : > { %5999 = vmatmul.mubr.bf16.gmra.mrb[24].mxu0 %v17191_v11  ;;  %16026 = vmatmul.mubr.msk.bf16.vlgmr.msra.gmra.mrb[12].mxu1 %vm4695_vm7, %v17195_v42  ;;  %v17263_v11 = vld [vmem:[%s22437_s9 + $0x274] ss:$12 sps:$4 sm:$0xff]   ;;  %v17258_v42 = vld [vmem:[%s22437_s9 + $0x198] ss:$12 sps:$4 sm:$0xff]  }
 0xdee   : > { %14445 = vmatpush3.bf16.msra.mxu1 %v19582_v4  ;;  %6006 = vmatprep.mubr.bf16.mxu0 %v17198_v46  ;;  %v17204_v4 = vld [vmem:[%s22437_s9 + $0x68] ss:$12 sps:$4 sm:$0xff]  }
 0xdef   : > { %14446 = vmatprep.subr.bf16.mxu1 %v19612_v21  ;;  %16029 = vmatprep.mubr.msk.bf16.mxu1 %vm4695_vm7, %v17199_v9  ;;  %v17205_v21 = vld [vmem:[%s22437_s9 + $0x80] ss:$12 sps:$4 sm:$0xff]  }
 0xdf0   : > { %v17266_v46 = vld [vmem:[%s22437_s9 + $0x1b4] ss:$12 sps:$4 sm:$0xff]   ;;  %v17269_v9 = vld [vmem:[%s22437_s9 + $0x28c] ss:$12 sps:$4 sm:$0xff]  }
 0xdf2   : > { %14447 = vmatpush3.bf16.msra.mxu1 %v19580_v14  ;;  %v17201_v14 = vld [vmem:[%s22437_s9 + $0x90] ss:$12 sps:$4 sm:$0xff]  }
 0xdf3   : > { %14448 = vmatprep.subr.bf16.mxu1 %v19622_v47  ;;  %v17208_v47 = vld [vmem:[%s22437_s9 + $0xac] ss:$12 sps:$4 sm:$0xff]  }
 0xdf5   : > { %6007 = vmatmul.mubr.bf16.gmra.mrb[28].mxu0 %v17196_v23  ;;  %16030 = vmatmul.mubr.msk.bf16.gmra.mrb[16].mxu1 %vm4695_vm7, %v17200_v7  ;;  %v17264_v23 = vld [vmem:[%s22437_s9 + $0x1b0] ss:$12 sps:$4 sm:$0xff]   ;;  %v17267_v7 = vld [vmem:[%s22437_s9 + $0x288] ss:$12 sps:$4 sm:$0xff]  }
 0xdf6   : > { %14449 = vmatpush3.bf16.msra.mxu1 %v19590_v37  ;;  %6014 = vmatprep.mubr.bf16.mxu0 %v17203_v62  ;;  %v17209_v37 = vld [vmem:[%s22437_s9 + $0x98] ss:$12 sps:$4 sm:$0xff]  }
 0xdf7   : > { %14450 = vmatprep.subr.bf16.mxu1 %v19620_v45  ;;  %16033 = vmatprep.mubr.msk.bf16.mxu1 %vm4695_vm7, %v17204_v4  ;;  %v17210_v45 = vld [vmem:[%s22437_s9 + $0xb0] ss:$12 sps:$4 sm:$0xff]   ;;  %v17272_v62 = vld [vmem:[%s22437_s9 + $0x1cc] ss:$12 sps:$4 sm:$0xff]  }
 0xdf8   : > { %v17275_v4 = vld [vmem:[%s22437_s9 + $0x2a4] ss:$12 sps:$4 sm:$0xff]  }
 0xdfa   : > { %14451 = vmatpush3.bf16.msra.mxu1 %v19588_v24  ;;  %v17206_v24 = vld [vmem:[%s22437_s9 + $0xa8] ss:$12 sps:$4 sm:$0xff]  }
 0xdfb   : > { %14452 = vmatprep.subr.bf16.mxu1 %v19630_v29  ;;  %v17213_v29 = vld [vmem:[%s22437_s9 + $0xc4] ss:$12 sps:$4 sm:$0xff]  }
 0xdfd   : > { %6015 = vmatmul.mubr.bf16.gmra.mrb[32].mxu0 %v17201_v14  ;;  %16034 = vmatmul.mubr.msk.bf16.gmra.mrb[20].mxu1 %vm4695_vm7, %v17205_v21  ;;  %v17270_v14 = vld [vmem:[%s22437_s9 + $0x1c8] ss:$12 sps:$4 sm:$0xff]   ;;  %v17273_v21 = vld [vmem:[%s22437_s9 + $0x2a0] ss:$12 sps:$4 sm:$0xff]  }
 0xdfe   : > { %14453 = vmatpush3.bf16.msra.mxu1 %v19598_v10  ;;  %6022 = vmatprep.mubr.bf16.mxu0 %v17208_v47  ;;  %v17214_v10 = vld [vmem:[%s22437_s9 + $0xc8] ss:$12 sps:$4 sm:$0xff]   ;;  %v17276_v47 = vld [vmem:[%s22437_s9 + $0xf8] ss:$12 sps:$4 sm:$0xff]  }
 0xdff   : > { %14454 = vmatprep.subr.bf16.mxu1 %v19628_v0  ;;  %16037 = vmatprep.mubr.msk.bf16.mxu1 %vm4695_vm7, %v17209_v37  ;;  %v17215_v0 = vld [vmem:[%s22437_s9 + $0xe0] ss:$12 sps:$4 sm:$0xff]   ;;  %v17279_v37 = vld [vmem:[%s22437_s9 + $0x2bc] ss:$12 sps:$4 sm:$0xff]  }
 0xe02   : > { %14455 = vmatpush3.bf16.msra.mxu1 %v19596_v25  ;;  %v17211_v25 = vld [vmem:[%s22437_s9 + $0xc0] ss:$12 sps:$4 sm:$0xff]  }
 0xe03   : > { %14456 = vmatprep.subr.bf16.mxu1 %v19638_v52  ;;  %v17218_v52 = vld [vmem:[%s22437_s9 + $0xdc] ss:$12 sps:$4 sm:$0xff]  }
 0xe05   : > { %6023 = vmatmul.mubr.bf16.gmra.mrb[36].mxu0 %v17206_v24  ;;  %16038 = vmatmul.mubr.msk.bf16.gmra.mrb[24].mxu1 %vm4695_vm7, %v17210_v45  ;;  %v17277_v24 = vld [vmem:[%s22437_s9 + $0x2b8] ss:$12 sps:$4 sm:$0xff]   ;;  %v17280_v45 = vld [vmem:[%s22437_s9 + $0x110] ss:$12 sps:$4 sm:$0xff]  }
 0xe06   : > { %14457 = vmatpush3.bf16.msra.mxu1 %v19606_v49  ;;  %6030 = vmatprep.mubr.bf16.mxu0 %v17213_v29  ;;  %v17221_v49 = vld [vmem:[%s22437_s9 + $0xf4] ss:$12 sps:$4 sm:$0xff]  }
 0xe07   : > { %14458 = vmatprep.subr.bf16.mxu1 %v19636_v26  ;;  %16041 = vmatprep.mubr.msk.bf16.mxu1 %vm4695_vm7, %v17214_v10  ;;  %v17216_v26 = vld [vmem:[%s22437_s9 + $0xd8] ss:$12 sps:$4 sm:$0xff]   ;;  %v17281_v29 = vld [vmem:[%s22437_s9 + $0x128] ss:$12 sps:$4 sm:$0xff]  }
 0xe08   : > { %v17285_v10 = vld [vmem:[%s22447_s19 + $0x4] ss:$8 sps:$4 sm:$0xff]  }
 0xe0a   : > { %14459 = vmatpush3.bf16.msra.mxu1 %v19604_v3  ;;  %v17219_v3 = vld [vmem:[%s22437_s9 + $0xf0] ss:$12 sps:$4 sm:$0xff]  }
 0xe0b   : > { %16045 = vmatprep.subr.bf16.mxu1 %v19646_v12 }
 0xe0d   : > { %6031 = vmatmul.mubr.bf16.gmra.mrb[40].mxu0 %v17211_v25  ;;  %16042 = vmatmul.mubr.msk.bf16.gmra.mrb[28].mxu1 %vm4695_vm7, %v17215_v0  ;;  %v17282_v25 = vld [vmem:[%s22437_s9 + $0x140] ss:$12 sps:$4 sm:$0xff]  }
 0xe0e   : > { %6038 = vmatprep.mubr.bf16.mxu0 %v17218_v52  ;;  %6372 = vmatprep.mubr.bf16.mxu1 %v17221_v49  ;;  %v17283_v0 = vld [vmem:[%s22447_s19] ss:$8 sps:$4 sm:$0xff]   ;;  %v17290_v52 = vld [vmem:[%s22447_s19 + $0x14] ss:$8 sps:$4 sm:$0xff]   ;;  %v17288_v49 = vld [vmem:[%s22447_s19 + $0x10] ss:$8 sps:$4 sm:$0xff]  }
 0xe15   : > { %6039 = vmatmul.mubr.bf16.gmra.mrb[44].mxu0 %v17216_v26  ;;  %6373 = vmatmul.mubr.bf16.vlgmr.msra.gmra.mrb[32].mxu1 %v17219_v3  ;;  %v17295_v26 = vld [vmem:[%s22447_s19 + $0x24] ss:$8 sps:$4 sm:$0xff]  }
 0xe16   : > { %16046 = vmatpush3.bf16.msra.mxu1 %v19646_v12  ;;  %6380 = vmatprep.mubr.bf16.mxu1 %v17224_v20  ;;  %v17230_v12 = vld [vmem:[%s22437_s9 + $0x124] ss:$12 sps:$4 sm:$0xff]   ;;  %v17292_v3 = vld [vmem:[%s22437_s9 + $0x1a0] ss:$12 sps:$4 sm:$0xff]  }
 0xe17   : > { %16047 = vmatprep.subr.bf16.mxu1 %v19644_v38  ;;  %6819 = vmatprep.mubr.bf16.mxu0 %v17227_v48  ;;  %v17296_v20 = vld [vmem:[%s22437_s9 + $0x1b8] ss:$12 sps:$4 sm:$0xff]   ;;  %v17300_v48 = vld [vmem:[%s22447_s19 + $0x34] ss:$8 sps:$4 sm:$0xff]  }
 0xe1a   : > { %16048 = vmatpush3.bf16.msra.mxu1 %v19644_v38  ;;  %v17228_v38 = vld [vmem:[%s22437_s9 + $0x120] ss:$12 sps:$4 sm:$0xff]  }
 0xe1b   : > { %16049 = vmatprep.subr.bf16.mxu1 %v19654_v32 }
 0xe1d   : > { %6381 = vmatmul.mubr.bf16.gmra.mrb[36].mxu1 %v17222_v1  ;;  %6820 = vmatmul.mubr.bf16.vlgmr.msra.gmra.mrb[48].mxu0 %v17225_v19  ;;  %v17297_v1 = vld [vmem:[%s22437_s9 + $0x1d0] ss:$12 sps:$4 sm:$0xff]  }
 0xe1e   : > { %16050 = vmatpush3.bf16.msra.mxu1 %v19654_v32  ;;  %7780 = vmatpush1.bf16.msra.mxu0 %v22505_v16  ;;  %v17236_v32 = vld [vmem:[%s22437_s9 + $0x13c] ss:$12 sps:$4 sm:$0xff]   ;;  %v17298_v19 = vld [vmem:[%s22447_s19 + $0x30] ss:$8 sps:$4 sm:$0xff]   ;;  %v17302_v16 = vld [vmem:[%s22437_s9 + $0x200] ss:$12 sps:$4 sm:$0xff]  }
 0xe1f   : > { %16051 = vmatprep.subr.bf16.mxu1 %v22506_v8  ;;  %7781 = vmatprep.subr.bf16.mxu0 %v22504_v34 }
 0xe20   : > { %6388 = vmatprep.mubr.bf16.mxu1 %v17230_v12  ;;  %6827 = vmatprep.mubr.bf16.mxu0 %v17233_v51  ;;  %v17301_v12 = vld [vmem:[%s22437_s9 + $0x1e8] ss:$12 sps:$4 sm:$0xff]   ;;  %v17305_v51 = vld [vmem:[%s22447_s19 + $0x44] ss:$8 sps:$4 sm:$0xff]  }
 0xe22   : > { %16052 = vmatpush3.bf16.msra.mxu1 %v22506_v8  ;;  %7782 = vmatpush1.bf16.msra.mxu0 %v22507_v33  ;;  %v17303_v8 = vld [vmem:[%s22447_s19 + $0x40] ss:$8 sps:$4 sm:$0xff]   ;;  %v17307_v33 = vld [vmem:[%s22437_s9 + $0x230] ss:$12 sps:$4 sm:$0xff]  }
 0xe23   : > { %16073 = vmatprep.subr.bf16.mxu1 %v19810_v53  ;;  %7783 = vmatprep.subr.bf16.mxu0 %v22504_v34 }
 0xe25   : > { %6389 = vmatmul.mubr.bf16.gmra.mrb[40].mxu1 %v17228_v38  ;;  %6828 = vmatmul.mubr.bf16.gmra.mrb[52].mxu0 %v17231_v60  ;;  %v17306_v38 = vld [vmem:[%s22437_s9 + $0x218] ss:$12 sps:$4 sm:$0xff]   ;;  %v17310_v60 = vld [vmem:[%s22447_s19 + $0x54] ss:$8 sps:$4 sm:$0xff]  }
 0xe26   : > { %7784 = vmatpush1.bf16.msra.mxu0 %v22508_v30  ;;  %6396 = vmatprep.mubr.bf16.mxu1 %v17236_v32  ;;  %v17308_v32 = vld [vmem:[%s22447_s19 + $0x50] ss:$8 sps:$4 sm:$0xff]   ;;  %v17315_v30 = vld [vmem:[%s22447_s19 + $0x64] ss:$8 sps:$4 sm:$0xff]  }
 0xe27   : > { %7785 = vmatprep.subr.bf16.mxu0 %v22504_v34  ;;  %6835 = vmatprep.mubr.bf16.mxu0 %v17239_v55  ;;  %v17311_v55 = vld [vmem:[%s22437_s9 + $0x248] ss:$12 sps:$4 sm:$0xff]  }
 0xe2a   : > { %7786 = vmatpush1.bf16.msra.mxu0 %v22509_v22  ;;  %v17316_v22 = vld [vmem:[%s22437_s9 + $0x278] ss:$12 sps:$4 sm:$0xff]  }
 0xe2b   : > { %7787 = vmatprep.subr.bf16.mxu0 %v22504_v34 }
 0xe2d   : > { %6397 = vmatmul.mubr.bf16.gmra.mrb[44].mxu1 %v17234_v56  ;;  %6836 = vmatmul.mubr.bf16.gmra.mrb[56].mxu0 %v17237_v17  ;;  %v17312_v56 = vld [vmem:[%s22437_s9 + $0x260] ss:$12 sps:$4 sm:$0xff]  }
 0xe2e   : > { %7788 = vmatpush1.bf16.msra.mxu0 %v22510_v61  ;;  %6404 = vmatprep.mubr.bf16.mxu1 %v17242_v63  ;;  %v17313_v17 = vld [vmem:[%s22447_s19 + $0x60] ss:$8 sps:$4 sm:$0xff]   ;;  %v17320_v63 = vld [vmem:[%s22447_s19 + $0x74] ss:$8 sps:$4 sm:$0xff]  }
 0xe2f   : > { %7789 = vmatprep.subr.bf16.mxu0 %v22504_v34  ;;  %6843 = vmatprep.mubr.bf16.mxu0 %v17245_v54 }
 0xe32   : > { %7790 = vmatpush1.bf16.msra.mxu0 %v22511_v13 }
 0xe33   : > { %7791 = vmatprep.subr.bf16.mxu0 %v22504_v34 }
 0xe35   : > { %6405 = vmatmul.mubr.bf16.gmra.mrb[48].mxu1 %v17240_v36  ;;  %6844 = vmatmul.mubr.bf16.gmra.mrb[60].mxu0 %v17243_v2  ;;  %v17317_v36 = vld [vmem:[%s22437_s9 + $0x290] ss:$12 sps:$4 sm:$0xff]  }
 0xe36   : > { %7792 = vmatpush1.bf16.msra.mxu0 %v22512_v31  ;;  %6412 = vmatprep.mubr.bf16.mxu1 %v17248_v5  ;;  %v17318_v2 = vld [vmem:[%s22447_s19 + $0x70] ss:$8 sps:$4 sm:$0xff]   ;;  %v17325_v31 = vld [vmem:[%s22447_s19 + $0x84] ss:$8 sps:$4 sm:$0xff]  }
 0xe37   : > { %7793 = vmatprep.subr.bf16.mxu0 %v22504_v34  ;;  %6851 = vmatprep.mubr.bf16.mxu0 %v17251_v18  ;;  %v17321_v18 = vld [vmem:[%s22437_s9 + $0x2a8] ss:$12 sps:$4 sm:$0xff]  }
 0xe3a   : > { %7794 = vmatpush1.bf16.msra.mxu0 %v22513_v40 }
 0xe3b   : > { %7795 = vmatprep.subr.bf16.mxu0 %v22504_v34 }
 0xe3d   : > { %6413 = vmatmul.mubr.bf16.gmra.mrb[52].mxu1 %v17246_v50  ;;  %6852 = vmatmul.mubr.bf16.gmra.mrb[64].mxu0 %v17249_v27 }
 0xe3e   : > { %7796 = vmatpush1.bf16.msra.mxu0 %v22514_v35  ;;  %6420 = vmatprep.mubr.bf16.mxu1 %v17254_v44  ;;  %v17323_v35 = vld [vmem:[%s22447_s19 + $0x80] ss:$8 sps:$4 sm:$0xff]  }
 0xe3f   : > { %7797 = vmatprep.subr.bf16.mxu0 %v22504_v34  ;;  %6859 = vmatprep.mubr.bf16.mxu0 %v17257_v6  ;;  %v17322_v6 = vld [vmem:[%s22437_s9 + $0x2c0] ss:$12 sps:$4 sm:$0xff]  }
 0xe42   : > { %7798 = vmatpush1.bf16.msra.mxu0 %v22515_v15  ;;  %v17328_v15 = vld [vmem:[%s22447_s19 + $0x94] ss:$8 sps:$4 sm:$0xff]  }
 0xe43   : > { %8532 = vmatprep.subr.bf16.mxu0 %v22504_v34 }
 0xe45   : > { %6421 = vmatmul.mubr.bf16.gmra.mrb[56].mxu1 %v17252_v59  ;;  %6860 = vmatmul.mubr.bf16.gmra.mrb[68].mxu0 %v17255_v58 }
 0xe46   : > { %6428 = vmatprep.mubr.bf16.mxu1 %v17260_v57  ;;  %6867 = vmatprep.mubr.bf16.mxu0 %v17263_v11 }
 0xe4d   : > { %6429 = vmatmul.mubr.bf16.gmra.mrb[60].mxu1 %v17258_v42  ;;  %6868 = vmatmul.mubr.bf16.gmra.mrb[72].mxu0 %v17261_v39 }
 0xe4e   : > { %6436 = vmatprep.mubr.bf16.mxu1 %v17266_v46  ;;  %6875 = vmatprep.mubr.bf16.mxu0 %v17269_v9  ;;  %v17326_v46 = vld [vmem:[%s22447_s19 + $0x90] ss:$8 sps:$4 sm:$0xff]  }
 0xe55   : > { %6437 = vmatmul.mubr.bf16.gmra.mrb[64].mxu1 %v17264_v23  ;;  %6876 = vmatmul.mubr.bf16.gmra.mrb[76].mxu0 %v17267_v7  ;;  %v17331_v7 = vld [vmem:[%s22447_s19 + $0xa4] ss:$8 sps:$4 sm:$0xff]  }
 0xe56   : > { %6444 = vmatprep.mubr.bf16.mxu1 %v17272_v62  ;;  %6883 = vmatprep.mubr.bf16.mxu0 %v17275_v4 }
 0xe5d   : > { %6445 = vmatmul.mubr.bf16.gmra.mrb[68].mxu1 %v17270_v14  ;;  %6884 = vmatmul.mubr.bf16.gmra.mrb[80].mxu0 %v17273_v21 }
 0xe5e   : > { %16053 = vmatprep.mubr.msk.bf16.mxu1 %vm4695_vm7, %v17276_v47  ;;  %6891 = vmatprep.mubr.bf16.mxu0 %v17279_v37  ;;  %v17329_v47 = vld [vmem:[%s22447_s19 + $0xa0] ss:$8 sps:$4 sm:$0xff]  }
 0xe65   : > { %16054 = vmatmul.mubr.msk.bf16.vlgmr.msra.gmra.mrb[12].mxu1 %vm4695_vm7, %v17280_v45  ;;  %6892 = vmatmul.mubr.bf16.gmra.mrb[84].mxu0 %v17277_v24  ;;  %v17334_v45 = vld [vmem:[%s22447_s19 + $0xb4] ss:$8 sps:$4 sm:$0xff]  }
 0xe66   : > { %16074 = vmatpush3.bf16.msra.mxu1 %v19810_v53  ;;  %16057 = vmatprep.mubr.msk.bf16.mxu1 %vm4695_vm7, %v17281_v29  ;;  %v17286_v53 = vld [vmem:[%s22437_s9 + $0x158] ss:$12 sps:$4 sm:$0xff]  }
 0xe67   : > { %16075 = vmatprep.subr.bf16.mxu1 %v19805_v43  ;;  %13532 = vmatprep.mubr.msk.bf16.mxu0 %vm3065_vm5, %v17285_v10 }
 0xe6a   : > { %16076 = vmatpush3.bf16.msra.mxu1 %v19805_v43  ;;  %v17287_v43 = vld [vmem:[%s22437_s9 + $0x170] ss:$12 sps:$4 sm:$0xff]  }
 0xe6b   : > { %16077 = vmatprep.subr.bf16.mxu1 %v19844_v28 }
 0xe6d   : > { %16058 = vmatmul.mubr.msk.bf16.gmra.mrb[16].mxu1 %vm4695_vm7, %v17282_v25  ;;  %7812 = vmatmul.mubr.bf16.vlgmr.msra.gmra.mrb[88].mxu0 %v17283_v0 }
 0xe6e   : > { %16078 = vmatpush3.bf16.msra.mxu1 %v19844_v28  ;;  %16061 = vmatprep.mubr.msk.bf16.mxu1 %vm4695_vm7, %v17286_v53  ;;  %v17291_v28 = vld [vmem:[%s22437_s9 + $0x188] ss:$12 sps:$4 sm:$0xff]   ;;  %v17332_v53 = vld [vmem:[%s22447_s19 + $0xb0] ss:$8 sps:$4 sm:$0xff]  }
 0xe6f   : > { %16079 = vmatprep.subr.bf16.mxu1 %v19839_v41  ;;  %13533 = vmatprep.mubr.msk.bf16.mxu0 %vm3065_vm5, %v17290_v52 }
 0xe72   : > { %16080 = vmatpush3.bf16.msra.mxu1 %v19839_v41  ;;  %v17293_v41 = vld [vmem:[%s22447_s19 + $0x20] ss:$8 sps:$4 sm:$0xff]  }
 0xe75   : > { %16062 = vmatmul.mubr.msk.bf16.gmra.mrb[20].mxu1 %vm4695_vm7, %v17287_v43  ;;  %7820 = vmatmul.mubr.bf16.gmra.mrb[92].mxu0 %v17288_v49  ;;  %v17337_v49 = vld [vmem:[%s22447_s19 + $0xc4] ss:$8 sps:$4 sm:$0xff]  }
 0xe76   : > { %16065 = vmatprep.mubr.msk.bf16.mxu1 %vm4695_vm7, %v17291_v28  ;;  %13534 = vmatprep.mubr.msk.bf16.mxu0 %vm3065_vm5, %v17295_v26 }
 0xe7d   : > { %16066 = vmatmul.mubr.msk.bf16.gmra.mrb[24].mxu1 %vm4695_vm7, %v17292_v3  ;;  %7828 = vmatmul.mubr.bf16.gmra.mrb[96].mxu0 %v17293_v41 }
 0xe7e   : > { %16069 = vmatprep.mubr.msk.bf16.mxu1 %vm4695_vm7, %v17296_v20  ;;  %13535 = vmatprep.mubr.msk.bf16.mxu0 %vm3065_vm5, %v17300_v48  ;;  %v17335_v20 = vld [vmem:[%s22447_s19 + $0xc0] ss:$8 sps:$4 sm:$0xff]  }
 0xe85   : > { %16070 = vmatmul.mubr.msk.bf16.gmra.mrb[28].mxu1 %vm4695_vm7, %v17297_v1  ;;  %7836 = vmatmul.mubr.bf16.gmra.mrb[100].mxu0 %v17298_v19  ;;  %v17340_v19 = vld [vmem:[%s22447_s19 + $0xd4] ss:$8 sps:$4 sm:$0xff]  }
 0xe86   : > { %16081 = vmatprep.mubr.msk.bf16.mxu1 %vm4695_vm7, %v17301_v12  ;;  %13536 = vmatprep.mubr.msk.bf16.mxu0 %vm3065_vm5, %v17305_v51 }
 0xe8d   : > { %16082 = vmatmul.mubr.msk.bf16.vlgmr.msra.gmra.mrb[12].mxu1 %vm4695_vm7, %v17302_v16  ;;  %7844 = vmatmul.mubr.bf16.gmra.mrb[104].mxu0 %v17303_v8 }
 0xe8e   : > { %16085 = vmatprep.mubr.msk.bf16.mxu1 %vm4695_vm7, %v17306_v38  ;;  %13537 = vmatprep.mubr.msk.bf16.mxu0 %vm3065_vm5, %v17310_v60  ;;  %v17338_v38 = vld [vmem:[%s22447_s19 + $0xd0] ss:$8 sps:$4 sm:$0xff]  }
 0xe95   : > { %16086 = vmatmul.mubr.msk.bf16.gmra.mrb[16].mxu1 %vm4695_vm7, %v17307_v33  ;;  %7852 = vmatmul.mubr.bf16.gmra.mrb[108].mxu0 %v17308_v32  ;;  %v17343_v32 = vld [vmem:[%s22447_s19 + $0xe4] ss:$8 sps:$4 sm:$0xff]  }
 0xe96   : > { %16089 = vmatprep.mubr.msk.bf16.mxu1 %vm4695_vm7, %v17311_v55  ;;  %13538 = vmatprep.mubr.msk.bf16.mxu0 %vm3065_vm5, %v17315_v30 }
 0xe9d   : > { %16090 = vmatmul.mubr.msk.bf16.gmra.mrb[20].mxu1 %vm4695_vm7, %v17312_v56  ;;  %7860 = vmatmul.mubr.bf16.gmra.mrb[112].mxu0 %v17313_v17 }
 0xe9e   : > { %16093 = vmatprep.mubr.msk.bf16.mxu1 %vm4695_vm7, %v17316_v22  ;;  %13539 = vmatprep.mubr.msk.bf16.mxu0 %vm3065_vm5, %v17320_v63  ;;  %v17341_v22 = vld [vmem:[%s22447_s19 + $0xe0] ss:$8 sps:$4 sm:$0xff]  }
 0xea0   : > { %v14370_v54 = vpop.f32.mrb[8].mxu0 }
 0xea1   : > { %v14371_v61 = vpop.f32.mrb[9].mxu0 }
 0xea2   : > { %v20227_v13 = vadd.f32 %v14371_v61, %v14370_v54  ;;  %v14373_v5 = vpop.f32.mrb[10].mxu0  ;;  %v17346_v61 = vld [vmem:[%s22447_s19 + $0xf4] ss:$8 sps:$4 sm:$0xff]  }
 0xea3   : > { %v14374_v50 = vpop.f32.mrb[11].mxu0 }
 0xea4   : > { %v20235_v27 = vadd.f32 %v14374_v50, %v14373_v5 }
 0xea5   : > { %16094 = vmatmul.mubr.msk.bf16.gmra.mrb[24].mxu1 %vm4695_vm7, %v17317_v36  ;;  %7868 = vmatmul.mubr.bf16.gmra.mrb[116].mxu0 %v17318_v2 }
 0xea6   : > { %16097 = vmatprep.mubr.msk.bf16.mxu1 %vm4695_vm7, %v17321_v18  ;;  %13540 = vmatprep.mubr.msk.bf16.mxu0 %vm3065_vm5, %v17325_v31  ;;  %v17344_v31 = vld [vmem:[%s22447_s19 + $0xf0] ss:$8 sps:$4 sm:$0xff]  }
 0xea8   : > { %v14376_v40 = vpop.f32.mrb[12].mxu0 }
 0xea9   : > { %v14377_v44 = vpop.f32.mrb[13].mxu0 }
 0xeaa   : > { %v20246_v59 = vadd.f32 %v14377_v44, %v14376_v40  ;;  %v14379_v58 = vpop.f32.mrb[14].mxu0  ;;  %v17349_v44 = vld [vmem:[%s22447_s19 + $0x104] ss:$8 sps:$4 sm:$0xff]  }
 0xeab   : > { %v14380_v57 = vpop.f32.mrb[15].mxu0 }
 0xeac   : > { %v20251_v11 = vadd.f32 %v14380_v57, %v14379_v58 }
 0xead   : > { %16098 = vmatmul.mubr.msk.bf16.gmra.mrb[28].mxu1 %vm4695_vm7, %v17322_v6  ;;  %7876 = vmatmul.mubr.bf16.gmra.mrb[120].mxu0 %v17323_v35 }
 0xeae   : > { %13541 = vmatprep.mubr.msk.bf16.mxu0 %vm3065_vm5, %v17328_v15 }
 0xeb0   : > { %v14382_v42 = vpop.f32.mrb[16].mxu0 }
 0xeb1   : > { %v14383_v39 = vpop.f32.mrb[17].mxu0 }
 0xeb2   : > { %v20258_v9 = vadd.f32 %v14383_v39, %v14382_v42  ;;  %v14385_v23 = vpop.f32.mrb[18].mxu0  ;;  %v17347_v39 = vld [vmem:[%s22447_s19 + $0x100] ss:$8 sps:$4 sm:$0xff]  }
 0xeb3   : > { %v14386_v62 = vpop.f32.mrb[19].mxu0 }
 0xeb4   : > { %v20263_v4 = vadd.f32 %v14386_v62, %v14385_v23 }
 0xeb5   : > { %7884 = vmatmul.mubr.bf16.gmra.mrb[124].mxu0 %v17326_v46 }
 0xeb6   : > { %13542 = vmatprep.mubr.msk.bf16.mxu0 %vm3065_vm5, %v17331_v7 }
 0xeb8   : > { %v14388_v14 = vpop.f32.mrb[20].mxu0 }
 0xeb9   : > { %v14389_v21 = vpop.f32.mrb[21].mxu0 }
 0xeba   : > { %v20269_v37 = vadd.f32 %v14389_v21, %v14388_v14  ;;  %v14391_v24 = vpop.f32.mrb[22].mxu0  ;;  %v17352_v14 = vld [vmem:[%s22447_s19 + $0x114] ss:$8 sps:$4 sm:$0xff]  }
 0xebb   : > { %v14392_v29 = vpop.f32.mrb[23].mxu0 }
 0xebc   : > { %v20274_v10 = vadd.f32 %v14392_v29, %v14391_v24 }
 0xebd   : > { %7892 = vmatmul.mubr.bf16.gmra.mrb[128].mxu0 %v17329_v47 }
 0xebe   : > { %13543 = vmatprep.mubr.msk.bf16.mxu0 %vm3065_vm5, %v17334_v45 }
 0xec0   : > { %v14394_v25 = vpop.f32.mrb[24].mxu0 }
 0xec1   : > { %v14395_v0 = vpop.f32.mrb[25].mxu0 }
 0xec2   : > { %v20280_v52 = vadd.f32 %v14395_v0, %v14394_v25  ;;  %v14397_v43 = vpop.f32.mrb[26].mxu0 }
 0xec3   : > { %v14398_v28 = vpop.f32.mrb[27].mxu0 }
 0xec4   : > { %v20285_v26 = vadd.f32 %v14398_v28, %v14397_v43  ;;  %v17350_v28 = vld [vmem:[%s22447_s19 + $0x110] ss:$8 sps:$4 sm:$0xff]  }
 0xec5   : > { %7900 = vmatmul.mubr.bf16.gmra.mrb[132].mxu0 %v17332_v53 }
 0xec6   : > { %13544 = vmatprep.mubr.msk.bf16.mxu0 %vm3065_vm5, %v17337_v49 }
 0xec8   : > { %v14400_v3 = vpop.f32.mrb[28].mxu0 }
 0xec9   : > { %v14401_v41 = vpop.f32.mrb[29].mxu0 }
 0xeca   : > { %v20291_v48 = vadd.f32 %v14401_v41, %v14400_v3  ;;  %v14403_v1 = vpop.f32.mrb[30].mxu0 }
 0xecb   : > { %v14404_v12 = vpop.f32.mrb[31].mxu0 }
 0xecc   : > { %v20296_v51 = vadd.f32 %v14404_v12, %v14403_v1  ;;  %v17355_v1 = vld [vmem:[%s22447_s19 + $0x124] ss:$8 sps:$4 sm:$0xff]  }
 0xecd   : > { %7908 = vmatmul.mubr.bf16.gmra.mrb[136].mxu0 %v17335_v20 }
 0xece   : > { %13545 = vmatprep.mubr.msk.bf16.mxu0 %vm3065_vm5, %v17340_v19 }
 0xed0   : > { %v14406_v16 = vpop.f32.mrb[32].mxu0 }
 0xed1   : > { %v14407_v8 = vpop.f32.mrb[33].mxu0 }
 0xed2   : > { %v20302_v60 = vadd.f32 %v14407_v8, %v14406_v16  ;;  %v14409_v33 = vpop.f32.mrb[34].mxu0 }
 0xed3   : > { %v14410_v55 = vpop.f32.mrb[35].mxu0 }
 0xed4   : > { %v20307_v30 = vadd.f32 %v14410_v55, %v14409_v33 }
 0xed5   : > { %7916 = vmatmul.mubr.bf16.gmra.mrb[140].mxu0 %v17338_v38 }
 0xed6   : > { %13546 = vmatprep.mubr.msk.bf16.mxu0 %vm3065_vm5, %v17343_v32 }
 0xed8   : > { %v14412_v56 = vpop.f32.mrb[36].mxu0 }
 0xed9   : > { %v14413_v17 = vpop.f32.mrb[37].mxu0 }
 0xeda   : > { %v20313_v63 = vadd.f32 %v14413_v17, %v14412_v56  ;;  %v14415_v54 = vpop.f32.mrb[38].mxu0 }
 0xedb   : > { %v14416_v36 = vpop.f32.mrb[39].mxu0 }
 0xedc   : > { %v20318_v2 = vadd.f32 %v14416_v36, %v14415_v54  ;;  %v17353_v54 = vld [vmem:[%s22447_s19 + $0x120] ss:$8 sps:$4 sm:$0xff]  }
 0xedd   : > { %7924 = vmatmul.mubr.bf16.gmra.mrb[144].mxu0 %v17341_v22 }
 0xede   : > { %13547 = vmatprep.mubr.msk.bf16.mxu0 %vm3065_vm5, %v17346_v61 }
 0xee0   : > { %v14418_v5 = vpop.f32.mrb[40].mxu0 }
 0xee1   : > { %v14419_v18 = vpop.f32.mrb[41].mxu0 }
 0xee2   : > { %v20324_v50 = vadd.f32 %v14419_v18, %v14418_v5  ;;  %v14421_v40 = vpop.f32.mrb[42].mxu0 }
 0xee3   : > { %v14422_v6 = vpop.f32.mrb[43].mxu0 }
 0xee4   : > { %v20329_v35 = vadd.f32 %v14422_v6, %v14421_v40 }
 0xee5   : > { %7932 = vmatmul.mubr.bf16.gmra.mrb[148].mxu0 %v17344_v31 }
 0xee6   : > { %13548 = vmatprep.mubr.msk.bf16.mxu0 %vm3065_vm5, %v17349_v44 }
 0xee8   : > { %v14460_v58 = vpop.f32.mrb[32].mxu1  ;;  %v14424_v15 = vpop.f32.mrb[44].mxu0 }
 0xee9   : > { %v14461_v57 = vpop.f32.mrb[33].mxu1  ;;  %v14425_v42 = vpop.f32.mrb[45].mxu0 }
 0xeea   : > { %v14462_v46 = vadd.f32 %v14461_v57, %v14460_v58  ;;  %v14463_v23 = vpop.f32.mrb[34].mxu1  ;;  %v20335_v7 = vadd.f32 %v14425_v42, %v14424_v15  ;;  %v14427_v62 = vpop.f32.mrb[46].mxu0 }
 0xeeb   : > { %v14464_v21 = vpop.f32.mrb[35].mxu1  ;;  %v14428_v47 = vpop.f32.mrb[47].mxu0 }
 0xeec   : > { %v16604_v24 = vadd.f32 %v14462_v46, %v20227_v13  ;;  %v14465_v45 = vadd.f32 %v14464_v21, %v14463_v23  ;;  %v20341_v29 = vadd.f32 %v14428_v47, %v14427_v62  ;;  %v17356_v62 = vld [vmem:[%s22447_s19 + $0x130] ss:$8 sps:$4 sm:$0xff]  }
 0xeed   : > { %7940 = vmatmul.mubr.bf16.gmra.mrb[152].mxu0 %v17347_v39 }
 0xeee   : > { %v16610_v25 = vadd.f32 %v14465_v45, %v20235_v27  ;;  %13549 = vmatprep.mubr.msk.bf16.mxu0 %vm3065_vm5, %v17352_v14 }
 0xef0   : > { %v14466_v0 = vpop.f32.mrb[36].mxu1  ;;  %v14550_v53 = vpop.f32.mrb[48].mxu0 }
 0xef1   : > { %v14467_v43 = vpop.f32.mrb[37].mxu1  ;;  %v14551_v49 = vpop.f32.mrb[49].mxu0 }
 0xef2   : > { %v14468_v3 = vadd.f32 %v14467_v43, %v14466_v0  ;;  %v14552_v41 = vadd.f32 %v14551_v49, %v14550_v53  ;;  %v14469_v20 = vpop.f32.mrb[38].mxu1  ;;  %v14553_v13 = vpop.f32.mrb[50].mxu0 }
 0xef3   : > { %v14470_v19 = vpop.f32.mrb[39].mxu1  ;;  %v14554_v27 = vpop.f32.mrb[51].mxu0 }
 0xef4   : > { %v16601_v12 = vadd.f32 %v14468_v3, %v20246_v59  ;;  %v14471_v16 = vadd.f32 %v14470_v19, %v14469_v20  ;;  %v14555_v8 = vadd.f32 %v14554_v27, %v14553_v13  ;;  %v20352_v38 = vadd.f32 %v16604_v24, %v14552_v41 }
 0xef5   : > { %7948 = vmatmul.mubr.bf16.gmra.mrb[156].mxu0 %v17350_v28 }
 0xef6   : > { %v16607_v33 = vadd.f32 %v14471_v16, %v20251_v11  ;;  %13550 = vmatprep.mubr.msk.bf16.mxu0 %vm3065_vm5, %v17355_v1  ;;  %v20356_v32 = vadd.f32 %v16610_v25, %v14555_v8  ;;  %v17358_v11 = vld [vmem:[%s22447_s19 + $0x134] ss:$8 sps:$4 sm:$0xff]   ;;  %v17359_v1 = vld [vmem:[%s22447_s19 + $0x140] ss:$8 sps:$4 sm:$0xff]  }
 0xef8   : > { %v14472_v55 = vpop.f32.mrb[40].mxu1  ;;  %v14556_v56 = vpop.f32.mrb[52].mxu0 }
 0xef9   : > { %v14473_v17 = vpop.f32.mrb[41].mxu1  ;;  %v14557_v22 = vpop.f32.mrb[53].mxu0 }
 0xefa   : > { %v14474_v59 = vadd.f32 %v14473_v17, %v14472_v55  ;;  %v14558_v61 = vadd.f32 %v14557_v22, %v14556_v56  ;;  %v14475_v36 = vpop.f32.mrb[42].mxu1  ;;  %v14559_v5 = vpop.f32.mrb[54].mxu0 }
 0xefb   : > { %v14476_v18 = vpop.f32.mrb[43].mxu1  ;;  %v14560_v31 = vpop.f32.mrb[55].mxu0 }
 0xefc   : > { %v16616_v40 = vadd.f32 %v14474_v59, %v20258_v9  ;;  %v14477_v44 = vadd.f32 %v14476_v18, %v14475_v36  ;;  %v14561_v6 = vadd.f32 %v14560_v31, %v14559_v5  ;;  %v20365_v58 = vadd.f32 %v16601_v12, %v14558_v61 }
 0xefd   : > { %7956 = vmatmul.mubr.bf16.gmra.mrb[160].mxu0 %v17353_v54 }
 0xefe   : > { %v16622_v15 = vadd.f32 %v14477_v44, %v20263_v4  ;;  %13551 = vmatprep.mubr.msk.bf16.mxu0 %vm3065_vm5, %v17358_v11  ;;  %v20369_v57 = vadd.f32 %v16607_v33, %v14561_v6  ;;  %v17361_v4 = vld [vmem:[%s22447_s19 + $0x144] ss:$8 sps:$4 sm:$0xff]   ;;  %v17362_v11 = vld [vmem:[%s22447_s19 + $0x150] ss:$8 sps:$4 sm:$0xff]  }
 0xf00   : > { %v14478_v42 = vpop.f32.mrb[44].mxu1  ;;  %v14562_v39 = vpop.f32.mrb[56].mxu0 }
 0xf01   : > { %v14479_v46 = vpop.f32.mrb[45].mxu1  ;;  %v14563_v23 = vpop.f32.mrb[57].mxu0 }
 0xf02   : > { %v14480_v9 = vadd.f32 %v14479_v46, %v14478_v42  ;;  %v14564_v14 = vadd.f32 %v14563_v23, %v14562_v39  ;;  %v14481_v21 = vpop.f32.mrb[46].mxu1  ;;  %v14565_v47 = vpop.f32.mrb[58].mxu0 }
 0xf03   : > { %v14482_v24 = vpop.f32.mrb[47].mxu1  ;;  %v14566_v45 = vpop.f32.mrb[59].mxu0 }
 0xf04   : > { %v16613_v25 = vadd.f32 %v14480_v9, %v20269_v37  ;;  %v14483_v0 = vadd.f32 %v14482_v24, %v14481_v21  ;;  %v14567_v53 = vadd.f32 %v14566_v45, %v14565_v47  ;;  %v20378_v43 = vadd.f32 %v16616_v40, %v14564_v14 }
 0xf05   : > { %7964 = vmatmul.mubr.bf16.gmra.mrb[164].mxu0 %v17356_v62 }
 0xf06   : > { %v16619_v49 = vadd.f32 %v14483_v0, %v20274_v10  ;;  %13552 = vmatprep.mubr.msk.bf16.mxu0 %vm3065_vm5, %v17361_v4  ;;  %v20382_v28 = vadd.f32 %v16622_v15, %v14567_v53  ;;  %v17364_v10 = vld [vmem:[%s22447_s19 + $0x154] ss:$8 sps:$4 sm:$0xff]   ;;  %v17365_v4 = vld [vmem:[%s22447_s19 + $0x160] ss:$8 sps:$4 sm:$0xff]  }
 0xf08   : > { %v14484_v3 = vpop.f32.mrb[48].mxu1  ;;  %v14568_v41 = vpop.f32.mrb[60].mxu0 }
 0xf09   : > { %v14485_v20 = vpop.f32.mrb[49].mxu1  ;;  %v14569_v13 = vpop.f32.mrb[61].mxu0 }
 0xf0a   : > { %v14486_v37 = vadd.f32 %v14485_v20, %v14484_v3  ;;  %v14570_v19 = vadd.f32 %v14569_v13, %v14568_v41  ;;  %v14487_v27 = vpop.f32.mrb[50].mxu1  ;;  %v14571_v12 = vpop.f32.mrb[62].mxu0 }
 0xf0b   : > { %v14488_v16 = vpop.f32.mrb[51].mxu1  ;;  %v14572_v8 = vpop.f32.mrb[63].mxu0 }
 0xf0c   : > { %v16628_v33 = vadd.f32 %v14486_v37, %v20280_v52  ;;  %v14489_v55 = vadd.f32 %v14488_v16, %v14487_v27  ;;  %v14573_v56 = vadd.f32 %v14572_v8, %v14571_v12  ;;  %v20391_v17 = vadd.f32 %v16613_v25, %v14570_v19 }
 0xf0d   : > { %7972 = vmatmul.mubr.bf16.gmra.mrb[168].mxu0 %v17359_v1 }
 0xf0e   : > { %v16634_v22 = vadd.f32 %v14489_v55, %v20285_v26  ;;  %13553 = vmatprep.mubr.msk.bf16.mxu0 %vm3065_vm5, %v17364_v10  ;;  %v20395_v54 = vadd.f32 %v16619_v49, %v14573_v56  ;;  %v17367_v26 = vld [vmem:[%s22447_s19 + $0x164] ss:$8 sps:$4 sm:$0xff]   ;;  %v17368_v10 = vld [vmem:[%s22447_s19 + $0x170] ss:$8 sps:$4 sm:$0xff]  }
 0xf10   : > { %v14490_v59 = vpop.f32.mrb[52].mxu1  ;;  %v14574_v61 = vpop.f32.mrb[64].mxu0 }
 0xf11   : > { %v14491_v36 = vpop.f32.mrb[53].mxu1  ;;  %v14575_v5 = vpop.f32.mrb[65].mxu0 }
 0xf12   : > { %v14492_v52 = vadd.f32 %v14491_v36, %v14490_v59  ;;  %v14576_v18 = vadd.f32 %v14575_v5, %v14574_v61  ;;  %v14493_v31 = vpop.f32.mrb[54].mxu1  ;;  %v14577_v40 = vpop.f32.mrb[66].mxu0 }
 0xf13   : > { %v14494_v44 = vpop.f32.mrb[55].mxu1  ;;  %v14578_v6 = vpop.f32.mrb[67].mxu0 }
 0xf14   : > { %v16625_v15 = vadd.f32 %v14492_v52, %v20291_v48  ;;  %v14495_v42 = vadd.f32 %v14494_v44, %v14493_v31  ;;  %v14579_v39 = vadd.f32 %v14578_v6, %v14577_v40  ;;  %v20404_v46 = vadd.f32 %v16628_v33, %v14576_v18 }
 0xf15   : > { %7980 = vmatmul.mubr.bf16.gmra.mrb[172].mxu0 %v17362_v11 }
 0xf16   : > { %v16631_v23 = vadd.f32 %v14495_v42, %v20296_v51  ;;  %13554 = vmatprep.mubr.msk.bf16.mxu0 %vm3065_vm5, %v17367_v26  ;;  %v20408_v62 = vadd.f32 %v16634_v22, %v14579_v39  ;;  %v17370_v51 = vld [vmem:[%s22447_s19 + $0x174] ss:$8 sps:$4 sm:$0xff]   ;;  %v17371_v26 = vld [vmem:[%s22447_s19 + $0x180] ss:$8 sps:$4 sm:$0xff]  }
 0xf18   : > { %v14496_v9 = vpop.f32.mrb[56].mxu1  ;;  %v14580_v14 = vpop.f32.mrb[68].mxu0 }
 0xf19   : > { %v14497_v21 = vpop.f32.mrb[57].mxu1  ;;  %v14581_v47 = vpop.f32.mrb[69].mxu0 }
 0xf1a   : > { %v14498_v48 = vadd.f32 %v14497_v21, %v14496_v9  ;;  %v14582_v24 = vadd.f32 %v14581_v47, %v14580_v14  ;;  %v14499_v45 = vpop.f32.mrb[58].mxu1  ;;  %v14583_v25 = vpop.f32.mrb[70].mxu0 }
 0xf1b   : > { %v14500_v0 = vpop.f32.mrb[59].mxu1  ;;  %v14584_v53 = vpop.f32.mrb[71].mxu0 }
 0xf1c   : > { %v16640_v49 = vadd.f32 %v14498_v48, %v20302_v60  ;;  %v14501_v3 = vadd.f32 %v14500_v0, %v14499_v45  ;;  %v14585_v41 = vadd.f32 %v14584_v53, %v14583_v25  ;;  %v20417_v20 = vadd.f32 %v16625_v15, %v14582_v24 }
 0xf1d   : > { %7988 = vmatmul.mubr.bf16.gmra.mrb[176].mxu0 %v17365_v4 }
 0xf1e   : > { %v16646_v13 = vadd.f32 %v14501_v3, %v20307_v30  ;;  %13555 = vmatprep.mubr.msk.bf16.mxu0 %vm3065_vm5, %v17370_v51  ;;  %v20421_v1 = vadd.f32 %v16631_v23, %v14585_v41  ;;  %v17373_v30 = vld [vmem:[%s22447_s19 + $0x184] ss:$8 sps:$4 sm:$0xff]   ;;  %v17374_v51 = vld [vmem:[%s22447_s19 + $0x190] ss:$8 sps:$4 sm:$0xff]  }
 0xf20   : > { %v14502_v37 = vpop.f32.mrb[60].mxu1  ;;  %v14586_v19 = vpop.f32.mrb[72].mxu0 }
 0xf21   : > { %v14503_v27 = vpop.f32.mrb[61].mxu1  ;;  %v14587_v12 = vpop.f32.mrb[73].mxu0 }
 0xf22   : > { %v14504_v60 = vadd.f32 %v14503_v27, %v14502_v37  ;;  %v14588_v16 = vadd.f32 %v14587_v12, %v14586_v19  ;;  %v14505_v8 = vpop.f32.mrb[62].mxu1  ;;  %v14589_v33 = vpop.f32.mrb[74].mxu0 }
 0xf23   : > { %v14506_v55 = vpop.f32.mrb[63].mxu1  ;;  %v14590_v56 = vpop.f32.mrb[75].mxu0 }
 0xf24   : > { %v16637_v22 = vadd.f32 %v14504_v60, %v20313_v63  ;;  %v14507_v59 = vadd.f32 %v14506_v55, %v14505_v8  ;;  %v14591_v61 = vadd.f32 %v14590_v56, %v14589_v33  ;;  %v20430_v36 = vadd.f32 %v16640_v49, %v14588_v16  ;;  %v17377_v8 = vld [vmem:[%s22447_s19 + $0x1a0] ss:$8 sps:$4 sm:$0xff]  }
 0xf25   : > { %7996 = vmatmul.mubr.bf16.gmra.mrb[180].mxu0 %v17368_v10 }
 0xf26   : > { %v16643_v5 = vadd.f32 %v14507_v59, %v20318_v2  ;;  %13556 = vmatprep.mubr.msk.bf16.mxu0 %vm3065_vm5, %v17373_v30  ;;  %v20434_v11 = vadd.f32 %v16646_v13, %v14591_v61  ;;  %v17376_v2 = vld [vmem:[%s22447_s19 + $0x194] ss:$8 sps:$4 sm:$0xff]   ;;  %v17380_v59 = vld [vmem:[%s22447_s19 + $0x1b0] ss:$8 sps:$4 sm:$0xff]   ;;  %v17385_v61 = vld [vmem:[%s22447_s19 + $0x1c4] ss:$8 sps:$4 sm:$0xff]  }
 0xf28   : > { %v14508_v52 = vpop.f32.mrb[64].mxu1  ;;  %v14592_v18 = vpop.f32.mrb[76].mxu0 }
 0xf29   : > { %v14509_v31 = vpop.f32.mrb[65].mxu1  ;;  %v14593_v40 = vpop.f32.mrb[77].mxu0 }
 0xf2a   : > { %v14510_v63 = vadd.f32 %v14509_v31, %v14508_v52  ;;  %v14594_v44 = vadd.f32 %v14593_v40, %v14592_v18  ;;  %v14511_v6 = vpop.f32.mrb[66].mxu1  ;;  %v14595_v15 = vpop.f32.mrb[78].mxu0  ;;  %v17388_v52 = vld [vmem:[%s22447_s19 + $0x1d4] ss:$8 sps:$4 sm:$0xff]   ;;  %v17386_v40 = vld [vmem:[%s22447_s19 + $0x1d0] ss:$8 sps:$4 sm:$0xff]  }
 0xf2b   : > { %v14512_v42 = vpop.f32.mrb[67].mxu1  ;;  %v14596_v39 = vpop.f32.mrb[79].mxu0 }
 0xf2c   : > { %v16652_v23 = vadd.f32 %v14510_v63, %v20324_v50  ;;  %v14513_v9 = vadd.f32 %v14512_v42, %v14511_v6  ;;  %v14597_v14 = vadd.f32 %v14596_v39, %v14595_v15  ;;  %v20443_v21 = vadd.f32 %v16637_v22, %v14594_v44  ;;  %v7056_v18 = vpop.permute.xlu0 %7055  ;;  %v7061_v31 = vpop.permute.xlu1 %7060  ;;  %v17391_v63 = vld [vmem:[%s22447_s19 + $0x1e4] ss:$8 sps:$4 sm:$0xff]   ;;  %v17389_v15 = vld [vmem:[%s22447_s19 + $0x1e0] ss:$8 sps:$4 sm:$0xff]   ;;  %v17394_v42 = vld [vmem:[%s22447_s19 + $0x1f4] ss:$8 sps:$4 sm:$0xff]  }
 0xf2d   : > { %8004 = vmatmul.mubr.bf16.gmra.mrb[184].mxu0 %v17371_v26 }
 0xf2e   : > { %v16658_v47 = vadd.f32 %v14513_v9, %v20329_v35  ;;  %13557 = vmatprep.mubr.msk.bf16.mxu0 %vm3065_vm5, %v17376_v2  ;;  %v20447_v4 = vadd.f32 %v16643_v5, %v14597_v14  ;;  %v17379_v35 = vld [vmem:[%s22447_s19 + $0x1a4] ss:$8 sps:$4 sm:$0xff]   ;;  %v17383_v5 = vld [vmem:[%s22447_s19 + $0x1c0] ss:$8 sps:$4 sm:$0xff]  }
 0xf30   : > { %v14514_v48 = vpop.f32.mrb[68].mxu1  ;;  %v14598_v24 = vpop.f32.mrb[80].mxu0 }
 0xf31   : > { %v14515_v45 = vpop.f32.mrb[69].mxu1  ;;  %v14599_v25 = vpop.f32.mrb[81].mxu0 }
 0xf32   : > { %v14516_v50 = vadd.f32 %v14515_v45, %v14514_v48  ;;  %v14600_v0 = vadd.f32 %v14599_v25, %v14598_v24  ;;  %v14517_v53 = vpop.f32.mrb[70].mxu1  ;;  %v14601_v49 = vpop.f32.mrb[82].mxu0  ;;  %v17392_v48 = vld [vmem:[%s22447_s19 + $0x1f0] ss:$8 sps:$4 sm:$0xff]   ;;  %v17397_v25 = vld [vmem:[%s22447_s19 + $0x204] ss:$8 sps:$4 sm:$0xff]  }
 0xf33   : > { %v14518_v3 = vpop.f32.mrb[71].mxu1  ;;  %v14602_v41 = vpop.f32.mrb[83].mxu0 }
 0xf34   : > { %v16649_v13 = vadd.f32 %v14516_v50, %v20335_v7  ;;  %v14519_v37 = vadd.f32 %v14518_v3, %v14517_v53  ;;  %v14603_v19 = vadd.f32 %v14602_v41, %v14601_v49  ;;  %v20456_v27 = vadd.f32 %v16652_v23, %v14600_v0  ;;  %v17382_v7 = vld [vmem:[%s22447_s19 + $0x1b4] ss:$8 sps:$4 sm:$0xff]   ;;  %v7066_v26 = vpop.permute.xlu0 %7065  ;;  %v7071_v44 = vpop.permute.xlu1 %7070 }
 0xf35   : > { %8012 = vmatmul.mubr.bf16.gmra.mrb[188].mxu0 %v17374_v51 }
 0xf36   : > { %v16655_v12 = vadd.f32 %v14519_v37, %v20341_v29  ;;  %13558 = vmatprep.mubr.msk.bf16.mxu0 %vm3065_vm5, %v17379_v35  ;;  %v20460_v10 = vadd.f32 %v16658_v47, %v14603_v19 }
 0xf38   : > { %v14604_v60 = vpop.f32.mrb[84].mxu0  ;;  %v7076_v6 = vpop.permute.xlu0 %7075 }
 0xf39   : > { %v14605_v16 = vpop.f32.mrb[85].mxu0  ;;  %v7081_v2 = vpop.permute.xlu1 %7080 }
 0xf3a   : > { %v14606_v33 = vadd.f32 %v14605_v16, %v14604_v60  ;;  %v14607_v30 = vpop.f32.mrb[86].mxu0 }
 0xf3b   : > { %v14608_v55 = vpop.f32.mrb[87].mxu0 }
 0xf3c   : > { %v14609_v56 = vadd.f32 %v14608_v55, %v14607_v30  ;;  %v20468_v22 = vadd.f32 %v16649_v13, %v14606_v33  ;;  %v7086_v39 = vpop.permute.xlu0 %7085  ;;  %v17400_v55 = vld [vmem:[%s22447_s19 + $0x214] ss:$8 sps:$4 sm:$0xff]  }
 0xf3d   : > { %8020 = vmatmul.mubr.bf16.gmra.mrb[192].mxu0 %v17377_v8  ;;  %v7091_v23 = vpop.permute.xlu1 %7090  ;;  %v17395_v8 = vld [vmem:[%s22447_s19 + $0x200] ss:$8 sps:$4 sm:$0xff]  }
 0xf3e   : > { %13559 = vmatprep.mubr.msk.bf16.mxu0 %vm3065_vm5, %v17382_v7  ;;  %v20471_v29 = vadd.f32 %v16655_v12, %v14609_v56 }
 0xf40   : > { %v7096_v53 = vpop.permute.xlu0 %7095 }
 0xf41   : > { %v7101_v3 = vpop.permute.xlu1 %7100 }
 0xf45   : > { %8028 = vmatmul.mubr.bf16.gmra.mrb[196].mxu0 %v17380_v59 }
 0xf46   : > { %13560 = vmatprep.mubr.msk.bf16.mxu0 %vm3065_vm5, %v17385_v61 }
 0xf4d   : > { %8036 = vmatmul.mubr.bf16.gmra.mrb[200].mxu0 %v17383_v5 }
 0xf4e   : > { %13561 = vmatprep.mubr.msk.bf16.mxu0 %vm3065_vm5, %v17388_v52 }
 0xf55   : > { %8044 = vmatmul.mubr.bf16.gmra.mrb[204].mxu0 %v17386_v40 }
 0xf56   : > { %13562 = vmatprep.mubr.msk.bf16.mxu0 %vm3065_vm5, %v17391_v63 }
 0xf5d   : > { %8052 = vmatmul.mubr.bf16.gmra.mrb[208].mxu0 %v17389_v15 }
 0xf5e   : > { %13563 = vmatprep.mubr.msk.bf16.mxu0 %vm3065_vm5, %v17394_v42  ;;  %v17398_v42 = vld [vmem:[%s22447_s19 + $0x210] ss:$8 sps:$4 sm:$0xff]  }
 0xf60   : > { %v16083_v9 = vpop.f32.mrb[12].mxu1 }
 0xf61   : > { %v16603_v14 = vadd.f32 %v20365_v58, %v16083_v9  ;;  %v6934_v47 = vpop.f32.mrb[13].mxu1 }
 0xf62   : > { %v16606_v24 = vadd.f32 %v20352_v38, %v6934_v47  ;;  %v16084_v45 = vpop.f32.mrb[14].mxu1 }
 0xf63   : > { %v7155_v51 = vadd.f32 %v16603_v14, %v7066_v26  ;;  %v16609_v50 = vadd.f32 %v20369_v57, %v16084_v45  ;;  %v6937_v0 = vpop.f32.mrb[15].mxu1  ;;  %v17403_v14 = vld [vmem:[%s22447_s19 + $0x224] ss:$8 sps:$4 sm:$0xff]  }
 0xf64   : > { %v7153_v49 = vadd.f32 %v16606_v24, %v7056_v18  ;;  %v16612_v58 = vadd.f32 %v20356_v32, %v6937_v0  ;;  %v7106_v32 = vpop.permute.xlu0 %7105 }
 0xf65   : > { %v7156_v35 = vadd.f32 %v16609_v50, %v7071_v44  ;;  %8060 = vmatmul.mubr.bf16.gmra.mrb[212].mxu0 %v17392_v48  ;;  %v7175_v38 = vmax.f32 %v7155_v51, 0.0 }
 0xf66   : > { %v7154_v41 = vadd.f32 %v16612_v58, %v7061_v31  ;;  %13564 = vmatprep.mubr.msk.bf16.mxu0 %vm3065_vm5, %v17397_v25  ;;  %v7173_v37 = vmax.f32 %v7153_v49, 0.0 }
 0xf67   : > { %v7176_v13 = vmax.f32 %v7156_v35, 0.0 }
 0xf68   : > { %v7174_v19 = vmax.f32 %v7154_v41, 0.0  ;;  %v16087_v12 = vpop.f32.mrb[16].mxu1  ;;  %v7116_v26 = vpop.permute.xlu0 %7115 }
 0xf69   : > { %v16615_v60 = vadd.f32 %v20391_v17, %v16087_v12  ;;  %v6950_v16 = vpop.f32.mrb[17].mxu1  ;;  %v7266_v57 = vpack.c.bf16 %v7176_v13, %v7175_v38  ;;  %v7111_v17 = vpop.permute.xlu1 %7110  ;;  %v17401_v38 = vld [vmem:[%s22447_s19 + $0x220] ss:$8 sps:$4 sm:$0xff]  }
 0xf6a   : > { %v16618_v33 = vadd.f32 %v20378_v43, %v6950_v16  ;;  %v16088_v30 = vpop.f32.mrb[18].mxu1  ;;  %v7265_v7 = vpack.c.bf16 %v7174_v19, %v7173_v37  ;;  %v17406_v19 = vld [vmem:[%s22447_s19 + $0x234] ss:$8 sps:$4 sm:$0xff]  }
 0xf6b   : > { %v7159_v56 = vadd.f32 %v16615_v60, %v7086_v39  ;;  %v16621_v59 = vadd.f32 %v20395_v54, %v16088_v30  ;;  %v6953_v61 = vpop.f32.mrb[19].mxu1 }
 0xf6c   : > { %v7157_v5 = vadd.f32 %v16618_v33, %v7076_v6  ;;  %v16624_v52 = vadd.f32 %v20382_v28, %v6953_v61  ;;  %8533 = vmatpush1.bf16.msra.mxu0 %v7265_v7  ;;  %v7126_v51 = vpop.permute.xlu0 %7125 }
 0xf6d   : > { %v7160_v18 = vadd.f32 %v16621_v59, %v7091_v23  ;;  %8534 = vmatprep.subr.bf16.mxu0 %v22504_v34  ;;  %8068 = vmatmul.mubr.bf16.gmra.mrb[216].mxu0 %v17395_v8  ;;  %v7179_v31 = vmax.f32 %v7159_v56, 0.0 }
 0xf6e   : > { %v7158_v43 = vadd.f32 %v16624_v52, %v7081_v2  ;;  %13565 = vmatprep.mubr.msk.bf16.mxu0 %vm3065_vm5, %v17400_v55  ;;  %v7177_v63 = vmax.f32 %v7157_v5, 0.0  ;;  %v7121_v2 = vpop.permute.xlu1 %7120 }
 0xf6f   : > { %v7180_v40 = vmax.f32 %v7160_v18, 0.0 }
 0xf70   : > { %v7178_v44 = vmax.f32 %v7158_v43, 0.0  ;;  %v16091_v15 = vpop.f32.mrb[20].mxu1  ;;  %8535 = vmatpush1.bf16.msra.mxu0 %v7266_v57  ;;  %v7136_v16 = vpop.permute.xlu0 %7135 }
 0xf71   : > { %v16627_v54 = vadd.f32 %v20417_v20, %v16091_v15  ;;  %v6966_v6 = vpop.f32.mrb[21].mxu1  ;;  %8536 = vmatprep.subr.bf16.mxu0 %v22504_v34  ;;  %v7268_v28 = vpack.c.bf16 %v7180_v40, %v7179_v31  ;;  %v17409_v31 = vld [vmem:[%s22446_s18 + $0x4] ss:$8 sps:$4 sm:$0xff]  }
 0xf72   : > { %v16630_v39 = vadd.f32 %v20404_v46, %v6966_v6  ;;  %v16092_v23 = vpop.f32.mrb[22].mxu1  ;;  %v7267_v9 = vpack.c.bf16 %v7178_v44, %v7177_v63  ;;  %v7131_v49 = vpop.permute.xlu1 %7130 }
 0xf73   : > { %v7163_v47 = vadd.f32 %v16627_v54, %v7106_v32  ;;  %v16633_v20 = vadd.f32 %v20421_v1, %v16092_v23  ;;  %v6969_v48 = vpop.f32.mrb[23].mxu1  ;;  %v17412_v23 = vld [vmem:[%s22446_s18 + $0x14] ss:$8 sps:$4 sm:$0xff]  }
 0xf74   : > { %v7161_v24 = vadd.f32 %v16630_v39, %v7096_v53  ;;  %v16636_v45 = vadd.f32 %v20408_v62, %v6969_v48  ;;  %8537 = vmatpush1.bf16.msra.mxu0 %v7267_v9  ;;  %v7146_v5 = vpop.permute.xlu0 %7145  ;;  %v22516_v9 = vmov 0.0   ;;  %v17418_v48 = vld [vmem:[%s22446_s18 + $0x34] ss:$8 sps:$4 sm:$0xff]  }
 0xf75   : > { %v7164_v25 = vadd.f32 %v16633_v20, %v7111_v17  ;;  %8538 = vmatprep.subr.bf16.mxu0 %v22504_v34  ;;  %8076 = vmatmul.mubr.bf16.gmra.mrb[220].mxu0 %v17398_v42  ;;  %v7183_v50 = vmax.f32 %v7163_v47, 0.0  ;;  %v17404_v17 = vld [vmem:[%s22447_s19 + $0x230] ss:$8 sps:$4 sm:$0xff]   ;;  %v17415_v47 = vld [vmem:[%s22446_s18 + $0x24] ss:$8 sps:$4 sm:$0xff]  }
 0xf76   : > { %v7162_v46 = vadd.f32 %v16636_v45, %v7101_v3  ;;  %13566 = vmatprep.mubr.msk.bf16.mxu0 %vm3065_vm5, %v17403_v14  ;;  %v7181_v58 = vmax.f32 %v7161_v24, 0.0  ;;  %v17410_v14 = vld [vmem:[%s22446_s18 + $0x10] ss:$8 sps:$4 sm:$0xff]   ;;  %v17413_v20 = vld [vmem:[%s22446_s18 + $0x20] ss:$8 sps:$4 sm:$0xff]  }
 0xf77   : > { %v7184_v0 = vmax.f32 %v7164_v25, 0.0  ;;  %v17416_v24 = vld [vmem:[%s22446_s18 + $0x30] ss:$8 sps:$4 sm:$0xff]   ;;  %v17421_v45 = vld [vmem:[%s22446_s18 + $0x44] ss:$8 sps:$4 sm:$0xff]  }
 0xf78   : > { %v7182_v35 = vmax.f32 %v7162_v46, 0.0  ;;  %v16095_v41 = vpop.f32.mrb[24].mxu1  ;;  %8539 = vmatpush1.bf16.msra.mxu0 %v7268_v28  ;;  %v17419_v25 = vld [vmem:[%s22446_s18 + $0x40] ss:$8 sps:$4 sm:$0xff]   ;;  %v17422_v46 = vld [vmem:[%s22446_s18 + $0x50] ss:$8 sps:$4 sm:$0xff]  }
 0xf79   : > { %v16639_v1 = vadd.f32 %v20443_v21, %v16095_v41  ;;  %v6982_v53 = vpop.f32.mrb[25].mxu1  ;;  %8540 = vmatprep.subr.bf16.mxu0 %v22504_v34  ;;  %v7270_v62 = vpack.c.bf16 %v7184_v0, %v7183_v50  ;;  %v17427_v50 = vld [vmem:[%s22446_s18 + $0x64] ss:$8 sps:$4 sm:$0xff]   ;;  %v17425_v0 = vld [vmem:[%s22446_s18 + $0x60] ss:$8 sps:$4 sm:$0xff]  }
 0xf7a   : > { %v16642_v3 = vadd.f32 %v20430_v36, %v6982_v53  ;;  %v16096_v13 = vpop.f32.mrb[26].mxu1  ;;  %v7269_v37 = vpack.c.bf16 %v7182_v35, %v7181_v58  ;;  %v7141_v36 = vpop.permute.xlu1 %7140  ;;  %v17428_v58 = vld [vmem:[%s22446_s18 + $0x70] ss:$8 sps:$4 sm:$0xff]   ;;  %v17433_v35 = vld [vmem:[%s22446_s18 + $0x84] ss:$8 sps:$4 sm:$0xff]  }
 0xf7b   : > { %v7167_v12 = vadd.f32 %v16639_v1, %v7126_v51  ;;  %v16645_v60 = vadd.f32 %v20447_v4, %v16096_v13  ;;  %v6985_v21 = vpop.f32.mrb[27].mxu1  ;;  %v17424_v51 = vld [vmem:[%s22446_s18 + $0x54] ss:$8 sps:$4 sm:$0xff]   ;;  %v17431_v41 = vld [vmem:[%s22446_s18 + $0x80] ss:$8 sps:$4 sm:$0xff]  }
 0xf7c   : > { %v7165_v57 = vadd.f32 %v16642_v3, %v7116_v26  ;;  %v16648_v8 = vadd.f32 %v20434_v11, %v6985_v21  ;;  %8541 = vmatpush1.bf16.msra.mxu0 %v7269_v37  ;;  %v17436_v1 = vld [vmem:[%s22446_s18 + $0x94] ss:$8 sps:$4 sm:$0xff]   ;;  %v17482_v53 = vld [vmem:[%s22479_s3 + $0xc0] sm:$0xff]   ;;  %v17493_v21 = vld [vmem:[%s22479_s3 + $0xe8] sm:$0xff]  }
 0xf7d   : > { %v7168_v32 = vadd.f32 %v16645_v60, %v7131_v49  ;;  %8542 = vmatprep.subr.bf16.mxu0 %v22504_v34  ;;  %8084 = vmatmul.mubr.bf16.gmra.mrb[224].mxu0 %v17401_v38  ;;  %v7187_v30 = vmax.f32 %v7167_v12, 0.0  ;;  %v17430_v49 = vld [vmem:[%s22446_s18 + $0x74] ss:$8 sps:$4 sm:$0xff]   ;;  %v17434_v38 = vld [vmem:[%s22446_s18 + $0x90] ss:$8 sps:$4 sm:$0xff]   ;;  %v17492_v60 = vld [vmem:[%s22479_s3 + $0xe0] sm:$0xff]  }
 0xf7e   : > { %v7166_v33 = vadd.f32 %v16648_v8, %v7121_v2  ;;  %13567 = vmatprep.mubr.msk.bf16.mxu0 %vm3065_vm5, %v17406_v19  ;;  %v7185_v55 = vmax.f32 %v7165_v57, 0.0  ;;  %v7151_v63 = vpop.permute.xlu1 %7150  ;;  %16101 = vmatprep.subr.bf16.mxu1 %v17482_v53  ;;  %v17439_v3 = vld [vmem:[%s22446_s18 + $0xa4] ss:$8 sps:$4 sm:$0xff]   ;;  %v17487_v13 = vld [vmem:[%s22479_s3 + $0xd0] sm:$0xff]   ;;  %v17488_v37 = vld [vmem:[%s22479_s3 + $0xd8] sm:$0xff]  }
 0xf7f   : > { %v7188_v7 = vmax.f32 %v7168_v32, 0.0  ;;  %16102 = vmatpush3.bf16.msra.mxu1 %v17482_v53  ;;  %v17437_v19 = vld [vmem:[%s22446_s18 + $0xa0] ss:$8 sps:$4 sm:$0xff]   ;;  %v17442_v12 = vld [vmem:[%s22446_s18 + $0xb4] ss:$8 sps:$4 sm:$0xff]  }
 0xf80   : > { %v7186_v56 = vmax.f32 %v7166_v33, 0.0  ;;  %v16099_v59 = vpop.f32.mrb[28].mxu1  ;;  %8543 = vmatpush1.bf16.msra.mxu0 %v7270_v62  ;;  %v17483_v62 = vld [vmem:[%s22479_s3 + $0xc8] sm:$0xff]   ;;  %v17497_v8 = vld [vmem:[%s22479_s3 + $0xf0] sm:$0xff]   ;;  %v17498_v32 = vld [vmem:[%s22479_s3 + $0xf8] sm:$0xff]  }
 0xf81   : > { %v16651_v4 = vadd.f32 %v20468_v22, %v16099_v59  ;;  %v6998_v61 = vpop.f32.mrb[29].mxu1  ;;  %8544 = vmatprep.subr.bf16.mxu0 %v22504_v34  ;;  %v7272_v11 = vpack.c.bf16 %v7188_v7, %v7187_v30  ;;  %16103 = vmatprep.subr.bf16.mxu1 %v17483_v62  ;;  %v17445_v57 = vld [vmem:[%s22446_s18 + $0xc4] ss:$8 sps:$4 sm:$0xff]   ;;  %v17448_v33 = vld [vmem:[%s22446_s18 + $0xd4] ss:$8 sps:$4 sm:$0xff]  }
 0xf82   : > { %v16654_v52 = vadd.f32 %v20456_v27, %v6998_v61  ;;  %v16100_v18 = vpop.f32.mrb[30].mxu1  ;;  %v7271_v43 = vpack.c.bf16 %v7186_v56, %v7185_v55  ;;  %v20683_v30 = vld [vmem:[%s22475_s2] sm:$0xff]   ;;  %v17446_v7 = vld [vmem:[%s22446_s18 + $0xd0] ss:$8 sps:$4 sm:$0xff]   ;;  %v17454_v59 = vld [vmem:[%s22446_s18 + $0xf4] ss:$8 sps:$4 sm:$0xff]  }
 0xf83   : > { %v7171_v40 = vadd.f32 %v16651_v4, %v7146_v5  ;;  %v16657_v22 = vadd.f32 %v20471_v29, %v16100_v18  ;;  %v7001_v26 = vpop.f32.mrb[31].mxu1  ;;  %16104 = vmatpush3.bf16.msra.mxu1 %v17483_v62  ;;  %v17451_v55 = vld [vmem:[%s22446_s18 + $0xe4] ss:$8 sps:$4 sm:$0xff]   ;;  %v17449_v56 = vld [vmem:[%s22446_s18 + $0xe0] ss:$8 sps:$4 sm:$0xff]  }
 0xf84   : > { %v7169_v44 = vadd.f32 %v16654_v52, %v7136_v16  ;;  %v16660_v15 = vadd.f32 %v20460_v10, %v7001_v26  ;;  %8545 = vmatpush1.bf16.msra.mxu0 %v7271_v43  ;;  %v17407_v10 = vld [vmem:[%s22446_s18] ss:$8 sps:$4 sm:$0xff]   ;;  %16105 = vmatprep.subr.bf16.mxu1 %v17487_v13  ;;  %v17440_v16 = vld [vmem:[%s22446_s18 + $0xb0] ss:$8 sps:$4 sm:$0xff]   ;;  %v17457_v61 = vld [vmem:[%s22446_s18 + $0x104] ss:$8 sps:$4 sm:$0xff]  }
 0xf85   : > { %v7172_v54 = vadd.f32 %v16657_v22, %v7151_v63  ;;  %8546 = vmatprep.subr.bf16.mxu0 %v22504_v34  ;;  %8092 = vmatmul.mubr.bf16.gmra.mrb[228].mxu0 %v17404_v17  ;;  %v7191_v6 = vmax.f32 %v7171_v40, 0.0  ;;  %v17452_v4 = vld [vmem:[%s22446_s18 + $0xf0] ss:$8 sps:$4 sm:$0xff]   ;;  %v17460_v17 = vld [vmem:[%s22446_s18 + $0x114] ss:$8 sps:$4 sm:$0xff]  }
 0xf86   : > { %v7170_v27 = vadd.f32 %v16660_v15, %v7141_v36  ;;  %13640 = vmatprep.mubr.msk.bf16.mxu0 %vm3065_vm5, %v17409_v31  ;;  %v7189_v42 = vmax.f32 %v7169_v44, 0.0  ;;  %v17443_v36 = vld [vmem:[%s22446_s18 + $0xc0] ss:$8 sps:$4 sm:$0xff]   ;;  %v17458_v5 = vld [vmem:[%s22446_s18 + $0x110] ss:$8 sps:$4 sm:$0xff]  }
 0xf87   : > { %v7192_v28 = vmax.f32 %v7172_v54, 0.0  ;;  %16106 = vmatpush3.bf16.msra.mxu1 %v17487_v13  ;;  %v17463_v52 = vld [vmem:[%s22446_s18 + $0x124] ss:$8 sps:$4 sm:$0xff]   ;;  %v17461_v18 = vld [vmem:[%s22446_s18 + $0x120] ss:$8 sps:$4 sm:$0xff]  }
 0xf88   : > { %v7190_v2 = vmax.f32 %v7170_v27, 0.0  ;;  %8547 = vmatpush1.bf16.msra.mxu0 %v7272_v11  ;;  %16107 = vmatprep.subr.bf16.mxu1 %v17488_v37  ;;  %v17455_v11 = vld [vmem:[%s22446_s18 + $0x100] ss:$8 sps:$4 sm:$0xff]   ;;  %v17466_v43 = vld [vmem:[%s22446_s18 + $0x134] ss:$8 sps:$4 sm:$0xff]  }
 0xf89   : > { %8548 = vmatprep.subr.bf16.mxu0 %v22504_v34  ;;  %v7274_v29 = vpack.c.bf16 %v7192_v28, %v7191_v6  ;;  %v17464_v31 = vld [vmem:[%s22446_s18 + $0x130] ss:$8 sps:$4 sm:$0xff]   ;;  %v17469_v40 = vld [vmem:[%s22446_s18 + $0x144] ss:$8 sps:$4 sm:$0xff]   ;;  %v17467_v22 = vld [vmem:[%s22446_s18 + $0x140] ss:$8 sps:$4 sm:$0xff]  }
 0xf8a   : > { %v7273_v39 = vpack.c.bf16 %v7190_v2, %v7189_v42  ;;  %v17472_v26 = vld [vmem:[%s22446_s18 + $0x154] ss:$8 sps:$4 sm:$0xff]   ;;  %v17470_v63 = vld [vmem:[%s22446_s18 + $0x150] ss:$8 sps:$4 sm:$0xff]   ;;  %v17475_v44 = vld [vmem:[%s22446_s18 + $0x164] ss:$8 sps:$4 sm:$0xff]  }
 0xf8b   : > { %16108 = vmatpush3.bf16.msra.mxu1 %v17488_v37  ;;  %v17473_v15 = vld [vmem:[%s22446_s18 + $0x160] ss:$8 sps:$4 sm:$0xff]   ;;  %v17478_v54 = vld [vmem:[%s22446_s18 + $0x174] ss:$8 sps:$4 sm:$0xff]   ;;  %v17476_v27 = vld [vmem:[%s22446_s18 + $0x170] ss:$8 sps:$4 sm:$0xff]  }
 0xf8c   : > { %8549 = vmatpush1.bf16.msra.mxu0 %v7273_v39  ;;  %16109 = vmatprep.subr.bf16.mxu1 %v17492_v60  ;;  %v17481_v6 = vld [vmem:[%s22446_s18 + $0x184] ss:$8 sps:$4 sm:$0xff]   ;;  %v17479_v28 = vld [vmem:[%s22446_s18 + $0x180] ss:$8 sps:$4 sm:$0xff]   ;;  %v17486_v42 = vld [vmem:[%s22446_s18 + $0x194] ss:$8 sps:$4 sm:$0xff]  }
 0xf8d   : > { %8550 = vmatprep.subr.bf16.mxu0 %v22504_v34  ;;  %v17484_v2 = vld [vmem:[%s22446_s18 + $0x190] ss:$8 sps:$4 sm:$0xff]   ;;  %v17489_v39 = vld [vmem:[%s22446_s18 + $0x1a0] ss:$8 sps:$4 sm:$0xff]  }
 0xf8e   : > { %v17502_v53 = vld [vmem:[%s22446_s18 + $0x1d0] ss:$8 sps:$4 sm:$0xff]  }
 0xf8f   : > { %16110 = vmatpush3.bf16.msra.mxu1 %v17492_v60  ;;  %v17779_v37 = vld [vmem:[%s22475_s2 + $0x10] sm:$0xff]  }
 0xf90   : > { %8551 = vmatpush1.bf16.msra.mxu0 %v7274_v29  ;;  %16111 = vmatprep.subr.bf16.mxu1 %v17493_v21  ;;  %v17491_v29 = vld [vmem:[%s22446_s18 + $0x1a4] ss:$8 sps:$4 sm:$0xff]  }
 0xf91   : > { %16365 = vmatprep.subr.bf16.mxu0 %v22516_v9 }
 0xf93   : > { %8565 = vmatmul.mubr.bf16.vlgmr.msra.gmra.mrb[88].mxu0 %v17407_v10  ;;  %16112 = vmatpush3.bf16.msra.mxu1 %v17493_v21  ;;  %v17496_v10 = vld [vmem:[%s22446_s18 + $0x1b4] ss:$8 sps:$4 sm:$0xff]   ;;  %v17505_v21 = vld [vmem:[%s22446_s18 + $0x1e0] ss:$8 sps:$4 sm:$0xff]  }
 0xf94   : > { %13641 = vmatprep.mubr.msk.bf16.mxu0 %vm3065_vm5, %v17412_v23  ;;  %16113 = vmatprep.subr.bf16.mxu1 %v17497_v8 }
 0xf97   : > { %16114 = vmatpush3.bf16.msra.mxu1 %v17497_v8 }
 0xf98   : > { %16115 = vmatprep.subr.bf16.mxu1 %v17498_v32 }
 0xf9b   : > { %8573 = vmatmul.mubr.bf16.gmra.mrb[92].mxu0 %v17410_v14  ;;  %16116 = vmatpush3.bf16.msra.mxu1 %v17498_v32 }
 0xf9c   : > { %13642 = vmatprep.mubr.msk.bf16.mxu0 %vm3065_vm5, %v17415_v47  ;;  %16189 = vmatprep.subr.bf16.mxu1 %v20683_v30  ;;  %v17494_v47 = vld [vmem:[%s22446_s18 + $0x1b0] ss:$8 sps:$4 sm:$0xff]  }
 0xfa3   : > { %8581 = vmatmul.mubr.bf16.gmra.mrb[96].mxu0 %v17413_v20 }
 0xfa4   : > { %13643 = vmatprep.mubr.msk.bf16.mxu0 %vm3065_vm5, %v17418_v48  ;;  %v17501_v48 = vld [vmem:[%s22446_s18 + $0x1c4] ss:$8 sps:$4 sm:$0xff]  }
 0xfab   : > { %8589 = vmatmul.mubr.bf16.gmra.mrb[100].mxu0 %v17416_v24 }
 0xfac   : > { %13644 = vmatprep.mubr.msk.bf16.mxu0 %vm3065_vm5, %v17421_v45 }
 0xfb3   : > { %8597 = vmatmul.mubr.bf16.gmra.mrb[104].mxu0 %v17419_v25 }
 0xfb4   : > { %13645 = vmatprep.mubr.msk.bf16.mxu0 %vm3065_vm5, %v17424_v51 }
 0xfbb   : > { %8605 = vmatmul.mubr.bf16.gmra.mrb[108].mxu0 %v17422_v46  ;;  %v17499_v46 = vld [vmem:[%s22446_s18 + $0x1c0] ss:$8 sps:$4 sm:$0xff]  }
 0xfbc   : > { %13646 = vmatprep.mubr.msk.bf16.mxu0 %vm3065_vm5, %v17427_v50 }
 0xfc3   : > { %8613 = vmatmul.mubr.bf16.gmra.mrb[112].mxu0 %v17425_v0  ;;  %v17504_v0 = vld [vmem:[%s22446_s18 + $0x1d4] ss:$8 sps:$4 sm:$0xff]  }
 0xfc4   : > { %13647 = vmatprep.mubr.msk.bf16.mxu0 %vm3065_vm5, %v17430_v49 }
 0xfcb   : > { %8621 = vmatmul.mubr.bf16.gmra.mrb[116].mxu0 %v17428_v58 }
 0xfcc   : > { %13648 = vmatprep.mubr.msk.bf16.mxu0 %vm3065_vm5, %v17433_v35  ;;  %v17778_v35 = vld [vmem:[%s22475_s2 + $0x8] sm:$0xff]  }
 0xfd3   : > { %8629 = vmatmul.mubr.bf16.gmra.mrb[120].mxu0 %v17431_v41 }
 0xfd4   : > { %13649 = vmatprep.mubr.msk.bf16.mxu0 %vm3065_vm5, %v17436_v1 }
 0xfdb   : > { %8637 = vmatmul.mubr.bf16.gmra.mrb[124].mxu0 %v17434_v38  ;;  %v17507_v38 = vld [vmem:[%s22446_s18 + $0x1e4] ss:$8 sps:$4 sm:$0xff]  }
 0xfdc   : > { %13650 = vmatprep.mubr.msk.bf16.mxu0 %vm3065_vm5, %v17439_v3 }
 0xfe3   : > { %8645 = vmatmul.mubr.bf16.gmra.mrb[128].mxu0 %v17437_v19  ;;  %v17780_v19 = vld [vmem:[%s22475_s2 + $0x18] sm:$0xff]  }
 0xfe4   : > { %13651 = vmatprep.mubr.msk.bf16.mxu0 %vm3065_vm5, %v17442_v12 }
 0xfeb   : > { %8653 = vmatmul.mubr.bf16.gmra.mrb[132].mxu0 %v17440_v16 }
 0xfec   : > { %13652 = vmatprep.mubr.msk.bf16.mxu0 %vm3065_vm5, %v17445_v57  ;;  %v17510_v57 = vld [vmem:[%s22446_s18 + $0x1f4] ss:$8 sps:$4 sm:$0xff]  }
 0xff3   : > { %8661 = vmatmul.mubr.bf16.gmra.mrb[136].mxu0 %v17443_v36  ;;  %v17781_v36 = vld [vmem:[%s22475_s2 + $0x20] sm:$0xff]  }
 0xff4   : > { %13653 = vmatprep.mubr.msk.bf16.mxu0 %vm3065_vm5, %v17448_v33  ;;  %v17782_v33 = vld [vmem:[%s22475_s2 + $0x28] sm:$0xff]  }
 0xffb   : > { %8669 = vmatmul.mubr.bf16.gmra.mrb[140].mxu0 %v17446_v7 }
 0xffc   : > { %13654 = vmatprep.mubr.msk.bf16.mxu0 %vm3065_vm5, %v17451_v55  ;;  %v17508_v55 = vld [vmem:[%s22446_s18 + $0x1f0] ss:$8 sps:$4 sm:$0xff]  }
0x1003   : > { %8677 = vmatmul.mubr.bf16.gmra.mrb[144].mxu0 %v17449_v56 }
0x1004   : > { %13655 = vmatprep.mubr.msk.bf16.mxu0 %vm3065_vm5, %v17454_v59  ;;  %v17513_v59 = vld [vmem:[%s22446_s18 + $0x204] ss:$8 sps:$4 sm:$0xff]  }
0x100b   : > { %8685 = vmatmul.mubr.bf16.gmra.mrb[148].mxu0 %v17452_v4 }
0x100c   : > { %13656 = vmatprep.mubr.msk.bf16.mxu0 %vm3065_vm5, %v17457_v61 }
0x1013   : > { %8693 = vmatmul.mubr.bf16.gmra.mrb[152].mxu0 %v17455_v11  ;;  %v17783_v11 = vld [vmem:[%s22475_s2 + $0x30] sm:$0xff]  }
0x1014   : > { %13657 = vmatprep.mubr.msk.bf16.mxu0 %vm3065_vm5, %v17460_v17  ;;  %v17784_v17 = vld [vmem:[%s22475_s2 + $0x38] sm:$0xff]  }
0x101b   : > { %8701 = vmatmul.mubr.bf16.gmra.mrb[156].mxu0 %v17458_v5 }
0x101c   : > { %13658 = vmatprep.mubr.msk.bf16.mxu0 %vm3065_vm5, %v17463_v52 }
0x1023   : > { %8709 = vmatmul.mubr.bf16.gmra.mrb[160].mxu0 %v17461_v18  ;;  %v17511_v18 = vld [vmem:[%s22446_s18 + $0x200] ss:$8 sps:$4 sm:$0xff]  }
0x1024   : > { %13659 = vmatprep.mubr.msk.bf16.mxu0 %vm3065_vm5, %v17466_v43 }
0x102b   : > { %8717 = vmatmul.mubr.bf16.gmra.mrb[164].mxu0 %v17464_v31  ;;  %v17516_v31 = vld [vmem:[%s22446_s18 + $0x214] ss:$8 sps:$4 sm:$0xff]  }
0x102c   : > { %13660 = vmatprep.mubr.msk.bf16.mxu0 %vm3065_vm5, %v17469_v40 }
0x1033   : > { %8725 = vmatmul.mubr.bf16.gmra.mrb[168].mxu0 %v17467_v22 }
0x1034   : > { %13661 = vmatprep.mubr.msk.bf16.mxu0 %vm3065_vm5, %v17472_v26  ;;  %v20851_v26 = vld [vmem:[%s22475_s2 + $0x40] sm:$0xff]  }
0x103b   : > { %8733 = vmatmul.mubr.bf16.gmra.mrb[172].mxu0 %v17470_v63 }
0x103c   : > { %13662 = vmatprep.mubr.msk.bf16.mxu0 %vm3065_vm5, %v17475_v44 }
0x1043   : > { %8741 = vmatmul.mubr.bf16.gmra.mrb[176].mxu0 %v17473_v15  ;;  %v17514_v15 = vld [vmem:[%s22446_s18 + $0x210] ss:$8 sps:$4 sm:$0xff]  }
0x1044   : > { %13663 = vmatprep.mubr.msk.bf16.mxu0 %vm3065_vm5, %v17478_v54 }
0x104b   : > { %8749 = vmatmul.mubr.bf16.gmra.mrb[180].mxu0 %v17476_v27  ;;  %v17519_v27 = vld [vmem:[%s22446_s18 + $0x224] ss:$8 sps:$4 sm:$0xff]  }
0x104c   : > { %13664 = vmatprep.mubr.msk.bf16.mxu0 %vm3065_vm5, %v17481_v6 }
0x1053   : > { %8757 = vmatmul.mubr.bf16.gmra.mrb[184].mxu0 %v17479_v28 }
0x1054   : > { %13665 = vmatprep.mubr.msk.bf16.mxu0 %vm3065_vm5, %v17486_v42 }
0x105b   : > { %8765 = vmatmul.mubr.bf16.gmra.mrb[188].mxu0 %v17484_v2 }
0x105c   : > { %13666 = vmatprep.mubr.msk.bf16.mxu0 %vm3065_vm5, %v17491_v29  ;;  %v17517_v29 = vld [vmem:[%s22446_s18 + $0x220] ss:$8 sps:$4 sm:$0xff]  }
0x1063   : > { %8773 = vmatmul.mubr.bf16.gmra.mrb[192].mxu0 %v17489_v39 }
0x1064   : > { %13667 = vmatprep.mubr.msk.bf16.mxu0 %vm3065_vm5, %v17496_v10  ;;  %v17522_v10 = vld [vmem:[%s22446_s18 + $0x234] ss:$8 sps:$4 sm:$0xff]  }
0x1066   : > { %v8566_v23 = vpop.f32.mrb[88].mxu0 }
0x1067   : > { %v8568_v14 = vpop.f32.mrb[89].mxu0 }
0x1068   : > { %v8569_v20 = vpop.f32.mrb[90].mxu0 }
0x1069   : > { %v8853_v24 = vpack.c.bf16 %v8569_v20, %v8566_v23  ;;  %v8571_v45 = vpop.f32.mrb[91].mxu0 }
0x106b   : > { %8781 = vmatmul.mubr.bf16.gmra.mrb[196].mxu0 %v17494_v47  ;;  %16117 = vmatprep.mubr.bf16.mxu1 %v8853_v24 }
0x106c   : > { %13668 = vmatprep.mubr.msk.bf16.mxu0 %vm3065_vm5, %v17501_v48  ;;  %v17520_v48 = vld [vmem:[%s22446_s18 + $0x230] ss:$8 sps:$4 sm:$0xff]  }
0x106e   : > { %v8574_v25 = vpop.f32.mrb[92].mxu0 }
0x106f   : > { %v8576_v51 = vpop.f32.mrb[93].mxu0 }
0x1070   : > { %v8577_v50 = vpop.f32.mrb[94].mxu0 }
0x1071   : > { %v8854_v49 = vpack.c.bf16 %v8577_v50, %v8574_v25  ;;  %v8579_v58 = vpop.f32.mrb[95].mxu0 }
0x1073   : > { %8789 = vmatmul.mubr.bf16.gmra.mrb[200].mxu0 %v17499_v46  ;;  %16118 = vmatmul.mubr.bf16.vlgmr.msra.gmra.mrb[72].mxu1 %v8854_v49 }
0x1074   : > { %13669 = vmatprep.mubr.msk.bf16.mxu0 %vm3065_vm5, %v17504_v0  ;;  %16190 = vmatpush3.bf16.msra.mxu1 %v20683_v30 }
0x1075   : > { %16191 = vmatprep.subr.bf16.mxu1 %v17778_v35 }
0x1076   : > { %v8582_v41 = vpop.f32.mrb[96].mxu0 }
0x1077   : > { %v8584_v1 = vpop.f32.mrb[97].mxu0 }
0x1078   : > { %v8585_v62 = vpop.f32.mrb[98].mxu0  ;;  %16192 = vmatpush3.bf16.msra.mxu1 %v17778_v35 }
0x1079   : > { %v8855_v3 = vpack.c.bf16 %v8585_v62, %v8582_v41  ;;  %v8587_v13 = vpop.f32.mrb[99].mxu0  ;;  %16193 = vmatprep.subr.bf16.mxu1 %v17779_v37 }
0x107b   : > { %8797 = vmatmul.mubr.bf16.gmra.mrb[204].mxu0 %v17502_v53  ;;  %16121 = vmatprep.mubr.bf16.mxu1 %v8855_v3 }
0x107c   : > { %13670 = vmatprep.mubr.msk.bf16.mxu0 %vm3065_vm5, %v17507_v38  ;;  %16194 = vmatpush3.bf16.msra.mxu1 %v17779_v37 }
0x107d   : > { %16195 = vmatprep.subr.bf16.mxu1 %v17780_v19 }
0x107e   : > { %v8590_v12 = vpop.f32.mrb[100].mxu0 }
0x107f   : > { %v8592_v60 = vpop.f32.mrb[101].mxu0 }
0x1080   : > { %v8593_v16 = vpop.f32.mrb[102].mxu0  ;;  %16196 = vmatpush3.bf16.msra.mxu1 %v17780_v19 }
0x1081   : > { %v8856_v8 = vpack.c.bf16 %v8593_v16, %v8590_v12  ;;  %v8595_v32 = vpop.f32.mrb[103].mxu0  ;;  %16197 = vmatprep.subr.bf16.mxu1 %v17781_v36 }
0x1083   : > { %8805 = vmatmul.mubr.bf16.gmra.mrb[208].mxu0 %v17505_v21  ;;  %16122 = vmatmul.mubr.bf16.gmra.mrb[76].mxu1 %v8856_v8 }
0x1084   : > { %13671 = vmatprep.mubr.msk.bf16.mxu0 %vm3065_vm5, %v17510_v57  ;;  %16198 = vmatpush3.bf16.msra.mxu1 %v17781_v36 }
0x1085   : > { %16199 = vmatprep.subr.bf16.mxu1 %v17782_v33 }
0x1086   : > { %v8598_v30 = vpop.f32.mrb[104].mxu0 }
0x1087   : > { %v8600_v7 = vpop.f32.mrb[105].mxu0 }
0x1088   : > { %v8601_v56 = vpop.f32.mrb[106].mxu0  ;;  %16200 = vmatpush3.bf16.msra.mxu1 %v17782_v33 }
0x1089   : > { %v8857_v4 = vpack.c.bf16 %v8601_v56, %v8598_v30  ;;  %v8603_v61 = vpop.f32.mrb[107].mxu0  ;;  %16201 = vmatprep.subr.bf16.mxu1 %v17783_v11 }
0x108b   : > { %8813 = vmatmul.mubr.bf16.gmra.mrb[212].mxu0 %v17508_v55  ;;  %16125 = vmatprep.mubr.bf16.mxu1 %v8857_v4 }
0x108c   : > { %13672 = vmatprep.mubr.msk.bf16.mxu0 %vm3065_vm5, %v17513_v59  ;;  %16202 = vmatpush3.bf16.msra.mxu1 %v17783_v11 }
0x108d   : > { %16203 = vmatprep.subr.bf16.mxu1 %v17784_v17 }
0x108e   : > { %v8606_v5 = vpop.f32.mrb[108].mxu0 }
0x108f   : > { %v8608_v52 = vpop.f32.mrb[109].mxu0 }
0x1090   : > { %v8609_v43 = vpop.f32.mrb[110].mxu0  ;;  %16204 = vmatpush3.bf16.msra.mxu1 %v17784_v17 }
0x1091   : > { %v8858_v40 = vpack.c.bf16 %v8609_v43, %v8606_v5  ;;  %v8611_v22 = vpop.f32.mrb[111].mxu0  ;;  %16277 = vmatprep.subr.bf16.mxu1 %v20851_v26 }
0x1093   : > { %8821 = vmatmul.mubr.bf16.gmra.mrb[216].mxu0 %v17511_v18  ;;  %16126 = vmatmul.mubr.bf16.gmra.mrb[80].mxu1 %v8858_v40 }
0x1094   : > { %13673 = vmatprep.mubr.msk.bf16.mxu0 %vm3065_vm5, %v17516_v31 }
0x1096   : > { %v8614_v63 = vpop.f32.mrb[112].mxu0 }
0x1097   : > { %v8616_v44 = vpop.f32.mrb[113].mxu0 }
0x1098   : > { %v8617_v54 = vpop.f32.mrb[114].mxu0 }
0x1099   : > { %v8859_v6 = vpack.c.bf16 %v8617_v54, %v8614_v63  ;;  %v8619_v28 = vpop.f32.mrb[115].mxu0 }
0x109b   : > { %8829 = vmatmul.mubr.bf16.gmra.mrb[220].mxu0 %v17514_v15  ;;  %16129 = vmatprep.mubr.bf16.mxu1 %v8859_v6 }
0x109c   : > { %13674 = vmatprep.mubr.msk.bf16.mxu0 %vm3065_vm5, %v17519_v27 }
0x109e   : > { %v8622_v42 = vpop.f32.mrb[116].mxu0 }
0x109f   : > { %v8624_v2 = vpop.f32.mrb[117].mxu0 }
0x10a0   : > { %v8625_v39 = vpop.f32.mrb[118].mxu0 }
0x10a1   : > { %v8860_v23 = vpack.c.bf16 %v8625_v39, %v8622_v42  ;;  %v8627_v14 = vpop.f32.mrb[119].mxu0 }
0x10a3   : > { %8837 = vmatmul.mubr.bf16.gmra.mrb[224].mxu0 %v17517_v29  ;;  %16130 = vmatmul.mubr.bf16.gmra.mrb[84].mxu1 %v8860_v23 }
0x10a4   : > { %13675 = vmatprep.mubr.msk.bf16.mxu0 %vm3065_vm5, %v17522_v10 }
0x10a6   : > { %v8630_v47 = vpop.f32.mrb[120].mxu0 }
0x10a7   : > { %v8632_v20 = vpop.f32.mrb[121].mxu0 }
0x10a8   : > { %v8633_v24 = vpop.f32.mrb[122].mxu0 }
0x10a9   : > { %v8861_v45 = vpack.c.bf16 %v8633_v24, %v8630_v47  ;;  %v8635_v25 = vpop.f32.mrb[123].mxu0 }
0x10ab   : > { %8845 = vmatmul.mubr.bf16.gmra.mrb[228].mxu0 %v17520_v48  ;;  %16133 = vmatprep.mubr.bf16.mxu1 %v8861_v45 }
0x10ac   : > { %16373 = vmatprep.mubr.msk.bf16.mxu0 %vm17818_vm0, %v22516_v9 }
0x10ae   : > { %v8638_v51 = vpop.f32.mrb[124].mxu0 }
0x10af   : > { %v8640_v46 = vpop.f32.mrb[125].mxu0 }
0x10b0   : > { %v8641_v50 = vpop.f32.mrb[126].mxu0 }
0x10b1   : > { %v8862_v0 = vpack.c.bf16 %v8641_v50, %v8638_v51  ;;  %v8643_v49 = vpop.f32.mrb[127].mxu0 }
0x10b3   : > { %16134 = vmatmul.mubr.bf16.gmra.mrb[88].mxu1 %v8862_v0 }
0x10b6   : > { %v8646_v58 = vpop.f32.mrb[128].mxu0 }
0x10b7   : > { %v8648_v35 = vpop.f32.mrb[129].mxu0 }
0x10b8   : > { %v8649_v41 = vpop.f32.mrb[130].mxu0 }
0x10b9   : > { %v8863_v1 = vpack.c.bf16 %v8649_v41, %v8646_v58  ;;  %v8651_v53 = vpop.f32.mrb[131].mxu0 }
0x10bb   : > { %16137 = vmatprep.mubr.bf16.mxu1 %v8863_v1 }
0x10be   : > { %v8654_v62 = vpop.f32.mrb[132].mxu0 }
0x10bf   : > { %v8656_v38 = vpop.f32.mrb[133].mxu0 }
0x10c0   : > { %v8657_v3 = vpop.f32.mrb[134].mxu0 }
0x10c1   : > { %v8864_v13 = vpack.c.bf16 %v8657_v3, %v8654_v62  ;;  %v8659_v37 = vpop.f32.mrb[135].mxu0 }
0x10c3   : > { %16138 = vmatmul.mubr.bf16.gmra.mrb[92].mxu1 %v8864_v13 }
0x10c6   : > { %v8662_v19 = vpop.f32.mrb[136].mxu0 }
0x10c7   : > { %v8664_v12 = vpop.f32.mrb[137].mxu0 }
0x10c8   : > { %v8665_v60 = vpop.f32.mrb[138].mxu0 }
0x10c9   : > { %v8865_v21 = vpack.c.bf16 %v8665_v60, %v8662_v19  ;;  %v8667_v16 = vpop.f32.mrb[139].mxu0 }
0x10cb   : > { %16141 = vmatprep.mubr.bf16.mxu1 %v8865_v21 }
0x10ce   : > { %v8670_v57 = vpop.f32.mrb[140].mxu0 }
0x10cf   : > { %v8672_v8 = vpop.f32.mrb[141].mxu0 }
0x10d0   : > { %v8673_v32 = vpop.f32.mrb[142].mxu0 }
0x10d1   : > { %v8866_v36 = vpack.c.bf16 %v8673_v32, %v8670_v57  ;;  %v8675_v33 = vpop.f32.mrb[143].mxu0 }
0x10d3   : > { %16142 = vmatmul.mubr.bf16.gmra.mrb[96].mxu1 %v8866_v36 }
0x10d6   : > { %v8678_v30 = vpop.f32.mrb[144].mxu0 }
0x10d7   : > { %v8680_v7 = vpop.f32.mrb[145].mxu0 }
0x10d8   : > { %v8681_v55 = vpop.f32.mrb[146].mxu0 }
0x10d9   : > { %v8867_v56 = vpack.c.bf16 %v8681_v55, %v8678_v30  ;;  %v8683_v59 = vpop.f32.mrb[147].mxu0 }
0x10db   : > { %16145 = vmatprep.mubr.bf16.mxu1 %v8867_v56 }
0x10de   : > { %v8686_v4 = vpop.f32.mrb[148].mxu0 }
0x10df   : > { %v8688_v61 = vpop.f32.mrb[149].mxu0 }
0x10e0   : > { %v8689_v11 = vpop.f32.mrb[150].mxu0 }
0x10e1   : > { %v8868_v17 = vpack.c.bf16 %v8689_v11, %v8686_v4  ;;  %v8691_v5 = vpop.f32.mrb[151].mxu0 }
0x10e3   : > { %16146 = vmatmul.mubr.bf16.gmra.mrb[100].mxu1 %v8868_v17 }
0x10e6   : > { %v8694_v52 = vpop.f32.mrb[152].mxu0 }
0x10e7   : > { %v8696_v18 = vpop.f32.mrb[153].mxu0 }
0x10e8   : > { %v8697_v43 = vpop.f32.mrb[154].mxu0 }
0x10e9   : > { %v8869_v31 = vpack.c.bf16 %v8697_v43, %v8694_v52  ;;  %v8699_v40 = vpop.f32.mrb[155].mxu0 }
0x10eb   : > { %16149 = vmatprep.mubr.bf16.mxu1 %v8869_v31 }
0x10ee   : > { %v8702_v22 = vpop.f32.mrb[156].mxu0 }
0x10ef   : > { %v8704_v63 = vpop.f32.mrb[157].mxu0 }
0x10f0   : > { %v8705_v44 = vpop.f32.mrb[158].mxu0 }
0x10f1   : > { %v8870_v15 = vpack.c.bf16 %v8705_v44, %v8702_v22  ;;  %v8707_v54 = vpop.f32.mrb[159].mxu0 }
0x10f3   : > { %16150 = vmatmul.mubr.bf16.gmra.mrb[104].mxu1 %v8870_v15 }
0x10f6   : > { %v8710_v27 = vpop.f32.mrb[160].mxu0 }
0x10f7   : > { %v8712_v6 = vpop.f32.mrb[161].mxu0 }
0x10f8   : > { %v8713_v28 = vpop.f32.mrb[162].mxu0 }
0x10f9   : > { %v8871_v42 = vpack.c.bf16 %v8713_v28, %v8710_v27  ;;  %v8715_v2 = vpop.f32.mrb[163].mxu0 }
0x10fb   : > { %16153 = vmatprep.mubr.bf16.mxu1 %v8871_v42 }
0x10fe   : > { %v8718_v29 = vpop.f32.mrb[164].mxu0 }
0x10ff   : > { %v8720_v39 = vpop.f32.mrb[165].mxu0 }
0x1100   : > { %v8721_v10 = vpop.f32.mrb[166].mxu0 }
0x1101   : > { %v8872_v23 = vpack.c.bf16 %v8721_v10, %v8718_v29  ;;  %v8723_v14 = vpop.f32.mrb[167].mxu0 }
0x1103   : > { %16154 = vmatmul.mubr.bf16.gmra.mrb[108].mxu1 %v8872_v23 }
0x1106   : > { %v8726_v47 = vpop.f32.mrb[168].mxu0 }
0x1107   : > { %v8728_v20 = vpop.f32.mrb[169].mxu0 }
0x1108   : > { %v8729_v48 = vpop.f32.mrb[170].mxu0 }
0x1109   : > { %v8873_v24 = vpack.c.bf16 %v8729_v48, %v8726_v47  ;;  %v8731_v45 = vpop.f32.mrb[171].mxu0 }
0x110b   : > { %16157 = vmatprep.mubr.bf16.mxu1 %v8873_v24 }
0x110e   : > { %v8734_v25 = vpop.f32.mrb[172].mxu0 }
0x110f   : > { %v8736_v51 = vpop.f32.mrb[173].mxu0 }
0x1110   : > { %v8737_v46 = vpop.f32.mrb[174].mxu0 }
0x1111   : > { %v8874_v50 = vpack.c.bf16 %v8737_v46, %v8734_v25  ;;  %v8739_v0 = vpop.f32.mrb[175].mxu0 }
0x1113   : > { %16158 = vmatmul.mubr.bf16.gmra.mrb[112].mxu1 %v8874_v50 }
0x1116   : > { %v8742_v49 = vpop.f32.mrb[176].mxu0 }
0x1117   : > { %v8744_v58 = vpop.f32.mrb[177].mxu0 }
0x1118   : > { %v8745_v35 = vpop.f32.mrb[178].mxu0 }
0x1119   : > { %v8875_v41 = vpack.c.bf16 %v8745_v35, %v8742_v49  ;;  %v8747_v1 = vpop.f32.mrb[179].mxu0 }
0x111b   : > { %16161 = vmatprep.mubr.bf16.mxu1 %v8875_v41 }
0x111e   : > { %v8750_v53 = vpop.f32.mrb[180].mxu0 }
0x111f   : > { %v8752_v62 = vpop.f32.mrb[181].mxu0 }
0x1120   : > { %v8753_v38 = vpop.f32.mrb[182].mxu0 }
0x1121   : > { %v8876_v3 = vpack.c.bf16 %v8753_v38, %v8750_v53  ;;  %v8755_v13 = vpop.f32.mrb[183].mxu0 }
0x1123   : > { %16162 = vmatmul.mubr.bf16.gmra.mrb[116].mxu1 %v8876_v3 }
0x1126   : > { %v8758_v37 = vpop.f32.mrb[184].mxu0 }
0x1127   : > { %v8760_v19 = vpop.f32.mrb[185].mxu0 }
0x1128   : > { %v8761_v12 = vpop.f32.mrb[186].mxu0 }
0x1129   : > { %v8877_v60 = vpack.c.bf16 %v8761_v12, %v8758_v37  ;;  %v8763_v21 = vpop.f32.mrb[187].mxu0 }
0x112b   : > { %16165 = vmatprep.mubr.bf16.mxu1 %v8877_v60 }
0x112e   : > { %v8766_v16 = vpop.f32.mrb[188].mxu0 }
0x112f   : > { %v8768_v57 = vpop.f32.mrb[189].mxu0 }
0x1130   : > { %v8769_v8 = vpop.f32.mrb[190].mxu0 }
0x1131   : > { %v8878_v32 = vpack.c.bf16 %v8769_v8, %v8766_v16  ;;  %v8771_v36 = vpop.f32.mrb[191].mxu0 }
0x1133   : > { %16166 = vmatmul.mubr.bf16.gmra.mrb[120].mxu1 %v8878_v32 }
0x1136   : > { %v8774_v33 = vpop.f32.mrb[192].mxu0 }
0x1137   : > { %v8776_v30 = vpop.f32.mrb[193].mxu0 }
0x1138   : > { %v8777_v7 = vpop.f32.mrb[194].mxu0 }
0x1139   : > { %v8879_v55 = vpack.c.bf16 %v8777_v7, %v8774_v33  ;;  %v8779_v56 = vpop.f32.mrb[195].mxu0 }
0x113b   : > { %16169 = vmatprep.mubr.bf16.mxu1 %v8879_v55 }
0x113e   : > { %v8782_v59 = vpop.f32.mrb[196].mxu0 }
0x113f   : > { %v8784_v4 = vpop.f32.mrb[197].mxu0 }
0x1140   : > { %v8785_v61 = vpop.f32.mrb[198].mxu0 }
0x1141   : > { %v8880_v11 = vpack.c.bf16 %v8785_v61, %v8782_v59  ;;  %v8787_v17 = vpop.f32.mrb[199].mxu0 }
0x1143   : > { %16170 = vmatmul.mubr.bf16.gmra.mrb[124].mxu1 %v8880_v11 }
0x1146   : > { %v8790_v5 = vpop.f32.mrb[200].mxu0  ;;  %v16119_v52 = vpop.f32.mrb[72].mxu1 }
0x1147   : > { %v8792_v18 = vpop.f32.mrb[201].mxu0  ;;  %v8988_v43 = vpop.f32.mrb[73].mxu1 }
0x1148   : > { %v8793_v31 = vpop.f32.mrb[202].mxu0  ;;  %v16120_v40 = vpop.f32.mrb[74].mxu1 }
0x1149   : > { %v8881_v22 = vpack.c.bf16 %v8793_v31, %v8790_v5  ;;  %v20874_v63 = vpack.c.bf16 %v16120_v40, %v16119_v52  ;;  %v8795_v44 = vpop.f32.mrb[203].mxu0  ;;  %v8991_v15 = vpop.f32.mrb[75].mxu1 }
0x114a   : > { %v20876_v54 = vpack.c.bf16 %v8991_v15, %v8988_v43 }
0x114b   : > { %16173 = vmatprep.mubr.bf16.mxu1 %v8881_v22 }
0x114e   : > { %v8798_v27 = vpop.f32.mrb[204].mxu0 }
0x114f   : > { %v8800_v6 = vpop.f32.mrb[205].mxu0 }
0x1150   : > { %v8801_v28 = vpop.f32.mrb[206].mxu0  ;;  %v17787_v6 = vld [vmem:[%s22475_s2 + $0x50] sm:$0xff]  }
0x1151   : > { %v8882_v42 = vpack.c.bf16 %v8801_v28, %v8798_v27  ;;  %v8803_v2 = vpop.f32.mrb[207].mxu0  ;;  %v17786_v27 = vld [vmem:[%s22475_s2 + $0x48] sm:$0xff]  }
0x1153   : > { %16174 = vmatmul.mubr.bf16.gmra.mrb[128].mxu1 %v8882_v42 }
0x1156   : > { %v8806_v29 = vpop.f32.mrb[208].mxu0  ;;  %v16123_v39 = vpop.f32.mrb[76].mxu1 }
0x1157   : > { %v8808_v10 = vpop.f32.mrb[209].mxu0  ;;  %v9004_v23 = vpop.f32.mrb[77].mxu1 }
0x1158   : > { %v8809_v14 = vpop.f32.mrb[210].mxu0  ;;  %v16124_v47 = vpop.f32.mrb[78].mxu1  ;;  %v17789_v10 = vld [vmem:[%s22475_s2 + $0x60] sm:$0xff]  }
0x1159   : > { %v8883_v20 = vpack.c.bf16 %v8809_v14, %v8806_v29  ;;  %v20878_v48 = vpack.c.bf16 %v16124_v47, %v16123_v39  ;;  %v8811_v24 = vpop.f32.mrb[211].mxu0  ;;  %v9007_v45 = vpop.f32.mrb[79].mxu1  ;;  %v17790_v14 = vld [vmem:[%s22475_s2 + $0x68] sm:$0xff]   ;;  %v17791_v47 = vld [vmem:[%s22475_s2 + $0x70] sm:$0xff]  }
0x115a   : > { %v20880_v25 = vpack.c.bf16 %v9007_v45, %v9004_v23 }
0x115b   : > { %16177 = vmatprep.mubr.bf16.mxu1 %v8883_v20  ;;  %v17792_v20 = vld [vmem:[%s22475_s2 + $0x78] sm:$0xff]  }
0x115e   : > { %v8814_v51 = vpop.f32.mrb[212].mxu0 }
0x115f   : > { %v8816_v46 = vpop.f32.mrb[213].mxu0 }
0x1160   : > { %v8817_v50 = vpop.f32.mrb[214].mxu0 }
0x1161   : > { %v8884_v0 = vpack.c.bf16 %v8817_v50, %v8814_v51  ;;  %v8819_v49 = vpop.f32.mrb[215].mxu0 }
0x1163   : > { %16178 = vmatmul.mubr.bf16.gmra.mrb[132].mxu1 %v8884_v0 }
0x1166   : > { %v8822_v58 = vpop.f32.mrb[216].mxu0  ;;  %v16127_v35 = vpop.f32.mrb[80].mxu1 }
0x1167   : > { %v8824_v41 = vpop.f32.mrb[217].mxu0  ;;  %v9020_v1 = vpop.f32.mrb[81].mxu1 }
0x1168   : > { %v8825_v53 = vpop.f32.mrb[218].mxu0  ;;  %v16128_v62 = vpop.f32.mrb[82].mxu1 }
0x1169   : > { %v8885_v38 = vpack.c.bf16 %v8825_v53, %v8822_v58  ;;  %v20882_v3 = vpack.c.bf16 %v16128_v62, %v16127_v35  ;;  %v8827_v13 = vpop.f32.mrb[219].mxu0  ;;  %v9023_v37 = vpop.f32.mrb[83].mxu1 }
0x116a   : > { %v20884_v19 = vpack.c.bf16 %v9023_v37, %v9020_v1 }
0x116b   : > { %16181 = vmatprep.mubr.bf16.mxu1 %v8885_v38 }
0x116e   : > { %v8830_v12 = vpop.f32.mrb[220].mxu0 }
0x116f   : > { %v8832_v60 = vpop.f32.mrb[221].mxu0 }
0x1170   : > { %v8833_v21 = vpop.f32.mrb[222].mxu0 }
0x1171   : > { %v8886_v16 = vpack.c.bf16 %v8833_v21, %v8830_v12  ;;  %v8835_v57 = vpop.f32.mrb[223].mxu0 }
0x1173   : > { %16182 = vmatmul.mubr.bf16.gmra.mrb[136].mxu1 %v8886_v16 }
0x1176   : > { %v8838_v8 = vpop.f32.mrb[224].mxu0  ;;  %v16131_v32 = vpop.f32.mrb[84].mxu1 }
0x1177   : > { %v8840_v36 = vpop.f32.mrb[225].mxu0  ;;  %v9036_v33 = vpop.f32.mrb[85].mxu1 }
0x1178   : > { %v8841_v30 = vpop.f32.mrb[226].mxu0  ;;  %v16132_v7 = vpop.f32.mrb[86].mxu1 }
0x1179   : > { %v8887_v55 = vpack.c.bf16 %v8841_v30, %v8838_v8  ;;  %v20886_v56 = vpack.c.bf16 %v16132_v7, %v16131_v32  ;;  %v8843_v59 = vpop.f32.mrb[227].mxu0  ;;  %v9039_v4 = vpop.f32.mrb[87].mxu1 }
0x117a   : > { %v20888_v61 = vpack.c.bf16 %v9039_v4, %v9036_v33 }
0x117b   : > { %16185 = vmatprep.mubr.bf16.mxu1 %v8887_v55 }
0x117e   : > { %v8846_v11 = vpop.f32.mrb[228].mxu0 }
0x117f   : > { %v8848_v17 = vpop.f32.mrb[229].mxu0 }
0x1180   : > { %v8849_v5 = vpop.f32.mrb[230].mxu0 }
0x1181   : > { %v8888_v52 = vpack.c.bf16 %v8849_v5, %v8846_v11  ;;  %v8851_v18 = vpop.f32.mrb[231].mxu0 }
0x1183   : > { %16186 = vmatmul.mubr.bf16.gmra.mrb[140].mxu1 %v8888_v52 }
0x1184   : > { %16205 = vmatprep.mubr.bf16.mxu1 %v20876_v54 }
0x1186   : > { %v16135_v43 = vpop.f32.mrb[88].mxu1 }
0x1187   : > { %v9052_v31 = vpop.f32.mrb[89].mxu1 }
0x1188   : > { %v16136_v40 = vpop.f32.mrb[90].mxu1 }
0x1189   : > { %v20891_v22 = vpack.c.bf16 %v16136_v40, %v16135_v43  ;;  %v9055_v44 = vpop.f32.mrb[91].mxu1 }
0x118a   : > { %v20893_v15 = vpack.c.bf16 %v9055_v44, %v9052_v31 }
0x118b   : > { %16206 = vmatmul.mubr.bf16.vlgmr.msra.gmra.mrb[144].mxu1 %v20874_v63 }
0x118c   : > { %16209 = vmatprep.mubr.bf16.mxu1 %v20880_v25  ;;  %16278 = vmatpush3.bf16.msra.mxu1 %v20851_v26  ;;  %v17788_v26 = vld [vmem:[%s22475_s2 + $0x58] sm:$0xff]  }
0x118d   : > { %16279 = vmatprep.subr.bf16.mxu1 %v17786_v27 }
0x1190   : > { %16280 = vmatpush3.bf16.msra.mxu1 %v17786_v27 }
0x1191   : > { %16281 = vmatprep.subr.bf16.mxu1 %v17787_v6 }
0x1193   : > { %16210 = vmatmul.mubr.bf16.gmra.mrb[148].mxu1 %v20878_v48 }
0x1194   : > { %16213 = vmatprep.mubr.bf16.mxu1 %v20884_v19  ;;  %16282 = vmatpush3.bf16.msra.mxu1 %v17787_v6 }
0x1195   : > { %16283 = vmatprep.subr.bf16.mxu1 %v17788_v26 }
0x1196   : > { %v16139_v28 = vpop.f32.mrb[92].mxu1 }
0x1197   : > { %v9068_v42 = vpop.f32.mrb[93].mxu1 }
0x1198   : > { %v16140_v2 = vpop.f32.mrb[94].mxu1  ;;  %16284 = vmatpush3.bf16.msra.mxu1 %v17788_v26 }
0x1199   : > { %v20909_v29 = vpack.c.bf16 %v16140_v2, %v16139_v28  ;;  %v9071_v39 = vpop.f32.mrb[95].mxu1  ;;  %16285 = vmatprep.subr.bf16.mxu1 %v17789_v10 }
0x119a   : > { %v20914_v23 = vpack.c.bf16 %v9071_v39, %v9068_v42 }
0x119b   : > { %16214 = vmatmul.mubr.bf16.gmra.mrb[152].mxu1 %v20882_v3 }
0x119c   : > { %16217 = vmatprep.mubr.bf16.mxu1 %v20888_v61  ;;  %16286 = vmatpush3.bf16.msra.mxu1 %v17789_v10 }
0x119d   : > { %16287 = vmatprep.subr.bf16.mxu1 %v17790_v14 }
0x11a0   : > { %16288 = vmatpush3.bf16.msra.mxu1 %v17790_v14 }
0x11a1   : > { %16289 = vmatprep.subr.bf16.mxu1 %v17791_v47 }
0x11a3   : > { %16218 = vmatmul.mubr.bf16.gmra.mrb[156].mxu1 %v20886_v56 }
0x11a4   : > { %16221 = vmatprep.mubr.bf16.mxu1 %v20893_v15  ;;  %16290 = vmatpush3.bf16.msra.mxu1 %v17791_v47 }
0x11a5   : > { %16291 = vmatprep.subr.bf16.mxu1 %v17792_v20 }
0x11a6   : > { %v16143_v24 = vpop.f32.mrb[96].mxu1 }
0x11a7   : > { %v9084_v45 = vpop.f32.mrb[97].mxu1 }
0x11a8   : > { %v16144_v51 = vpop.f32.mrb[98].mxu1  ;;  %16292 = vmatpush3.bf16.msra.mxu1 %v17792_v20 }
0x11a9   : > { %v20929_v46 = vpack.c.bf16 %v16144_v51, %v16143_v24  ;;  %v9087_v50 = vpop.f32.mrb[99].mxu1 }
0x11aa   : > { %v20931_v0 = vpack.c.bf16 %v9087_v50, %v9084_v45 }
0x11ab   : > { %16222 = vmatmul.mubr.bf16.gmra.mrb[160].mxu1 %v20891_v22 }
0x11ac   : > { %16225 = vmatprep.mubr.bf16.mxu1 %v20914_v23 }
0x11b3   : > { %16226 = vmatmul.mubr.bf16.gmra.mrb[164].mxu1 %v20909_v29 }
0x11b4   : > { %16229 = vmatprep.mubr.bf16.mxu1 %v20931_v0 }
0x11b6   : > { %v16147_v49 = vpop.f32.mrb[100].mxu1 }
0x11b7   : > { %v9100_v58 = vpop.f32.mrb[101].mxu1 }
0x11b8   : > { %v16148_v35 = vpop.f32.mrb[102].mxu1 }
0x11b9   : > { %v20937_v41 = vpack.c.bf16 %v16148_v35, %v16147_v49  ;;  %v9103_v1 = vpop.f32.mrb[103].mxu1 }
0x11ba   : > { %v20939_v53 = vpack.c.bf16 %v9103_v1, %v9100_v58 }
0x11bb   : > { %16230 = vmatmul.mubr.bf16.gmra.mrb[168].mxu1 %v20929_v46 }
0x11bc   : > { %16233 = vmatprep.mubr.bf16.mxu1 %v20939_v53 }
0x11c3   : > { %16234 = vmatmul.mubr.bf16.gmra.mrb[172].mxu1 %v20937_v41 }
0x11c6   : > { %v16151_v62 = vpop.f32.mrb[104].mxu1 }
0x11c7   : > { %v9116_v38 = vpop.f32.mrb[105].mxu1 }
0x11c8   : > { %v16152_v13 = vpop.f32.mrb[106].mxu1 }
0x11c9   : > { %v20944_v37 = vpack.c.bf16 %v16152_v13, %v16151_v62  ;;  %v9119_v12 = vpop.f32.mrb[107].mxu1 }
0x11ca   : > { %v20946_v60 = vpack.c.bf16 %v9119_v12, %v9116_v38 }
0x11cc   : > { %16237 = vmatprep.mubr.bf16.mxu1 %v20946_v60 }
0x11cd   : > { %16238 = vmatmul.mubr.bf16.gmra.mrb[176].mxu1 %v20944_v37 }
0x11d6   : > { %v16155_v21 = vpop.f32.mrb[108].mxu1 }
0x11d7   : > { %v9132_v16 = vpop.f32.mrb[109].mxu1 }
0x11d8   : > { %v16156_v57 = vpop.f32.mrb[110].mxu1 }
0x11d9   : > { %v20950_v8 = vpack.c.bf16 %v16156_v57, %v16155_v21  ;;  %v9135_v32 = vpop.f32.mrb[111].mxu1 }
0x11da   : > { %v20952_v36 = vpack.c.bf16 %v9135_v32, %v9132_v16 }
0x11dc   : > { %16241 = vmatprep.mubr.bf16.mxu1 %v20952_v36 }
0x11dd   : > { %16242 = vmatmul.mubr.bf16.gmra.mrb[180].mxu1 %v20950_v8 }
0x11e6   : > { %v16159_v33 = vpop.f32.mrb[112].mxu1 }
0x11e7   : > { %v9148_v30 = vpop.f32.mrb[113].mxu1 }
0x11e8   : > { %v16160_v7 = vpop.f32.mrb[114].mxu1 }
0x11e9   : > { %v20956_v55 = vpack.c.bf16 %v16160_v7, %v16159_v33  ;;  %v9151_v59 = vpop.f32.mrb[115].mxu1 }
0x11ea   : > { %v20958_v4 = vpack.c.bf16 %v9151_v59, %v9148_v30 }
0x11ec   : > { %16245 = vmatprep.mubr.bf16.mxu1 %v20958_v4 }
0x11ed   : > { %16246 = vmatmul.mubr.bf16.gmra.mrb[184].mxu1 %v20956_v55 }
0x11f6   : > { %v16163_v11 = vpop.f32.mrb[116].mxu1 }
0x11f7   : > { %v9164_v17 = vpop.f32.mrb[117].mxu1 }
0x11f8   : > { %v16164_v5 = vpop.f32.mrb[118].mxu1 }
0x11f9   : > { %v20962_v52 = vpack.c.bf16 %v16164_v5, %v16163_v11  ;;  %v9167_v18 = vpop.f32.mrb[119].mxu1 }
0x11fa   : > { %v20964_v43 = vpack.c.bf16 %v9167_v18, %v9164_v17 }
0x11fc   : > { %16249 = vmatprep.mubr.bf16.mxu1 %v20964_v43 }
0x11fd   : > { %16250 = vmatmul.mubr.bf16.gmra.mrb[188].mxu1 %v20962_v52 }
0x1206   : > { %v16167_v31 = vpop.f32.mrb[120].mxu1 }
0x1207   : > { %v9180_v40 = vpop.f32.mrb[121].mxu1 }
0x1208   : > { %v16168_v44 = vpop.f32.mrb[122].mxu1 }
0x1209   : > { %v20968_v27 = vpack.c.bf16 %v16168_v44, %v16167_v31  ;;  %v9183_v6 = vpop.f32.mrb[123].mxu1 }
0x120a   : > { %v20970_v26 = vpack.c.bf16 %v9183_v6, %v9180_v40 }
0x120c   : > { %16253 = vmatprep.mubr.bf16.mxu1 %v20970_v26 }
0x120d   : > { %16254 = vmatmul.mubr.bf16.gmra.mrb[192].mxu1 %v20968_v27 }
0x1216   : > { %v16171_v28 = vpop.f32.mrb[124].mxu1 }
0x1217   : > { %v9196_v42 = vpop.f32.mrb[125].mxu1 }
0x1218   : > { %v16172_v2 = vpop.f32.mrb[126].mxu1 }
0x1219   : > { %v20974_v39 = vpack.c.bf16 %v16172_v2, %v16171_v28  ;;  %v9199_v10 = vpop.f32.mrb[127].mxu1 }
0x121a   : > { %v20976_v14 = vpack.c.bf16 %v9199_v10, %v9196_v42 }
0x121c   : > { %16257 = vmatprep.mubr.bf16.mxu1 %v20976_v14 }
0x121d   : > { %16258 = vmatmul.mubr.bf16.gmra.mrb[196].mxu1 %v20974_v39 }
0x1226   : > { %v16175_v47 = vpop.f32.mrb[128].mxu1 }
0x1227   : > { %v9212_v20 = vpop.f32.mrb[129].mxu1 }
0x1228   : > { %v16176_v24 = vpop.f32.mrb[130].mxu1 }
0x1229   : > { %v20980_v45 = vpack.c.bf16 %v16176_v24, %v16175_v47  ;;  %v9215_v51 = vpop.f32.mrb[131].mxu1 }
0x122a   : > { %v20982_v50 = vpack.c.bf16 %v9215_v51, %v9212_v20 }
0x122c   : > { %16261 = vmatprep.mubr.bf16.mxu1 %v20982_v50 }
0x122d   : > { %16262 = vmatmul.mubr.bf16.gmra.mrb[200].mxu1 %v20980_v45 }
0x1236   : > { %v16179_v49 = vpop.f32.mrb[132].mxu1 }
0x1237   : > { %v9228_v58 = vpop.f32.mrb[133].mxu1 }
0x1238   : > { %v16180_v35 = vpop.f32.mrb[134].mxu1 }
0x1239   : > { %v20986_v1 = vpack.c.bf16 %v16180_v35, %v16179_v49  ;;  %v9231_v62 = vpop.f32.mrb[135].mxu1 }
0x123a   : > { %v20988_v38 = vpack.c.bf16 %v9231_v62, %v9228_v58 }
0x123c   : > { %16265 = vmatprep.mubr.bf16.mxu1 %v20988_v38 }
0x123d   : > { %16266 = vmatmul.mubr.bf16.gmra.mrb[204].mxu1 %v20986_v1 }
0x1246   : > { %v16183_v13 = vpop.f32.mrb[136].mxu1 }
0x1247   : > { %v9244_v12 = vpop.f32.mrb[137].mxu1 }
0x1248   : > { %v16184_v21 = vpop.f32.mrb[138].mxu1 }
0x1249   : > { %v20992_v16 = vpack.c.bf16 %v16184_v21, %v16183_v13  ;;  %v9247_v57 = vpop.f32.mrb[139].mxu1 }
0x124a   : > { %v20994_v32 = vpack.c.bf16 %v9247_v57, %v9244_v12 }
0x124c   : > { %16269 = vmatprep.mubr.bf16.mxu1 %v20994_v32 }
0x124d   : > { %16270 = vmatmul.mubr.bf16.gmra.mrb[208].mxu1 %v20992_v16 }
0x1256   : > { %v16187_v33 = vpop.f32.mrb[140].mxu1 }
0x1257   : > { %v9260_v30 = vpop.f32.mrb[141].mxu1 }
0x1258   : > { %v16188_v7 = vpop.f32.mrb[142].mxu1 }
0x1259   : > { %v20998_v59 = vpack.c.bf16 %v16188_v7, %v16187_v33  ;;  %v9263_v11 = vpop.f32.mrb[143].mxu1 }
0x125a   : > { %v21000_v17 = vpack.c.bf16 %v9263_v11, %v9260_v30 }
0x125c   : > { %16273 = vmatprep.mubr.bf16.mxu1 %v21000_v17 }
0x125d   : > { %16274 = vmatmul.mubr.bf16.gmra.mrb[212].mxu1 %v20998_v59 }
0x125e   : > { %v16207_v5 = vpop.f32.mrb[144].mxu1  ;;  %16293 = vmatprep.mubr.bf16.mxu1 %v20876_v54 }
0x125f   : > { %v9345_v18 = vpop.f32.mrb[145].mxu1 }
0x1260   : > { %v16208_v31 = vpop.f32.mrb[146].mxu1 }
0x1261   : > { %v9633_v40 = vpack.c.bf16 %v16208_v31, %v16207_v5  ;;  %v9348_v44 = vpop.f32.mrb[147].mxu1 }
0x1262   : > { %v9632_v6 = vpack.c.bf16 %v9348_v44, %v9345_v18 }
0x1265   : > { %16294 = vmatmul.mubr.bf16.vlgmr.msra.gmra.mrb[216].mxu1 %v20874_v63 }
0x1266   : > { %v16211_v28 = vpop.f32.mrb[148].mxu1  ;;  %16297 = vmatprep.mubr.bf16.mxu1 %v20880_v25 }
0x1267   : > { %v9361_v42 = vpop.f32.mrb[149].mxu1 }
0x1268   : > { %v16212_v2 = vpop.f32.mrb[150].mxu1 }
0x1269   : > { %v9635_v10 = vpack.c.bf16 %v16212_v2, %v16211_v28  ;;  %v9364_v47 = vpop.f32.mrb[151].mxu1 }
0x126a   : > { %v9634_v20 = vpack.c.bf16 %v9364_v47, %v9361_v42 }
0x126d   : > { %16298 = vmatmul.mubr.bf16.gmra.mrb[220].mxu1 %v20878_v48 }
0x126e   : > { %v16215_v24 = vpop.f32.mrb[152].mxu1  ;;  %16301 = vmatprep.mubr.bf16.mxu1 %v20884_v19 }
0x126f   : > { %v9377_v51 = vpop.f32.mrb[153].mxu1 }
0x1270   : > { %v16216_v49 = vpop.f32.mrb[154].mxu1 }
0x1271   : > { %v9637_v58 = vpack.c.bf16 %v16216_v49, %v16215_v24  ;;  %v9380_v35 = vpop.f32.mrb[155].mxu1 }
0x1272   : > { %v9636_v62 = vpack.c.bf16 %v9380_v35, %v9377_v51 }
0x1275   : > { %16302 = vmatmul.mubr.bf16.gmra.mrb[224].mxu1 %v20882_v3 }
0x1276   : > { %v16219_v13 = vpop.f32.mrb[156].mxu1  ;;  %16305 = vmatprep.mubr.bf16.mxu1 %v20888_v61 }
0x1277   : > { %v9393_v12 = vpop.f32.mrb[157].mxu1 }
0x1278   : > { %v16220_v21 = vpop.f32.mrb[158].mxu1 }
0x1279   : > { %v9639_v57 = vpack.c.bf16 %v16220_v21, %v16219_v13  ;;  %v9396_v33 = vpop.f32.mrb[159].mxu1 }
0x127a   : > { %v9638_v30 = vpack.c.bf16 %v9396_v33, %v9393_v12 }
0x127d   : > { %16306 = vmatmul.mubr.bf16.gmra.mrb[228].mxu1 %v20886_v56 }
0x127e   : > { %v16223_v7 = vpop.f32.mrb[160].mxu1  ;;  %16309 = vmatprep.mubr.bf16.mxu1 %v20893_v15 }
0x127f   : > { %v9409_v11 = vpop.f32.mrb[161].mxu1 }
0x1280   : > { %v16224_v5 = vpop.f32.mrb[162].mxu1 }
0x1281   : > { %v9641_v18 = vpack.c.bf16 %v16224_v5, %v16223_v7  ;;  %v9412_v31 = vpop.f32.mrb[163].mxu1 }
0x1282   : > { %v9640_v44 = vpack.c.bf16 %v9412_v31, %v9409_v11 }
0x1284   : > { %14756 = vmatprep.subr.bf16.mxu1 %v9640_v44 }
0x1285   : > { %16310 = vmatmul.mubr.bf16.gmra.mrb[232].mxu1 %v20891_v22 }
0x1286   : > { %14757 = vmatpush3.bf16.msra.mxu1 %v9632_v6  ;;  %v16227_v28 = vpop.f32.mrb[164].mxu1  ;;  %16313 = vmatprep.mubr.bf16.mxu1 %v20914_v23 }
0x1287   : > { %14758 = vmatprep.subr.bf16.mxu1 %v9641_v18  ;;  %v9425_v42 = vpop.f32.mrb[165].mxu1 }
0x1288   : > { %v16228_v2 = vpop.f32.mrb[166].mxu1 }
0x1289   : > { %v9643_v47 = vpack.c.bf16 %v16228_v2, %v16227_v28  ;;  %v9428_v24 = vpop.f32.mrb[167].mxu1 }
0x128a   : > { %v9642_v51 = vpack.c.bf16 %v9428_v24, %v9425_v42  ;;  %14759 = vmatpush3.bf16.msra.mxu1 %v9633_v40 }
0x128c   : > { %14760 = vmatprep.subr.bf16.mxu1 %v9642_v51 }
0x128d   : > { %16314 = vmatmul.mubr.bf16.gmra.mrb[236].mxu1 %v20909_v29 }
0x128e   : > { %14761 = vmatpush3.bf16.msra.mxu1 %v9634_v20  ;;  %v16231_v49 = vpop.f32.mrb[168].mxu1  ;;  %16317 = vmatprep.mubr.bf16.mxu1 %v20931_v0 }
0x128f   : > { %14762 = vmatprep.subr.bf16.mxu1 %v9643_v47  ;;  %v9441_v35 = vpop.f32.mrb[169].mxu1 }
0x1290   : > { %v16232_v6 = vpop.f32.mrb[170].mxu1 }
0x1291   : > { %v9645_v13 = vpack.c.bf16 %v16232_v6, %v16231_v49  ;;  %v9444_v12 = vpop.f32.mrb[171].mxu1 }
0x1292   : > { %v9644_v21 = vpack.c.bf16 %v9444_v12, %v9441_v35  ;;  %14763 = vmatpush3.bf16.msra.mxu1 %v9635_v10 }
0x1294   : > { %14764 = vmatprep.subr.bf16.mxu1 %v9644_v21 }
0x1295   : > { %16318 = vmatmul.mubr.bf16.gmra.mrb[240].mxu1 %v20929_v46 }
0x1296   : > { %14765 = vmatpush3.bf16.msra.mxu1 %v9636_v62  ;;  %v16235_v33 = vpop.f32.mrb[172].mxu1  ;;  %16321 = vmatprep.mubr.bf16.mxu1 %v20939_v53 }
0x1297   : > { %14766 = vmatprep.subr.bf16.mxu1 %v9645_v13  ;;  %v9457_v40 = vpop.f32.mrb[173].mxu1 }
0x1298   : > { %v16236_v20 = vpop.f32.mrb[174].mxu1 }
0x1299   : > { %v9647_v7 = vpack.c.bf16 %v16236_v20, %v16235_v33  ;;  %v9460_v11 = vpop.f32.mrb[175].mxu1 }
0x129a   : > { %v9646_v5 = vpack.c.bf16 %v9460_v11, %v9457_v40  ;;  %14767 = vmatpush3.bf16.msra.mxu1 %v9637_v58 }
0x129c   : > { %14768 = vmatprep.subr.bf16.mxu1 %v9646_v5 }
0x129d   : > { %16322 = vmatmul.mubr.bf16.gmra.mrb[244].mxu1 %v20937_v41 }
0x129e   : > { %14769 = vmatpush3.bf16.msra.mxu1 %v9638_v30  ;;  %16325 = vmatprep.mubr.bf16.mxu1 %v20946_v60 }
0x129f   : > { %14770 = vmatprep.subr.bf16.mxu1 %v9647_v7 }
0x12a0   : > { %v21021_v10 = vpop.f32.mrb[176].mxu1 }
0x12a1   : > { %v9473_v62 = vpop.f32.mrb[177].mxu1 }
0x12a2   : > { %14771 = vmatpush3.bf16.msra.mxu1 %v9639_v57  ;;  %v21023_v18 = vpop.f32.mrb[178].mxu1 }
0x12a3   : > { %v9649_v31 = vpack.c.bf16 %v21023_v18, %v21021_v10  ;;  %v9476_v44 = vpop.f32.mrb[179].mxu1 }
0x12a4   : > { %v9648_v28 = vpack.c.bf16 %v9476_v44, %v9473_v62 }
0x12a5   : > { %16326 = vmatmul.mubr.bf16.gmra.mrb[248].mxu1 %v20944_v37 }
0x12a6   : > { %16329 = vmatprep.mubr.bf16.mxu1 %v20952_v36 }
0x12ad   : > { %16330 = vmatmul.mubr.bf16.gmra.mrb[252].mxu1 %v20950_v8 }
0x12ae   : > { %16333 = vmatprep.mubr.bf16.mxu1 %v20958_v4 }
0x12b0   : > { %v21031_v58 = vpop.f32.mrb[180].mxu1 }
0x12b1   : > { %v9489_v30 = vpop.f32.mrb[181].mxu1 }
0x12b2   : > { %v21033_v42 = vpop.f32.mrb[182].mxu1 }
0x12b3   : > { %v9651_v57 = vpack.c.bf16 %v21033_v42, %v21031_v58  ;;  %v9492_v2 = vpop.f32.mrb[183].mxu1  ;;  %v17525_v58 = vld [vmem:[%s22439_s11 + $0x4] ss:$20 sps:$4 sm:$0xff]  }
0x12b4   : > { %v9650_v47 = vpack.c.bf16 %v9492_v2, %v9489_v30  ;;  %v17523_v2 = vld [vmem:[%s22439_s11] ss:$20 sps:$4 sm:$0xff]  }
0x12b5   : > { %16334 = vmatmul.mubr.bf16.gmra.mrb[0].mxu1 %v20956_v55 }
0x12b6   : > { %16337 = vmatprep.mubr.bf16.mxu1 %v20964_v43 }
0x12bd   : > { %16338 = vmatmul.mubr.bf16.gmra.mrb[4].mxu1 %v20962_v52 }
0x12be   : > { %16341 = vmatprep.mubr.bf16.mxu1 %v20970_v26 }
0x12c0   : > { %v21041_v24 = vpop.f32.mrb[184].mxu1 }
0x12c1   : > { %v21043_v51 = vpop.f32.mrb[185].mxu1 }
0x12c2   : > { %v21045_v49 = vpop.f32.mrb[186].mxu1 }
0x12c3   : > { %v9653_v35 = vpack.c.bf16 %v21045_v49, %v21041_v24  ;;  %v9508_v6 = vpop.f32.mrb[187].mxu1  ;;  %v17538_v24 = vld [vmem:[%s22439_s11 + $0xc8] ss:$20 sps:$4 sm:$0xff]  }
0x12c4   : > { %v9652_v13 = vpack.c.bf16 %v9508_v6, %v21043_v51  ;;  %v17528_v6 = vld [vmem:[%s22439_s11 + $0x2c] ss:$20 sps:$4 sm:$0xff]   ;;  %v17543_v49 = vld [vmem:[%s22439_s11 + $0xf4] ss:$20 sps:$4 sm:$0xff]  }
0x12c5   : > { %16342 = vmatmul.mubr.bf16.gmra.mrb[8].mxu1 %v20968_v27 }
0x12c6   : > { %16345 = vmatprep.mubr.bf16.mxu1 %v20976_v14 }
0x12cd   : > { %16346 = vmatmul.mubr.bf16.gmra.mrb[32].mxu1 %v20974_v39 }
0x12ce   : > { %16349 = vmatprep.mubr.bf16.mxu1 %v20982_v50 }
0x12d0   : > { %v21054_v12 = vpop.f32.mrb[188].mxu1 }
0x12d1   : > { %v21056_v21 = vpop.f32.mrb[189].mxu1 }
0x12d2   : > { %v21058_v33 = vpop.f32.mrb[190].mxu1 }
0x12d3   : > { %v9655_v40 = vpack.c.bf16 %v21058_v33, %v21054_v12  ;;  %v21062_v20 = vpop.f32.mrb[191].mxu1  ;;  %v17549_v12 = vld [vmem:[%s22439_s11 + $0x144] ss:$20 sps:$4 sm:$0xff]  }
0x12d4   : > { %v9654_v7 = vpack.c.bf16 %v21062_v20, %v21056_v21  ;;  %v17541_v20 = vld [vmem:[%s22439_s11 + $0xf0] ss:$20 sps:$4 sm:$0xff]  }
0x12d5   : > { %16350 = vmatmul.mubr.bf16.gmra.mrb[36].mxu1 %v20980_v45 }
0x12d6   : > { %16353 = vmatprep.mubr.bf16.mxu1 %v20988_v38 }
0x12dd   : > { %16354 = vmatmul.mubr.bf16.gmra.mrb[40].mxu1 %v20986_v1 }
0x12de   : > { %16357 = vmatprep.mubr.bf16.mxu1 %v20994_v32 }
0x12e0   : > { %v16255_v11 = vpop.f32.mrb[192].mxu1 }
0x12e1   : > { %v9537_v5 = vpop.f32.mrb[193].mxu1 }
0x12e2   : > { %v16256_v10 = vpop.f32.mrb[194].mxu1 }
0x12e3   : > { %v9657_v62 = vpack.c.bf16 %v16256_v10, %v16255_v11  ;;  %v9540_v18 = vpop.f32.mrb[195].mxu1 }
0x12e4   : > { %v9656_v44 = vpack.c.bf16 %v9540_v18, %v9537_v5  ;;  %v17526_v18 = vld [vmem:[%s22439_s11 + $0x28] ss:$20 sps:$4 sm:$0xff]  }
0x12e5   : > { %16358 = vmatmul.mubr.bf16.gmra.mrb[44].mxu1 %v20992_v16 }
0x12e6   : > { %16361 = vmatprep.mubr.bf16.mxu1 %v21000_v17  ;;  %14826 = vmatprep.subr.bf16.mxu1 %v9656_v44  ;;  %v17531_v44 = vld [vmem:[%s22439_s11 + $0x54] ss:$20 sps:$4 sm:$0xff]  }
0x12ed   : > { %16362 = vmatmul.mubr.bf16.gmra.mrb[48].mxu1 %v20998_v59 }
0x12ee   : > { %10418 = vmatprep.mubr.bf16.mxu1 %v17525_v58 }
0x12f0   : > { %v16259_v30 = vpop.f32.mrb[196].mxu1 }
0x12f1   : > { %v9553_v42 = vpop.f32.mrb[197].mxu1 }
0x12f2   : > { %v16260_v51 = vpop.f32.mrb[198].mxu1 }
0x12f3   : > { %v9659_v11 = vpack.c.bf16 %v16260_v51, %v16259_v30  ;;  %v9556_v5 = vpop.f32.mrb[199].mxu1 }
0x12f4   : > { %v9658_v10 = vpack.c.bf16 %v9556_v5, %v9553_v42 }
0x12f5   : > { %10419 = vmatmul.mubr.bf16.vlgmr.msra.gmra.mrb[52].mxu1 %v17523_v2 }
0x12f6   : > { %14827 = vmatpush3.bf16.msra.mxu1 %v9648_v28  ;;  %10426 = vmatprep.mubr.bf16.mxu1 %v17528_v6  ;;  %v17529_v28 = vld [vmem:[%s22439_s11 + $0x50] ss:$20 sps:$4 sm:$0xff]  }
0x12f7   : > { %14828 = vmatprep.subr.bf16.mxu1 %v9657_v62 }
0x12fa   : > { %14829 = vmatpush3.bf16.msra.mxu1 %v9649_v31  ;;  %v17534_v31 = vld [vmem:[%s22439_s11 + $0x7c] ss:$20 sps:$4 sm:$0xff]  }
0x12fb   : > { %14830 = vmatprep.subr.bf16.mxu1 %v9658_v10  ;;  %v17540_v10 = vld [vmem:[%s22439_s11 + $0xcc] ss:$20 sps:$4 sm:$0xff]  }
0x12fd   : > { %10427 = vmatmul.mubr.bf16.gmra.mrb[56].mxu1 %v17526_v18 }
0x12fe   : > { %14831 = vmatpush3.bf16.msra.mxu1 %v9650_v47  ;;  %10434 = vmatprep.mubr.bf16.mxu1 %v17531_v44  ;;  %v17532_v47 = vld [vmem:[%s22439_s11 + $0x78] ss:$20 sps:$4 sm:$0xff]  }
0x12ff   : > { %14832 = vmatprep.subr.bf16.mxu1 %v9659_v11 }
0x1300   : > { %v16263_v58 = vpop.f32.mrb[200].mxu1 }
0x1301   : > { %v9569_v30 = vpop.f32.mrb[201].mxu1 }
0x1302   : > { %14833 = vmatpush3.bf16.msra.mxu1 %v9651_v57  ;;  %v16264_v62 = vpop.f32.mrb[202].mxu1  ;;  %v17537_v57 = vld [vmem:[%s22439_s11 + $0xa4] ss:$20 sps:$4 sm:$0xff]  }
0x1303   : > { %v9661_v42 = vpack.c.bf16 %v16264_v62, %v16263_v58  ;;  %v9572_v2 = vpop.f32.mrb[203].mxu1 }
0x1304   : > { %v9660_v51 = vpack.c.bf16 %v9572_v2, %v9569_v30  ;;  %v17546_v30 = vld [vmem:[%s22439_s11 + $0x11c] ss:$20 sps:$4 sm:$0xff]  }
0x1305   : > { %10435 = vmatmul.mubr.bf16.gmra.mrb[60].mxu1 %v17529_v28 }
0x1306   : > { %14834 = vmatprep.subr.bf16.mxu1 %v9660_v51  ;;  %10442 = vmatprep.mubr.bf16.mxu1 %v17534_v31  ;;  %v17552_v51 = vld [vmem:[%s22439_s11 + $0xc] ss:$20 sps:$4 sm:$0xff]  }
0x1307   : > { %14835 = vmatpush3.bf16.msra.mxu1 %v9652_v13  ;;  %v17535_v13 = vld [vmem:[%s22439_s11 + $0xa0] ss:$20 sps:$4 sm:$0xff]  }
0x1308   : > { %14836 = vmatprep.subr.bf16.mxu1 %v9661_v42  ;;  %v17547_v42 = vld [vmem:[%s22439_s11 + $0x140] ss:$20 sps:$4 sm:$0xff]  }
0x130b   : > { %14837 = vmatpush3.bf16.msra.mxu1 %v9653_v35 }
0x130d   : > { %10443 = vmatmul.mubr.bf16.gmra.mrb[64].mxu1 %v17532_v47 }
0x130e   : > { %10450 = vmatprep.mubr.bf16.mxu1 %v17537_v57 }
0x1310   : > { %v16267_v6 = vpop.f32.mrb[204].mxu1 }
0x1311   : > { %v9585_v11 = vpop.f32.mrb[205].mxu1 }
0x1312   : > { %v16268_v5 = vpop.f32.mrb[206].mxu1 }
0x1313   : > { %v9663_v18 = vpack.c.bf16 %v16268_v5, %v16267_v6  ;;  %v9588_v44 = vpop.f32.mrb[207].mxu1  ;;  %v17550_v5 = vld [vmem:[%s22439_s11 + $0x8] ss:$20 sps:$4 sm:$0xff]  }
0x1314   : > { %v9662_v58 = vpack.c.bf16 %v9588_v44, %v9585_v11 }
0x1315   : > { %10451 = vmatmul.mubr.bf16.gmra.mrb[68].mxu1 %v17535_v13 }
0x1316   : > { %14838 = vmatprep.subr.bf16.mxu1 %v9662_v58  ;;  %10458 = vmatprep.mubr.bf16.mxu1 %v17540_v10  ;;  %v17553_v10 = vld [vmem:[%s22439_s11 + $0x10] ss:$20 sps:$4 sm:$0xff]  }
0x1317   : > { %14839 = vmatpush3.bf16.msra.mxu1 %v9654_v7 }
0x1318   : > { %14840 = vmatprep.subr.bf16.mxu1 %v9663_v18 }
0x131b   : > { %14841 = vmatpush3.bf16.msra.mxu1 %v9655_v40 }
0x131c   : > { %14909 = vmatprep.subr.bf16.mxu1 %v20893_v15  ;;  %v17544_v15 = vld [vmem:[%s22439_s11 + $0x118] ss:$20 sps:$4 sm:$0xff]  }
0x131d   : > { %10459 = vmatmul.mubr.bf16.gmra.mrb[12].mxu1 %v17538_v24 }
0x131e   : > { %10466 = vmatprep.mubr.bf16.mxu1 %v17543_v49  ;;  %v17556_v49 = vld [vmem:[%s22439_s11 + $0x34] ss:$20 sps:$4 sm:$0xff]  }
0x1320   : > { %v16271_v35 = vpop.f32.mrb[208].mxu1 }
0x1321   : > { %v9601_v21 = vpop.f32.mrb[209].mxu1 }
0x1322   : > { %v16272_v7 = vpop.f32.mrb[210].mxu1 }
0x1323   : > { %v9665_v28 = vpack.c.bf16 %v16272_v7, %v16271_v35  ;;  %v9604_v62 = vpop.f32.mrb[211].mxu1 }
0x1324   : > { %v9664_v31 = vpack.c.bf16 %v9604_v62, %v9601_v21  ;;  %v17554_v21 = vld [vmem:[%s22439_s11 + $0x30] ss:$20 sps:$4 sm:$0xff]  }
0x1325   : > { %10467 = vmatmul.mubr.bf16.gmra.mrb[16].mxu1 %v17541_v20 }
0x1326   : > { %16366 = vmatpush3.bf16.msra.mxu0 %v9664_v31  ;;  %10474 = vmatprep.mubr.bf16.mxu1 %v17546_v30  ;;  %v17570_v31 = vld [vmem:[%s22439_s11 + $0xd0] ss:$20 sps:$4 sm:$0xff]  }
0x1327   : > { %16367 = vmatprep.subr.bf16.mxu0 %v22516_v9 }
0x132a   : > { %16368 = vmatpush3.bf16.msra.mxu0 %v9665_v28 }
0x132b   : > { %16369 = vmatprep.subr.bf16.mxu0 %v22516_v9 }
0x132d   : > { %10475 = vmatmul.mubr.bf16.gmra.mrb[20].mxu1 %v17544_v15  ;;  %v17573_v15 = vld [vmem:[%s22439_s11 + $0xd8] ss:$20 sps:$4 sm:$0xff]  }
0x132e   : > { %10482 = vmatprep.mubr.bf16.mxu1 %v17549_v12 }
0x1330   : > { %v16275_v33 = vpop.f32.mrb[212].mxu1 }
0x1331   : > { %v9617_v40 = vpop.f32.mrb[213].mxu1 }
0x1332   : > { %v16276_v2 = vpop.f32.mrb[214].mxu1 }
0x1333   : > { %v9667_v47 = vpack.c.bf16 %v16276_v2, %v16275_v33  ;;  %v9620_v57 = vpop.f32.mrb[215].mxu1  ;;  %v17576_v33 = vld [vmem:[%s22439_s11 + $0xfc] ss:$20 sps:$4 sm:$0xff]  }
0x1334   : > { %v9666_v6 = vpack.c.bf16 %v9620_v57, %v9617_v40  ;;  %v17574_v57 = vld [vmem:[%s22439_s11 + $0xf8] ss:$20 sps:$4 sm:$0xff]  }
0x1335   : > { %10483 = vmatmul.mubr.bf16.gmra.mrb[24].mxu1 %v17547_v42 }
0x1336   : > { %16370 = vmatpush3.bf16.msra.mxu0 %v9666_v6  ;;  %10523 = vmatprep.mubr.bf16.mxu1 %v17552_v51  ;;  %v17577_v6 = vld [vmem:[%s22439_s11 + $0x100] ss:$20 sps:$4 sm:$0xff]  }
0x1337   : > { %16371 = vmatprep.subr.bf16.mxu0 %v22516_v9 }
0x1338   : > { %v21143_v11 = vpop.f32.mrb[216].mxu1 }
0x1339   : > { %v21145_v13 = vpop.f32.mrb[217].mxu1 }
0x133a   : > { %v21153_v18 = vpop.f32.mrb[218].mxu1  ;;  %16372 = vmatpush3.bf16.msra.mxu0 %v9667_v47 }
0x133b   : > { %v9990_v44 = vpack.c.bf16 %v21153_v18, %v21143_v11  ;;  %v21157_v58 = vpop.f32.mrb[219].mxu1  ;;  %14979 = vmatprep.subr.bf16.mxu0 %v20970_v26  ;;  %v17600_v11 = vld [vmem:[%s22439_s11 + $0x1bc] ss:$20 sps:$4 sm:$0xff]   ;;  %v17603_v18 = vld [vmem:[%s22439_s11 + $0x1c4] ss:$20 sps:$4 sm:$0xff]  }
0x133c   : > { %v9989_v24 = vpack.c.bf16 %v21157_v58, %v21145_v13  ;;  %v17595_v13 = vld [vmem:[%s22439_s11 + $0x198] ss:$20 sps:$4 sm:$0xff]  }
0x133d   : > { %10524 = vmatmul.mubr.bf16.vlgmr.msra.gmra.mrb[28].mxu1 %v17550_v5  ;;  %16374 = vmatmul.mubr.msk.bf16.vlgmr.msra.gmra.mrb[232].mxu0 %vm4695_vm7, %v17553_v10  ;;  %v17580_v10 = vld [vmem:[%s22439_s11 + $0x124] ss:$20 sps:$4 sm:$0xff]  }
0x133e   : > { %14910 = vmatpush3.bf16.msra.mxu1 %v20876_v54  ;;  %14980 = vmatpush3.bf16.msra.mxu0 %v20946_v60  ;;  %v17557_v54 = vld [vmem:[%s22439_s11 + $0x38] ss:$20 sps:$4 sm:$0xff]  }
0x133f   : > { %14911 = vmatprep.subr.bf16.mxu1 %v20891_v22  ;;  %14981 = vmatprep.subr.bf16.mxu0 %v20968_v27 }
0x1340   : > { %v21170_v35 = vpop.f32.mrb[220].mxu1  ;;  %10531 = vmatprep.mubr.bf16.mxu1 %v17556_v49  ;;  %16377 = vmatprep.mubr.msk.bf16.mxu0 %vm17818_vm0, %v22516_v9 }
0x1341   : > { %v21174_v26 = vpop.f32.mrb[221].mxu1 }
0x1342   : > { %14912 = vmatpush3.bf16.msra.mxu1 %v20874_v63  ;;  %v21183_v22 = vpop.f32.mrb[222].mxu1  ;;  %14982 = vmatpush3.bf16.msra.mxu0 %v20944_v37  ;;  %v17560_v63 = vld [vmem:[%s22439_s11 + $0x5c] ss:$20 sps:$4 sm:$0xff]  }
0x1343   : > { %v9992_v60 = vpack.c.bf16 %v21183_v22, %v21170_v35  ;;  %14913 = vmatprep.subr.bf16.mxu1 %v20914_v23  ;;  %v21189_v27 = vpop.f32.mrb[223].mxu1  ;;  %14983 = vmatprep.subr.bf16.mxu0 %v20976_v14  ;;  %v17558_v14 = vld [vmem:[%s22439_s11 + $0x58] ss:$20 sps:$4 sm:$0xff]  }
0x1344   : > { %v9991_v20 = vpack.c.bf16 %v21189_v27, %v21174_v26  ;;  %v17601_v26 = vld [vmem:[%s22439_s11 + $0x1c0] ss:$20 sps:$4 sm:$0xff]  }
0x1345   : > { %10532 = vmatmul.mubr.bf16.gmra.mrb[72].mxu1 %v17554_v21  ;;  %16378 = vmatmul.mubr.msk.bf16.gmra.mrb[236].mxu0 %vm4695_vm7, %v17557_v54 }
0x1346   : > { %14914 = vmatpush3.bf16.msra.mxu1 %v20880_v25  ;;  %14984 = vmatpush3.bf16.msra.mxu0 %v20952_v36  ;;  %v17561_v25 = vld [vmem:[%s22439_s11 + $0x60] ss:$20 sps:$4 sm:$0xff]  }
0x1347   : > { %14915 = vmatprep.subr.bf16.mxu1 %v20909_v29  ;;  %14985 = vmatprep.subr.bf16.mxu0 %v20974_v39 }
0x1348   : > { %v21202_v23 = vpop.f32.mrb[224].mxu1  ;;  %10539 = vmatprep.mubr.bf16.mxu1 %v17560_v63  ;;  %16381 = vmatprep.mubr.msk.bf16.mxu0 %vm17818_vm0, %v22516_v9 }
0x1349   : > { %v21206_v37 = vpop.f32.mrb[225].mxu1 }
0x134a   : > { %14916 = vmatpush3.bf16.msra.mxu1 %v20878_v48  ;;  %v21215_v29 = vpop.f32.mrb[226].mxu1  ;;  %14986 = vmatpush3.bf16.msra.mxu0 %v20950_v8  ;;  %v17564_v48 = vld [vmem:[%s22439_s11 + $0x84] ss:$20 sps:$4 sm:$0xff]  }
0x134b   : > { %v9994_v36 = vpack.c.bf16 %v21215_v29, %v21202_v23  ;;  %14917 = vmatprep.subr.bf16.mxu1 %v20931_v0  ;;  %v21221_v39 = vpop.f32.mrb[227].mxu1  ;;  %14987 = vmatprep.subr.bf16.mxu0 %v20982_v50  ;;  %v17562_v50 = vld [vmem:[%s22439_s11 + $0x80] ss:$20 sps:$4 sm:$0xff]  }
0x134c   : > { %v9993_v7 = vpack.c.bf16 %v21221_v39, %v21206_v37  ;;  %v17615_v23 = vld [vmem:[%s22439_s11 + $0x214] ss:$20 sps:$4 sm:$0xff]  }
0x134d   : > { %10540 = vmatmul.mubr.bf16.gmra.mrb[76].mxu1 %v17558_v14  ;;  %16382 = vmatmul.mubr.msk.bf16.gmra.mrb[240].mxu0 %vm4695_vm7, %v17561_v25  ;;  %v17578_v25 = vld [vmem:[%s22439_s11 + $0x120] ss:$20 sps:$4 sm:$0xff]  }
0x134e   : > { %14918 = vmatpush3.bf16.msra.mxu1 %v20884_v19  ;;  %14988 = vmatpush3.bf16.msra.mxu0 %v20958_v4  ;;  %v17565_v19 = vld [vmem:[%s22439_s11 + $0x88] ss:$20 sps:$4 sm:$0xff]  }
0x134f   : > { %14919 = vmatprep.subr.bf16.mxu1 %v20929_v46  ;;  %14989 = vmatprep.subr.bf16.mxu0 %v20980_v45 }
0x1350   : > { %v21234_v0 = vpop.f32.mrb[228].mxu1  ;;  %10547 = vmatprep.mubr.bf16.mxu1 %v17564_v48  ;;  %16385 = vmatprep.mubr.msk.bf16.mxu0 %vm17818_vm0, %v22516_v9  ;;  %v17581_v48 = vld [vmem:[%s22439_s11 + $0x128] ss:$20 sps:$4 sm:$0xff]  }
0x1351   : > { %v21238_v8 = vpop.f32.mrb[229].mxu1 }
0x1352   : > { %14920 = vmatpush3.bf16.msra.mxu1 %v20882_v3  ;;  %v21247_v46 = vpop.f32.mrb[230].mxu1  ;;  %14990 = vmatpush3.bf16.msra.mxu0 %v20956_v55  ;;  %v17568_v3 = vld [vmem:[%s22439_s11 + $0xac] ss:$20 sps:$4 sm:$0xff]  }
0x1353   : > { %14921 = vmatprep.subr.bf16.mxu1 %v20939_v53  ;;  %v21253_v45 = vpop.f32.mrb[231].mxu1  ;;  %14991 = vmatprep.subr.bf16.mxu0 %v20988_v38  ;;  %v17566_v38 = vld [vmem:[%s22439_s11 + $0xa8] ss:$20 sps:$4 sm:$0xff]  }
0x1354   : > { %v9995_v30 = vpack.c.bf16 %v21253_v45, %v21238_v8  ;;  %v17613_v8 = vld [vmem:[%s22439_s11 + $0x210] ss:$20 sps:$4 sm:$0xff]   ;;  %v22517_v45 = vpack.c.bf16 %v21247_v46, %v21234_v0 }
0x1355   : > { %10548 = vmatmul.mubr.bf16.gmra.mrb[80].mxu1 %v17562_v50  ;;  %16386 = vmatmul.mubr.msk.bf16.gmra.mrb[244].mxu0 %vm4695_vm7, %v17565_v19  ;;  %v17584_v19 = vld [vmem:[%s22439_s11 + $0x14c] ss:$20 sps:$4 sm:$0xff]  }
0x1356   : > { %14922 = vmatpush3.bf16.msra.mxu1 %v20888_v61  ;;  %14992 = vmatpush3.bf16.msra.mxu0 %v20964_v43  ;;  %v17569_v61 = vld [vmem:[%s22439_s11 + $0xb0] ss:$20 sps:$4 sm:$0xff]   ;;  %v17572_v43 = vld [vmem:[%s22439_s11 + $0xd4] ss:$20 sps:$4 sm:$0xff]  }
0x1357   : > { %14923 = vmatprep.subr.bf16.mxu1 %v20937_v41  ;;  %14993 = vmatprep.subr.bf16.mxu0 %v20986_v1 }
0x1358   : > { %v21266_v53 = vpop.f32.mrb[232].mxu1  ;;  %10555 = vmatprep.mubr.bf16.mxu1 %v17568_v3  ;;  %16389 = vmatprep.mubr.msk.bf16.mxu0 %vm17818_vm0, %v22516_v9 }
0x1359   : > { %v9766_v55 = vpop.f32.mrb[233].mxu1 }
0x135a   : > { %14924 = vmatpush3.bf16.msra.mxu1 %v20886_v56  ;;  %v21277_v41 = vpop.f32.mrb[234].mxu1  ;;  %14994 = vmatpush3.bf16.msra.mxu0 %v20962_v52 }
0x135b   : > { %v9998_v1 = vpack.c.bf16 %v21277_v41, %v21266_v53  ;;  %v9769_v28 = vpop.f32.mrb[235].mxu1  ;;  %16409 = vmatprep.subr.bf16.mxu1 %v22516_v9 }
0x135c   : > { %v9997_v62 = vpack.c.bf16 %v9769_v28, %v9766_v55  ;;  %v17582_v28 = vld [vmem:[%s22439_s11 + $0x148] ss:$20 sps:$4 sm:$0xff]  }
0x135d   : > { %10556 = vmatmul.mubr.bf16.gmra.mrb[84].mxu1 %v17566_v38  ;;  %16390 = vmatmul.mubr.msk.bf16.gmra.mrb[248].mxu0 %vm4695_vm7, %v17569_v61 }
0x135e   : > { %15062 = vmatprep.subr.bf16.mxu0 %v9997_v62  ;;  %10563 = vmatprep.mubr.bf16.mxu1 %v17572_v43  ;;  %v17585_v62 = vld [vmem:[%s22439_s11 + $0x150] ss:$20 sps:$4 sm:$0xff]  }
0x135f   : > { %16393 = vmatprep.mubr.msk.bf16.mxu0 %vm17818_vm0, %v22516_v9 }
0x1360   : > { %v21289_v56 = vpop.f32.mrb[236].mxu1 }
0x1361   : > { %v21291_v52 = vpop.f32.mrb[237].mxu1 }
0x1362   : > { %v21299_v12 = vpop.f32.mrb[238].mxu1 }
0x1363   : > { %v10000_v40 = vpack.c.bf16 %v21299_v12, %v21289_v56  ;;  %v21306_v42 = vpop.f32.mrb[239].mxu1  ;;  %v17607_v12 = vld [vmem:[%s22439_s11 + $0x1e8] ss:$20 sps:$4 sm:$0xff]  }
0x1364   : > { %v9999_v2 = vpack.c.bf16 %v21306_v42, %v21291_v52  ;;  %v17604_v52 = vld [vmem:[%s22439_s11 + $0x1e0] ss:$20 sps:$4 sm:$0xff]  }
0x1365   : > { %10564 = vmatmul.mubr.bf16.gmra.mrb[88].mxu1 %v17570_v31  ;;  %16394 = vmatmul.mubr.msk.bf16.gmra.mrb[252].mxu0 %vm4695_vm7, %v17573_v15  ;;  %v17588_v15 = vld [vmem:[%s22439_s11 + $0x16c] ss:$20 sps:$4 sm:$0xff]  }
0x1366   : > { %10571 = vmatprep.mubr.bf16.mxu1 %v17576_v33  ;;  %16397 = vmatprep.mubr.msk.bf16.mxu0 %vm17818_vm0, %v22516_v9  ;;  %v17591_v33 = vld [vmem:[%s22439_s11 + $0x174] ss:$20 sps:$4 sm:$0xff]  }
0x1368   : > { %v21313_v51 = vpop.f32.mrb[240].mxu1 }
0x1369   : > { %v21315_v47 = vpop.f32.mrb[241].mxu1 }
0x136a   : > { %v21323_v5 = vpop.f32.mrb[242].mxu1 }
0x136b   : > { %v10002_v49 = vpack.c.bf16 %v21323_v5, %v21313_v51  ;;  %v21330_v21 = vpop.f32.mrb[243].mxu1  ;;  %v17618_v51 = vld [vmem:[%s22439_s11 + $0x234] ss:$20 sps:$4 sm:$0xff]  }
0x136c   : > { %v10001_v54 = vpack.c.bf16 %v21330_v21, %v21315_v47  ;;  %v17621_v47 = vld [vmem:[%s22439_s11 + $0x23c] ss:$20 sps:$4 sm:$0xff]  }
0x136d   : > { %10572 = vmatmul.mubr.bf16.gmra.mrb[92].mxu1 %v17574_v57  ;;  %16398 = vmatmul.mubr.msk.bf16.gmra.mrb[0].mxu0 %vm4695_vm7, %v17577_v6  ;;  %v17589_v57 = vld [vmem:[%s22439_s11 + $0x170] ss:$20 sps:$4 sm:$0xff]  }
0x136e   : > { %10579 = vmatprep.mubr.bf16.mxu1 %v17580_v10  ;;  %16401 = vmatprep.mubr.msk.bf16.mxu0 %vm17818_vm0, %v22516_v9  ;;  %v17597_v10 = vld [vmem:[%s22439_s11 + $0x19c] ss:$20 sps:$4 sm:$0xff]  }
0x1370   : > { %v21337_v63 = vpop.f32.mrb[244].mxu1 }
0x1371   : > { %v21339_v14 = vpop.f32.mrb[245].mxu1 }
0x1372   : > { %v21347_v50 = vpop.f32.mrb[246].mxu1 }
0x1373   : > { %v10004_v3 = vpack.c.bf16 %v21347_v50, %v21337_v63  ;;  %v21354_v55 = vpop.f32.mrb[247].mxu1  ;;  %v17619_v63 = vld [vmem:[%s22439_s11 + $0x238] ss:$20 sps:$4 sm:$0xff]   ;;  %v17624_v50 = vld [vmem:[%s22439_s11 + $0x25c] ss:$20 sps:$4 sm:$0xff]  }
0x1374   : > { %v10003_v38 = vpack.c.bf16 %v21354_v55, %v21339_v14 }
0x1375   : > { %10580 = vmatmul.mubr.bf16.gmra.mrb[96].mxu1 %v17578_v25  ;;  %16402 = vmatmul.mubr.msk.bf16.gmra.mrb[4].mxu0 %vm4695_vm7, %v17581_v48 }
0x1376   : > { %10587 = vmatprep.mubr.bf16.mxu1 %v17584_v19  ;;  %16405 = vmatprep.mubr.msk.bf16.mxu0 %vm17818_vm0, %v22516_v9  ;;  %v17586_v19 = vld [vmem:[%s22439_s11 + $0x168] ss:$20 sps:$4 sm:$0xff]  }
0x1378   : > { %v21361_v61 = vpop.f32.mrb[248].mxu1 }
0x1379   : > { %v21363_v43 = vpop.f32.mrb[249].mxu1 }
0x137a   : > { %v21371_v31 = vpop.f32.mrb[250].mxu1 }
0x137b   : > { %v21381_v6 = vpop.f32.mrb[251].mxu1 }
0x137d   : > { %10588 = vmatmul.mubr.bf16.gmra.mrb[100].mxu1 %v17582_v28  ;;  %16406 = vmatmul.mubr.msk.bf16.gmra.mrb[8].mxu0 %vm4695_vm7, %v17585_v62 }
0x137e   : > { %10985 = vmatprep.mubr.bf16.mxu1 %v17588_v15  ;;  %11090 = vmatprep.mubr.bf16.mxu0 %v17591_v33  ;;  %v17594_v33 = vld [vmem:[%s22439_s11 + $0x194] ss:$20 sps:$4 sm:$0xff]  }
0x1380   : > { %v21386_v25 = vpop.f32.mrb[252].mxu1 }
0x1381   : > { %v21388_v48 = vpop.f32.mrb[253].mxu1 }
0x1382   : > { %v21396_v4 = vpop.f32.mrb[254].mxu1 }
0x1383   : > { %v21400_v62 = vpop.f32.mrb[255].mxu1 }
0x1385   : > { %10986 = vmatmul.mubr.bf16.vlgmr.msra.gmra.mrb[104].mxu1 %v17586_v19  ;;  %11091 = vmatmul.mubr.bf16.vlgmr.msra.gmra.mrb[12].mxu0 %v17589_v57 }
0x1386   : > { %16410 = vmatpush3.bf16.msra.mxu1 %v20994_v32  ;;  %15063 = vmatpush3.bf16.msra.mxu0 %v9989_v24  ;;  %v17592_v32 = vld [vmem:[%s22439_s11 + $0x190] ss:$20 sps:$4 sm:$0xff]  }
0x1387   : > { %15064 = vmatprep.subr.bf16.mxu0 %v9998_v1  ;;  %16411 = vmatprep.subr.bf16.mxu1 %v22516_v9 }
0x1388   : > { %v21418_v28 = vpop.f32.mrb[0].mxu1  ;;  %10993 = vmatprep.mubr.bf16.mxu1 %v17594_v33  ;;  %11098 = vmatprep.mubr.bf16.mxu0 %v17597_v10  ;;  %v17622_v33 = vld [vmem:[%s22439_s11 + $0x258] ss:$20 sps:$4 sm:$0xff]  }
0x1389   : > { %v21420_v15 = vpop.f32.mrb[1].mxu1 }
0x138a   : > { %16412 = vmatpush3.bf16.msra.mxu1 %v20992_v16  ;;  %15065 = vmatpush3.bf16.msra.mxu0 %v9990_v44  ;;  %v21432_v58 = vpop.f32.mrb[2].mxu1 }
0x138b   : > { %v10010_v24 = vpack.c.bf16 %v21432_v58, %v21418_v28  ;;  %15066 = vmatprep.subr.bf16.mxu0 %v9999_v2  ;;  %v21439_v53 = vpop.f32.mrb[3].mxu1  ;;  %16413 = vmatprep.subr.bf16.mxu1 %v22516_v9  ;;  %v17610_v2 = vld [vmem:[%s22439_s11 + $0x208] ss:$20 sps:$4 sm:$0xff]   ;;  %v17656_v58 = vld [vmem:[%s22439_s11 + $0x218] ss:$20 sps:$4 sm:$0xff]  }
0x138c   : > { %v10009_v16 = vpack.c.bf16 %v21439_v53, %v21420_v15 }
0x138d   : > { %10994 = vmatmul.mubr.bf16.gmra.mrb[108].mxu1 %v17592_v32  ;;  %11099 = vmatmul.mubr.bf16.gmra.mrb[16].mxu0 %v17595_v13  ;;  %v17625_v32 = vld [vmem:[%s22439_s11 + $0x260] ss:$20 sps:$4 sm:$0xff]  }
0x138e   : > { %16414 = vmatpush3.bf16.msra.mxu1 %v21000_v17  ;;  %15067 = vmatpush3.bf16.msra.mxu0 %v9991_v20  ;;  %v17598_v17 = vld [vmem:[%s22439_s11 + $0x1b8] ss:$20 sps:$4 sm:$0xff]  }
0x138f   : > { %15068 = vmatprep.subr.bf16.mxu0 %v10000_v40  ;;  %16415 = vmatprep.subr.bf16.mxu1 %v22516_v9  ;;  %v17606_v20 = vld [vmem:[%s22439_s11 + $0x1e4] ss:$20 sps:$4 sm:$0xff]   ;;  %v17612_v40 = vld [vmem:[%s22439_s11 + $0x20c] ss:$20 sps:$4 sm:$0xff]  }
0x1390   : > { %v21458_v44 = vpop.f32.mrb[4].mxu1  ;;  %11001 = vmatprep.mubr.bf16.mxu1 %v17600_v11  ;;  %11106 = vmatprep.mubr.bf16.mxu0 %v17603_v18  ;;  %v17630_v11 = vld [vmem:[%s22439_s11 + $0x284] ss:$20 sps:$4 sm:$0xff]   ;;  %v17633_v18 = vld [vmem:[%s22439_s11 + $0x28c] ss:$20 sps:$4 sm:$0xff]  }
0x1391   : > { %v21460_v41 = vpop.f32.mrb[5].mxu1 }
0x1392   : > { %16416 = vmatpush3.bf16.msra.mxu1 %v20998_v59  ;;  %15069 = vmatpush3.bf16.msra.mxu0 %v9992_v60  ;;  %v21472_v27 = vpop.f32.mrb[6].mxu1  ;;  %v17609_v59 = vld [vmem:[%s22439_s11 + $0x1ec] ss:$20 sps:$4 sm:$0xff]  }
0x1393   : > { %v10012_v1 = vpack.c.bf16 %v21472_v27, %v21458_v44  ;;  %15070 = vmatprep.subr.bf16.mxu0 %v10001_v54  ;;  %v21482_v56 = vpop.f32.mrb[7].mxu1  ;;  %v17616_v54 = vld [vmem:[%s22439_s11 + $0x230] ss:$20 sps:$4 sm:$0xff]   ;;  %v17660_v27 = vld [vmem:[%s22439_s11 + $0x240] ss:$20 sps:$4 sm:$0xff]  }
0x1394   : > { %v10011_v35 = vpack.c.bf16 %v21482_v56, %v21460_v41  ;;  %v17663_v41 = vld [vmem:[%s22439_s11 + $0x39c] ss:$20 sps:$4 sm:$0xff]  }
0x1395   : > { %11002 = vmatmul.mubr.bf16.gmra.mrb[112].mxu1 %v17598_v17  ;;  %11107 = vmatmul.mubr.bf16.gmra.mrb[20].mxu0 %v17601_v26 }
0x1396   : > { %15071 = vmatpush3.bf16.msra.mxu0 %v9993_v7  ;;  %11009 = vmatprep.mubr.bf16.mxu1 %v17606_v20 }
0x1397   : > { %15072 = vmatprep.subr.bf16.mxu0 %v10002_v49  ;;  %11114 = vmatprep.mubr.bf16.mxu0 %v17609_v59 }
0x1398   : > { %v21495_v22 = vpop.f32.mrb[8].mxu1 }
0x1399   : > { %v9894_v60 = vpop.f32.mrb[9].mxu1 }
0x139a   : > { %15073 = vmatpush3.bf16.msra.mxu0 %v9994_v36  ;;  %v21506_v37 = vpop.f32.mrb[10].mxu1 }
0x139b   : > { %v10014_v39 = vpack.c.bf16 %v21506_v37, %v21495_v22  ;;  %15074 = vmatprep.subr.bf16.mxu0 %v10003_v38  ;;  %v9897_v7 = vpop.f32.mrb[11].mxu1  ;;  %v22519_v22 = vpack.c.bf16 %v21371_v31, %v21361_v61  ;;  %v22520_v61 = vpack.c.bf16 %v21400_v62, %v21388_v48  ;;  %v17649_v48 = vld [vmem:[%s22439_s11 + $0x320] ss:$20 sps:$4 sm:$0xff]  }
0x139c   : > { %v10013_v42 = vpack.c.bf16 %v9897_v7, %v9894_v60 }
0x139d   : > { %11010 = vmatmul.mubr.bf16.gmra.mrb[116].mxu1 %v17604_v52  ;;  %11115 = vmatmul.mubr.bf16.gmra.mrb[24].mxu0 %v17607_v12  ;;  %v17628_v52 = vld [vmem:[%s22439_s11 + $0x280] ss:$20 sps:$4 sm:$0xff]   ;;  %v17631_v12 = vld [vmem:[%s22439_s11 + $0x288] ss:$20 sps:$4 sm:$0xff]  }
0x139e   : > { %15075 = vmatpush3.bf16.msra.mxu0 %v9995_v30  ;;  %15132 = vmatprep.subr.bf16.mxu1 %v10013_v42  ;;  %v17639_v42 = vld [vmem:[%s22439_s11 + $0x2b4] ss:$20 sps:$4 sm:$0xff]  }
0x139f   : > { %15076 = vmatprep.subr.bf16.mxu0 %v10004_v3  ;;  %11017 = vmatprep.mubr.bf16.mxu1 %v17612_v40  ;;  %v17627_v3 = vld [vmem:[%s22439_s11 + $0x264] ss:$20 sps:$4 sm:$0xff]   ;;  %v17636_v40 = vld [vmem:[%s22439_s11 + $0x2ac] ss:$20 sps:$4 sm:$0xff]  }
0x13a0   : > { %v21525_v29 = vpop.f32.mrb[32].mxu1  ;;  %11122 = vmatprep.mubr.bf16.mxu0 %v17615_v23 }
0x13a1   : > { %v21527_v36 = vpop.f32.mrb[33].mxu1 }
0x13a2   : > { %15077 = vmatpush3.bf16.msra.mxu0 %v22517_v45  ;;  %v21538_v30 = vpop.f32.mrb[34].mxu1 }
0x13a3   : > { %v10016_v5 = vpack.c.bf16 %v21538_v30, %v21525_v29  ;;  %v21548_v49 = vpop.f32.mrb[35].mxu1  ;;  %16453 = vmatprep.subr.bf16.mxu0 %v22516_v9  ;;  %v22521_v29 = vpack.c.bf16 %v21396_v4, %v21386_v25  ;;  %v17652_v25 = vld [vmem:[%s22439_s11 + $0x1f0] ss:$20 sps:$4 sm:$0xff]  }
0x13a4   : > { %v10015_v0 = vpack.c.bf16 %v21548_v49, %v21527_v36  ;;  %v17648_v36 = vld [vmem:[%s22439_s11 + $0x1c8] ss:$20 sps:$4 sm:$0xff]   ;;  %v17655_v49 = vld [vmem:[%s22439_s11 + $0x34c] ss:$20 sps:$4 sm:$0xff]  }
0x13a5   : > { %11018 = vmatmul.mubr.bf16.gmra.mrb[120].mxu1 %v17610_v2  ;;  %11123 = vmatmul.mubr.bf16.gmra.mrb[28].mxu0 %v17613_v8 }
0x13a6   : > { %11025 = vmatprep.mubr.bf16.mxu1 %v17618_v51  ;;  %11130 = vmatprep.mubr.bf16.mxu0 %v17621_v47  ;;  %v17634_v47 = vld [vmem:[%s22439_s11 + $0x2a8] ss:$20 sps:$4 sm:$0xff]  }
0x13a8   : > { %v21553_v46 = vpop.f32.mrb[36].mxu1 }
0x13a9   : > { %v21555_v21 = vpop.f32.mrb[37].mxu1 }
0x13aa   : > { %v21563_v14 = vpop.f32.mrb[38].mxu1 }
0x13ab   : > { %v10018_v55 = vpack.c.bf16 %v21563_v14, %v21553_v46  ;;  %v21573_v38 = vpop.f32.mrb[39].mxu1 }
0x13ac   : > { %v10017_v57 = vpack.c.bf16 %v21573_v38, %v21555_v21  ;;  %v17653_v21 = vld [vmem:[%s22439_s11 + $0x348] ss:$20 sps:$4 sm:$0xff]  }
0x13ad   : > { %11026 = vmatmul.mubr.bf16.gmra.mrb[124].mxu1 %v17616_v54  ;;  %11131 = vmatmul.mubr.bf16.gmra.mrb[32].mxu0 %v17619_v63  ;;  %v17637_v54 = vld [vmem:[%s22439_s11 + $0x2b0] ss:$20 sps:$4 sm:$0xff]  }
0x13ae   : > { %11033 = vmatprep.mubr.bf16.mxu1 %v17624_v50  ;;  %11138 = vmatprep.mubr.bf16.mxu0 %v17627_v3  ;;  %v17642_v50 = vld [vmem:[%s22439_s11 + $0x2d4] ss:$20 sps:$4 sm:$0xff]  }
0x13b0   : > { %v21577_v10 = vpop.f32.mrb[40].mxu1 }
0x13b1   : > { %v21579_v19 = vpop.f32.mrb[41].mxu1 }
0x13b2   : > { %v21587_v13 = vpop.f32.mrb[42].mxu1 }
0x13b3   : > { %v10020_v17 = vpack.c.bf16 %v21587_v13, %v21577_v10  ;;  %v21597_v26 = vpop.f32.mrb[43].mxu1  ;;  %v17667_v13 = vld [vmem:[%s22439_s11 + $0x3c4] ss:$20 sps:$4 sm:$0xff]  }
0x13b4   : > { %v10019_v20 = vpack.c.bf16 %v21597_v26, %v21579_v19 }
0x13b5   : > { %11034 = vmatmul.mubr.bf16.gmra.mrb[128].mxu1 %v17622_v33  ;;  %11139 = vmatmul.mubr.bf16.gmra.mrb[36].mxu0 %v17625_v32 }
0x13b6   : > { %11041 = vmatprep.mubr.bf16.mxu1 %v17630_v11  ;;  %11146 = vmatprep.mubr.bf16.mxu0 %v17633_v18  ;;  %v17640_v18 = vld [vmem:[%s22439_s11 + $0x2d0] ss:$20 sps:$4 sm:$0xff]  }
0x13b8   : > { %v16359_v59 = vpop.f32.mrb[44].mxu1 }
0x13b9   : > { %v9958_v60 = vpop.f32.mrb[45].mxu1 }
0x13ba   : > { %v16360_v7 = vpop.f32.mrb[46].mxu1 }
0x13bb   : > { %v10022_v23 = vpack.c.bf16 %v16360_v7, %v16359_v59  ;;  %v9961_v2 = vpop.f32.mrb[47].mxu1  ;;  %v17643_v59 = vld [vmem:[%s22439_s11 + $0x178] ss:$20 sps:$4 sm:$0xff]  }
0x13bc   : > { %v10021_v8 = vpack.c.bf16 %v9961_v2, %v9958_v60  ;;  %v22518_v2 = vpack.c.bf16 %v21381_v6, %v21363_v43  ;;  %v17645_v43 = vld [vmem:[%s22439_s11 + $0x2f8] ss:$20 sps:$4 sm:$0xff]  }
0x13bd   : > { %11042 = vmatmul.mubr.bf16.gmra.mrb[132].mxu1 %v17628_v52  ;;  %11147 = vmatmul.mubr.bf16.gmra.mrb[40].mxu0 %v17631_v12 }
0x13be   : > { %11049 = vmatprep.mubr.bf16.mxu1 %v17636_v40  ;;  %11154 = vmatprep.mubr.bf16.mxu0 %v17639_v42  ;;  %v17647_v40 = vld [vmem:[%s22439_s11 + $0x2fc] ss:$20 sps:$4 sm:$0xff]  }
0x13c0   : > { %v16363_v45 = vpop.f32.mrb[48].mxu1 }
0x13c1   : > { %v9974_v51 = vpop.f32.mrb[49].mxu1 }
0x13c2   : > { %v16364_v63 = vpop.f32.mrb[50].mxu1 }
0x13c3   : > { %v10024_v3 = vpack.c.bf16 %v16364_v63, %v16363_v45  ;;  %v9977_v33 = vpop.f32.mrb[51].mxu1 }
0x13c4   : > { %v10023_v32 = vpack.c.bf16 %v9977_v33, %v9974_v51  ;;  %v17644_v51 = vld [vmem:[%s22439_s11 + $0x1a0] ss:$20 sps:$4 sm:$0xff]  }
0x13c5   : > { %11050 = vmatmul.mubr.bf16.gmra.mrb[136].mxu1 %v17634_v47  ;;  %11155 = vmatmul.mubr.bf16.gmra.mrb[44].mxu0 %v17637_v54  ;;  %v17651_v47 = vld [vmem:[%s22439_s11 + $0x324] ss:$20 sps:$4 sm:$0xff]   ;;  %v17665_v33 = vld [vmem:[%s22439_s11 + $0x3c0] ss:$20 sps:$4 sm:$0xff]  }
0x13c6   : > { %16417 = vmatprep.mubr.msk.bf16.mxu1 %vm17818_vm0, %v22516_v9  ;;  %11607 = vmatprep.mubr.bf16.mxu0 %v17642_v50 }
0x13c8   : > { %v14772_v11 = vpop.f32.mrb[52].mxu1 }
0x13c9   : > { %v14773_v60 = vpop.f32.mrb[53].mxu1 }
0x13ca   : > { %v21630_v52 = vadd.f32 %v14773_v60, %v14772_v11  ;;  %v14775_v12 = vpop.f32.mrb[54].mxu1  ;;  %v17671_v11 = vld [vmem:[%s22439_s11 + $0x3ec] ss:$20 sps:$4 sm:$0xff]  }
0x13cb   : > { %v14776_v7 = vpop.f32.mrb[55].mxu1 }
0x13cc   : > { %v21635_v42 = vadd.f32 %v14776_v7, %v14775_v12 }
0x13cd   : > { %16418 = vmatmul.mubr.msk.bf16.vlgmr.msra.gmra.mrb[140].mxu1 %vm4695_vm7, %v17643_v59  ;;  %11608 = vmatmul.mubr.bf16.vlgmr.msra.gmra.mrb[48].mxu0 %v17640_v18 }
0x13ce   : > { %15133 = vmatpush3.bf16.msra.mxu1 %v22518_v2  ;;  %16454 = vmatpush3.bf16.msra.mxu0 %v10021_v8  ;;  %v17669_v2 = vld [vmem:[%s22439_s11 + $0x3e8] ss:$20 sps:$4 sm:$0xff]  }
0x13cf   : > { %15134 = vmatprep.subr.bf16.mxu1 %v10014_v39  ;;  %16455 = vmatprep.subr.bf16.mxu0 %v22516_v9 }
0x13d0   : > { %16421 = vmatprep.mubr.msk.bf16.mxu1 %vm17818_vm0, %v22516_v9  ;;  %11615 = vmatprep.mubr.bf16.mxu0 %v17647_v40  ;;  %v14778_v45 = vpop.f32.mrb[56].mxu1  ;;  %v17668_v40 = vld [vmem:[%s22439_s11 + $0x290] ss:$20 sps:$4 sm:$0xff]  }
0x13d1   : > { %v14779_v6 = vpop.f32.mrb[57].mxu1 }
0x13d2   : > { %15135 = vmatpush3.bf16.msra.mxu1 %v22519_v22  ;;  %16456 = vmatpush3.bf16.msra.mxu0 %v10022_v23  ;;  %v21656_v37 = vadd.f32 %v14779_v6, %v14778_v45  ;;  %v14781_v39 = vpop.f32.mrb[58].mxu1 }
0x13d3   : > { %15136 = vmatprep.subr.bf16.mxu1 %v10015_v0  ;;  %16457 = vmatprep.subr.bf16.mxu0 %v22516_v9  ;;  %v14782_v8 = vpop.f32.mrb[59].mxu1 }
0x13d4   : > { %v21665_v54 = vadd.f32 %v14782_v8, %v14781_v39 }
0x13d5   : > { %16422 = vmatmul.mubr.msk.bf16.gmra.mrb[144].mxu1 %vm4695_vm7, %v17644_v51  ;;  %11616 = vmatmul.mubr.bf16.gmra.mrb[52].mxu0 %v17645_v43  ;;  %v17675_v51 = vld [vmem:[%s22439_s11 + $0x414] ss:$20 sps:$4 sm:$0xff]  }
0x13d6   : > { %15137 = vmatpush3.bf16.msra.mxu1 %v22520_v61  ;;  %16458 = vmatpush3.bf16.msra.mxu0 %v10023_v32  ;;  %v17673_v61 = vld [vmem:[%s22439_s11 + $0x410] ss:$20 sps:$4 sm:$0xff]  }
0x13d7   : > { %15138 = vmatprep.subr.bf16.mxu1 %v10016_v5  ;;  %16459 = vmatprep.subr.bf16.mxu0 %v22516_v9 }
0x13d8   : > { %16425 = vmatprep.mubr.msk.bf16.mxu1 %vm17818_vm0, %v22516_v9  ;;  %11623 = vmatprep.mubr.bf16.mxu0 %v17651_v47  ;;  %v14784_v31 = vpop.f32.mrb[60].mxu1  ;;  %v17672_v47 = vld [vmem:[%s22439_s11 + $0x2b8] ss:$20 sps:$4 sm:$0xff]  }
0x13d9   : > { %v14785_v62 = vpop.f32.mrb[61].mxu1 }
0x13da   : > { %15139 = vmatpush3.bf16.msra.mxu1 %v22521_v29  ;;  %16460 = vmatpush3.bf16.msra.mxu0 %v10024_v3  ;;  %v21686_v30 = vadd.f32 %v14785_v62, %v14784_v31  ;;  %v14787_v5 = vpop.f32.mrb[62].mxu1  ;;  %v17664_v3 = vld [vmem:[%s22439_s11 + $0x268] ss:$20 sps:$4 sm:$0xff]  }
0x13db   : > { %15140 = vmatprep.subr.bf16.mxu1 %v10017_v57  ;;  %v14788_v0 = vpop.f32.mrb[63].mxu1  ;;  %16549 = vmatprep.subr.bf16.mxu0 %v22516_v9 }
0x13dc   : > { %v21695_v23 = vadd.f32 %v14788_v0, %v14787_v5 }
0x13dd   : > { %16426 = vmatmul.mubr.msk.bf16.gmra.mrb[148].mxu1 %vm4695_vm7, %v17648_v36  ;;  %11624 = vmatmul.mubr.bf16.gmra.mrb[56].mxu0 %v17649_v48  ;;  %v17678_v36 = vld [vmem:[%s22439_s11 + $0x2dc] ss:$20 sps:$4 sm:$0xff]  }
0x13de   : > { %15141 = vmatpush3.bf16.msra.mxu1 %v10009_v16  ;;  %16429 = vmatprep.mubr.msk.bf16.mxu1 %vm17818_vm0, %v22516_v9  ;;  %v17659_v16 = vld [vmem:[%s22439_s11 + $0x374] ss:$20 sps:$4 sm:$0xff]  }
0x13df   : > { %15142 = vmatprep.subr.bf16.mxu1 %v10018_v55  ;;  %11631 = vmatprep.mubr.bf16.mxu0 %v17655_v49 }
0x13e0   : > { %v14790_v4 = vpop.f32.mrb[64].mxu1 }
0x13e1   : > { %v14791_v38 = vpop.f32.mrb[65].mxu1 }
0x13e2   : > { %15143 = vmatpush3.bf16.msra.mxu1 %v10010_v24  ;;  %v21715_v15 = vadd.f32 %v14791_v38, %v14790_v4  ;;  %v14793_v53 = vpop.f32.mrb[66].mxu1  ;;  %v17657_v24 = vld [vmem:[%s22439_s11 + $0x370] ss:$20 sps:$4 sm:$0xff]   ;;  %v17676_v4 = vld [vmem:[%s22439_s11 + $0x2d8] ss:$20 sps:$4 sm:$0xff]  }
0x13e3   : > { %15144 = vmatprep.subr.bf16.mxu1 %v10019_v20  ;;  %v14794_v46 = vpop.f32.mrb[67].mxu1 }
0x13e4   : > { %v21723_v14 = vadd.f32 %v14794_v46, %v14793_v53  ;;  %v17682_v53 = vld [vmem:[%s22439_s11 + $0x304] ss:$20 sps:$4 sm:$0xff]  }
0x13e5   : > { %16430 = vmatmul.mubr.msk.bf16.gmra.mrb[152].mxu1 %vm4695_vm7, %v17652_v25  ;;  %11632 = vmatmul.mubr.bf16.gmra.mrb[60].mxu0 %v17653_v21  ;;  %v17679_v25 = vld [vmem:[%s22439_s11 + $0x2e0] ss:$20 sps:$4 sm:$0xff]  }
0x13e6   : > { %15145 = vmatpush3.bf16.msra.mxu1 %v10011_v35  ;;  %16433 = vmatprep.mubr.msk.bf16.mxu1 %vm17818_vm0, %v22516_v9 }
0x13e7   : > { %15146 = vmatprep.subr.bf16.mxu1 %v10020_v17  ;;  %11639 = vmatprep.mubr.bf16.mxu0 %v17659_v16 }
0x13e8   : > { %v14796_v28 = vpop.f32.mrb[68].mxu1 }
0x13e9   : > { %v14797_v55 = vpop.f32.mrb[69].mxu1 }
0x13ea   : > { %15147 = vmatpush3.bf16.msra.mxu1 %v10012_v1  ;;  %v21746_v56 = vadd.f32 %v14797_v55, %v14796_v28  ;;  %v14799_v35 = vpop.f32.mrb[70].mxu1  ;;  %v17661_v1 = vld [vmem:[%s22439_s11 + $0x398] ss:$20 sps:$4 sm:$0xff]  }
0x13eb   : > { %v14800_v57 = vpop.f32.mrb[71].mxu1  ;;  %16497 = vmatprep.subr.bf16.mxu1 %v22516_v9 }
0x13ec   : > { %v21749_v10 = vadd.f32 %v14800_v57, %v14799_v35 }
0x13ed   : > { %16434 = vmatmul.mubr.msk.bf16.gmra.mrb[156].mxu1 %vm4695_vm7, %v17656_v58  ;;  %11640 = vmatmul.mubr.bf16.gmra.mrb[64].mxu0 %v17657_v24 }
0x13ee   : > { %16437 = vmatprep.mubr.msk.bf16.mxu1 %vm17818_vm0, %v22516_v9  ;;  %11647 = vmatprep.mubr.bf16.mxu0 %v17663_v41 }
0x13f0   : > { %v14802_v44 = vpop.f32.mrb[12].mxu1 }
0x13f1   : > { %v14803_v19 = vpop.f32.mrb[13].mxu1 }
0x13f2   : > { %v21763_v17 = vadd.f32 %v14803_v19, %v14802_v44  ;;  %v14805_v26 = vpop.f32.mrb[14].mxu1  ;;  %v17793_v44 = vld [vmem:[%s22475_s2 + $0x40] sm:$0xff]  }
0x13f3   : > { %v14806_v20 = vpop.f32.mrb[15].mxu1 }
0x13f4   : > { %v21765_v63 = vadd.f32 %v14806_v20, %v14805_v26 }
0x13f5   : > { %16438 = vmatmul.mubr.msk.bf16.gmra.mrb[160].mxu1 %vm4695_vm7, %v17660_v27  ;;  %11648 = vmatmul.mubr.bf16.gmra.mrb[68].mxu0 %v17661_v1 }
0x13f6   : > { %16441 = vmatprep.mubr.msk.bf16.mxu1 %vm17818_vm0, %v22516_v9  ;;  %11655 = vmatprep.mubr.bf16.mxu0 %v17667_v13  ;;  %v17683_v13 = vld [vmem:[%s22439_s11 + $0x308] ss:$20 sps:$4 sm:$0xff]  }
0x13f8   : > { %v14808_v50 = vpop.f32.mrb[16].mxu1 }
0x13f9   : > { %v14809_v32 = vpop.f32.mrb[17].mxu1 }
0x13fa   : > { %v21779_v18 = vadd.f32 %v14809_v32, %v14808_v50  ;;  %v14811_v59 = vpop.f32.mrb[18].mxu1  ;;  %v17686_v50 = vld [vmem:[%s22439_s11 + $0x32c] ss:$20 sps:$4 sm:$0xff]  }
0x13fb   : > { %v14812_v60 = vpop.f32.mrb[19].mxu1 }
0x13fc   : > { %v21781_v12 = vadd.f32 %v14812_v60, %v14811_v59  ;;  %v17795_v60 = vld [vmem:[%s22475_s2 + $0x48] sm:$0xff]  }
0x13fd   : > { %16442 = vmatmul.mubr.msk.bf16.gmra.mrb[164].mxu1 %vm4695_vm7, %v17664_v3  ;;  %11656 = vmatmul.mubr.bf16.gmra.mrb[72].mxu0 %v17665_v33 }
0x13fe   : > { %16445 = vmatprep.mubr.msk.bf16.mxu1 %vm17818_vm0, %v22516_v9  ;;  %11663 = vmatprep.mubr.bf16.mxu0 %v17671_v11 }
0x1400   : > { %v14814_v7 = vpop.f32.mrb[20].mxu1 }
0x1401   : > { %v14815_v45 = vpop.f32.mrb[21].mxu1 }
0x1402   : > { %v21795_v43 = vadd.f32 %v14815_v45, %v14814_v7  ;;  %v14817_v6 = vpop.f32.mrb[22].mxu1  ;;  %v17796_v7 = vld [vmem:[%s22475_s2 + $0x8] sm:$0xff]  }
0x1403   : > { %v14818_v22 = vpop.f32.mrb[23].mxu1 }
0x1404   : > { %v21797_v39 = vadd.f32 %v14818_v22, %v14817_v6  ;;  %v17797_v6 = vld [vmem:[%s22475_s2 + $0x50] sm:$0xff]  }
0x1405   : > { %16446 = vmatmul.mubr.msk.bf16.gmra.mrb[168].mxu1 %vm4695_vm7, %v17668_v40  ;;  %11664 = vmatmul.mubr.bf16.gmra.mrb[76].mxu0 %v17669_v2 }
0x1406   : > { %16449 = vmatprep.mubr.msk.bf16.mxu1 %vm17818_vm0, %v22516_v9  ;;  %11671 = vmatprep.mubr.bf16.mxu0 %v17675_v51 }
0x1408   : > { %v14820_v8 = vpop.f32.mrb[24].mxu1 }
0x1409   : > { %v14821_v31 = vpop.f32.mrb[25].mxu1 }
0x140a   : > { %v21811_v48 = vadd.f32 %v14821_v31, %v14820_v8  ;;  %v14823_v62 = vpop.f32.mrb[26].mxu1 }
0x140b   : > { %v14824_v29 = vpop.f32.mrb[27].mxu1 }
0x140c   : > { %v21813_v5 = vadd.f32 %v14824_v29, %v14823_v62  ;;  %v17690_v62 = vld [vmem:[%s22439_s11 + $0x354] ss:$20 sps:$4 sm:$0xff]  }
0x140d   : > { %16450 = vmatmul.mubr.msk.bf16.gmra.mrb[172].mxu1 %vm4695_vm7, %v17672_v47  ;;  %11672 = vmatmul.mubr.bf16.gmra.mrb[80].mxu0 %v17673_v61  ;;  %v17687_v61 = vld [vmem:[%s22439_s11 + $0x330] ss:$20 sps:$4 sm:$0xff]  }
0x140e   : > { %11712 = vmatprep.mubr.bf16.mxu1 %v17678_v36  ;;  %16461 = vmatprep.mubr.msk.bf16.mxu0 %vm17818_vm0, %v22516_v9 }
0x1410   : > { %v14842_v49 = vpop.f32.mrb[28].mxu1  ;;  %v10630_v0 = vpop.f32.mrb[232].mxu0 }
0x1411   : > { %v14843_v21 = vpop.f32.mrb[29].mxu1  ;;  %v16375_v38 = vpop.f32.mrb[233].mxu0 }
0x1412   : > { %v14844_v16 = vadd.f32 %v14843_v21, %v14842_v49  ;;  %v14845_v46 = vpop.f32.mrb[30].mxu1  ;;  %v10633_v28 = vpop.f32.mrb[234].mxu0  ;;  %v17799_v21 = vld [vmem:[%s22475_s2 + $0x58] sm:$0xff]  }
0x1413   : > { %v14846_v58 = vpop.f32.mrb[31].mxu1  ;;  %v16376_v24 = vpop.f32.mrb[235].mxu0  ;;  %v17800_v38 = vld [vmem:[%s22475_s2 + $0x18] sm:$0xff]  }
0x1414   : > { %v14847_v55 = vadd.f32 %v14846_v58, %v14845_v46  ;;  %v10526_v41 = vadd.f32 %v14844_v16, %v21630_v52  ;;  %v17794_v52 = vld [vmem:[%s22475_s2] sm:$0xff]  }
0x1415   : > { %11713 = vmatmul.mubr.bf16.vlgmr.msra.gmra.mrb[176].mxu1 %v17676_v4  ;;  %16462 = vmatmul.mubr.msk.bf16.vlgmr.msra.gmra.mrb[84].mxu0 %vm4695_vm7, %v17679_v25  ;;  %v17801_v58 = vld [vmem:[%s22475_s2 + $0x60] sm:$0xff]  }
0x1416   : > { %11720 = vmatprep.mubr.bf16.mxu1 %v17682_v53  ;;  %16465 = vmatprep.mubr.msk.bf16.mxu0 %vm17818_vm0, %v22516_v9  ;;  %v21831_v35 = vadd.f32 %v10630_v0, %v10526_v41  ;;  %v10529_v57 = vadd.f32 %v14847_v55, %v21635_v42  ;;  %v17680_v42 = vld [vmem:[%s22439_s11 + $0x300] ss:$20 sps:$4 sm:$0xff]  }
0x1417   : > { %16550 = vmatpush3.bf16.msra.mxu0 %v17793_v44  ;;  %16498 = vmatpush3.bf16.msra.mxu1 %v17794_v52 }
0x1418   : > { %v14848_v27 = vpop.f32.mrb[72].mxu1  ;;  %v21840_v1 = vadd.f32 %v10633_v28, %v10529_v57  ;;  %v10638_v19 = vpop.f32.mrb[236].mxu0  ;;  %16551 = vmatprep.subr.bf16.mxu0 %v22516_v9  ;;  %16499 = vmatprep.subr.bf16.mxu1 %v22516_v9  ;;  %v17691_v57 = vld [vmem:[%s22439_s11 + $0x358] ss:$20 sps:$4 sm:$0xff]  }
0x1419   : > { %v14849_v26 = vpop.f32.mrb[73].mxu1  ;;  %v16379_v20 = vpop.f32.mrb[237].mxu0 }
0x141a   : > { %v14850_v3 = vadd.f32 %v14849_v26, %v14848_v27  ;;  %v14851_v33 = vpop.f32.mrb[74].mxu1  ;;  %v10641_v32 = vpop.f32.mrb[238].mxu0  ;;  %v17694_v27 = vld [vmem:[%s22439_s11 + $0x37c] ss:$20 sps:$4 sm:$0xff]  }
0x141b   : > { %v14852_v11 = vpop.f32.mrb[75].mxu1  ;;  %v16380_v59 = vpop.f32.mrb[239].mxu0  ;;  %16552 = vmatpush3.bf16.msra.mxu0 %v17795_v60  ;;  %16500 = vmatpush3.bf16.msra.mxu1 %v17796_v7  ;;  %v17805_v60 = vld [vmem:[%s22475_s2 + $0x70] sm:$0xff]  }
0x141c   : > { %v14853_v40 = vadd.f32 %v14852_v11, %v14851_v33  ;;  %v10534_v2 = vadd.f32 %v14850_v3, %v21656_v37  ;;  %16553 = vmatprep.subr.bf16.mxu0 %v22516_v9  ;;  %16501 = vmatprep.subr.bf16.mxu1 %v22516_v9  ;;  %v17798_v37 = vld [vmem:[%s22475_s2 + $0x10] sm:$0xff]   ;;  %v17804_v3 = vld [vmem:[%s22475_s2 + $0x28] sm:$0xff]  }
0x141d   : > { %11721 = vmatmul.mubr.bf16.gmra.mrb[180].mxu1 %v17680_v42  ;;  %16466 = vmatmul.mubr.msk.bf16.gmra.mrb[88].mxu0 %vm4695_vm7, %v17683_v13 }
0x141e   : > { %11728 = vmatprep.mubr.bf16.mxu1 %v17686_v50  ;;  %16469 = vmatprep.mubr.msk.bf16.mxu0 %vm17818_vm0, %v22516_v9  ;;  %v21865_v45 = vadd.f32 %v10638_v19, %v10534_v2  ;;  %v10537_v51 = vadd.f32 %v14853_v40, %v21665_v54  ;;  %v17684_v54 = vld [vmem:[%s22439_s11 + $0x328] ss:$20 sps:$4 sm:$0xff]  }
0x141f   : > { %16554 = vmatpush3.bf16.msra.mxu0 %v17797_v6  ;;  %16502 = vmatpush3.bf16.msra.mxu1 %v17798_v37  ;;  %v17803_v50 = vld [vmem:[%s22475_s2 + $0x68] sm:$0xff]  }
0x1420   : > { %v14854_v22 = vpop.f32.mrb[76].mxu1  ;;  %v21874_v8 = vadd.f32 %v10641_v32, %v10537_v51  ;;  %v10646_v47 = vpop.f32.mrb[240].mxu0  ;;  %16555 = vmatprep.subr.bf16.mxu0 %v22516_v9  ;;  %16503 = vmatprep.subr.bf16.mxu1 %v22516_v9  ;;  %v17695_v51 = vld [vmem:[%s22439_s11 + $0x380] ss:$20 sps:$4 sm:$0xff]  }
0x1421   : > { %v14855_v31 = vpop.f32.mrb[77].mxu1  ;;  %v16383_v36 = vpop.f32.mrb[241].mxu0 }
0x1422   : > { %v14856_v29 = vadd.f32 %v14855_v31, %v14854_v22  ;;  %v14857_v49 = vpop.f32.mrb[78].mxu1  ;;  %v10649_v0 = vpop.f32.mrb[242].mxu0  ;;  %v17698_v22 = vld [vmem:[%s22439_s11 + $0x3a4] ss:$20 sps:$4 sm:$0xff]  }
0x1423   : > { %v14858_v4 = vpop.f32.mrb[79].mxu1  ;;  %v16384_v25 = vpop.f32.mrb[243].mxu0  ;;  %16556 = vmatpush3.bf16.msra.mxu0 %v17799_v21  ;;  %16504 = vmatpush3.bf16.msra.mxu1 %v17800_v38 }
0x1424   : > { %v14859_v53 = vadd.f32 %v14858_v4, %v14857_v49  ;;  %v10542_v16 = vadd.f32 %v14856_v29, %v21686_v30  ;;  %16557 = vmatprep.subr.bf16.mxu0 %v22516_v9  ;;  %16505 = vmatprep.subr.bf16.mxu1 %v22516_v9  ;;  %v17802_v30 = vld [vmem:[%s22475_s2 + $0x20] sm:$0xff]   ;;  %v17808_v29 = vld [vmem:[%s22475_s2 + $0x38] sm:$0xff]  }
0x1425   : > { %11729 = vmatmul.mubr.bf16.gmra.mrb[184].mxu1 %v17684_v54  ;;  %16470 = vmatmul.mubr.msk.bf16.gmra.mrb[92].mxu0 %vm4695_vm7, %v17687_v61 }
0x1426   : > { %11736 = vmatprep.mubr.bf16.mxu1 %v17690_v62  ;;  %16473 = vmatprep.mubr.msk.bf16.mxu0 %vm17818_vm0, %v22516_v9  ;;  %v21899_v46 = vadd.f32 %v10646_v47, %v10542_v16  ;;  %v10545_v28 = vadd.f32 %v14859_v53, %v21695_v23  ;;  %v17688_v23 = vld [vmem:[%s22439_s11 + $0x350] ss:$20 sps:$4 sm:$0xff]   ;;  %v17807_v62 = vld [vmem:[%s22475_s2 + $0x78] sm:$0xff]  }
0x1427   : > { %16558 = vmatpush3.bf16.msra.mxu0 %v17801_v58  ;;  %16506 = vmatpush3.bf16.msra.mxu1 %v17802_v30  ;;  %v17699_v16 = vld [vmem:[%s22439_s11 + $0x3a8] ss:$20 sps:$4 sm:$0xff]   ;;  %v17702_v30 = vld [vmem:[%s22439_s11 + $0x3cc] ss:$20 sps:$4 sm:$0xff]  }
0x1428   : > { %v14860_v24 = vpop.f32.mrb[80].mxu1  ;;  %v21908_v55 = vadd.f32 %v10649_v0, %v10545_v28  ;;  %v10654_v41 = vpop.f32.mrb[244].mxu0  ;;  %16559 = vmatprep.subr.bf16.mxu0 %v22516_v9  ;;  %16507 = vmatprep.subr.bf16.mxu1 %v22516_v9 }
0x1429   : > { %v14861_v44 = vpop.f32.mrb[81].mxu1  ;;  %v16387_v52 = vpop.f32.mrb[245].mxu0 }
0x142a   : > { %v14862_v19 = vadd.f32 %v14861_v44, %v14860_v24  ;;  %v14863_v42 = vpop.f32.mrb[82].mxu1  ;;  %v10657_v13 = vpop.f32.mrb[246].mxu0 }
0x142b   : > { %v14864_v26 = vpop.f32.mrb[83].mxu1  ;;  %v16388_v20 = vpop.f32.mrb[247].mxu0  ;;  %16560 = vmatpush3.bf16.msra.mxu0 %v17803_v50  ;;  %16508 = vmatpush3.bf16.msra.mxu1 %v17804_v3 }
0x142c   : > { %v14865_v33 = vadd.f32 %v14864_v26, %v14863_v42  ;;  %v10550_v32 = vadd.f32 %v14862_v19, %v21715_v15  ;;  %16561 = vmatprep.subr.bf16.mxu0 %v22516_v9  ;;  %16509 = vmatprep.subr.bf16.mxu1 %v22516_v9  ;;  %v17806_v15 = vld [vmem:[%s22475_s2 + $0x30] sm:$0xff]   ;;  %v17700_v20 = vld [vmem:[%s22439_s11 + $0x3c8] ss:$20 sps:$4 sm:$0xff]  }
0x142d   : > { %11737 = vmatmul.mubr.bf16.gmra.mrb[188].mxu1 %v17688_v23  ;;  %16474 = vmatmul.mubr.msk.bf16.gmra.mrb[96].mxu0 %vm4695_vm7, %v17691_v57 }
0x142e   : > { %11744 = vmatprep.mubr.bf16.mxu1 %v17694_v27  ;;  %16477 = vmatprep.mubr.msk.bf16.mxu0 %vm17818_vm0, %v22516_v9  ;;  %v21933_v11 = vadd.f32 %v10654_v41, %v10550_v32  ;;  %v10553_v59 = vadd.f32 %v14865_v33, %v21723_v14  ;;  %v17692_v14 = vld [vmem:[%s22439_s11 + $0x378] ss:$20 sps:$4 sm:$0xff]   ;;  %v17706_v33 = vld [vmem:[%s22439_s11 + $0x3f4] ss:$20 sps:$4 sm:$0xff]  }
0x142f   : > { %16562 = vmatpush3.bf16.msra.mxu0 %v17805_v60  ;;  %16510 = vmatpush3.bf16.msra.mxu1 %v17806_v15 }
0x1430   : > { %v14866_v7 = vpop.f32.mrb[84].mxu1  ;;  %v21942_v40 = vadd.f32 %v10657_v13, %v10553_v59  ;;  %v10662_v2 = vpop.f32.mrb[248].mxu0  ;;  %16563 = vmatprep.subr.bf16.mxu0 %v22516_v9  ;;  %16511 = vmatprep.subr.bf16.mxu1 %v22516_v9 }
0x1431   : > { %v14867_v6 = vpop.f32.mrb[85].mxu1  ;;  %v16391_v37 = vpop.f32.mrb[249].mxu0 }
0x1432   : > { %v14868_v47 = vadd.f32 %v14867_v6, %v14866_v7  ;;  %v14869_v54 = vpop.f32.mrb[86].mxu1  ;;  %v10665_v61 = vpop.f32.mrb[250].mxu0 }
0x1433   : > { %v14870_v31 = vpop.f32.mrb[87].mxu1  ;;  %v16392_v36 = vpop.f32.mrb[251].mxu0  ;;  %16564 = vmatpush3.bf16.msra.mxu0 %v17807_v62  ;;  %16512 = vmatpush3.bf16.msra.mxu1 %v17808_v29 }
0x1434   : > { %v14871_v49 = vadd.f32 %v14870_v31, %v14869_v54  ;;  %v10558_v0 = vadd.f32 %v14868_v47, %v21746_v56  ;;  %12458 = vmatprep.subr.bf16.mxu0 %v22504_v34  ;;  %12349 = vmatprep.subr.bf16.mxu1 %v22504_v34  ;;  %v17696_v56 = vld [vmem:[%s22439_s11 + $0x3a0] ss:$20 sps:$4 sm:$0xff]   ;;  %v17704_v47 = vld [vmem:[%s22439_s11 + $0x3f0] ss:$20 sps:$4 sm:$0xff]  }
0x1435   : > { %11745 = vmatmul.mubr.bf16.gmra.mrb[192].mxu1 %v17692_v14  ;;  %16478 = vmatmul.mubr.msk.bf16.gmra.mrb[100].mxu0 %vm4695_vm7, %v17695_v51  ;;  %v17710_v31 = vld [vmem:[%s22439_s11 + $0x41c] ss:$20 sps:$4 sm:$0xff]  }
0x1436   : > { %11752 = vmatprep.mubr.bf16.mxu1 %v17698_v22  ;;  %16481 = vmatprep.mubr.msk.bf16.mxu0 %vm17818_vm0, %v22516_v9  ;;  %v21967_v4 = vadd.f32 %v10662_v2, %v10558_v0  ;;  %v10561_v25 = vadd.f32 %v14871_v49, %v21749_v10 }
0x1438   : > { %v14872_v21 = vpop.f32.mrb[88].mxu1  ;;  %v21970_v38 = vadd.f32 %v10665_v61, %v10561_v25  ;;  %v10670_v53 = vpop.f32.mrb[252].mxu0 }
0x1439   : > { %v14873_v28 = vpop.f32.mrb[89].mxu1  ;;  %v16395_v58 = vpop.f32.mrb[253].mxu0 }
0x143a   : > { %v14874_v24 = vadd.f32 %v14873_v28, %v14872_v21  ;;  %v14875_v10 = vpop.f32.mrb[90].mxu1  ;;  %v10673_v41 = vpop.f32.mrb[254].mxu0  ;;  %v17708_v58 = vld [vmem:[%s22439_s11 + $0x418] ss:$20 sps:$4 sm:$0xff]  }
0x143b   : > { %v14876_v23 = vpop.f32.mrb[91].mxu1  ;;  %v16396_v57 = vpop.f32.mrb[255].mxu0 }
0x143c   : > { %v14877_v44 = vadd.f32 %v14876_v23, %v14875_v10  ;;  %v10566_v52 = vadd.f32 %v14874_v24, %v21763_v17  ;;  %v17703_v17 = vld [vmem:[%s22439_s11 + $0x3d0] ss:$20 sps:$4 sm:$0xff]  }
0x143d   : > { %11753 = vmatmul.mubr.bf16.gmra.mrb[196].mxu1 %v17696_v56  ;;  %16482 = vmatmul.mubr.msk.bf16.gmra.mrb[104].mxu0 %vm4695_vm7, %v17699_v16 }
0x143e   : > { %11760 = vmatprep.mubr.bf16.mxu1 %v17702_v30  ;;  %16485 = vmatprep.mubr.msk.bf16.mxu0 %vm17818_vm0, %v22516_v9  ;;  %v21985_v27 = vadd.f32 %v10670_v53, %v10566_v52  ;;  %v10569_v19 = vadd.f32 %v14877_v44, %v21765_v63 }
0x1440   : > { %v14878_v42 = vpop.f32.mrb[92].mxu1  ;;  %v21988_v13 = vadd.f32 %v10673_v41, %v10569_v19  ;;  %v10678_v26 = vpop.f32.mrb[0].mxu0 }
0x1441   : > { %v14879_v50 = vpop.f32.mrb[93].mxu1  ;;  %v16399_v3 = vpop.f32.mrb[1].mxu0 }
0x1442   : > { %v14880_v32 = vadd.f32 %v14879_v50, %v14878_v42  ;;  %v14881_v63 = vpop.f32.mrb[94].mxu1  ;;  %v10681_v59 = vpop.f32.mrb[2].mxu0 }
0x1443   : > { %v14882_v60 = vpop.f32.mrb[95].mxu1  ;;  %v16400_v15 = vpop.f32.mrb[3].mxu0 }
0x1444   : > { %v14883_v7 = vadd.f32 %v14882_v60, %v14881_v63  ;;  %v10574_v2 = vadd.f32 %v14880_v32, %v21779_v18  ;;  %v17707_v18 = vld [vmem:[%s22439_s11 + $0x3f8] ss:$20 sps:$4 sm:$0xff]  }
0x1445   : > { %11761 = vmatmul.mubr.bf16.gmra.mrb[200].mxu1 %v17700_v20  ;;  %16486 = vmatmul.mubr.msk.bf16.gmra.mrb[108].mxu0 %vm4695_vm7, %v17703_v17 }
0x1446   : > { %11768 = vmatprep.mubr.bf16.mxu1 %v17706_v33  ;;  %16489 = vmatprep.mubr.msk.bf16.mxu0 %vm17818_vm0, %v22516_v9  ;;  %v22003_v14 = vadd.f32 %v10678_v26, %v10574_v2  ;;  %v10577_v51 = vadd.f32 %v14883_v7, %v21781_v12 }
0x1448   : > { %v14884_v6 = vpop.f32.mrb[96].mxu1  ;;  %v22006_v37 = vadd.f32 %v10681_v59, %v10577_v51  ;;  %v10686_v22 = vpop.f32.mrb[4].mxu0 }
0x1449   : > { %v14885_v54 = vpop.f32.mrb[97].mxu1  ;;  %v16403_v61 = vpop.f32.mrb[5].mxu0 }
0x144a   : > { %v14886_v36 = vadd.f32 %v14885_v54, %v14884_v6  ;;  %v14887_v12 = vpop.f32.mrb[98].mxu1  ;;  %v10689_v62 = vpop.f32.mrb[6].mxu0 }
0x144b   : > { %v14888_v29 = vpop.f32.mrb[99].mxu1  ;;  %v16404_v49 = vpop.f32.mrb[7].mxu0 }
0x144c   : > { %v14889_v0 = vadd.f32 %v14888_v29, %v14887_v12  ;;  %v10582_v25 = vadd.f32 %v14886_v36, %v21795_v43  ;;  %v17711_v43 = vld [vmem:[%s22439_s11 + $0x420] ss:$20 sps:$4 sm:$0xff]  }
0x144d   : > { %11769 = vmatmul.mubr.bf16.gmra.mrb[204].mxu1 %v17704_v47  ;;  %16490 = vmatmul.mubr.msk.bf16.gmra.mrb[112].mxu0 %vm4695_vm7, %v17707_v18 }
0x144e   : > { %11776 = vmatprep.mubr.bf16.mxu1 %v17710_v31  ;;  %16493 = vmatprep.mubr.msk.bf16.mxu0 %vm17818_vm0, %v22516_v9  ;;  %v22021_v21 = vadd.f32 %v10686_v22, %v10582_v25  ;;  %v10585_v53 = vadd.f32 %v14889_v0, %v21797_v39 }
0x1450   : > { %v14890_v56 = vpop.f32.mrb[100].mxu1  ;;  %v22024_v16 = vadd.f32 %v10689_v62, %v10585_v53  ;;  %v10694_v28 = vpop.f32.mrb[8].mxu0 }
0x1451   : > { %v14891_v30 = vpop.f32.mrb[101].mxu1  ;;  %v16407_v24 = vpop.f32.mrb[9].mxu0 }
0x1452   : > { %v14892_v10 = vadd.f32 %v14891_v30, %v14890_v56  ;;  %v14893_v41 = vpop.f32.mrb[102].mxu1  ;;  %v10697_v23 = vpop.f32.mrb[10].mxu0 }
0x1453   : > { %v14894_v57 = vpop.f32.mrb[103].mxu1  ;;  %v16408_v44 = vpop.f32.mrb[11].mxu0 }
0x1454   : > { %v14895_v39 = vadd.f32 %v14894_v57, %v14893_v41  ;;  %v10590_v52 = vadd.f32 %v14892_v10, %v21811_v48 }
0x1455   : > { %11777 = vmatmul.mubr.bf16.gmra.mrb[208].mxu1 %v17708_v58  ;;  %16494 = vmatmul.mubr.msk.bf16.gmra.mrb[116].mxu0 %vm4695_vm7, %v17711_v43 }
0x1456   : > { %v22034_v19 = vadd.f32 %v10694_v28, %v10590_v52  ;;  %v10593_v42 = vadd.f32 %v14895_v39, %v21813_v5  ;;  %16513 = vmatprep.mubr.msk.bf16.mxu1 %vm17818_vm0, %v22516_v9  ;;  %16565 = vmatprep.mubr.msk.bf16.mxu0 %vm17818_vm0, %v22516_v9 }
0x1458   : > { %v14925_v26 = vpop.f32.mrb[104].mxu1  ;;  %v22041_v20 = vadd.f32 %v10697_v23, %v10593_v42  ;;  %v14995_v17 = vpop.f32.mrb[12].mxu0 }
0x1459   : > { %v14926_v50 = vpop.f32.mrb[105].mxu1  ;;  %v14996_v3 = vpop.f32.mrb[13].mxu0 }
0x145a   : > { %v14927_v48 = vadd.f32 %v14926_v50, %v14925_v26  ;;  %v14928_v33 = vpop.f32.mrb[106].mxu1  ;;  %v14997_v32 = vadd.f32 %v14996_v3, %v14995_v17  ;;  %v14998_v63 = vpop.f32.mrb[14].mxu0 }
0x145b   : > { %v14929_v59 = vpop.f32.mrb[107].mxu1  ;;  %v14999_v60 = vpop.f32.mrb[15].mxu0 }
0x145c   : > { %v10988_v5 = vadd.f32 %v14927_v48, %v21831_v35  ;;  %v14930_v15 = vadd.f32 %v14929_v59, %v14928_v33  ;;  %v15000_v7 = vadd.f32 %v14999_v60, %v14998_v63 }
0x145e   : > { %v10991_v2 = vadd.f32 %v14930_v15, %v21840_v1  ;;  %v22045_v51 = vadd.f32 %v14997_v32, %v10988_v5 }
0x1460   : > { %v14931_v6 = vpop.f32.mrb[108].mxu1  ;;  %v15001_v22 = vpop.f32.mrb[16].mxu0  ;;  %v22047_v47 = vadd.f32 %v15000_v7, %v10991_v2 }
0x1461   : > { %v14932_v18 = vpop.f32.mrb[109].mxu1  ;;  %v15002_v54 = vpop.f32.mrb[17].mxu0 }
0x1462   : > { %v14933_v61 = vadd.f32 %v14932_v18, %v14931_v6  ;;  %v14934_v31 = vpop.f32.mrb[110].mxu1  ;;  %v15003_v36 = vadd.f32 %v15002_v54, %v15001_v22  ;;  %v15004_v12 = vpop.f32.mrb[18].mxu0 }
0x1463   : > { %v14935_v62 = vpop.f32.mrb[111].mxu1  ;;  %v15005_v29 = vpop.f32.mrb[19].mxu0 }
0x1464   : > { %v10996_v35 = vadd.f32 %v14933_v61, %v21865_v45  ;;  %v14936_v49 = vadd.f32 %v14935_v62, %v14934_v31  ;;  %v15006_v0 = vadd.f32 %v15005_v29, %v15004_v12 }
0x1466   : > { %v10999_v1 = vadd.f32 %v14936_v49, %v21874_v8  ;;  %v22051_v25 = vadd.f32 %v15003_v36, %v10996_v35 }
0x1468   : > { %v14937_v53 = vpop.f32.mrb[112].mxu1  ;;  %v15007_v56 = vpop.f32.mrb[20].mxu0  ;;  %v22053_v28 = vadd.f32 %v15006_v0, %v10999_v1 }
0x1469   : > { %v14938_v58 = vpop.f32.mrb[113].mxu1  ;;  %v15008_v43 = vpop.f32.mrb[21].mxu0 }
0x146a   : > { %v14939_v30 = vadd.f32 %v14938_v58, %v14937_v53  ;;  %v14940_v24 = vpop.f32.mrb[114].mxu1  ;;  %v15009_v10 = vadd.f32 %v15008_v43, %v15007_v56  ;;  %v15010_v41 = vpop.f32.mrb[22].mxu0 }
0x146b   : > { %v14941_v23 = vpop.f32.mrb[115].mxu1  ;;  %v15011_v57 = vpop.f32.mrb[23].mxu0 }
0x146c   : > { %v11004_v45 = vadd.f32 %v14939_v30, %v21899_v46  ;;  %v14942_v44 = vadd.f32 %v14941_v23, %v14940_v24  ;;  %v15012_v39 = vadd.f32 %v15011_v57, %v15010_v41 }
0x146e   : > { %v11007_v8 = vadd.f32 %v14942_v44, %v21908_v55  ;;  %v22057_v52 = vadd.f32 %v15009_v10, %v11004_v45 }
0x1470   : > { %v14943_v42 = vpop.f32.mrb[116].mxu1  ;;  %v15013_v26 = vpop.f32.mrb[24].mxu0  ;;  %v22059_v17 = vadd.f32 %v15012_v39, %v11007_v8 }
0x1471   : > { %v14944_v50 = vpop.f32.mrb[117].mxu1  ;;  %v15014_v3 = vpop.f32.mrb[25].mxu0 }
0x1472   : > { %v14945_v48 = vadd.f32 %v14944_v50, %v14943_v42  ;;  %v14946_v33 = vpop.f32.mrb[118].mxu1  ;;  %v15015_v32 = vadd.f32 %v15014_v3, %v15013_v26  ;;  %v15016_v63 = vpop.f32.mrb[26].mxu0 }
0x1473   : > { %v14947_v59 = vpop.f32.mrb[119].mxu1  ;;  %v15017_v60 = vpop.f32.mrb[27].mxu0 }
0x1474   : > { %v11012_v46 = vadd.f32 %v14945_v48, %v21933_v11  ;;  %v14948_v5 = vadd.f32 %v14947_v59, %v14946_v33  ;;  %v15018_v15 = vadd.f32 %v15017_v60, %v15016_v63 }
0x1476   : > { %v11015_v55 = vadd.f32 %v14948_v5, %v21942_v40  ;;  %v22063_v7 = vadd.f32 %v15015_v32, %v11012_v46 }
0x1478   : > { %v14949_v2 = vpop.f32.mrb[120].mxu1  ;;  %v15019_v6 = vpop.f32.mrb[28].mxu0  ;;  %v22065_v22 = vadd.f32 %v15018_v15, %v11015_v55 }
0x1479   : > { %v14950_v18 = vpop.f32.mrb[121].mxu1  ;;  %v15020_v54 = vpop.f32.mrb[29].mxu0 }
0x147a   : > { %v14951_v61 = vadd.f32 %v14950_v18, %v14949_v2  ;;  %v14952_v31 = vpop.f32.mrb[122].mxu1  ;;  %v15021_v36 = vadd.f32 %v15020_v54, %v15019_v6  ;;  %v15022_v12 = vpop.f32.mrb[30].mxu0 }
0x147b   : > { %v14953_v62 = vpop.f32.mrb[123].mxu1  ;;  %v15023_v29 = vpop.f32.mrb[31].mxu0 }
0x147c   : > { %v11020_v11 = vadd.f32 %v14951_v61, %v21967_v4  ;;  %v14954_v35 = vadd.f32 %v14953_v62, %v14952_v31  ;;  %v15024_v49 = vadd.f32 %v15023_v29, %v15022_v12 }
0x147e   : > { %v11023_v40 = vadd.f32 %v14954_v35, %v21970_v38  ;;  %v22069_v0 = vadd.f32 %v15021_v36, %v11020_v11 }
0x1480   : > { %v14955_v1 = vpop.f32.mrb[124].mxu1  ;;  %v15025_v53 = vpop.f32.mrb[32].mxu0  ;;  %v22071_v56 = vadd.f32 %v15024_v49, %v11023_v40 }
0x1481   : > { %v14956_v58 = vpop.f32.mrb[125].mxu1  ;;  %v15026_v43 = vpop.f32.mrb[33].mxu0 }
0x1482   : > { %v14957_v30 = vadd.f32 %v14956_v58, %v14955_v1  ;;  %v14958_v24 = vpop.f32.mrb[126].mxu1  ;;  %v15027_v10 = vadd.f32 %v15026_v43, %v15025_v53  ;;  %v15028_v41 = vpop.f32.mrb[34].mxu0 }
0x1483   : > { %v14959_v23 = vpop.f32.mrb[127].mxu1  ;;  %v15029_v57 = vpop.f32.mrb[35].mxu0 }
0x1484   : > { %v11028_v4 = vadd.f32 %v14957_v30, %v21985_v27  ;;  %v14960_v45 = vadd.f32 %v14959_v23, %v14958_v24  ;;  %v15030_v44 = vadd.f32 %v15029_v57, %v15028_v41 }
0x1486   : > { %v11031_v38 = vadd.f32 %v14960_v45, %v21988_v13  ;;  %v22075_v39 = vadd.f32 %v15027_v10, %v11028_v4 }
0x1488   : > { %v14961_v8 = vpop.f32.mrb[128].mxu1  ;;  %v15031_v42 = vpop.f32.mrb[36].mxu0  ;;  %v22077_v26 = vadd.f32 %v15030_v44, %v11031_v38 }
0x1489   : > { %v14962_v50 = vpop.f32.mrb[129].mxu1  ;;  %v15032_v3 = vpop.f32.mrb[37].mxu0 }
0x148a   : > { %v14963_v48 = vadd.f32 %v14962_v50, %v14961_v8  ;;  %v14964_v33 = vpop.f32.mrb[130].mxu1  ;;  %v15033_v32 = vadd.f32 %v15032_v3, %v15031_v42  ;;  %v15034_v63 = vpop.f32.mrb[38].mxu0 }
0x148b   : > { %v14965_v59 = vpop.f32.mrb[131].mxu1  ;;  %v15035_v60 = vpop.f32.mrb[39].mxu0 }
0x148c   : > { %v11036_v27 = vadd.f32 %v14963_v48, %v22003_v14  ;;  %v14966_v46 = vadd.f32 %v14965_v59, %v14964_v33  ;;  %v15036_v5 = vadd.f32 %v15035_v60, %v15034_v63 }
0x148e   : > { %v11039_v13 = vadd.f32 %v14966_v46, %v22006_v37  ;;  %v22081_v15 = vadd.f32 %v15033_v32, %v11036_v27 }
0x1490   : > { %v14967_v55 = vpop.f32.mrb[132].mxu1  ;;  %v15037_v2 = vpop.f32.mrb[40].mxu0  ;;  %v22083_v6 = vadd.f32 %v15036_v5, %v11039_v13 }
0x1491   : > { %v14968_v18 = vpop.f32.mrb[133].mxu1  ;;  %v15038_v54 = vpop.f32.mrb[41].mxu0 }
0x1492   : > { %v14969_v61 = vadd.f32 %v14968_v18, %v14967_v55  ;;  %v14970_v31 = vpop.f32.mrb[134].mxu1  ;;  %v15039_v36 = vadd.f32 %v15038_v54, %v15037_v2  ;;  %v15040_v12 = vpop.f32.mrb[42].mxu0 }
0x1493   : > { %v14971_v62 = vpop.f32.mrb[135].mxu1  ;;  %v15041_v29 = vpop.f32.mrb[43].mxu0 }
0x1494   : > { %v11044_v14 = vadd.f32 %v14969_v61, %v22021_v21  ;;  %v14972_v11 = vadd.f32 %v14971_v62, %v14970_v31  ;;  %v15042_v35 = vadd.f32 %v15041_v29, %v15040_v12 }
0x1496   : > { %v11047_v37 = vadd.f32 %v14972_v11, %v22024_v16  ;;  %v22087_v49 = vadd.f32 %v15039_v36, %v11044_v14 }
0x1498   : > { %v14973_v40 = vpop.f32.mrb[136].mxu1  ;;  %v15043_v1 = vpop.f32.mrb[44].mxu0  ;;  %v22089_v53 = vadd.f32 %v15042_v35, %v11047_v37 }
0x1499   : > { %v14974_v58 = vpop.f32.mrb[137].mxu1  ;;  %v15044_v43 = vpop.f32.mrb[45].mxu0 }
0x149a   : > { %v14975_v30 = vadd.f32 %v14974_v58, %v14973_v40  ;;  %v14976_v24 = vpop.f32.mrb[138].mxu1  ;;  %v15045_v10 = vadd.f32 %v15044_v43, %v15043_v1  ;;  %v15046_v41 = vpop.f32.mrb[46].mxu0 }
0x149b   : > { %v14977_v23 = vpop.f32.mrb[139].mxu1  ;;  %v15047_v57 = vpop.f32.mrb[47].mxu0 }
0x149c   : > { %v11052_v21 = vadd.f32 %v14975_v30, %v22034_v19  ;;  %v14978_v4 = vadd.f32 %v14977_v23, %v14976_v24  ;;  %v15048_v45 = vadd.f32 %v15047_v57, %v15046_v41 }
0x149e   : > { %v11055_v16 = vadd.f32 %v14978_v4, %v22041_v20  ;;  %v22093_v44 = vadd.f32 %v15045_v10, %v11052_v21 }
0x14a0   : > { %v11197_v38 = vpop.f32.mrb[140].mxu1  ;;  %v15078_v8 = vpop.f32.mrb[48].mxu0  ;;  %v22095_v42 = vadd.f32 %v15048_v45, %v11055_v16 }
0x14a1   : > { %v22098_v50 = vadd.f32 %v11197_v38, %v22045_v51  ;;  %v16419_v3 = vpop.f32.mrb[141].mxu1  ;;  %v15079_v48 = vpop.f32.mrb[49].mxu0 }
0x14a2   : > { %v11200_v33 = vpop.f32.mrb[142].mxu1  ;;  %v22100_v32 = vadd.f32 %v15079_v48, %v15078_v8  ;;  %v15081_v63 = vpop.f32.mrb[50].mxu0 }
0x14a3   : > { %v22103_v19 = vadd.f32 %v11200_v33, %v22047_v47  ;;  %v16420_v59 = vpop.f32.mrb[143].mxu1  ;;  %v15082_v20 = vpop.f32.mrb[51].mxu0 }
0x14a4   : > { %v22105_v60 = vadd.f32 %v15082_v20, %v15081_v63 }
0x14a8   : > { %v11205_v27 = vpop.f32.mrb[144].mxu1  ;;  %v15084_v46 = vpop.f32.mrb[52].mxu0 }
0x14a9   : > { %v22108_v5 = vadd.f32 %v11205_v27, %v22051_v25  ;;  %v16423_v51 = vpop.f32.mrb[145].mxu1  ;;  %v15085_v13 = vpop.f32.mrb[53].mxu0 }
0x14aa   : > { %v11208_v55 = vpop.f32.mrb[146].mxu1  ;;  %v22110_v2 = vadd.f32 %v15085_v13, %v15084_v46  ;;  %v15087_v18 = vpop.f32.mrb[54].mxu0 }
0x14ab   : > { %v22113_v54 = vadd.f32 %v11208_v55, %v22053_v28  ;;  %v16424_v47 = vpop.f32.mrb[147].mxu1  ;;  %v15088_v61 = vpop.f32.mrb[55].mxu0 }
0x14ac   : > { %v22115_v31 = vadd.f32 %v15088_v61, %v15087_v18 }
0x14b0   : > { %v11213_v36 = vpop.f32.mrb[148].mxu1  ;;  %v15090_v12 = vpop.f32.mrb[56].mxu0 }
0x14b1   : > { %v22118_v62 = vadd.f32 %v11213_v36, %v22057_v52  ;;  %v16427_v25 = vpop.f32.mrb[149].mxu1  ;;  %v15091_v29 = vpop.f32.mrb[57].mxu0 }
0x14b2   : > { %v11216_v14 = vpop.f32.mrb[150].mxu1  ;;  %v22120_v11 = vadd.f32 %v15091_v29, %v15090_v12  ;;  %v15093_v35 = vpop.f32.mrb[58].mxu0 }
0x14b3   : > { %v22123_v37 = vadd.f32 %v11216_v14, %v22059_v17  ;;  %v16428_v28 = vpop.f32.mrb[151].mxu1  ;;  %v15094_v40 = vpop.f32.mrb[59].mxu0 }
0x14b4   : > { %v22125_v1 = vadd.f32 %v15094_v40, %v15093_v35 }
0x14b8   : > { %v11221_v58 = vpop.f32.mrb[152].mxu1  ;;  %v15096_v43 = vpop.f32.mrb[60].mxu0 }
0x14b9   : > { %v22128_v30 = vadd.f32 %v11221_v58, %v22063_v7  ;;  %v16431_v52 = vpop.f32.mrb[153].mxu1  ;;  %v15097_v24 = vpop.f32.mrb[61].mxu0 }
0x14ba   : > { %v11224_v10 = vpop.f32.mrb[154].mxu1  ;;  %v22130_v41 = vadd.f32 %v15097_v24, %v15096_v43  ;;  %v15099_v23 = vpop.f32.mrb[62].mxu0 }
0x14bb   : > { %v22133_v57 = vadd.f32 %v11224_v10, %v22065_v22  ;;  %v16432_v17 = vpop.f32.mrb[155].mxu1  ;;  %v15100_v21 = vpop.f32.mrb[63].mxu0 }
0x14bc   : > { %v22135_v4 = vadd.f32 %v15100_v21, %v15099_v23 }
0x14c0   : > { %v11229_v45 = vpop.f32.mrb[156].mxu1  ;;  %v15102_v16 = vpop.f32.mrb[64].mxu0 }
0x14c1   : > { %v22138_v38 = vadd.f32 %v11229_v45, %v22069_v0  ;;  %v16435_v7 = vpop.f32.mrb[157].mxu1  ;;  %v15103_v8 = vpop.f32.mrb[65].mxu0 }
0x14c2   : > { %v11232_v3 = vpop.f32.mrb[158].mxu1  ;;  %v22140_v48 = vadd.f32 %v15103_v8, %v15102_v16  ;;  %v15105_v33 = vpop.f32.mrb[66].mxu0 }
0x14c3   : > { %v22143_v63 = vadd.f32 %v11232_v3, %v22071_v56  ;;  %v16436_v22 = vpop.f32.mrb[159].mxu1  ;;  %v15106_v59 = vpop.f32.mrb[67].mxu0 }
0x14c4   : > { %v22145_v20 = vadd.f32 %v15106_v59, %v15105_v33 }
0x14c8   : > { %v11237_v27 = vpop.f32.mrb[160].mxu1  ;;  %v15108_v46 = vpop.f32.mrb[68].mxu0 }
0x14c9   : > { %v22148_v51 = vadd.f32 %v11237_v27, %v22075_v39  ;;  %v16439_v0 = vpop.f32.mrb[161].mxu1  ;;  %v15109_v13 = vpop.f32.mrb[69].mxu0 }
0x14ca   : > { %v11240_v55 = vpop.f32.mrb[162].mxu1  ;;  %v22150_v18 = vadd.f32 %v15109_v13, %v15108_v46  ;;  %v15111_v47 = vpop.f32.mrb[70].mxu0 }
0x14cb   : > { %v22153_v61 = vadd.f32 %v11240_v55, %v22077_v26  ;;  %v16440_v56 = vpop.f32.mrb[163].mxu1  ;;  %v15112_v36 = vpop.f32.mrb[71].mxu0 }
0x14cc   : > { %v22155_v12 = vadd.f32 %v15112_v36, %v15111_v47 }
0x14d0   : > { %v11245_v25 = vpop.f32.mrb[164].mxu1  ;;  %v15114_v29 = vpop.f32.mrb[72].mxu0 }
0x14d1   : > { %v22158_v14 = vadd.f32 %v11245_v25, %v22081_v15  ;;  %v16443_v39 = vpop.f32.mrb[165].mxu1  ;;  %v15115_v35 = vpop.f32.mrb[73].mxu0 }
0x14d2   : > { %v11248_v28 = vpop.f32.mrb[166].mxu1  ;;  %v22160_v40 = vadd.f32 %v15115_v35, %v15114_v29  ;;  %v15117_v58 = vpop.f32.mrb[74].mxu0 }
0x14d3   : > { %v22163_v43 = vadd.f32 %v11248_v28, %v22083_v6  ;;  %v16444_v26 = vpop.f32.mrb[167].mxu1  ;;  %v15118_v52 = vpop.f32.mrb[75].mxu0 }
0x14d4   : > { %v22165_v24 = vadd.f32 %v15118_v52, %v15117_v58 }
0x14d8   : > { %v11253_v10 = vpop.f32.mrb[168].mxu1  ;;  %v15120_v23 = vpop.f32.mrb[76].mxu0 }
0x14d9   : > { %v22168_v17 = vadd.f32 %v11253_v10, %v22087_v49  ;;  %v16447_v15 = vpop.f32.mrb[169].mxu1  ;;  %v15121_v21 = vpop.f32.mrb[77].mxu0 }
0x14da   : > { %v11256_v45 = vpop.f32.mrb[170].mxu1  ;;  %v22170_v16 = vadd.f32 %v15121_v21, %v15120_v23  ;;  %v15123_v7 = vpop.f32.mrb[78].mxu0 }
0x14db   : > { %v22173_v8 = vadd.f32 %v11256_v45, %v22089_v53  ;;  %v16448_v6 = vpop.f32.mrb[171].mxu1  ;;  %v15124_v3 = vpop.f32.mrb[79].mxu0 }
0x14dc   : > { %v22175_v33 = vadd.f32 %v15124_v3, %v15123_v7  ;;  %v11929_v21 = vpop.permute.xlu0 %11928  ;;  %v11934_v45 = vpop.permute.xlu1 %11933 }
0x14e0   : > { %v11261_v22 = vpop.f32.mrb[172].mxu1  ;;  %v15126_v59 = vpop.f32.mrb[80].mxu0 }
0x14e1   : > { %v22178_v27 = vadd.f32 %v11261_v22, %v22093_v44  ;;  %v16451_v49 = vpop.f32.mrb[173].mxu1  ;;  %v15127_v46 = vpop.f32.mrb[81].mxu0 }
0x14e2   : > { %v11264_v0 = vpop.f32.mrb[174].mxu1  ;;  %v22180_v13 = vadd.f32 %v15127_v46, %v15126_v59  ;;  %v15129_v55 = vpop.f32.mrb[82].mxu0 }
0x14e3   : > { %v22183_v47 = vadd.f32 %v11264_v0, %v22095_v42  ;;  %v16452_v53 = vpop.f32.mrb[175].mxu1  ;;  %v15130_v56 = vpop.f32.mrb[83].mxu0 }
0x14e4   : > { %v22185_v36 = vadd.f32 %v15130_v56, %v15129_v55 }
0x14e8   : > { %v15148_v25 = vpop.f32.mrb[176].mxu1  ;;  %v11819_v29 = vpop.f32.mrb[84].mxu0 }
0x14e9   : > { %v15149_v39 = vpop.f32.mrb[177].mxu1  ;;  %v16463_v35 = vpop.f32.mrb[85].mxu0 }
0x14ea   : > { %v15150_v28 = vadd.f32 %v15149_v39, %v15148_v25  ;;  %v15151_v44 = vpop.f32.mrb[178].mxu1  ;;  %v11822_v58 = vpop.f32.mrb[86].mxu0 }
0x14eb   : > { %v15152_v26 = vpop.f32.mrb[179].mxu1  ;;  %v16464_v52 = vpop.f32.mrb[87].mxu0 }
0x14ec   : > { %v15153_v10 = vadd.f32 %v15152_v26, %v15151_v44  ;;  %v11715_v23 = vadd.f32 %v15150_v28, %v22100_v32  ;;  %v11944_v26 = vpop.permute.xlu1 %11943 }
0x14ee   : > { %v11820_v15 = vadd.f32 %v11819_v29, %v11715_v23  ;;  %v11718_v42 = vadd.f32 %v15153_v10, %v22105_v60 }
0x14f0   : > { %v11890_v7 = vadd.f32 %v11820_v15, %v22098_v50  ;;  %v11823_v6 = vadd.f32 %v11822_v58, %v11718_v42  ;;  %v15154_v3 = vpop.f32.mrb[180].mxu1  ;;  %v11827_v22 = vpop.f32.mrb[88].mxu0 }
0x14f1   : > { %v15155_v59 = vpop.f32.mrb[181].mxu1  ;;  %v16467_v49 = vpop.f32.mrb[89].mxu0 }
0x14f2   : > { %v12016_v46 = vadd.f32 %v11929_v21, %v11890_v7  ;;  %v11891_v0 = vadd.f32 %v11823_v6, %v22103_v19  ;;  %v15156_v55 = vadd.f32 %v15155_v59, %v15154_v3  ;;  %v15157_v53 = vpop.f32.mrb[182].mxu1  ;;  %v11830_v56 = vpop.f32.mrb[90].mxu0 }
0x14f3   : > { %v15158_v25 = vpop.f32.mrb[183].mxu1  ;;  %v16468_v32 = vpop.f32.mrb[91].mxu0 }
0x14f4   : > { %v12017_v29 = vadd.f32 %v11934_v45, %v11891_v0  ;;  %v15159_v39 = vadd.f32 %v15158_v25, %v15157_v53  ;;  %v11723_v60 = vadd.f32 %v15156_v55, %v22110_v2  ;;  %v12034_v35 = vmax.f32 %v12016_v46, 0.0  ;;  %v11939_v58 = vpop.permute.xlu0 %11938 }
0x14f6   : > { %v12035_v28 = vmax.f32 %v12017_v29, 0.0  ;;  %v11828_v50 = vadd.f32 %v11827_v22, %v11723_v60  ;;  %v11726_v44 = vadd.f32 %v15159_v39, %v22115_v31 }
0x14f8   : > { %v12052_v52 = vpack.c.bf16 %v12035_v28, %v12034_v35  ;;  %v11892_v10 = vadd.f32 %v11828_v50, %v22108_v5  ;;  %v11831_v19 = vadd.f32 %v11830_v56, %v11726_v44  ;;  %v15160_v23 = vpop.f32.mrb[184].mxu1  ;;  %v11835_v15 = vpop.f32.mrb[92].mxu0 }
0x14f9   : > { %v15161_v42 = vpop.f32.mrb[185].mxu1  ;;  %v16471_v21 = vpop.f32.mrb[93].mxu0 }
0x14fa   : > { %v12018_v7 = vadd.f32 %v11939_v58, %v11892_v10  ;;  %v11893_v45 = vadd.f32 %v11831_v19, %v22113_v54  ;;  %v15162_v6 = vadd.f32 %v15161_v42, %v15160_v23  ;;  %v15163_v2 = vpop.f32.mrb[186].mxu1  ;;  %16514 = vmatmul.mubr.bf16.vlgmr.msra.gmra.mrb[212].mxu1 %v12052_v52  ;;  %16566 = vmatmul.mubr.bf16.vlgmr.msra.gmra.mrb[120].mxu0 %v12052_v52  ;;  %v11838_v3 = vpop.f32.mrb[94].mxu0 }
0x14fb   : > { %12459 = vmatpush1.bf16.msra.mxu0 %v12052_v52  ;;  %v15164_v31 = vpop.f32.mrb[187].mxu1  ;;  %16517 = vmatprep.mubr.msk.bf16.mxu1 %vm17818_vm0, %v22516_v9  ;;  %v16472_v22 = vpop.f32.mrb[95].mxu0 }
0x14fc   : > { %v12019_v5 = vadd.f32 %v11944_v26, %v11893_v45  ;;  %v15165_v59 = vadd.f32 %v15164_v31, %v15163_v2  ;;  %v11731_v49 = vadd.f32 %v15162_v6, %v22120_v11  ;;  %16569 = vmatprep.mubr.msk.bf16.mxu0 %vm17818_vm0, %v22516_v9  ;;  %12460 = vmatprep.subr.bf16.mxu0 %v22504_v34  ;;  %v12036_v54 = vmax.f32 %v12018_v7, 0.0  ;;  %v11949_v53 = vpop.permute.xlu0 %11948  ;;  %v11954_v56 = vpop.permute.xlu1 %11953 }
0x14fe   : > { %v12037_v46 = vmax.f32 %v12019_v5, 0.0  ;;  %v11836_v0 = vadd.f32 %v11835_v15, %v11731_v49  ;;  %v11734_v55 = vadd.f32 %v15165_v59, %v22125_v1 }
0x1500   : > { %v12053_v25 = vpack.c.bf16 %v12037_v46, %v12036_v54  ;;  %v11894_v32 = vadd.f32 %v11836_v0, %v22118_v62  ;;  %v11839_v29 = vadd.f32 %v11838_v3, %v11734_v55  ;;  %v15166_v39 = vpop.f32.mrb[188].mxu1  ;;  %v11843_v60 = vpop.f32.mrb[96].mxu0 }
0x1501   : > { %v15167_v35 = vpop.f32.mrb[189].mxu1  ;;  %v16475_v11 = vpop.f32.mrb[97].mxu0 }
0x1502   : > { %v12020_v28 = vadd.f32 %v11949_v53, %v11894_v32  ;;  %v11895_v50 = vadd.f32 %v11839_v29, %v22123_v37  ;;  %v15168_v44 = vadd.f32 %v15167_v35, %v15166_v39  ;;  %v15169_v58 = vpop.f32.mrb[190].mxu1  ;;  %16518 = vmatmul.mubr.bf16.gmra.mrb[216].mxu1 %v12053_v25  ;;  %16570 = vmatmul.mubr.bf16.gmra.mrb[124].mxu0 %v12053_v25  ;;  %v11846_v26 = vpop.f32.mrb[98].mxu0 }
0x1503   : > { %12461 = vmatpush1.bf16.msra.mxu0 %v12053_v25  ;;  %v15170_v1 = vpop.f32.mrb[191].mxu1  ;;  %16521 = vmatprep.mubr.msk.bf16.mxu1 %vm17818_vm0, %v22516_v9  ;;  %v16476_v52 = vpop.f32.mrb[99].mxu0 }
0x1504   : > { %v12021_v62 = vadd.f32 %v11954_v56, %v11895_v50  ;;  %v15171_v10 = vadd.f32 %v15170_v1, %v15169_v58  ;;  %v11739_v19 = vadd.f32 %v15168_v44, %v22130_v41  ;;  %16573 = vmatprep.mubr.msk.bf16.mxu0 %vm17818_vm0, %v22516_v9  ;;  %12462 = vmatprep.subr.bf16.mxu0 %v22504_v34  ;;  %v12038_v37 = vmax.f32 %v12020_v28, 0.0  ;;  %v11959_v21 = vpop.permute.xlu0 %11958  ;;  %v11964_v7 = vpop.permute.xlu1 %11963 }
0x1506   : > { %v12039_v23 = vmax.f32 %v12021_v62, 0.0  ;;  %v11844_v15 = vadd.f32 %v11843_v60, %v11739_v19  ;;  %v11742_v42 = vadd.f32 %v15171_v10, %v22135_v4 }
0x1508   : > { %v12054_v45 = vpack.c.bf16 %v12039_v23, %v12038_v37  ;;  %v11896_v6 = vadd.f32 %v11844_v15, %v22128_v30  ;;  %v11847_v2 = vadd.f32 %v11846_v26, %v11742_v42  ;;  %v15172_v3 = vpop.f32.mrb[192].mxu1  ;;  %v11851_v31 = vpop.f32.mrb[100].mxu0 }
0x1509   : > { %v15173_v22 = vpop.f32.mrb[193].mxu1  ;;  %v16479_v41 = vpop.f32.mrb[101].mxu0 }
0x150a   : > { %v12022_v5 = vadd.f32 %v11959_v21, %v11896_v6  ;;  %v11897_v59 = vadd.f32 %v11847_v2, %v22133_v57  ;;  %v15174_v49 = vadd.f32 %v15173_v22, %v15172_v3  ;;  %v15175_v54 = vpop.f32.mrb[194].mxu1  ;;  %16522 = vmatmul.mubr.bf16.gmra.mrb[220].mxu1 %v12054_v45  ;;  %16574 = vmatmul.mubr.bf16.gmra.mrb[128].mxu0 %v12054_v45  ;;  %v11854_v46 = vpop.f32.mrb[102].mxu0 }
0x150b   : > { %12463 = vmatpush1.bf16.msra.mxu0 %v12054_v45  ;;  %v15176_v4 = vpop.f32.mrb[195].mxu1  ;;  %16525 = vmatprep.mubr.msk.bf16.mxu1 %vm17818_vm0, %v22516_v9  ;;  %v16480_v0 = vpop.f32.mrb[103].mxu0 }
0x150c   : > { %v12023_v30 = vadd.f32 %v11964_v7, %v11897_v59  ;;  %v15177_v55 = vadd.f32 %v15176_v4, %v15175_v54  ;;  %v11747_v53 = vadd.f32 %v15174_v49, %v22140_v48  ;;  %16577 = vmatprep.mubr.msk.bf16.mxu0 %vm17818_vm0, %v22516_v9  ;;  %12464 = vmatprep.subr.bf16.mxu0 %v22504_v34  ;;  %v12040_v57 = vmax.f32 %v12022_v5, 0.0  ;;  %v11969_v29 = vpop.permute.xlu0 %11968  ;;  %v11974_v39 = vpop.permute.xlu1 %11973 }
0x150e   : > { %v12041_v56 = vmax.f32 %v12023_v30, 0.0  ;;  %v11852_v25 = vadd.f32 %v11851_v31, %v11747_v53  ;;  %v11750_v32 = vadd.f32 %v15177_v55, %v22145_v20 }
0x1510   : > { %v12055_v60 = vpack.c.bf16 %v12041_v56, %v12040_v57  ;;  %v11898_v35 = vadd.f32 %v11852_v25, %v22138_v38  ;;  %v11855_v11 = vadd.f32 %v11854_v46, %v11750_v32  ;;  %v15178_v28 = vpop.f32.mrb[196].mxu1  ;;  %v11859_v50 = vpop.f32.mrb[104].mxu0 }
0x1511   : > { %v15179_v44 = vpop.f32.mrb[197].mxu1  ;;  %v16483_v48 = vpop.f32.mrb[105].mxu0 }
0x1512   : > { %v12024_v58 = vadd.f32 %v11969_v29, %v11898_v35  ;;  %v11899_v26 = vadd.f32 %v11855_v11, %v22143_v63  ;;  %v15180_v1 = vadd.f32 %v15179_v44, %v15178_v28  ;;  %v15181_v52 = vpop.f32.mrb[198].mxu1  ;;  %16526 = vmatmul.mubr.bf16.gmra.mrb[224].mxu1 %v12055_v60  ;;  %16578 = vmatmul.mubr.bf16.gmra.mrb[132].mxu0 %v12055_v60  ;;  %v11862_v62 = vpop.f32.mrb[106].mxu0 }
0x1513   : > { %12465 = vmatpush1.bf16.msra.mxu0 %v12055_v60  ;;  %v15182_v20 = vpop.f32.mrb[199].mxu1  ;;  %16529 = vmatprep.mubr.msk.bf16.mxu1 %vm17818_vm0, %v22516_v9  ;;  %v16484_v10 = vpop.f32.mrb[107].mxu0 }
0x1514   : > { %v12025_v38 = vadd.f32 %v11974_v39, %v11899_v26  ;;  %v15183_v19 = vadd.f32 %v15182_v20, %v15181_v52  ;;  %v11755_v37 = vadd.f32 %v15180_v1, %v22150_v18  ;;  %16581 = vmatprep.mubr.msk.bf16.mxu0 %vm17818_vm0, %v22516_v9  ;;  %12466 = vmatprep.subr.bf16.mxu0 %v22504_v34  ;;  %v12042_v63 = vmax.f32 %v12024_v58, 0.0  ;;  %v11979_v21 = vpop.permute.xlu0 %11978  ;;  %v11984_v7 = vpop.permute.xlu1 %11983 }
0x1516   : > { %v12043_v23 = vmax.f32 %v12025_v38, 0.0  ;;  %v11860_v15 = vadd.f32 %v11859_v50, %v11755_v37  ;;  %v11758_v42 = vadd.f32 %v15183_v19, %v22155_v12 }
0x1518   : > { %v12056_v45 = vpack.c.bf16 %v12043_v23, %v12042_v63  ;;  %v11900_v6 = vadd.f32 %v11860_v15, %v22148_v51  ;;  %v11863_v2 = vadd.f32 %v11862_v62, %v11758_v42  ;;  %v15184_v3 = vpop.f32.mrb[200].mxu1  ;;  %v11867_v31 = vpop.f32.mrb[108].mxu0 }
0x1519   : > { %v15185_v22 = vpop.f32.mrb[201].mxu1  ;;  %v16487_v18 = vpop.f32.mrb[109].mxu0 }
0x151a   : > { %v12026_v41 = vadd.f32 %v11979_v21, %v11900_v6  ;;  %v11901_v5 = vadd.f32 %v11863_v2, %v22153_v61  ;;  %v15186_v59 = vadd.f32 %v15185_v22, %v15184_v3  ;;  %v15187_v49 = vpop.f32.mrb[202].mxu1  ;;  %16530 = vmatmul.mubr.bf16.gmra.mrb[228].mxu1 %v12056_v45  ;;  %16582 = vmatmul.mubr.bf16.gmra.mrb[136].mxu0 %v12056_v45  ;;  %v11870_v54 = vpop.f32.mrb[110].mxu0 }
0x151b   : > { %12467 = vmatpush1.bf16.msra.mxu0 %v12056_v45  ;;  %v15188_v12 = vpop.f32.mrb[203].mxu1  ;;  %16533 = vmatprep.mubr.msk.bf16.mxu1 %vm17818_vm0, %v22516_v9  ;;  %v16488_v46 = vpop.f32.mrb[111].mxu0 }
0x151c   : > { %v12027_v51 = vadd.f32 %v11984_v7, %v11901_v5  ;;  %v15189_v4 = vadd.f32 %v15188_v12, %v15187_v49  ;;  %v11763_v0 = vadd.f32 %v15186_v59, %v22160_v40  ;;  %16585 = vmatprep.mubr.msk.bf16.mxu0 %vm17818_vm0, %v22516_v9  ;;  %12468 = vmatprep.subr.bf16.mxu0 %v22504_v34  ;;  %v12044_v61 = vmax.f32 %v12026_v41, 0.0  ;;  %v11989_v57 = vpop.permute.xlu0 %11988  ;;  %v11994_v56 = vpop.permute.xlu1 %11993 }
0x151e   : > { %v12045_v30 = vmax.f32 %v12027_v51, 0.0  ;;  %v11868_v55 = vadd.f32 %v11867_v31, %v11763_v0  ;;  %v11766_v53 = vadd.f32 %v15189_v4, %v22165_v24 }
0x1520   : > { %v12057_v25 = vpack.c.bf16 %v12045_v30, %v12044_v61  ;;  %v11902_v32 = vadd.f32 %v11868_v55, %v22158_v14  ;;  %v11871_v29 = vadd.f32 %v11870_v54, %v11766_v53  ;;  %v15190_v39 = vpop.f32.mrb[204].mxu1  ;;  %v11875_v60 = vpop.f32.mrb[112].mxu0  ;;  %v17725_v61 = vld [vmem:[%s22441_s13 + $0x3c] ss:$8 sps:$4 sm:$0xff]   ;;  %v17731_v30 = vld [vmem:[%s22441_s13 + $0x4c] ss:$8 sps:$4 sm:$0xff]  }
0x1521   : > { %v15191_v35 = vpop.f32.mrb[205].mxu1  ;;  %v16491_v40 = vpop.f32.mrb[113].mxu0  ;;  %v17729_v55 = vld [vmem:[%s22441_s13 + $0x48] ss:$8 sps:$4 sm:$0xff]   ;;  %v17737_v53 = vld [vmem:[%s22441_s13 + $0x5c] ss:$8 sps:$4 sm:$0xff]  }
0x1522   : > { %v12028_v11 = vadd.f32 %v11989_v57, %v11902_v32  ;;  %v11903_v28 = vadd.f32 %v11871_v29, %v22163_v43  ;;  %v15192_v50 = vadd.f32 %v15191_v35, %v15190_v39  ;;  %v15193_v44 = vpop.f32.mrb[206].mxu1  ;;  %16534 = vmatmul.mubr.bf16.gmra.mrb[232].mxu1 %v12057_v25  ;;  %16586 = vmatmul.mubr.bf16.gmra.mrb[140].mxu0 %v12057_v25  ;;  %v11878_v48 = vpop.f32.mrb[114].mxu0  ;;  %v17735_v57 = vld [vmem:[%s22441_s13 + $0x58] ss:$8 sps:$4 sm:$0xff]  }
0x1523   : > { %12469 = vmatpush1.bf16.msra.mxu0 %v12057_v25  ;;  %v15194_v24 = vpop.f32.mrb[207].mxu1  ;;  %16537 = vmatprep.mubr.msk.bf16.mxu1 %vm17818_vm0, %v22516_v9  ;;  %v16492_v58 = vpop.f32.mrb[115].mxu0 }
0x1524   : > { %v12029_v14 = vadd.f32 %v11994_v56, %v11903_v28  ;;  %v15195_v26 = vadd.f32 %v15194_v24, %v15193_v44  ;;  %v11771_v1 = vadd.f32 %v15192_v50, %v22170_v16  ;;  %16589 = vmatprep.mubr.msk.bf16.mxu0 %vm17818_vm0, %v22516_v9  ;;  %12470 = vmatprep.subr.bf16.mxu0 %v22504_v34  ;;  %v12046_v43 = vmax.f32 %v12028_v11, 0.0  ;;  %v11999_v10 = vpop.permute.xlu0 %11998  ;;  %v12004_v38 = vpop.permute.xlu1 %12003  ;;  %v13976_v56 = vld [vmem:[%s22441_s13 + $0x68] sm:$0x77] }
0x1525   : > { %v13996_v25 = vcombine.high %v13976_v56, %v13976_v56  ;;  %v13995_v32 = vcombine.low %v13976_v56, %v13976_v56 }
0x1526   : > { %v12047_v52 = vmax.f32 %v12029_v14, 0.0  ;;  %v11876_v62 = vadd.f32 %v11875_v60, %v11771_v1  ;;  %v11774_v20 = vadd.f32 %v15195_v26, %v22175_v33 }
0x1528   : > { %v12058_v19 = vpack.c.bf16 %v12047_v52, %v12046_v43  ;;  %v11904_v37 = vadd.f32 %v11876_v62, %v22168_v17  ;;  %v11879_v63 = vadd.f32 %v11878_v48, %v11774_v20  ;;  %v15196_v23 = vpop.f32.mrb[208].mxu1  ;;  %v11883_v15 = vpop.f32.mrb[116].mxu0 }
0x1529   : > { %v15197_v42 = vpop.f32.mrb[209].mxu1  ;;  %v16495_v16 = vpop.f32.mrb[117].mxu0 }
0x152a   : > { %v12030_v21 = vadd.f32 %v11999_v10, %v11904_v37  ;;  %v11905_v7 = vadd.f32 %v11879_v63, %v22173_v8  ;;  %v15198_v45 = vadd.f32 %v15197_v42, %v15196_v23  ;;  %v15199_v6 = vpop.f32.mrb[210].mxu1  ;;  %16538 = vmatmul.mubr.bf16.gmra.mrb[236].mxu1 %v12058_v19  ;;  %16590 = vmatmul.mubr.bf16.gmra.mrb[144].mxu0 %v12058_v19  ;;  %v11886_v2 = vpop.f32.mrb[118].mxu0 }
0x152b   : > { %12471 = vmatpush1.bf16.msra.mxu0 %v12058_v19  ;;  %v15200_v33 = vpop.f32.mrb[211].mxu1  ;;  %16541 = vmatprep.mubr.msk.bf16.mxu1 %vm17818_vm0, %v22516_v9  ;;  %v16496_v3 = vpop.f32.mrb[119].mxu0 }
0x152c   : > { %v12031_v17 = vadd.f32 %v12004_v38, %v11905_v7  ;;  %v15201_v31 = vadd.f32 %v15200_v33, %v15199_v6  ;;  %v11779_v22 = vadd.f32 %v15198_v45, %v22180_v13  ;;  %16593 = vmatprep.mubr.msk.bf16.mxu0 %vm17818_vm0, %v22516_v9  ;;  %12472 = vmatprep.subr.bf16.mxu0 %v22504_v34  ;;  %v12048_v8 = vmax.f32 %v12030_v21, 0.0  ;;  %v12009_v12 = vpop.permute.xlu0 %12008  ;;  %v12014_v13 = vpop.permute.xlu1 %12013 }
0x152e   : > { %v12049_v18 = vmax.f32 %v12031_v17, 0.0  ;;  %v11884_v41 = vadd.f32 %v11883_v15, %v11779_v22  ;;  %v11782_v5 = vadd.f32 %v15201_v31, %v22185_v36 }
0x1530   : > { %v12059_v59 = vpack.c.bf16 %v12049_v18, %v12048_v8  ;;  %v11906_v49 = vadd.f32 %v11884_v41, %v22178_v27  ;;  %v11887_v54 = vadd.f32 %v11886_v2, %v11782_v5 }
0x1532   : > { %v12032_v46 = vadd.f32 %v12009_v12, %v11906_v49  ;;  %v11907_v51 = vadd.f32 %v11887_v54, %v22183_v47  ;;  %16542 = vmatmul.mubr.bf16.gmra.mrb[240].mxu1 %v12059_v59  ;;  %16594 = vmatmul.mubr.bf16.gmra.mrb[148].mxu0 %v12059_v59  ;;  %v17714_v47 = vld [vmem:[%s22441_s13 + $0x4] ss:$8 sps:$4 sm:$0xff]  }
0x1533   : > { %12473 = vmatpush1.bf16.msra.mxu0 %v12059_v59  ;;  %16545 = vmatprep.mubr.msk.bf16.mxu1 %vm17818_vm0, %v22516_v9 }
0x1534   : > { %v12033_v4 = vadd.f32 %v12014_v13, %v11907_v51  ;;  %16597 = vmatprep.mubr.msk.bf16.mxu0 %vm17818_vm0, %v22516_v9  ;;  %12474 = vmatprep.subr.bf16.mxu0 %v22504_v34  ;;  %v12050_v36 = vmax.f32 %v12032_v46, 0.0  ;;  %v17723_v9 = vld [vmem:[%s22441_s13 + $0x38] ss:$8 sps:$4 sm:$0xff]  }
0x1536   : > { %v12051_v27 = vmax.f32 %v12033_v4, 0.0 }
0x1538   : > { %v12060_v0 = vpack.c.bf16 %v12051_v27, %v12050_v36 }
0x153a   : > { %16546 = vmatmul.mubr.bf16.gmra.mrb[244].mxu1 %v12060_v0  ;;  %16598 = vmatmul.mubr.bf16.gmra.mrb[152].mxu0 %v12060_v0 }
0x153b   : > { %12475 = vmatpush1.bf16.msra.mxu0 %v12060_v0  ;;  %13985 = vmatprep.mubr.msk.bf16.mxu1 %vm1775_vm3, %v17714_v47 }
0x153c   : > { %13997 = vmatprep.mubr.msk.bf16.mxu0 %vm1775_vm3, %v17725_v61 }
0x1542   : > { %12491 = vmatmul.mubr.bf16.vlgmr.msra.gmra.mrb[156].mxu0 %v17723_v9 }
0x1543   : > { %13998 = vmatprep.mubr.msk.bf16.mxu0 %vm1775_vm3, %v17731_v30 }
0x154a   : > { %12499 = vmatmul.mubr.bf16.gmra.mrb[160].mxu0 %v17729_v55 }
0x154b   : > { %13999 = vmatprep.mubr.msk.bf16.mxu0 %vm1775_vm3, %v17737_v53 }
0x1552   : > { %12507 = vmatmul.mubr.bf16.gmra.mrb[164].mxu0 %v17735_v57 }
0x1553   : > { %14000 = vmatprep.mubr.msk.bf16.mxu0 %vm1775_vm3, %v13996_v25 }
0x155a   : > { %12515 = vmatmul.mubr.bf16.gmra.mrb[168].mxu0 %v13995_v32 }
0x15cd   : > { %v12095_v29 = vpop.f32.mrb[212].mxu1  ;;  %v22292_v39 = vpop.f32.mrb[120].mxu0 }
0x15ce   : > { %v16515_v60 = vpop.f32.mrb[213].mxu1  ;;  %v16567_v35 = vpop.f32.mrb[121].mxu0 }
0x15cf   : > { %v12098_v40 = vpop.f32.mrb[214].mxu1  ;;  %v22294_v11 = vpop.f32.mrb[122].mxu0 }
0x15d0   : > { %v12166_v28 = vpack.c.bf16 %v12098_v40, %v12095_v29  ;;  %v12280_v50 = vpack.c.bf16 %v22294_v11, %v22292_v39  ;;  %v16516_v44 = vpop.f32.mrb[215].mxu1  ;;  %v16568_v48 = vpop.f32.mrb[123].mxu0  ;;  %v12303_v39 = vld [vmem:[%s22441_s13 + $0x30] sm:$0x77]  ;;  %v17718_v11 = vld [vmem:[%s22441_s13 + $0x20] ss:$8 sps:$4 sm:$0xff]  }
0x15d2   : > { %12350 = vmatpush1.bf16.msra.mxu1 %v12166_v28 }
0x15d3   : > { %12351 = vmatprep.subr.bf16.mxu1 %v22504_v34 }
0x15d5   : > { %v12103_v24 = vpop.f32.mrb[216].mxu1  ;;  %v22299_v58 = vpop.f32.mrb[124].mxu0 }
0x15d6   : > { %v16519_v14 = vpop.f32.mrb[217].mxu1  ;;  %v16571_v26 = vpop.f32.mrb[125].mxu0 }
0x15d7   : > { %v12106_v1 = vpop.f32.mrb[218].mxu1  ;;  %v22301_v43 = vpop.f32.mrb[126].mxu0 }
0x15d8   : > { %v12167_v52 = vpack.c.bf16 %v12106_v1, %v12103_v24  ;;  %v12281_v62 = vpack.c.bf16 %v22301_v43, %v22299_v58  ;;  %v16520_v20 = vpop.f32.mrb[219].mxu1  ;;  %v16572_v10 = vpop.f32.mrb[127].mxu0  ;;  %v13983_v58 = vcombine.low %v12303_v39, %v12303_v39  ;;  %v17728_v43 = vld [vmem:[%s22441_s13 + $0x74] ss:$8 sps:$4 sm:$0xff]  }
0x15da   : > { %12352 = vmatpush1.bf16.msra.mxu1 %v12167_v52 }
0x15db   : > { %12353 = vmatprep.subr.bf16.mxu1 %v22504_v34 }
0x15dd   : > { %v12111_v38 = vpop.f32.mrb[220].mxu1  ;;  %v22306_v19 = vpop.f32.mrb[128].mxu0 }
0x15de   : > { %v16523_v37 = vpop.f32.mrb[221].mxu1  ;;  %v16575_v63 = vpop.f32.mrb[129].mxu0 }
0x15df   : > { %v12114_v23 = vpop.f32.mrb[222].mxu1  ;;  %v22308_v15 = vpop.f32.mrb[130].mxu0 }
0x15e0   : > { %v12168_v42 = vpack.c.bf16 %v12114_v23, %v12111_v38  ;;  %v12282_v16 = vpack.c.bf16 %v22308_v15, %v22306_v19  ;;  %v16524_v21 = vpop.f32.mrb[223].mxu1  ;;  %v16576_v7 = vpop.f32.mrb[131].mxu0  ;;  %v17734_v19 = vld [vmem:[%s22441_s13 + $0x84] ss:$8 sps:$4 sm:$0xff]   ;;  %v17732_v15 = vld [vmem:[%s22441_s13 + $0x80] ss:$8 sps:$4 sm:$0xff]  }
0x15e2   : > { %12354 = vmatpush1.bf16.msra.mxu1 %v12168_v42 }
0x15e3   : > { %12355 = vmatprep.subr.bf16.mxu1 %v22504_v34 }
0x15e5   : > { %v12119_v45 = vpop.f32.mrb[224].mxu1  ;;  %v22313_v6 = vpop.f32.mrb[132].mxu0 }
0x15e6   : > { %v16527_v2 = vpop.f32.mrb[225].mxu1  ;;  %v16579_v33 = vpop.f32.mrb[133].mxu0 }
0x15e7   : > { %v12122_v3 = vpop.f32.mrb[226].mxu1  ;;  %v22315_v17 = vpop.f32.mrb[134].mxu0 }
0x15e8   : > { %v12169_v31 = vpack.c.bf16 %v12122_v3, %v12119_v45  ;;  %v12283_v22 = vpack.c.bf16 %v22315_v17, %v22313_v6  ;;  %v16528_v8 = vpop.f32.mrb[227].mxu1  ;;  %v16580_v18 = vpop.f32.mrb[135].mxu0  ;;  %v17738_v6 = vld [vmem:[%s22441_s13 + $0x90] ss:$8 sps:$4 sm:$0xff]  }
0x15e9   : > { %v17712_v18 = vld [vmem:[%s22441_s13] ss:$8 sps:$4 sm:$0xff]  }
0x15ea   : > { %12356 = vmatpush1.bf16.msra.mxu1 %v12169_v31 }
0x15eb   : > { %12357 = vmatprep.subr.bf16.mxu1 %v22504_v34 }
0x15ed   : > { %v12127_v41 = vpop.f32.mrb[228].mxu1  ;;  %v22320_v5 = vpop.f32.mrb[136].mxu0 }
0x15ee   : > { %v16531_v59 = vpop.f32.mrb[229].mxu1  ;;  %v16583_v49 = vpop.f32.mrb[137].mxu0 }
0x15ef   : > { %v12130_v54 = vpop.f32.mrb[230].mxu1  ;;  %v22322_v12 = vpop.f32.mrb[138].mxu0  ;;  %v17715_v59 = vld [vmem:[%s22441_s13 + $0x10] ss:$8 sps:$4 sm:$0xff]   ;;  %v17720_v49 = vld [vmem:[%s22441_s13 + $0x24] ss:$8 sps:$4 sm:$0xff]  }
0x15f0   : > { %v12170_v46 = vpack.c.bf16 %v12130_v54, %v12127_v41  ;;  %v12284_v51 = vpack.c.bf16 %v22322_v12, %v22320_v5  ;;  %v16532_v13 = vpop.f32.mrb[231].mxu1  ;;  %v16584_v4 = vpop.f32.mrb[139].mxu0  ;;  %v17717_v41 = vld [vmem:[%s22441_s13 + $0x14] ss:$8 sps:$4 sm:$0xff]  }
0x15f2   : > { %12358 = vmatpush1.bf16.msra.mxu1 %v12170_v46 }
0x15f3   : > { %12359 = vmatprep.subr.bf16.mxu1 %v22504_v34 }
0x15f5   : > { %v12135_v36 = vpop.f32.mrb[232].mxu1  ;;  %v22327_v27 = vpop.f32.mrb[140].mxu0 }
0x15f6   : > { %v16535_v0 = vpop.f32.mrb[233].mxu1  ;;  %v16587_v47 = vpop.f32.mrb[141].mxu0 }
0x15f7   : > { %v12138_v61 = vpop.f32.mrb[234].mxu1  ;;  %v22329_v9 = vpop.f32.mrb[142].mxu0 }
0x15f8   : > { %v12171_v30 = vpack.c.bf16 %v12138_v61, %v12135_v36  ;;  %v12285_v55 = vpack.c.bf16 %v22329_v9, %v22327_v27  ;;  %v16536_v53 = vpop.f32.mrb[235].mxu1  ;;  %v16588_v57 = vpop.f32.mrb[143].mxu0 }
0x15fa   : > { %12360 = vmatpush1.bf16.msra.mxu1 %v12171_v30 }
0x15fb   : > { %12361 = vmatprep.subr.bf16.mxu1 %v22504_v34 }
0x15fd   : > { %v12143_v56 = vpop.f32.mrb[236].mxu1  ;;  %v22334_v25 = vpop.f32.mrb[144].mxu0 }
0x15fe   : > { %v16539_v32 = vpop.f32.mrb[237].mxu1  ;;  %v16591_v29 = vpop.f32.mrb[145].mxu0 }
0x15ff   : > { %v12146_v60 = vpop.f32.mrb[238].mxu1  ;;  %v12260_v35 = vpop.f32.mrb[146].mxu0 }
0x1600   : > { %v12172_v40 = vpack.c.bf16 %v12146_v60, %v12143_v56  ;;  %v12286_v28 = vpack.c.bf16 %v12260_v35, %v22334_v25  ;;  %v16540_v44 = vpop.f32.mrb[239].mxu1  ;;  %v16592_v48 = vpop.f32.mrb[147].mxu0 }
0x1602   : > { %12362 = vmatpush1.bf16.msra.mxu1 %v12172_v40 }
0x1603   : > { %12363 = vmatprep.subr.bf16.mxu1 %v22504_v34 }
0x1605   : > { %v12151_v24 = vpop.f32.mrb[240].mxu1  ;;  %v12265_v14 = vpop.f32.mrb[148].mxu0 }
0x1606   : > { %v16543_v26 = vpop.f32.mrb[241].mxu1  ;;  %v16595_v1 = vpop.f32.mrb[149].mxu0 }
0x1607   : > { %v12154_v52 = vpop.f32.mrb[242].mxu1  ;;  %v12268_v20 = vpop.f32.mrb[150].mxu0 }
0x1608   : > { %v12173_v10 = vpack.c.bf16 %v12154_v52, %v12151_v24  ;;  %v12287_v38 = vpack.c.bf16 %v12268_v20, %v12265_v14  ;;  %v16544_v37 = vpop.f32.mrb[243].mxu1  ;;  %v16596_v63 = vpop.f32.mrb[151].mxu0 }
0x160a   : > { %12364 = vmatpush1.bf16.msra.mxu1 %v12173_v10 }
0x160b   : > { %12365 = vmatprep.subr.bf16.mxu1 %v22504_v34 }
0x160d   : > { %v12159_v23 = vpop.f32.mrb[244].mxu1  ;;  %v12273_v42 = vpop.f32.mrb[152].mxu0 }
0x160e   : > { %v16547_v21 = vpop.f32.mrb[245].mxu1  ;;  %v16599_v7 = vpop.f32.mrb[153].mxu0 }
0x160f   : > { %v12162_v45 = vpop.f32.mrb[246].mxu1  ;;  %v12276_v2 = vpop.f32.mrb[154].mxu0 }
0x1610   : > { %v12174_v33 = vpack.c.bf16 %v12162_v45, %v12159_v23  ;;  %v12288_v3 = vpack.c.bf16 %v12276_v2, %v12273_v42  ;;  %v16548_v31 = vpop.f32.mrb[247].mxu1  ;;  %v16600_v8 = vpop.f32.mrb[155].mxu0 }
0x1611   : > { %v12656_v2 = vpop.permute.xlu0 %12655 }
0x1612   : > { %12366 = vmatpush1.bf16.msra.mxu1 %v12174_v33 }
0x1613   : > { %12575 = vmatprep.subr.bf16.mxu1 %v22504_v34 }
0x1615   : > { %12382 = vmatmul.mubr.bf16.vlgmr.msra.gmra.mrb[248].mxu1 %v17712_v18  ;;  %v12492_v5 = vpop.f32.mrb[156].mxu0  ;;  %v12661_v18 = vpop.permute.xlu1 %12660 }
0x1616   : > { %12576 = vmatpush1.bf16.msra.mxu1 %v12280_v50  ;;  %13986 = vmatprep.mubr.msk.bf16.mxu1 %vm1775_vm3, %v17717_v41  ;;  %v13984_v50 = vcombine.high %v12303_v39, %v12303_v39  ;;  %v12494_v54 = vpop.f32.mrb[157].mxu0 }
0x1617   : > { %12577 = vmatprep.subr.bf16.mxu1 %v22504_v34  ;;  %v12495_v12 = vpop.f32.mrb[158].mxu0 }
0x1618   : > { %v12497_v46 = vpop.f32.mrb[159].mxu0 }
0x161a   : > { %12578 = vmatpush1.bf16.msra.mxu1 %v12281_v62  ;;  %v17726_v62 = vld [vmem:[%s22441_s13 + $0x70] ss:$8 sps:$4 sm:$0xff]  }
0x161b   : > { %12579 = vmatprep.subr.bf16.mxu1 %v22504_v34 }
0x161d   : > { %12390 = vmatmul.mubr.bf16.gmra.mrb[252].mxu1 %v17715_v59 }
0x161e   : > { %12580 = vmatpush1.bf16.msra.mxu1 %v12282_v16  ;;  %13987 = vmatprep.mubr.msk.bf16.mxu1 %vm1775_vm3, %v17720_v49  ;;  %v14007_v16 = vld [vmem:[%s22441_s13 + $0xa0] sm:$0x77] }
0x161f   : > { %12581 = vmatprep.subr.bf16.mxu1 %v22504_v34  ;;  %v14015_v17 = vcombine.high %v14007_v16, %v14007_v16 }
0x1622   : > { %12582 = vmatpush1.bf16.msra.mxu1 %v12283_v22  ;;  %v14014_v22 = vcombine.low %v14007_v16, %v14007_v16 }
0x1623   : > { %12583 = vmatprep.subr.bf16.mxu1 %v22504_v34 }
0x1625   : > { %12398 = vmatmul.mubr.bf16.gmra.mrb[0].mxu1 %v17718_v11  ;;  %v12666_v11 = vpop.permute.xlu0 %12665 }
0x1626   : > { %12584 = vmatpush1.bf16.msra.mxu1 %v12284_v51  ;;  %13988 = vmatprep.mubr.msk.bf16.mxu1 %vm1775_vm3, %v13984_v50  ;;  %v12500_v51 = vpop.f32.mrb[160].mxu0 }
0x1627   : > { %12585 = vmatprep.subr.bf16.mxu1 %v22504_v34  ;;  %v12502_v13 = vpop.f32.mrb[161].mxu0 }
0x1628   : > { %v12503_v4 = vpop.f32.mrb[162].mxu0 }
0x1629   : > { %v12505_v36 = vpop.f32.mrb[163].mxu0 }
0x162a   : > { %12586 = vmatpush1.bf16.msra.mxu1 %v12285_v55  ;;  %v12508_v27 = vpop.f32.mrb[164].mxu0 }
0x162b   : > { %12587 = vmatprep.subr.bf16.mxu1 %v22504_v34  ;;  %v12510_v0 = vpop.f32.mrb[165].mxu0 }
0x162c   : > { %v12511_v47 = vpop.f32.mrb[166].mxu0 }
0x162d   : > { %12406 = vmatmul.mubr.bf16.gmra.mrb[4].mxu1 %v13983_v58  ;;  %v12513_v61 = vpop.f32.mrb[167].mxu0 }
0x162e   : > { %12588 = vmatpush1.bf16.msra.mxu1 %v12286_v28  ;;  %14016 = vmatprep.mubr.msk.bf16.mxu1 %vm1775_vm3, %v17728_v43  ;;  %v12516_v9 = vpop.f32.mrb[168].mxu0 }
0x162f   : > { %12589 = vmatprep.subr.bf16.mxu1 %v22504_v34  ;;  %v12518_v30 = vpop.f32.mrb[169].mxu0 }
0x1630   : > { %v12519_v55 = vpop.f32.mrb[170].mxu0 }
0x1631   : > { %v12520_v53 = vpop.f32.mrb[171].mxu0 }
0x1632   : > { %12590 = vmatpush1.bf16.msra.mxu1 %v12287_v38 }
0x1633   : > { %12591 = vmatprep.subr.bf16.mxu1 %v22504_v34  ;;  %v17740_v34 = vld [vmem:[%s22441_s13 + $0x94] ss:$8 sps:$4 sm:$0xff]  }
0x1636   : > { %12592 = vmatpush1.bf16.msra.mxu1 %v12288_v3 }
0x1639   : > { %12608 = vmatmul.mubr.bf16.vlgmr.msra.gmra.mrb[8].mxu1 %v17726_v62 }
0x163a   : > { %14017 = vmatprep.mubr.msk.bf16.mxu1 %vm1775_vm3, %v17734_v19  ;;  %v12671_v19 = vpop.permute.xlu1 %12670 }
0x163e   : > { %v12681_v46 = vpop.permute.xlu1 %12680 }
0x1641   : > { %12616 = vmatmul.mubr.bf16.gmra.mrb[32].mxu1 %v17732_v15 }
0x1642   : > { %14018 = vmatprep.mubr.msk.bf16.mxu1 %vm1775_vm3, %v17740_v34 }
0x1649   : > { %12624 = vmatmul.mubr.bf16.gmra.mrb[36].mxu1 %v17738_v6 }
0x164a   : > { %14019 = vmatprep.mubr.msk.bf16.mxu1 %vm1775_vm3, %v14015_v17  ;;  %v12676_v17 = vpop.permute.xlu0 %12675 }
0x1651   : > { %12632 = vmatmul.mubr.bf16.gmra.mrb[40].mxu1 %v14014_v22 }
0x16e8   : > { %v12383_v57 = vpop.f32.mrb[248].mxu1 }
0x16e9   : > { %v12385_v56 = vpop.f32.mrb[249].mxu1  ;;  %v12493_v25 = vadd.f32 %v12492_v5, %v12383_v57 }
0x16ea   : > { %v12386_v32 = vpop.f32.mrb[250].mxu1 }
0x16eb   : > { %v12388_v29 = vpop.f32.mrb[251].mxu1  ;;  %v12496_v60 = vadd.f32 %v12495_v12, %v12386_v32 }
0x16f0   : > { %v12391_v35 = vpop.f32.mrb[252].mxu1 }
0x16f1   : > { %v12393_v40 = vpop.f32.mrb[253].mxu1  ;;  %v12501_v28 = vadd.f32 %v12500_v51, %v12391_v35 }
0x16f2   : > { %v12394_v44 = vpop.f32.mrb[254].mxu1 }
0x16f3   : > { %v12396_v48 = vpop.f32.mrb[255].mxu1  ;;  %v12504_v24 = vadd.f32 %v12503_v4, %v12394_v44 }
0x16f8   : > { %v12399_v14 = vpop.f32.mrb[0].mxu1 }
0x16f9   : > { %v12401_v26 = vpop.f32.mrb[1].mxu1  ;;  %v12509_v1 = vadd.f32 %v12508_v27, %v12399_v14  ;;  %v12686_v27 = vpop.permute.xlu0 %12685 }
0x16fa   : > { %v12402_v52 = vpop.f32.mrb[2].mxu1 }
0x16fb   : > { %v12404_v20 = vpop.f32.mrb[3].mxu1  ;;  %v12512_v10 = vadd.f32 %v12511_v47, %v12402_v52 }
0x1700   : > { %v12407_v38 = vpop.f32.mrb[4].mxu1 }
0x1701   : > { %v12409_v37 = vpop.f32.mrb[5].mxu1  ;;  %v12517_v63 = vadd.f32 %v12516_v9, %v12407_v38 }
0x1702   : > { %v12410_v23 = vpop.f32.mrb[6].mxu1 }
0x1703   : > { %v12411_v42 = vpop.f32.mrb[7].mxu1 }
0x170c   : > { %v12609_v21 = vpop.f32.mrb[8].mxu1 }
0x170d   : > { %v12639_v7 = vadd.f32 %v12609_v21, %v12493_v25  ;;  %v12611_v45 = vpop.f32.mrb[9].mxu1 }
0x170e   : > { %v12612_v33 = vpop.f32.mrb[10].mxu1 }
0x170f   : > { %v12688_v3 = vadd.f32 %v12656_v2, %v12639_v7  ;;  %v12640_v31 = vadd.f32 %v12612_v33, %v12496_v60  ;;  %v12614_v8 = vpop.f32.mrb[11].mxu1 }
0x1711   : > { %12695 = vst [vmem:[%s22416_s25] sm:$0xff] %v12688_v3  ;;  %v12689_v41 = vadd.f32 %v12661_v18, %v12640_v31 }
0x1713   : > { %12696 = vst [vmem:[%s22416_s25 + $0x8] sm:$0xff] %v12689_v41 }
0x1714   : > { %v12617_v59 = vpop.f32.mrb[32].mxu1 }
0x1715   : > { %v12641_v49 = vadd.f32 %v12617_v59, %v12501_v28  ;;  %v12619_v39 = vpop.f32.mrb[33].mxu1 }
0x1716   : > { %v12620_v50 = vpop.f32.mrb[34].mxu1 }
0x1717   : > { %v12690_v58 = vadd.f32 %v12666_v11, %v12641_v49  ;;  %v12642_v43 = vadd.f32 %v12620_v50, %v12504_v24  ;;  %v12622_v62 = vpop.f32.mrb[35].mxu1 }
0x1719   : > { %12697 = vst [vmem:[%s22416_s25 + $0x10] sm:$0xff] %v12690_v58  ;;  %v12691_v15 = vadd.f32 %v12671_v19, %v12642_v43 }
0x171b   : > { %12698 = vst [vmem:[%s22416_s25 + $0x18] sm:$0xff] %v12691_v15 }
0x171c   : > { %v12625_v34 = vpop.f32.mrb[36].mxu1 }
0x171d   : > { %v12643_v16 = vadd.f32 %v12625_v34, %v12509_v1  ;;  %v12627_v6 = vpop.f32.mrb[37].mxu1 }
0x171e   : > { %v12628_v22 = vpop.f32.mrb[38].mxu1 }
0x171f   : > { %v12692_v5 = vadd.f32 %v12676_v17, %v12643_v16  ;;  %v12644_v54 = vadd.f32 %v12628_v22, %v12512_v10  ;;  %v12630_v12 = vpop.f32.mrb[39].mxu1 }
0x1721   : > { %12699 = vst [vmem:[%s22416_s25 + $0x20] sm:$0xff] %v12692_v5  ;;  %v12693_v51 = vadd.f32 %v12681_v46, %v12644_v54 }
0x1723   : > { %12700 = vst [vmem:[%s22416_s25 + $0x28] sm:$0xff] %v12693_v51 }
0x1724   : > { %v12633_v13 = vpop.f32.mrb[40].mxu1 }
0x1725   : > { %v12645_v4 = vadd.f32 %v12633_v13, %v12517_v63  ;;  %v12635_v36 = vpop.f32.mrb[41].mxu1 }
0x1726   : > { %v12636_v0 = vpop.f32.mrb[42].mxu1 }
0x1727   : > { %v12694_v47 = vadd.f32 %v12686_v27, %v12645_v4  ;;  %v12637_v61 = vpop.f32.mrb[43].mxu1 }
0x1729   : > { %12701 = vst [vmem:[%s22416_s25 + $0x30] sm:$0x3f] %v12694_v47 }
0x172a PF: > { %s30_s1 = sadd.s32 1, %s17815_s1  }
0x172b   : > { %p27_p4 = scmp.ge.s32.totalorder %s30_s1, 4  }
0x172d   :  { %29 = sbr.rel (!%p27_p4) target bundleno = 6 (0x6), region = 146 }

</bundles_post_ra>
